<compile_context>
chip_gen: v7x
topology: tpu7x:2x2x1
jax: 0.10.0
libtpu: 0.0.40
codegen_flags: <defaults>
</compile_context>

<pallas_src>
import functools

import jax
import jax.numpy as jnp
import numpy as np
from jax import lax
from jax.experimental import pallas as pl
from jax.experimental.pallas import tpu as pltpu


PAD = 128   # lane halo on each side of the folded-activation scratch (lane-aligned)


# --------------------------------------------------------------------------
# Host-side constant builders (run once, outside the jitted forward).
# --------------------------------------------------------------------------
def interp_matrix(out_size, in_size):
    """(out, in) row matrix reproducing torch bilinear, align_corners=False."""
    scale = in_size / out_size
    dst = np.arange(out_size, dtype=np.float64)
    src = np.maximum((dst + 0.5) * scale - 0.5, 0.0)
    i0 = np.clip(np.floor(src).astype(np.int64), 0, in_size - 1)
    i1 = np.minimum(i0 + 1, in_size - 1)
    w1 = src - i0
    w0 = 1.0 - w1
    a = np.zeros((out_size, in_size), np.float64)
    a[np.arange(out_size), i0] += w0
    a[np.arange(out_size), i1] += w1
    return a.astype(np.float32)


def build_interp_bt(hs, ws, hp, wp):
    """(hp*wp, hs*ws) matrix Bt such that flat(pm) @ Bt == flat(bilinear(pm))."""
    ah = interp_matrix(hs, hp)          # (hs, hp)
    aw = interp_matrix(ws, wp)          # (ws, wp)
    b = np.kron(ah, aw)                 # (hs*ws, hp*wp)
    return np.ascontiguousarray(b.T.astype(np.float32))


def tap_masks(h, w, b_tile):
    """(9, b_tile*h*w) {0,1} tap-validity masks, tiled per folded image."""
    hh, ww = np.meshgrid(np.arange(h), np.arange(w), indexing="ij")
    hh = hh.reshape(-1)
    ww = ww.reshape(-1)
    m = np.zeros((9, h * w), np.float32)
    t = 0
    for dy in (-1, 0, 1):
        for dx in (-1, 0, 1):
            valid = (hh + dy >= 0) & (hh + dy < h) & (ww + dx >= 0) & (ww + dx < w)
            m[t] = valid.astype(np.float32)
            t += 1
    return np.tile(m, (1, b_tile))


def tap_offsets(w):
    """Flat (row-major h*W + w) source offsets of the 9 taps."""
    return tuple(dy * w + dx for dy in (-1, 0, 1) for dx in (-1, 0, 1))


def pack_conv(w, b):
    """torch (Cout, Cin, 3, 3) + (Cout,) -> bf16 (Cout, 9*Cin + 8).

    Tap-major im2col layout; the bias is folded into column 9*Cin (multiplied
    by a ones row appended to the patches), columns 9*Cin+1.. are zero padding
    so K stays a multiple of 8.
    """
    cout, cin = w.shape[0], w.shape[1]
    wm = jnp.transpose(w, (0, 2, 3, 1)).reshape(cout, 9 * cin)
    wfull = jnp.zeros((cout, 9 * cin + 8), jnp.float32)
    wfull = wfull.at[:, :9 * cin].set(wm)
    wfull = wfull.at[:, 9 * cin].set(b)
    return wfull.astype(jnp.bfloat16)


# --------------------------------------------------------------------------
# Fused Refine kernel (B_TILE batch elements folded onto lanes per grid step).
# --------------------------------------------------------------------------
def refine_kernel(f_ref, pm_ref,
                  wfs_ref, w1f_ref, w2f_ref, w1m_ref, w2m_ref,
                  bt_ref, masks_ref, o_ref,
                  xpad_ref, patch_ref,
                  *, offsets, b_tile):
    bhw = o_ref.shape[-1]                     # b_tile * H * W lanes
    cmax = xpad_ref.shape[0]

    # Zero the lane halos once per step; later writes never touch them, so any
    # shifted read that falls into the halo sees exact zeros (no NaN*0 hazards).
    xpad_ref[:, 0:PAD] = jnp.zeros((cmax, PAD), jnp.float32)
    xpad_ref[:, PAD + bhw:PAD + bhw + PAD] = jnp.zeros((cmax, PAD), jnp.float32)

    # Tap-validity masks, loaded once (already tiled per folded image, so they
    # also zero lanes whose shifted source crosses an image boundary).
    mask_rows = [masks_ref[t:t + 1, :] for t in range(9)]

    # "ones row + 7 zero rows" block that folds the bias into the matmul.
    bias_pad = (lax.broadcasted_iota(jnp.int32, (8, bhw), 0) == 0).astype(jnp.float32)

    def conv3x3(x, w_ref, relu):
        # x: (Cin, BHW) f32 -> (Cout, BHW) f32; one K = 9*Cin+8 bf16 MXU matmul.
        kpad = w_ref.shape[1]
        cin = (kpad - 8) // 9
        xi = jnp.maximum(x, 0.0) if relu else x              # elementwise stays f32
        xpad_ref[0:cin, PAD:PAD + bhw] = xi                  # lane-aligned store
        for t, off in enumerate(offsets):
            if off == 0:
                tap = xi
            else:
                tap = xpad_ref[0:cin, PAD + off:PAD + off + bhw] * mask_rows[t]
            patch_ref[t * cin:(t + 1) * cin, :] = tap
        patch_ref[9 * cin:9 * cin + 8, :] = bias_pad
        return jnp.dot(w_ref[...],                            # bf16 weights
                       patch_ref[0:kpad, :].astype(jnp.bfloat16),
                       preferred_element_type=jnp.float32)    # f32 accumulation

    f = f_ref[...]                                            # (Cin, BHW)
    s0 = conv3x3(f, wfs_ref, relu=False)                      # convFS
    r = conv3x3(s0, w1f_ref, relu=True)                       # ResFS.conv1(relu)
    r = conv3x3(r, w2f_ref, relu=True)                        # ResFS.conv2(relu)
    s = s0 + r

    # Bilinear upsample of each folded image's pm + residual add.
    bt = bt_ref[...]                                          # (Hp*Wp, H*W) bf16
    ups = [jnp.dot(pm_ref[b].astype(jnp.bfloat16), bt,
                   preferred_element_type=jnp.float32)
           for b in range(b_tile)]
    up = ups[0] if b_tile == 1 else jnp.concatenate(ups, axis=1)
    m0 = s + up

    r = conv3x3(m0, w1m_ref, relu=True)                       # ResMM.conv1(relu)
    r = conv3x3(r, w2m_ref, relu=True)                        # ResMM.conv2(relu)
    o_ref[...] = (m0 + r).astype(o_ref.dtype)                 # lane-dense store


def make_refine(params, inplanes, planes, h, w, hp, wp, b_tile,
                single_buffer_consts=True):
    """Returns a jitted (f_nchw, pm_nchw) -> m_nchw callable."""
    hw, hpwp = h * w, hp * wp
    bhw = b_tile * hw
    cin_max = max(inplanes, planes)
    kmax = 9 * cin_max + 8

    wfs = pack_conv(params["fs_w"], params["fs_b"])
    w1f = pack_conv(params["fs1_w"], params["fs1_b"])
    w2f = pack_conv(params["fs2_w"], params["fs2_b"])
    w1m = pack_conv(params["mm1_w"], params["mm1_b"])
    w2m = pack_conv(params["mm2_w"], params["mm2_b"])
    bt = jnp.asarray(build_interp_bt(h, w, hp, wp)).astype(jnp.bfloat16)
    masks = jnp.asarray(tap_masks(h, w, b_tile))
    consts = (wfs, w1f, w2f, w1m, w2m, bt, masks)

    kernel = functools.partial(refine_kernel, offsets=tap_offsets(w), b_tile=b_tile)

    def const_spec(a):
        idx = lambda n: (0,) * a.ndim
        if single_buffer_consts:
            # Constant index map -> no re-DMA; single-buffer to halve footprint.
            return pl.BlockSpec(a.shape, idx, pipeline_mode=pl.Buffered(1))
        return pl.BlockSpec(a.shape, idx)

    # VMEM budget sized from the real working set (double-buffered I/O blocks,
    # constants, scratches) with generous headroom; matters on v7x's 64 MiB.
    def nbytes(shape, dt):
        return int(np.prod(shape)) * jnp.dtype(dt).itemsize
    io_bytes = 2 * (nbytes((inplanes, bhw), jnp.float32)
                    + nbytes((b_tile, planes, hpwp), jnp.float32)
                    + nbytes((planes, bhw), jnp.float32))
    const_mult = 1 if single_buffer_consts else 2
    const_bytes = const_mult * sum(int(a.size) * a.dtype.itemsize for a in consts)
    scratch_bytes = (nbytes((cin_max, PAD + bhw + PAD), jnp.float32)
                     + nbytes((kmax, bhw), jnp.float32))
    vmem_limit = int(min(100 * 2 ** 20,
                         max(16 * 2 ** 20,
                             4 * (io_bytes + const_bytes + scratch_bytes))))

    @jax.jit
    def fwd(f_nchw, pm_nchw):
        nb = f_nchw.shape[0]
        assert nb % b_tile == 0, "batch must be divisible by the batch tile"
        steps = nb // b_tile
        # Layout plumbing only: present (C, N*H*W) lane-dense slabs to the kernel.
        f_fold = jnp.transpose(f_nchw.reshape(nb, inplanes, hw),
                               (1, 0, 2)).reshape(inplanes, nb * hw)
        pm_in = pm_nchw.reshape(nb, planes, hpwp)
        out = pl.pallas_call(
            kernel,
            out_shape=jax.ShapeDtypeStruct((planes, nb * hw), jnp.float32),
            grid=(steps,),
            in_specs=[
                pl.BlockSpec((inplanes, bhw), lambda n: (0, n)),
                pl.BlockSpec((b_tile, planes, hpwp), lambda n: (n, 0, 0)),
                *[const_spec(a) for a in consts],
            ],
            out_specs=pl.BlockSpec((planes, bhw), lambda n: (0, n)),
            scratch_shapes=[
                pltpu.VMEM((cin_max, PAD + bhw + PAD), jnp.float32),  # padded act
                pltpu.VMEM((kmax, bhw), jnp.float32),                 # im2col patches
            ],
            compiler_params=pltpu.CompilerParams(
                dimension_semantics=("parallel",),
                vmem_limit_bytes=vmem_limit),
        )(f_fold, pm_in, *consts)
        return jnp.transpose(out.reshape(planes, nb, h, w), (1, 0, 2, 3))

    return fwd


# --------------------------------------------------------------------------
# Pure-JAX (XLA) reference of the same graph, mirroring the kernel's bf16
# MXU operands (f32 accumulation), for verification.
# --------------------------------------------------------------------------
def _q(x):
    return x.astype(jnp.bfloat16).astype(jnp.float32)


def conv3x3_ref(x, w, b):
    y = jax.lax.conv_general_dilated(
        _q(x), _q(w), window_strides=(1, 1), padding=((1, 1), (1, 1)),
        dimension_numbers=("NCHW", "OIHW", "NCHW"),
        precision=jax.lax.Precision.HIGHEST)
    return y + _q(b)[None, :, None, None]


def refine_ref(f, pm, p, bt_f32):
    s0 = conv3x3_ref(f, p["fs_w"], p["fs_b"])
    r = conv3x3_ref(jax.nn.relu(s0), p["fs1_w"], p["fs1_b"])
    r = conv3x3_ref(jax.nn.relu(r), p["fs2_w"], p["fs2_b"])
    s = s0 + r
    n, c, hh, ww = s.shape
    up = jnp.einsum("ncq,qp->ncp", _q(pm.reshape(n, c, -1)), bt_f32,
                    precision=jax.lax.Precision.HIGHEST).reshape(n, c, hh, ww)
    m0 = s + up
    r = conv3x3_ref(jax.nn.relu(m0), p["mm1_w"], p["mm1_b"])
    r = conv3x3_ref(jax.nn.relu(r), p["mm2_w"], p["mm2_b"])
    return m0 + r


def init_params(key, inplanes, planes):
    ks = jax.random.split(key, 10)

    def wconv(k, cout, cin):  # torch nn.Conv2d weight layout (Cout, Cin, 3, 3)
        return 0.1 * jax.random.normal(k, (cout, cin, 3, 3), jnp.float32)

    def bias(k, cout):
        return 0.05 * jax.random.normal(k, (cout,), jnp.float32)

    return {
        "fs_w": wconv(ks[0], planes, inplanes), "fs_b": bias(ks[1], planes),
        "fs1_w": wconv(ks[2], planes, planes), "fs1_b": bias(ks[3], planes),
        "fs2_w": wconv(ks[4], planes, planes), "fs2_b": bias(ks[5], planes),
        "mm1_w": wconv(ks[6], planes, planes), "mm1_b": bias(ks[7], planes),
        "mm2_w": wconv(ks[8], planes, planes), "mm2_b": bias(ks[9], planes),
    }


if __name__ == "__main__":
    key = jax.random.PRNGKey(0)
    k_f, k_pm, k_p = jax.random.split(key, 3)

    inplanes, planes = 16, 8
    n, h, w = 4, 16, 16          # fine feature map size (NCHW, PyTorch interface)
    hp, wp = 8, 8                # coarse mask, bilinearly upsampled to (h, w)
    b_tile = 2                   # images folded onto lanes per grid step (2 steps)

    f = jax.random.normal(k_f, (n, inplanes, h, w), jnp.float32)
    pm = jax.random.normal(k_pm, (n, planes, hp, wp), jnp.float32)
    params = init_params(k_p, inplanes, planes)

    try:
        fwd = make_refine(params, inplanes, planes, h, w, hp, wp, b_tile,
                          single_buffer_consts=True)
        out = jax.block_until_ready(fwd(f, pm))
    except Exception:
        # pl.Buffered(1) on the constant operands is a pure VMEM optimization;
        # fall back to default double-buffered constant specs if unsupported.
        fwd = make_refine(params, inplanes, planes, h, w, hp, wp, b_tile,
                          single_buffer_consts=False)
        out = jax.block_until_ready(fwd(f, pm))

    assert out.shape == (n, planes, h, w)
    assert out.dtype == jnp.float32

    bt_f32 = jnp.asarray(build_interp_bt(h, w, hp, wp)).astype(jnp.bfloat16)\
                                                       .astype(jnp.float32)
    ref = jax.block_until_ready(refine_ref(f, pm, params, bt_f32))
    np.testing.assert_allclose(np.asarray(out), np.asarray(ref),
                               rtol=2e-2, atol=2e-2)
    print("KERNEL_OK")
</pallas_src>

<mosaic_0001>
module attributes {stable_mosaic.version = 11 : i64} {
  func.func @refine_kernel(%arg0: i32, %arg1: memref<16x512xf32, #tpu.memory_space<vmem>>, %arg2: memref<2x8x64xf32, #tpu.memory_space<vmem>>, %arg3: memref<8x152xbf16, #tpu.memory_space<vmem>>, %arg4: memref<8x80xbf16, #tpu.memory_space<vmem>>, %arg5: memref<8x80xbf16, #tpu.memory_space<vmem>>, %arg6: memref<8x80xbf16, #tpu.memory_space<vmem>>, %arg7: memref<8x80xbf16, #tpu.memory_space<vmem>>, %arg8: memref<64x256xbf16, #tpu.memory_space<vmem>>, %arg9: memref<9x512xf32, #tpu.memory_space<vmem>>, %arg10: memref<8x512xf32, #tpu.memory_space<vmem>>, %arg11: memref<16x768xf32, #tpu.memory_space<vmem>>, %arg12: memref<152x512xf32, #tpu.memory_space<vmem>>) attributes {dimension_semantics = [#tpu.dimension_semantics<parallel>], iteration_bounds = array<i64: 2>, scalar_prefetch = 0 : i64, scratch_operands = 2 : i64, tpu.core_type = #tpu.core_type<tc>, window_params = [{transform_indices = @transform_0, window_bounds = array<i64: 16, 512>}, {transform_indices = @transform_1, window_bounds = array<i64: 2, 8, 64>}, {pipeline_mode = #tpu.pipeline_mode<synchronous>, transform_indices = @transform_2, window_bounds = array<i64: 8, 152>}, {pipeline_mode = #tpu.pipeline_mode<synchronous>, transform_indices = @transform_3, window_bounds = array<i64: 8, 80>}, {pipeline_mode = #tpu.pipeline_mode<synchronous>, transform_indices = @transform_4, window_bounds = array<i64: 8, 80>}, {pipeline_mode = #tpu.pipeline_mode<synchronous>, transform_indices = @transform_5, window_bounds = array<i64: 8, 80>}, {pipeline_mode = #tpu.pipeline_mode<synchronous>, transform_indices = @transform_6, window_bounds = array<i64: 8, 80>}, {pipeline_mode = #tpu.pipeline_mode<synchronous>, transform_indices = @transform_7, window_bounds = array<i64: 64, 256>}, {pipeline_mode = #tpu.pipeline_mode<synchronous>, transform_indices = @transform_8, window_bounds = array<i64: 9, 512>}, {transform_indices = @transform_9, window_bounds = array<i64: 8, 512>}]} {
    %cst = arith.constant 0.000000e+00 : f32
    %0 = vector.broadcast %cst : f32 to vector<16x128xf32>
    %c0 = arith.constant 0 : index
    %c0_0 = arith.constant 0 : index
    %1 = vector.load %arg11[%c0, %c0_0] : memref<16x768xf32, #tpu.memory_space<vmem>>, vector<16x128xf32>
    tpu.vector_store %arg11[%c0, %c0_0], %0 {strides = array<i32>} : memref<16x768xf32, #tpu.memory_space<vmem>>, vector<16x128xf32>,
    %cst_1 = arith.constant 0.000000e+00 : f32
    %2 = vector.broadcast %cst_1 : f32 to vector<16x128xf32>
    %c0_2 = arith.constant 0 : index
    %c640 = arith.constant 640 : index
    %3 = vector.load %arg11[%c0_2, %c640] : memref<16x768xf32, #tpu.memory_space<vmem>>, vector<16x128xf32>
    tpu.vector_store %arg11[%c0_2, %c640], %2 {strides = array<i32>} : memref<16x768xf32, #tpu.memory_space<vmem>>, vector<16x128xf32>,
    %c0_3 = arith.constant 0 : index
    %c0_4 = arith.constant 0 : index
    %4 = vector.load %arg9[%c0_3, %c0_4] : memref<9x512xf32, #tpu.memory_space<vmem>>, vector<1x512xf32>
    %c1 = arith.constant 1 : index
    %c0_5 = arith.constant 0 : index
    %5 = vector.load %arg9[%c1, %c0_5] : memref<9x512xf32, #tpu.memory_space<vmem>>, vector<1x512xf32>
    %c2 = arith.constant 2 : index
    %c0_6 = arith.constant 0 : index
    %6 = vector.load %arg9[%c2, %c0_6] : memref<9x512xf32, #tpu.memory_space<vmem>>, vector<1x512xf32>
    %c3 = arith.constant 3 : index
    %c0_7 = arith.constant 0 : index
    %7 = vector.load %arg9[%c3, %c0_7] : memref<9x512xf32, #tpu.memory_space<vmem>>, vector<1x512xf32>
    %c5 = arith.constant 5 : index
    %c0_8 = arith.constant 0 : index
    %8 = vector.load %arg9[%c5, %c0_8] : memref<9x512xf32, #tpu.memory_space<vmem>>, vector<1x512xf32>
    %c6 = arith.constant 6 : index
    %c0_9 = arith.constant 0 : index
    %9 = vector.load %arg9[%c6, %c0_9] : memref<9x512xf32, #tpu.memory_space<vmem>>, vector<1x512xf32>
    %c7 = arith.constant 7 : index
    %c0_10 = arith.constant 0 : index
    %10 = vector.load %arg9[%c7, %c0_10] : memref<9x512xf32, #tpu.memory_space<vmem>>, vector<1x512xf32>
    %c8 = arith.constant 8 : index
    %c0_11 = arith.constant 0 : index
    %11 = vector.load %arg9[%c8, %c0_11] : memref<9x512xf32, #tpu.memory_space<vmem>>, vector<1x512xf32>
    %12 = tpu.iota {dimensions = array<i32: 0>} : vector<8x512xi32>
    %c0_i32 = arith.constant 0 : i32
    %13 = vector.broadcast %c0_i32 : i32 to vector<8x512xi32>
    %14 = arith.cmpi eq, %12, %13 : vector<8x512xi32>
    %15 = arith.extui %14 : vector<8x512xi1> to vector<8x512xi32>
    %16 = arith.sitofp %15 : vector<8x512xi32> to vector<8x512xf32>
    %c0_12 = arith.constant 0 : index
    %c0_13 = arith.constant 0 : index
    %17 = vector.load %arg1[%c0_12, %c0_13] : memref<16x512xf32, #tpu.memory_space<vmem>>, vector<16x512xf32>
    %c0_14 = arith.constant 0 : index
    %c128 = arith.constant 128 : index
    %18 = vector.load %arg11[%c0_14, %c128] : memref<16x768xf32, #tpu.memory_space<vmem>>, vector<16x512xf32>
    tpu.vector_store %arg11[%c0_14, %c128], %17 {strides = array<i32>} : memref<16x768xf32, #tpu.memory_space<vmem>>, vector<16x512xf32>,
    %c0_15 = arith.constant 0 : index
    %c111 = arith.constant 111 : index
    %19 = vector.load %arg11[%c0_15, %c111] : memref<16x768xf32, #tpu.memory_space<vmem>>, vector<16x512xf32>
    %20 = vector.broadcast %4 : vector<1x512xf32> to vector<16x512xf32>
    %21 = arith.mulf %19, %20 : vector<16x512xf32>
    %c0_16 = arith.constant 0 : index
    %c0_17 = arith.constant 0 : index
    %22 = vector.load %arg12[%c0_16, %c0_17] : memref<152x512xf32, #tpu.memory_space<vmem>>, vector<16x512xf32>
    tpu.vector_store %arg12[%c0_16, %c0_17], %21 {strides = array<i32>} : memref<152x512xf32, #tpu.memory_space<vmem>>, vector<16x512xf32>,
    %c0_18 = arith.constant 0 : index
    %c112 = arith.constant 112 : index
    %23 = vector.load %arg11[%c0_18, %c112] : memref<16x768xf32, #tpu.memory_space<vmem>>, vector<16x512xf32>
    %24 = vector.broadcast %5 : vector<1x512xf32> to vector<16x512xf32>
    %25 = arith.mulf %23, %24 : vector<16x512xf32>
    %c16 = arith.constant 16 : index
    %c0_19 = arith.constant 0 : index
    %26 = vector.load %arg12[%c16, %c0_19] : memref<152x512xf32, #tpu.memory_space<vmem>>, vector<16x512xf32>
    tpu.vector_store %arg12[%c16, %c0_19], %25 {strides = array<i32>} : memref<152x512xf32, #tpu.memory_space<vmem>>, vector<16x512xf32>,
    %c0_20 = arith.constant 0 : index
    %c113 = arith.constant 113 : index
    %27 = vector.load %arg11[%c0_20, %c113] : memref<16x768xf32, #tpu.memory_space<vmem>>, vector<16x512xf32>
    %28 = vector.broadcast %6 : vector<1x512xf32> to vector<16x512xf32>
    %29 = arith.mulf %27, %28 : vector<16x512xf32>
    %c32 = arith.constant 32 : index
    %c0_21 = arith.constant 0 : index
    %30 = vector.load %arg12[%c32, %c0_21] : memref<152x512xf32, #tpu.memory_space<vmem>>, vector<16x512xf32>
    tpu.vector_store %arg12[%c32, %c0_21], %29 {strides = array<i32>} : memref<152x512xf32, #tpu.memory_space<vmem>>, vector<16x512xf32>,
    %c0_22 = arith.constant 0 : index
    %c127 = arith.constant 127 : index
    %31 = vector.load %arg11[%c0_22, %c127] : memref<16x768xf32, #tpu.memory_space<vmem>>, vector<16x512xf32>
    %32 = vector.broadcast %7 : vector<1x512xf32> to vector<16x512xf32>
    %33 = arith.mulf %31, %32 : vector<16x512xf32>
    %c48 = arith.constant 48 : index
    %c0_23 = arith.constant 0 : index
    %34 = vector.load %arg12[%c48, %c0_23] : memref<152x512xf32, #tpu.memory_space<vmem>>, vector<16x512xf32>
    tpu.vector_store %arg12[%c48, %c0_23], %33 {strides = array<i32>} : memref<152x512xf32, #tpu.memory_space<vmem>>, vector<16x512xf32>,
    %c64 = arith.constant 64 : index
    %c0_24 = arith.constant 0 : index
    %35 = vector.load %arg12[%c64, %c0_24] : memref<152x512xf32, #tpu.memory_space<vmem>>, vector<16x512xf32>
    tpu.vector_store %arg12[%c64, %c0_24], %17 {strides = array<i32>} : memref<152x512xf32, #tpu.memory_space<vmem>>, vector<16x512xf32>,
    %c0_25 = arith.constant 0 : index
    %c129 = arith.constant 129 : index
    %36 = vector.load %arg11[%c0_25, %c129] : memref<16x768xf32, #tpu.memory_space<vmem>>, vector<16x512xf32>
    %37 = vector.broadcast %8 : vector<1x512xf32> to vector<16x512xf32>
    %38 = arith.mulf %36, %37 : vector<16x512xf32>
    %c80 = arith.constant 80 : index
    %c0_26 = arith.constant 0 : index
    %39 = vector.load %arg12[%c80, %c0_26] : memref<152x512xf32, #tpu.memory_space<vmem>>, vector<16x512xf32>
    tpu.vector_store %arg12[%c80, %c0_26], %38 {strides = array<i32>} : memref<152x512xf32, #tpu.memory_space<vmem>>, vector<16x512xf32>,
    %c0_27 = arith.constant 0 : index
    %c143 = arith.constant 143 : index
    %40 = vector.load %arg11[%c0_27, %c143] : memref<16x768xf32, #tpu.memory_space<vmem>>, vector<16x512xf32>
    %41 = vector.broadcast %9 : vector<1x512xf32> to vector<16x512xf32>
    %42 = arith.mulf %40, %41 : vector<16x512xf32>
    %c96 = arith.constant 96 : index
    %c0_28 = arith.constant 0 : index
    %43 = vector.load %arg12[%c96, %c0_28] : memref<152x512xf32, #tpu.memory_space<vmem>>, vector<16x512xf32>
    tpu.vector_store %arg12[%c96, %c0_28], %42 {strides = array<i32>} : memref<152x512xf32, #tpu.memory_space<vmem>>, vector<16x512xf32>,
    %c0_29 = arith.constant 0 : index
    %c144 = arith.constant 144 : index
    %44 = vector.load %arg11[%c0_29, %c144] : memref<16x768xf32, #tpu.memory_space<vmem>>, vector<16x512xf32>
    %45 = vector.broadcast %10 : vector<1x512xf32> to vector<16x512xf32>
    %46 = arith.mulf %44, %45 : vector<16x512xf32>
    %c112_30 = arith.constant 112 : index
    %c0_31 = arith.constant 0 : index
    %47 = vector.load %arg12[%c112_30, %c0_31] : memref<152x512xf32, #tpu.memory_space<vmem>>, vector<16x512xf32>
    tpu.vector_store %arg12[%c112_30, %c0_31], %46 {strides = array<i32>} : memref<152x512xf32, #tpu.memory_space<vmem>>, vector<16x512xf32>,
    %c0_32 = arith.constant 0 : index
    %c145 = arith.constant 145 : index
    %48 = vector.load %arg11[%c0_32, %c145] : memref<16x768xf32, #tpu.memory_space<vmem>>, vector<16x512xf32>
    %49 = vector.broadcast %11 : vector<1x512xf32> to vector<16x512xf32>
    %50 = arith.mulf %48, %49 : vector<16x512xf32>
    %c128_33 = arith.constant 128 : index
    %c0_34 = arith.constant 0 : index
    %51 = vector.load %arg12[%c128_33, %c0_34] : memref<152x512xf32, #tpu.memory_space<vmem>>, vector<16x512xf32>
    tpu.vector_store %arg12[%c128_33, %c0_34], %50 {strides = array<i32>} : memref<152x512xf32, #tpu.memory_space<vmem>>, vector<16x512xf32>,
    %c144_35 = arith.constant 144 : index
    %c0_36 = arith.constant 0 : index
    %52 = vector.load %arg12[%c144_35, %c0_36] : memref<152x512xf32, #tpu.memory_space<vmem>>, vector<8x512xf32>
    tpu.vector_store %arg12[%c144_35, %c0_36], %16 {strides = array<i32>} : memref<152x512xf32, #tpu.memory_space<vmem>>, vector<8x512xf32>,
    %c0_37 = arith.constant 0 : index
    %c0_38 = arith.constant 0 : index
    %53 = vector.load %arg3[%c0_37, %c0_38] : memref<8x152xbf16, #tpu.memory_space<vmem>>, vector<8x152xbf16>
    %c0_39 = arith.constant 0 : index
    %c0_40 = arith.constant 0 : index
    %54 = vector.load %arg12[%c0_39, %c0_40] : memref<152x512xf32, #tpu.memory_space<vmem>>, vector<152x512xf32>
    %55 = arith.truncf %54 : vector<152x512xf32> to vector<152x512xbf16>
    %cst_41 = arith.constant dense<0.000000e+00> : vector<8x512xf32>
    %56 = tpu.matmul %53, %55, %cst_41 {dimension_numbers = #tpu.dot_dimension_numbers<[1], [0], [0], [1], [0, 0, 1, 1], [], []>} : vector<8x152xbf16>, vector<152x512xbf16>, vector<8x512xf32> -> vector<8x512xf32>
    %cst_42 = arith.constant 0.000000e+00 : f32
    %57 = vector.broadcast %cst_42 : f32 to vector<8x512xf32>
    %58 = arith.maximumf %56, %57 : vector<8x512xf32>
    %c0_43 = arith.constant 0 : index
    %c128_44 = arith.constant 128 : index
    %59 = vector.load %arg11[%c0_43, %c128_44] : memref<16x768xf32, #tpu.memory_space<vmem>>, vector<8x512xf32>
    tpu.vector_store %arg11[%c0_43, %c128_44], %58 {strides = array<i32>} : memref<16x768xf32, #tpu.memory_space<vmem>>, vector<8x512xf32>,
    %c0_45 = arith.constant 0 : index
    %c111_46 = arith.constant 111 : index
    %60 = vector.load %arg11[%c0_45, %c111_46] : memref<16x768xf32, #tpu.memory_space<vmem>>, vector<8x512xf32>
    %61 = vector.broadcast %4 : vector<1x512xf32> to vector<8x512xf32>
    %62 = arith.mulf %60, %61 : vector<8x512xf32>
    %c0_47 = arith.constant 0 : index
    %c0_48 = arith.constant 0 : index
    %63 = vector.load %arg12[%c0_47, %c0_48] : memref<152x512xf32, #tpu.memory_space<vmem>>, vector<8x512xf32>
    tpu.vector_store %arg12[%c0_47, %c0_48], %62 {strides = array<i32>} : memref<152x512xf32, #tpu.memory_space<vmem>>, vector<8x512xf32>,
    %c0_49 = arith.constant 0 : index
    %c112_50 = arith.constant 112 : index
    %64 = vector.load %arg11[%c0_49, %c112_50] : memref<16x768xf32, #tpu.memory_space<vmem>>, vector<8x512xf32>
    %65 = vector.broadcast %5 : vector<1x512xf32> to vector<8x512xf32>
    %66 = arith.mulf %64, %65 : vector<8x512xf32>
    %c8_51 = arith.constant 8 : index
    %c0_52 = arith.constant 0 : index
    %67 = vector.load %arg12[%c8_51, %c0_52] : memref<152x512xf32, #tpu.memory_space<vmem>>, vector<8x512xf32>
    tpu.vector_store %arg12[%c8_51, %c0_52], %66 {strides = array<i32>} : memref<152x512xf32, #tpu.memory_space<vmem>>, vector<8x512xf32>,
    %c0_53 = arith.constant 0 : index
    %c113_54 = arith.constant 113 : index
    %68 = vector.load %arg11[%c0_53, %c113_54] : memref<16x768xf32, #tpu.memory_space<vmem>>, vector<8x512xf32>
    %69 = vector.broadcast %6 : vector<1x512xf32> to vector<8x512xf32>
    %70 = arith.mulf %68, %69 : vector<8x512xf32>
    %c16_55 = arith.constant 16 : index
    %c0_56 = arith.constant 0 : index
    %71 = vector.load %arg12[%c16_55, %c0_56] : memref<152x512xf32, #tpu.memory_space<vmem>>, vector<8x512xf32>
    tpu.vector_store %arg12[%c16_55, %c0_56], %70 {strides = array<i32>} : memref<152x512xf32, #tpu.memory_space<vmem>>, vector<8x512xf32>,
    %c0_57 = arith.constant 0 : index
    %c127_58 = arith.constant 127 : index
    %72 = vector.load %arg11[%c0_57, %c127_58] : memref<16x768xf32, #tpu.memory_space<vmem>>, vector<8x512xf32>
    %73 = vector.broadcast %7 : vector<1x512xf32> to vector<8x512xf32>
    %74 = arith.mulf %72, %73 : vector<8x512xf32>
    %c24 = arith.constant 24 : index
    %c0_59 = arith.constant 0 : index
    %75 = vector.load %arg12[%c24, %c0_59] : memref<152x512xf32, #tpu.memory_space<vmem>>, vector<8x512xf32>
    tpu.vector_store %arg12[%c24, %c0_59], %74 {strides = array<i32>} : memref<152x512xf32, #tpu.memory_space<vmem>>, vector<8x512xf32>,
    %c32_60 = arith.constant 32 : index
    %c0_61 = arith.constant 0 : index
    %76 = vector.load %arg12[%c32_60, %c0_61] : memref<152x512xf32, #tpu.memory_space<vmem>>, vector<8x512xf32>
    tpu.vector_store %arg12[%c32_60, %c0_61], %58 {strides = array<i32>} : memref<152x512xf32, #tpu.memory_space<vmem>>, vector<8x512xf32>,
    %c0_62 = arith.constant 0 : index
    %c129_63 = arith.constant 129 : index
    %77 = vector.load %arg11[%c0_62, %c129_63] : memref<16x768xf32, #tpu.memory_space<vmem>>, vector<8x512xf32>
    %78 = vector.broadcast %8 : vector<1x512xf32> to vector<8x512xf32>
    %79 = arith.mulf %77, %78 : vector<8x512xf32>
    %c40 = arith.constant 40 : index
    %c0_64 = arith.constant 0 : index
    %80 = vector.load %arg12[%c40, %c0_64] : memref<152x512xf32, #tpu.memory_space<vmem>>, vector<8x512xf32>
    tpu.vector_store %arg12[%c40, %c0_64], %79 {strides = array<i32>} : memref<152x512xf32, #tpu.memory_space<vmem>>, vector<8x512xf32>,
    %c0_65 = arith.constant 0 : index
    %c143_66 = arith.constant 143 : index
    %81 = vector.load %arg11[%c0_65, %c143_66] : memref<16x768xf32, #tpu.memory_space<vmem>>, vector<8x512xf32>
    %82 = vector.broadcast %9 : vector<1x512xf32> to vector<8x512xf32>
    %83 = arith.mulf %81, %82 : vector<8x512xf32>
    %c48_67 = arith.constant 48 : index
    %c0_68 = arith.constant 0 : index
    %84 = vector.load %arg12[%c48_67, %c0_68] : memref<152x512xf32, #tpu.memory_space<vmem>>, vector<8x512xf32>
    tpu.vector_store %arg12[%c48_67, %c0_68], %83 {strides = array<i32>} : memref<152x512xf32, #tpu.memory_space<vmem>>, vector<8x512xf32>,
    %c0_69 = arith.constant 0 : index
    %c144_70 = arith.constant 144 : index
    %85 = vector.load %arg11[%c0_69, %c144_70] : memref<16x768xf32, #tpu.memory_space<vmem>>, vector<8x512xf32>
    %86 = vector.broadcast %10 : vector<1x512xf32> to vector<8x512xf32>
    %87 = arith.mulf %85, %86 : vector<8x512xf32>
    %c56 = arith.constant 56 : index
    %c0_71 = arith.constant 0 : index
    %88 = vector.load %arg12[%c56, %c0_71] : memref<152x512xf32, #tpu.memory_space<vmem>>, vector<8x512xf32>
    tpu.vector_store %arg12[%c56, %c0_71], %87 {strides = array<i32>} : memref<152x512xf32, #tpu.memory_space<vmem>>, vector<8x512xf32>,
    %c0_72 = arith.constant 0 : index
    %c145_73 = arith.constant 145 : index
    %89 = vector.load %arg11[%c0_72, %c145_73] : memref<16x768xf32, #tpu.memory_space<vmem>>, vector<8x512xf32>
    %90 = vector.broadcast %11 : vector<1x512xf32> to vector<8x512xf32>
    %91 = arith.mulf %89, %90 : vector<8x512xf32>
    %c64_74 = arith.constant 64 : index
    %c0_75 = arith.constant 0 : index
    %92 = vector.load %arg12[%c64_74, %c0_75] : memref<152x512xf32, #tpu.memory_space<vmem>>, vector<8x512xf32>
    tpu.vector_store %arg12[%c64_74, %c0_75], %91 {strides = array<i32>} : memref<152x512xf32, #tpu.memory_space<vmem>>, vector<8x512xf32>,
    %c72 = arith.constant 72 : index
    %c0_76 = arith.constant 0 : index
    %93 = vector.load %arg12[%c72, %c0_76] : memref<152x512xf32, #tpu.memory_space<vmem>>, vector<8x512xf32>
    tpu.vector_store %arg12[%c72, %c0_76], %16 {strides = array<i32>} : memref<152x512xf32, #tpu.memory_space<vmem>>, vector<8x512xf32>,
    %c0_77 = arith.constant 0 : index
    %c0_78 = arith.constant 0 : index
    %94 = vector.load %arg4[%c0_77, %c0_78] : memref<8x80xbf16, #tpu.memory_space<vmem>>, vector<8x80xbf16>
    %c0_79 = arith.constant 0 : index
    %c0_80 = arith.constant 0 : index
    %95 = vector.load %arg12[%c0_79, %c0_80] : memref<152x512xf32, #tpu.memory_space<vmem>>, vector<80x512xf32>
    %96 = arith.truncf %95 : vector<80x512xf32> to vector<80x512xbf16>
    %cst_81 = arith.constant dense<0.000000e+00> : vector<8x512xf32>
    %97 = tpu.matmul %94, %96, %cst_81 {dimension_numbers = #tpu.dot_dimension_numbers<[1], [0], [0], [1], [0, 0, 1, 1], [], []>} : vector<8x80xbf16>, vector<80x512xbf16>, vector<8x512xf32> -> vector<8x512xf32>
    %cst_82 = arith.constant 0.000000e+00 : f32
    %98 = vector.broadcast %cst_82 : f32 to vector<8x512xf32>
    %99 = arith.maximumf %97, %98 : vector<8x512xf32>
    %c0_83 = arith.constant 0 : index
    %c128_84 = arith.constant 128 : index
    %100 = vector.load %arg11[%c0_83, %c128_84] : memref<16x768xf32, #tpu.memory_space<vmem>>, vector<8x512xf32>
    tpu.vector_store %arg11[%c0_83, %c128_84], %99 {strides = array<i32>} : memref<16x768xf32, #tpu.memory_space<vmem>>, vector<8x512xf32>,
    %c0_85 = arith.constant 0 : index
    %c111_86 = arith.constant 111 : index
    %101 = vector.load %arg11[%c0_85, %c111_86] : memref<16x768xf32, #tpu.memory_space<vmem>>, vector<8x512xf32>
    %102 = vector.broadcast %4 : vector<1x512xf32> to vector<8x512xf32>
    %103 = arith.mulf %101, %102 : vector<8x512xf32>
    %c0_87 = arith.constant 0 : index
    %c0_88 = arith.constant 0 : index
    %104 = vector.load %arg12[%c0_87, %c0_88] : memref<152x512xf32, #tpu.memory_space<vmem>>, vector<8x512xf32>
    tpu.vector_store %arg12[%c0_87, %c0_88], %103 {strides = array<i32>} : memref<152x512xf32, #tpu.memory_space<vmem>>, vector<8x512xf32>,
    %c0_89 = arith.constant 0 : index
    %c112_90 = arith.constant 112 : index
    %105 = vector.load %arg11[%c0_89, %c112_90] : memref<16x768xf32, #tpu.memory_space<vmem>>, vector<8x512xf32>
    %106 = vector.broadcast %5 : vector<1x512xf32> to vector<8x512xf32>
    %107 = arith.mulf %105, %106 : vector<8x512xf32>
    %c8_91 = arith.constant 8 : index
    %c0_92 = arith.constant 0 : index
    %108 = vector.load %arg12[%c8_91, %c0_92] : memref<152x512xf32, #tpu.memory_space<vmem>>, vector<8x512xf32>
    tpu.vector_store %arg12[%c8_91, %c0_92], %107 {strides = array<i32>} : memref<152x512xf32, #tpu.memory_space<vmem>>, vector<8x512xf32>,
    %c0_93 = arith.constant 0 : index
    %c113_94 = arith.constant 113 : index
    %109 = vector.load %arg11[%c0_93, %c113_94] : memref<16x768xf32, #tpu.memory_space<vmem>>, vector<8x512xf32>
    %110 = vector.broadcast %6 : vector<1x512xf32> to vector<8x512xf32>
    %111 = arith.mulf %109, %110 : vector<8x512xf32>
    %c16_95 = arith.constant 16 : index
    %c0_96 = arith.constant 0 : index
    %112 = vector.load %arg12[%c16_95, %c0_96] : memref<152x512xf32, #tpu.memory_space<vmem>>, vector<8x512xf32>
    tpu.vector_store %arg12[%c16_95, %c0_96], %111 {strides = array<i32>} : memref<152x512xf32, #tpu.memory_space<vmem>>, vector<8x512xf32>,
    %c0_97 = arith.constant 0 : index
    %c127_98 = arith.constant 127 : index
    %113 = vector.load %arg11[%c0_97, %c127_98] : memref<16x768xf32, #tpu.memory_space<vmem>>, vector<8x512xf32>
    %114 = vector.broadcast %7 : vector<1x512xf32> to vector<8x512xf32>
    %115 = arith.mulf %113, %114 : vector<8x512xf32>
    %c24_99 = arith.constant 24 : index
    %c0_100 = arith.constant 0 : index
    %116 = vector.load %arg12[%c24_99, %c0_100] : memref<152x512xf32, #tpu.memory_space<vmem>>, vector<8x512xf32>
    tpu.vector_store %arg12[%c24_99, %c0_100], %115 {strides = array<i32>} : memref<152x512xf32, #tpu.memory_space<vmem>>, vector<8x512xf32>,
    %c32_101 = arith.constant 32 : index
    %c0_102 = arith.constant 0 : index
    %117 = vector.load %arg12[%c32_101, %c0_102] : memref<152x512xf32, #tpu.memory_space<vmem>>, vector<8x512xf32>
    tpu.vector_store %arg12[%c32_101, %c0_102], %99 {strides = array<i32>} : memref<152x512xf32, #tpu.memory_space<vmem>>, vector<8x512xf32>,
    %c0_103 = arith.constant 0 : index
    %c129_104 = arith.constant 129 : index
    %118 = vector.load %arg11[%c0_103, %c129_104] : memref<16x768xf32, #tpu.memory_space<vmem>>, vector<8x512xf32>
    %119 = vector.broadcast %8 : vector<1x512xf32> to vector<8x512xf32>
    %120 = arith.mulf %118, %119 : vector<8x512xf32>
    %c40_105 = arith.constant 40 : index
    %c0_106 = arith.constant 0 : index
    %121 = vector.load %arg12[%c40_105, %c0_106] : memref<152x512xf32, #tpu.memory_space<vmem>>, vector<8x512xf32>
    tpu.vector_store %arg12[%c40_105, %c0_106], %120 {strides = array<i32>} : memref<152x512xf32, #tpu.memory_space<vmem>>, vector<8x512xf32>,
    %c0_107 = arith.constant 0 : index
    %c143_108 = arith.constant 143 : index
    %122 = vector.load %arg11[%c0_107, %c143_108] : memref<16x768xf32, #tpu.memory_space<vmem>>, vector<8x512xf32>
    %123 = vector.broadcast %9 : vector<1x512xf32> to vector<8x512xf32>
    %124 = arith.mulf %122, %123 : vector<8x512xf32>
    %c48_109 = arith.constant 48 : index
    %c0_110 = arith.constant 0 : index
    %125 = vector.load %arg12[%c48_109, %c0_110] : memref<152x512xf32, #tpu.memory_space<vmem>>, vector<8x512xf32>
    tpu.vector_store %arg12[%c48_109, %c0_110], %124 {strides = array<i32>} : memref<152x512xf32, #tpu.memory_space<vmem>>, vector<8x512xf32>,
    %c0_111 = arith.constant 0 : index
    %c144_112 = arith.constant 144 : index
    %126 = vector.load %arg11[%c0_111, %c144_112] : memref<16x768xf32, #tpu.memory_space<vmem>>, vector<8x512xf32>
    %127 = vector.broadcast %10 : vector<1x512xf32> to vector<8x512xf32>
    %128 = arith.mulf %126, %127 : vector<8x512xf32>
    %c56_113 = arith.constant 56 : index
    %c0_114 = arith.constant 0 : index
    %129 = vector.load %arg12[%c56_113, %c0_114] : memref<152x512xf32, #tpu.memory_space<vmem>>, vector<8x512xf32>
    tpu.vector_store %arg12[%c56_113, %c0_114], %128 {strides = array<i32>} : memref<152x512xf32, #tpu.memory_space<vmem>>, vector<8x512xf32>,
    %c0_115 = arith.constant 0 : index
    %c145_116 = arith.constant 145 : index
    %130 = vector.load %arg11[%c0_115, %c145_116] : memref<16x768xf32, #tpu.memory_space<vmem>>, vector<8x512xf32>
    %131 = vector.broadcast %11 : vector<1x512xf32> to vector<8x512xf32>
    %132 = arith.mulf %130, %131 : vector<8x512xf32>
    %c64_117 = arith.constant 64 : index
    %c0_118 = arith.constant 0 : index
    %133 = vector.load %arg12[%c64_117, %c0_118] : memref<152x512xf32, #tpu.memory_space<vmem>>, vector<8x512xf32>
    tpu.vector_store %arg12[%c64_117, %c0_118], %132 {strides = array<i32>} : memref<152x512xf32, #tpu.memory_space<vmem>>, vector<8x512xf32>,
    %c72_119 = arith.constant 72 : index
    %c0_120 = arith.constant 0 : index
    %134 = vector.load %arg12[%c72_119, %c0_120] : memref<152x512xf32, #tpu.memory_space<vmem>>, vector<8x512xf32>
    tpu.vector_store %arg12[%c72_119, %c0_120], %16 {strides = array<i32>} : memref<152x512xf32, #tpu.memory_space<vmem>>, vector<8x512xf32>,
    %c0_121 = arith.constant 0 : index
    %c0_122 = arith.constant 0 : index
    %135 = vector.load %arg5[%c0_121, %c0_122] : memref<8x80xbf16, #tpu.memory_space<vmem>>, vector<8x80xbf16>
    %c0_123 = arith.constant 0 : index
    %c0_124 = arith.constant 0 : index
    %136 = vector.load %arg12[%c0_123, %c0_124] : memref<152x512xf32, #tpu.memory_space<vmem>>, vector<80x512xf32>
    %137 = arith.truncf %136 : vector<80x512xf32> to vector<80x512xbf16>
    %cst_125 = arith.constant dense<0.000000e+00> : vector<8x512xf32>
    %138 = tpu.matmul %135, %137, %cst_125 {dimension_numbers = #tpu.dot_dimension_numbers<[1], [0], [0], [1], [0, 0, 1, 1], [], []>} : vector<8x80xbf16>, vector<80x512xbf16>, vector<8x512xf32> -> vector<8x512xf32>
    %139 = arith.addf %56, %138 : vector<8x512xf32>
    %c0_126 = arith.constant 0 : index
    %c0_127 = arith.constant 0 : index
    %140 = vector.load %arg8[%c0_126, %c0_127] : memref<64x256xbf16, #tpu.memory_space<vmem>>, vector<64x256xbf16>
    %c0_128 = arith.constant 0 : index
    %c0_129 = arith.constant 0 : index
    %c0_130 = arith.constant 0 : index
    %141 = vector.load %arg2[%c0_128, %c0_129, %c0_130] : memref<2x8x64xf32, #tpu.memory_space<vmem>>, vector<1x8x64xf32>
    %142 = vector.shape_cast %141 : vector<1x8x64xf32> to vector<8x64xf32>
    %143 = arith.truncf %142 : vector<8x64xf32> to vector<8x64xbf16>
    %cst_131 = arith.constant dense<0.000000e+00> : vector<8x256xf32>
    %144 = tpu.matmul %143, %140, %cst_131 {dimension_numbers = #tpu.dot_dimension_numbers<[1], [0], [0], [1], [0, 0, 1, 1], [], []>} : vector<8x64xbf16>, vector<64x256xbf16>, vector<8x256xf32> -> vector<8x256xf32>
    %c1_132 = arith.constant 1 : index
    %c0_133 = arith.constant 0 : index
    %c0_134 = arith.constant 0 : index
    %145 = vector.load %arg2[%c1_132, %c0_133, %c0_134] : memref<2x8x64xf32, #tpu.memory_space<vmem>>, vector<1x8x64xf32>
    %146 = vector.shape_cast %145 : vector<1x8x64xf32> to vector<8x64xf32>
    %147 = arith.truncf %146 : vector<8x64xf32> to vector<8x64xbf16>
    %cst_135 = arith.constant dense<0.000000e+00> : vector<8x256xf32>
    %148 = tpu.matmul %147, %140, %cst_135 {dimension_numbers = #tpu.dot_dimension_numbers<[1], [0], [0], [1], [0, 0, 1, 1], [], []>} : vector<8x64xbf16>, vector<64x256xbf16>, vector<8x256xf32> -> vector<8x256xf32>
    %149 = tpu.concatenate %144, %148 in 1 : vector<8x256xf32>, vector<8x256xf32> -> vector<8x512xf32>
    %150 = arith.addf %139, %149 : vector<8x512xf32>
    %cst_136 = arith.constant 0.000000e+00 : f32
    %151 = vector.broadcast %cst_136 : f32 to vector<8x512xf32>
    %152 = arith.maximumf %150, %151 : vector<8x512xf32>
    %c0_137 = arith.constant 0 : index
    %c128_138 = arith.constant 128 : index
    %153 = vector.load %arg11[%c0_137, %c128_138] : memref<16x768xf32, #tpu.memory_space<vmem>>, vector<8x512xf32>
    tpu.vector_store %arg11[%c0_137, %c128_138], %152 {strides = array<i32>} : memref<16x768xf32, #tpu.memory_space<vmem>>, vector<8x512xf32>,
    %c0_139 = arith.constant 0 : index
    %c111_140 = arith.constant 111 : index
    %154 = vector.load %arg11[%c0_139, %c111_140] : memref<16x768xf32, #tpu.memory_space<vmem>>, vector<8x512xf32>
    %155 = vector.broadcast %4 : vector<1x512xf32> to vector<8x512xf32>
    %156 = arith.mulf %154, %155 : vector<8x512xf32>
    %c0_141 = arith.constant 0 : index
    %c0_142 = arith.constant 0 : index
    %157 = vector.load %arg12[%c0_141, %c0_142] : memref<152x512xf32, #tpu.memory_space<vmem>>, vector<8x512xf32>
    tpu.vector_store %arg12[%c0_141, %c0_142], %156 {strides = array<i32>} : memref<152x512xf32, #tpu.memory_space<vmem>>, vector<8x512xf32>,
    %c0_143 = arith.constant 0 : index
    %c112_144 = arith.constant 112 : index
    %158 = vector.load %arg11[%c0_143, %c112_144] : memref<16x768xf32, #tpu.memory_space<vmem>>, vector<8x512xf32>
    %159 = vector.broadcast %5 : vector<1x512xf32> to vector<8x512xf32>
    %160 = arith.mulf %158, %159 : vector<8x512xf32>
    %c8_145 = arith.constant 8 : index
    %c0_146 = arith.constant 0 : index
    %161 = vector.load %arg12[%c8_145, %c0_146] : memref<152x512xf32, #tpu.memory_space<vmem>>, vector<8x512xf32>
    tpu.vector_store %arg12[%c8_145, %c0_146], %160 {strides = array<i32>} : memref<152x512xf32, #tpu.memory_space<vmem>>, vector<8x512xf32>,
    %c0_147 = arith.constant 0 : index
    %c113_148 = arith.constant 113 : index
    %162 = vector.load %arg11[%c0_147, %c113_148] : memref<16x768xf32, #tpu.memory_space<vmem>>, vector<8x512xf32>
    %163 = vector.broadcast %6 : vector<1x512xf32> to vector<8x512xf32>
    %164 = arith.mulf %162, %163 : vector<8x512xf32>
    %c16_149 = arith.constant 16 : index
    %c0_150 = arith.constant 0 : index
    %165 = vector.load %arg12[%c16_149, %c0_150] : memref<152x512xf32, #tpu.memory_space<vmem>>, vector<8x512xf32>
    tpu.vector_store %arg12[%c16_149, %c0_150], %164 {strides = array<i32>} : memref<152x512xf32, #tpu.memory_space<vmem>>, vector<8x512xf32>,
    %c0_151 = arith.constant 0 : index
    %c127_152 = arith.constant 127 : index
    %166 = vector.load %arg11[%c0_151, %c127_152] : memref<16x768xf32, #tpu.memory_space<vmem>>, vector<8x512xf32>
    %167 = vector.broadcast %7 : vector<1x512xf32> to vector<8x512xf32>
    %168 = arith.mulf %166, %167 : vector<8x512xf32>
    %c24_153 = arith.constant 24 : index
    %c0_154 = arith.constant 0 : index
    %169 = vector.load %arg12[%c24_153, %c0_154] : memref<152x512xf32, #tpu.memory_space<vmem>>, vector<8x512xf32>
    tpu.vector_store %arg12[%c24_153, %c0_154], %168 {strides = array<i32>} : memref<152x512xf32, #tpu.memory_space<vmem>>, vector<8x512xf32>,
    %c32_155 = arith.constant 32 : index
    %c0_156 = arith.constant 0 : index
    %170 = vector.load %arg12[%c32_155, %c0_156] : memref<152x512xf32, #tpu.memory_space<vmem>>, vector<8x512xf32>
    tpu.vector_store %arg12[%c32_155, %c0_156], %152 {strides = array<i32>} : memref<152x512xf32, #tpu.memory_space<vmem>>, vector<8x512xf32>,
    %c0_157 = arith.constant 0 : index
    %c129_158 = arith.constant 129 : index
    %171 = vector.load %arg11[%c0_157, %c129_158] : memref<16x768xf32, #tpu.memory_space<vmem>>, vector<8x512xf32>
    %172 = vector.broadcast %8 : vector<1x512xf32> to vector<8x512xf32>
    %173 = arith.mulf %171, %172 : vector<8x512xf32>
    %c40_159 = arith.constant 40 : index
    %c0_160 = arith.constant 0 : index
    %174 = vector.load %arg12[%c40_159, %c0_160] : memref<152x512xf32, #tpu.memory_space<vmem>>, vector<8x512xf32>
    tpu.vector_store %arg12[%c40_159, %c0_160], %173 {strides = array<i32>} : memref<152x512xf32, #tpu.memory_space<vmem>>, vector<8x512xf32>,
    %c0_161 = arith.constant 0 : index
    %c143_162 = arith.constant 143 : index
    %175 = vector.load %arg11[%c0_161, %c143_162] : memref<16x768xf32, #tpu.memory_space<vmem>>, vector<8x512xf32>
    %176 = vector.broadcast %9 : vector<1x512xf32> to vector<8x512xf32>
    %177 = arith.mulf %175, %176 : vector<8x512xf32>
    %c48_163 = arith.constant 48 : index
    %c0_164 = arith.constant 0 : index
    %178 = vector.load %arg12[%c48_163, %c0_164] : memref<152x512xf32, #tpu.memory_space<vmem>>, vector<8x512xf32>
    tpu.vector_store %arg12[%c48_163, %c0_164], %177 {strides = array<i32>} : memref<152x512xf32, #tpu.memory_space<vmem>>, vector<8x512xf32>,
    %c0_165 = arith.constant 0 : index
    %c144_166 = arith.constant 144 : index
    %179 = vector.load %arg11[%c0_165, %c144_166] : memref<16x768xf32, #tpu.memory_space<vmem>>, vector<8x512xf32>
    %180 = vector.broadcast %10 : vector<1x512xf32> to vector<8x512xf32>
    %181 = arith.mulf %179, %180 : vector<8x512xf32>
    %c56_167 = arith.constant 56 : index
    %c0_168 = arith.constant 0 : index
    %182 = vector.load %arg12[%c56_167, %c0_168] : memref<152x512xf32, #tpu.memory_space<vmem>>, vector<8x512xf32>
    tpu.vector_store %arg12[%c56_167, %c0_168], %181 {strides = array<i32>} : memref<152x512xf32, #tpu.memory_space<vmem>>, vector<8x512xf32>,
    %c0_169 = arith.constant 0 : index
    %c145_170 = arith.constant 145 : index
    %183 = vector.load %arg11[%c0_169, %c145_170] : memref<16x768xf32, #tpu.memory_space<vmem>>, vector<8x512xf32>
    %184 = vector.broadcast %11 : vector<1x512xf32> to vector<8x512xf32>
    %185 = arith.mulf %183, %184 : vector<8x512xf32>
    %c64_171 = arith.constant 64 : index
    %c0_172 = arith.constant 0 : index
    %186 = vector.load %arg12[%c64_171, %c0_172] : memref<152x512xf32, #tpu.memory_space<vmem>>, vector<8x512xf32>
    tpu.vector_store %arg12[%c64_171, %c0_172], %185 {strides = array<i32>} : memref<152x512xf32, #tpu.memory_space<vmem>>, vector<8x512xf32>,
    %c72_173 = arith.constant 72 : index
    %c0_174 = arith.constant 0 : index
    %187 = vector.load %arg12[%c72_173, %c0_174] : memref<152x512xf32, #tpu.memory_space<vmem>>, vector<8x512xf32>
    tpu.vector_store %arg12[%c72_173, %c0_174], %16 {strides = array<i32>} : memref<152x512xf32, #tpu.memory_space<vmem>>, vector<8x512xf32>,
    %c0_175 = arith.constant 0 : index
    %c0_176 = arith.constant 0 : index
    %188 = vector.load %arg6[%c0_175, %c0_176] : memref<8x80xbf16, #tpu.memory_space<vmem>>, vector<8x80xbf16>
    %c0_177 = arith.constant 0 : index
    %c0_178 = arith.constant 0 : index
    %189 = vector.load %arg12[%c0_177, %c0_178] : memref<152x512xf32, #tpu.memory_space<vmem>>, vector<80x512xf32>
    %190 = arith.truncf %189 : vector<80x512xf32> to vector<80x512xbf16>
    %cst_179 = arith.constant dense<0.000000e+00> : vector<8x512xf32>
    %191 = tpu.matmul %188, %190, %cst_179 {dimension_numbers = #tpu.dot_dimension_numbers<[1], [0], [0], [1], [0, 0, 1, 1], [], []>} : vector<8x80xbf16>, vector<80x512xbf16>, vector<8x512xf32> -> vector<8x512xf32>
    %cst_180 = arith.constant 0.000000e+00 : f32
    %192 = vector.broadcast %cst_180 : f32 to vector<8x512xf32>
    %193 = arith.maximumf %191, %192 : vector<8x512xf32>
    %c0_181 = arith.constant 0 : index
    %c128_182 = arith.constant 128 : index
    %194 = vector.load %arg11[%c0_181, %c128_182] : memref<16x768xf32, #tpu.memory_space<vmem>>, vector<8x512xf32>
    tpu.vector_store %arg11[%c0_181, %c128_182], %193 {strides = array<i32>} : memref<16x768xf32, #tpu.memory_space<vmem>>, vector<8x512xf32>,
    %c0_183 = arith.constant 0 : index
    %c111_184 = arith.constant 111 : index
    %195 = vector.load %arg11[%c0_183, %c111_184] : memref<16x768xf32, #tpu.memory_space<vmem>>, vector<8x512xf32>
    %196 = vector.broadcast %4 : vector<1x512xf32> to vector<8x512xf32>
    %197 = arith.mulf %195, %196 : vector<8x512xf32>
    %c0_185 = arith.constant 0 : index
    %c0_186 = arith.constant 0 : index
    %198 = vector.load %arg12[%c0_185, %c0_186] : memref<152x512xf32, #tpu.memory_space<vmem>>, vector<8x512xf32>
    tpu.vector_store %arg12[%c0_185, %c0_186], %197 {strides = array<i32>} : memref<152x512xf32, #tpu.memory_space<vmem>>, vector<8x512xf32>,
    %c0_187 = arith.constant 0 : index
    %c112_188 = arith.constant 112 : index
    %199 = vector.load %arg11[%c0_187, %c112_188] : memref<16x768xf32, #tpu.memory_space<vmem>>, vector<8x512xf32>
    %200 = vector.broadcast %5 : vector<1x512xf32> to vector<8x512xf32>
    %201 = arith.mulf %199, %200 : vector<8x512xf32>
    %c8_189 = arith.constant 8 : index
    %c0_190 = arith.constant 0 : index
    %202 = vector.load %arg12[%c8_189, %c0_190] : memref<152x512xf32, #tpu.memory_space<vmem>>, vector<8x512xf32>
    tpu.vector_store %arg12[%c8_189, %c0_190], %201 {strides = array<i32>} : memref<152x512xf32, #tpu.memory_space<vmem>>, vector<8x512xf32>,
    %c0_191 = arith.constant 0 : index
    %c113_192 = arith.constant 113 : index
    %203 = vector.load %arg11[%c0_191, %c113_192] : memref<16x768xf32, #tpu.memory_space<vmem>>, vector<8x512xf32>
    %204 = vector.broadcast %6 : vector<1x512xf32> to vector<8x512xf32>
    %205 = arith.mulf %203, %204 : vector<8x512xf32>
    %c16_193 = arith.constant 16 : index
    %c0_194 = arith.constant 0 : index
    %206 = vector.load %arg12[%c16_193, %c0_194] : memref<152x512xf32, #tpu.memory_space<vmem>>, vector<8x512xf32>
    tpu.vector_store %arg12[%c16_193, %c0_194], %205 {strides = array<i32>} : memref<152x512xf32, #tpu.memory_space<vmem>>, vector<8x512xf32>,
    %c0_195 = arith.constant 0 : index
    %c127_196 = arith.constant 127 : index
    %207 = vector.load %arg11[%c0_195, %c127_196] : memref<16x768xf32, #tpu.memory_space<vmem>>, vector<8x512xf32>
    %208 = vector.broadcast %7 : vector<1x512xf32> to vector<8x512xf32>
    %209 = arith.mulf %207, %208 : vector<8x512xf32>
    %c24_197 = arith.constant 24 : index
    %c0_198 = arith.constant 0 : index
    %210 = vector.load %arg12[%c24_197, %c0_198] : memref<152x512xf32, #tpu.memory_space<vmem>>, vector<8x512xf32>
    tpu.vector_store %arg12[%c24_197, %c0_198], %209 {strides = array<i32>} : memref<152x512xf32, #tpu.memory_space<vmem>>, vector<8x512xf32>,
    %c32_199 = arith.constant 32 : index
    %c0_200 = arith.constant 0 : index
    %211 = vector.load %arg12[%c32_199, %c0_200] : memref<152x512xf32, #tpu.memory_space<vmem>>, vector<8x512xf32>
    tpu.vector_store %arg12[%c32_199, %c0_200], %193 {strides = array<i32>} : memref<152x512xf32, #tpu.memory_space<vmem>>, vector<8x512xf32>,
    %c0_201 = arith.constant 0 : index
    %c129_202 = arith.constant 129 : index
    %212 = vector.load %arg11[%c0_201, %c129_202] : memref<16x768xf32, #tpu.memory_space<vmem>>, vector<8x512xf32>
    %213 = vector.broadcast %8 : vector<1x512xf32> to vector<8x512xf32>
    %214 = arith.mulf %212, %213 : vector<8x512xf32>
    %c40_203 = arith.constant 40 : index
    %c0_204 = arith.constant 0 : index
    %215 = vector.load %arg12[%c40_203, %c0_204] : memref<152x512xf32, #tpu.memory_space<vmem>>, vector<8x512xf32>
    tpu.vector_store %arg12[%c40_203, %c0_204], %214 {strides = array<i32>} : memref<152x512xf32, #tpu.memory_space<vmem>>, vector<8x512xf32>,
    %c0_205 = arith.constant 0 : index
    %c143_206 = arith.constant 143 : index
    %216 = vector.load %arg11[%c0_205, %c143_206] : memref<16x768xf32, #tpu.memory_space<vmem>>, vector<8x512xf32>
    %217 = vector.broadcast %9 : vector<1x512xf32> to vector<8x512xf32>
    %218 = arith.mulf %216, %217 : vector<8x512xf32>
    %c48_207 = arith.constant 48 : index
    %c0_208 = arith.constant 0 : index
    %219 = vector.load %arg12[%c48_207, %c0_208] : memref<152x512xf32, #tpu.memory_space<vmem>>, vector<8x512xf32>
    tpu.vector_store %arg12[%c48_207, %c0_208], %218 {strides = array<i32>} : memref<152x512xf32, #tpu.memory_space<vmem>>, vector<8x512xf32>,
    %c0_209 = arith.constant 0 : index
    %c144_210 = arith.constant 144 : index
    %220 = vector.load %arg11[%c0_209, %c144_210] : memref<16x768xf32, #tpu.memory_space<vmem>>, vector<8x512xf32>
    %221 = vector.broadcast %10 : vector<1x512xf32> to vector<8x512xf32>
    %222 = arith.mulf %220, %221 : vector<8x512xf32>
    %c56_211 = arith.constant 56 : index
    %c0_212 = arith.constant 0 : index
    %223 = vector.load %arg12[%c56_211, %c0_212] : memref<152x512xf32, #tpu.memory_space<vmem>>, vector<8x512xf32>
    tpu.vector_store %arg12[%c56_211, %c0_212], %222 {strides = array<i32>} : memref<152x512xf32, #tpu.memory_space<vmem>>, vector<8x512xf32>,
    %c0_213 = arith.constant 0 : index
    %c145_214 = arith.constant 145 : index
    %224 = vector.load %arg11[%c0_213, %c145_214] : memref<16x768xf32, #tpu.memory_space<vmem>>, vector<8x512xf32>
    %225 = vector.broadcast %11 : vector<1x512xf32> to vector<8x512xf32>
    %226 = arith.mulf %224, %225 : vector<8x512xf32>
    %c64_215 = arith.constant 64 : index
    %c0_216 = arith.constant 0 : index
    %227 = vector.load %arg12[%c64_215, %c0_216] : memref<152x512xf32, #tpu.memory_space<vmem>>, vector<8x512xf32>
    tpu.vector_store %arg12[%c64_215, %c0_216], %226 {strides = array<i32>} : memref<152x512xf32, #tpu.memory_space<vmem>>, vector<8x512xf32>,
    %c72_217 = arith.constant 72 : index
    %c0_218 = arith.constant 0 : index
    %228 = vector.load %arg12[%c72_217, %c0_218] : memref<152x512xf32, #tpu.memory_space<vmem>>, vector<8x512xf32>
    tpu.vector_store %arg12[%c72_217, %c0_218], %16 {strides = array<i32>} : memref<152x512xf32, #tpu.memory_space<vmem>>, vector<8x512xf32>,
    %c0_219 = arith.constant 0 : index
    %c0_220 = arith.constant 0 : index
    %229 = vector.load %arg7[%c0_219, %c0_220] : memref<8x80xbf16, #tpu.memory_space<vmem>>, vector<8x80xbf16>
    %c0_221 = arith.constant 0 : index
    %c0_222 = arith.constant 0 : index
    %230 = vector.load %arg12[%c0_221, %c0_222] : memref<152x512xf32, #tpu.memory_space<vmem>>, vector<80x512xf32>
    %231 = arith.truncf %230 : vector<80x512xf32> to vector<80x512xbf16>
    %cst_223 = arith.constant dense<0.000000e+00> : vector<8x512xf32>
    %232 = tpu.matmul %229, %231, %cst_223 {dimension_numbers = #tpu.dot_dimension_numbers<[1], [0], [0], [1], [0, 0, 1, 1], [], []>} : vector<8x80xbf16>, vector<80x512xbf16>, vector<8x512xf32> -> vector<8x512xf32>
    %233 = arith.addf %150, %232 : vector<8x512xf32>
    %c0_224 = arith.constant 0 : index
    %c0_225 = arith.constant 0 : index
    %234 = vector.load %arg10[%c0_224, %c0_225] : memref<8x512xf32, #tpu.memory_space<vmem>>, vector<8x512xf32>
    tpu.vector_store %arg10[%c0_224, %c0_225], %233 {strides = array<i32>} : memref<8x512xf32, #tpu.memory_space<vmem>>, vector<8x512xf32>,
    return
  }
  func.func @transform_0(%arg0: i32) -> (i32, i32) {
    %c0_i32 = arith.constant 0 : i32
    %c0_i32_0 = arith.constant 0 : i32
    return %c0_i32, %arg0 : i32, i32
  }
  func.func @transform_1(%arg0: i32) -> (i32, i32, i32) {
    %c0_i32 = arith.constant 0 : i32
    %c0_i32_0 = arith.constant 0 : i32
    %c0_i32_1 = arith.constant 0 : i32
    return %arg0, %c0_i32, %c0_i32_0 : i32, i32, i32
  }
  func.func @transform_2(%arg0: i32) -> (i32, i32) {
    %c0_i32 = arith.constant 0 : i32
    %c0_i32_0 = arith.constant 0 : i32
    %c0_i32_1 = arith.constant 0 : i32
    return %c0_i32, %c0_i32_0 : i32, i32
  }
  func.func @transform_3(%arg0: i32) -> (i32, i32) {
    %c0_i32 = arith.constant 0 : i32
    %c0_i32_0 = arith.constant 0 : i32
    %c0_i32_1 = arith.constant 0 : i32
    return %c0_i32, %c0_i32_0 : i32, i32
  }
  func.func @transform_4(%arg0: i32) -> (i32, i32) {
    %c0_i32 = arith.constant 0 : i32
    %c0_i32_0 = arith.constant 0 : i32
    %c0_i32_1 = arith.constant 0 : i32
    return %c0_i32, %c0_i32_0 : i32, i32
  }
  func.func @transform_5(%arg0: i32) -> (i32, i32) {
    %c0_i32 = arith.constant 0 : i32
    %c0_i32_0 = arith.constant 0 : i32
    %c0_i32_1 = arith.constant 0 : i32
    return %c0_i32, %c0_i32_0 : i32, i32
  }
  func.func @transform_6(%arg0: i32) -> (i32, i32) {
    %c0_i32 = arith.constant 0 : i32
    %c0_i32_0 = arith.constant 0 : i32
    %c0_i32_1 = arith.constant 0 : i32
    return %c0_i32, %c0_i32_0 : i32, i32
  }
  func.func @transform_7(%arg0: i32) -> (i32, i32) {
    %c0_i32 = arith.constant 0 : i32
    %c0_i32_0 = arith.constant 0 : i32
    %c0_i32_1 = arith.constant 0 : i32
    return %c0_i32, %c0_i32_0 : i32, i32
  }
  func.func @transform_8(%arg0: i32) -> (i32, i32) {
    %c0_i32 = arith.constant 0 : i32
    %c0_i32_0 = arith.constant 0 : i32
    %c0_i32_1 = arith.constant 0 : i32
    return %c0_i32, %c0_i32_0 : i32, i32
  }
  func.func @transform_9(%arg0: i32) -> (i32, i32) {
    %c0_i32 = arith.constant 0 : i32
    %c0_i32_0 = arith.constant 0 : i32
    return %c0_i32, %arg0 : i32, i32
  }
}

module attributes {stable_mosaic.version = 11 : i64} {
  func.func @refine_kernel(%arg0: i32, %arg1: memref<16x512xf32, #tpu.memory_space<vmem>>, %arg2: memref<2x8x64xf32, #tpu.memory_space<vmem>>, %arg3: memref<8x152xbf16, #tpu.memory_space<vmem>>, %arg4: memref<8x80xbf16, #tpu.memory_space<vmem>>, %arg5: memref<8x80xbf16, #tpu.memory_space<vmem>>, %arg6: memref<8x80xbf16, #tpu.memory_space<vmem>>, %arg7: memref<8x80xbf16, #tpu.memory_space<vmem>>, %arg8: memref<64x256xbf16, #tpu.memory_space<vmem>>, %arg9: memref<9x512xf32, #tpu.memory_space<vmem>>, %arg10: memref<8x512xf32, #tpu.memory_space<vmem>>, %arg11: memref<16x768xf32, #tpu.memory_space<vmem>>, %arg12: memref<152x512xf32, #tpu.memory_space<vmem>>) attributes {dimension_semantics = [#tpu.dimension_semantics<parallel>], iteration_bounds = array<i64: 2>, scalar_prefetch = 0 : i64, scratch_operands = 2 : i64, tpu.core_type = #tpu.core_type<tc>, window_params = [{transform_indices = @transform_0, window_bounds = array<i64: 16, 512>}, {transform_indices = @transform_1, window_bounds = array<i64: 2, 8, 64>}, {pipeline_mode = #tpu.pipeline_mode<synchronous>, transform_indices = @transform_2, window_bounds = array<i64: 8, 152>}, {pipeline_mode = #tpu.pipeline_mode<synchronous>, transform_indices = @transform_3, window_bounds = array<i64: 8, 80>}, {pipeline_mode = #tpu.pipeline_mode<synchronous>, transform_indices = @transform_4, window_bounds = array<i64: 8, 80>}, {pipeline_mode = #tpu.pipeline_mode<synchronous>, transform_indices = @transform_5, window_bounds = array<i64: 8, 80>}, {pipeline_mode = #tpu.pipeline_mode<synchronous>, transform_indices = @transform_6, window_bounds = array<i64: 8, 80>}, {pipeline_mode = #tpu.pipeline_mode<synchronous>, transform_indices = @transform_7, window_bounds = array<i64: 64, 256>}, {pipeline_mode = #tpu.pipeline_mode<synchronous>, transform_indices = @transform_8, window_bounds = array<i64: 9, 512>}, {transform_indices = @transform_9, window_bounds = array<i64: 8, 512>}]} {
    %cst = arith.constant 0.000000e+00 : f32
    %0 = vector.broadcast %cst : f32 to vector<16x128xf32>
    %c0 = arith.constant 0 : index
    %c0_0 = arith.constant 0 : index
    %1 = vector.load %arg11[%c0, %c0_0] : memref<16x768xf32, #tpu.memory_space<vmem>>, vector<16x128xf32>
    tpu.vector_store %arg11[%c0, %c0_0], %0 {strides = array<i32>} : memref<16x768xf32, #tpu.memory_space<vmem>>, vector<16x128xf32>,
    %cst_1 = arith.constant 0.000000e+00 : f32
    %2 = vector.broadcast %cst_1 : f32 to vector<16x128xf32>
    %c0_2 = arith.constant 0 : index
    %c640 = arith.constant 640 : index
    %3 = vector.load %arg11[%c0_2, %c640] : memref<16x768xf32, #tpu.memory_space<vmem>>, vector<16x128xf32>
    tpu.vector_store %arg11[%c0_2, %c640], %2 {strides = array<i32>} : memref<16x768xf32, #tpu.memory_space<vmem>>, vector<16x128xf32>,
    %c0_3 = arith.constant 0 : index
    %c0_4 = arith.constant 0 : index
    %4 = vector.load %arg9[%c0_3, %c0_4] : memref<9x512xf32, #tpu.memory_space<vmem>>, vector<1x512xf32>
    %c1 = arith.constant 1 : index
    %c0_5 = arith.constant 0 : index
    %5 = vector.load %arg9[%c1, %c0_5] : memref<9x512xf32, #tpu.memory_space<vmem>>, vector<1x512xf32>
    %c2 = arith.constant 2 : index
    %c0_6 = arith.constant 0 : index
    %6 = vector.load %arg9[%c2, %c0_6] : memref<9x512xf32, #tpu.memory_space<vmem>>, vector<1x512xf32>
    %c3 = arith.constant 3 : index
    %c0_7 = arith.constant 0 : index
    %7 = vector.load %arg9[%c3, %c0_7] : memref<9x512xf32, #tpu.memory_space<vmem>>, vector<1x512xf32>
    %c5 = arith.constant 5 : index
    %c0_8 = arith.constant 0 : index
    %8 = vector.load %arg9[%c5, %c0_8] : memref<9x512xf32, #tpu.memory_space<vmem>>, vector<1x512xf32>
    %c6 = arith.constant 6 : index
    %c0_9 = arith.constant 0 : index
    %9 = vector.load %arg9[%c6, %c0_9] : memref<9x512xf32, #tpu.memory_space<vmem>>, vector<1x512xf32>
    %c7 = arith.constant 7 : index
    %c0_10 = arith.constant 0 : index
    %10 = vector.load %arg9[%c7, %c0_10] : memref<9x512xf32, #tpu.memory_space<vmem>>, vector<1x512xf32>
    %c8 = arith.constant 8 : index
    %c0_11 = arith.constant 0 : index
    %11 = vector.load %arg9[%c8, %c0_11] : memref<9x512xf32, #tpu.memory_space<vmem>>, vector<1x512xf32>
    %12 = tpu.iota {dimensions = array<i32: 0>} : vector<8x512xi32>
    %c0_i32 = arith.constant 0 : i32
    %13 = vector.broadcast %c0_i32 : i32 to vector<8x512xi32>
    %14 = arith.cmpi eq, %12, %13 : vector<8x512xi32>
    %15 = arith.extui %14 : vector<8x512xi1> to vector<8x512xi32>
    %16 = arith.sitofp %15 : vector<8x512xi32> to vector<8x512xf32>
    %c0_12 = arith.constant 0 : index
    %c0_13 = arith.constant 0 : index
    %17 = vector.load %arg1[%c0_12, %c0_13] : memref<16x512xf32, #tpu.memory_space<vmem>>, vector<16x512xf32>
    %c0_14 = arith.constant 0 : index
    %c128 = arith.constant 128 : index
    %18 = vector.load %arg11[%c0_14, %c128] : memref<16x768xf32, #tpu.memory_space<vmem>>, vector<16x512xf32>
    tpu.vector_store %arg11[%c0_14, %c128], %17 {strides = array<i32>} : memref<16x768xf32, #tpu.memory_space<vmem>>, vector<16x512xf32>,
    %c0_15 = arith.constant 0 : index
    %c111 = arith.constant 111 : index
    %19 = vector.load %arg11[%c0_15, %c111] : memref<16x768xf32, #tpu.memory_space<vmem>>, vector<16x512xf32>
    %20 = vector.broadcast %4 : vector<1x512xf32> to vector<16x512xf32>
    %21 = arith.mulf %19, %20 : vector<16x512xf32>
    %c0_16 = arith.constant 0 : index
    %c0_17 = arith.constant 0 : index
    %22 = vector.load %arg12[%c0_16, %c0_17] : memref<152x512xf32, #tpu.memory_space<vmem>>, vector<16x512xf32>
    tpu.vector_store %arg12[%c0_16, %c0_17], %21 {strides = array<i32>} : memref<152x512xf32, #tpu.memory_space<vmem>>, vector<16x512xf32>,
    %c0_18 = arith.constant 0 : index
    %c112 = arith.constant 112 : index
    %23 = vector.load %arg11[%c0_18, %c112] : memref<16x768xf32, #tpu.memory_space<vmem>>, vector<16x512xf32>
    %24 = vector.broadcast %5 : vector<1x512xf32> to vector<16x512xf32>
    %25 = arith.mulf %23, %24 : vector<16x512xf32>
    %c16 = arith.constant 16 : index
    %c0_19 = arith.constant 0 : index
    %26 = vector.load %arg12[%c16, %c0_19] : memref<152x512xf32, #tpu.memory_space<vmem>>, vector<16x512xf32>
    tpu.vector_store %arg12[%c16, %c0_19], %25 {strides = array<i32>} : memref<152x512xf32, #tpu.memory_space<vmem>>, vector<16x512xf32>,
    %c0_20 = arith.constant 0 : index
    %c113 = arith.constant 113 : index
    %27 = vector.load %arg11[%c0_20, %c113] : memref<16x768xf32, #tpu.memory_space<vmem>>, vector<16x512xf32>
    %28 = vector.broadcast %6 : vector<1x512xf32> to vector<16x512xf32>
    %29 = arith.mulf %27, %28 : vector<16x512xf32>
    %c32 = arith.constant 32 : index
    %c0_21 = arith.constant 0 : index
    %30 = vector.load %arg12[%c32, %c0_21] : memref<152x512xf32, #tpu.memory_space<vmem>>, vector<16x512xf32>
    tpu.vector_store %arg12[%c32, %c0_21], %29 {strides = array<i32>} : memref<152x512xf32, #tpu.memory_space<vmem>>, vector<16x512xf32>,
    %c0_22 = arith.constant 0 : index
    %c127 = arith.constant 127 : index
    %31 = vector.load %arg11[%c0_22, %c127] : memref<16x768xf32, #tpu.memory_space<vmem>>, vector<16x512xf32>
    %32 = vector.broadcast %7 : vector<1x512xf32> to vector<16x512xf32>
    %33 = arith.mulf %31, %32 : vector<16x512xf32>
    %c48 = arith.constant 48 : index
    %c0_23 = arith.constant 0 : index
    %34 = vector.load %arg12[%c48, %c0_23] : memref<152x512xf32, #tpu.memory_space<vmem>>, vector<16x512xf32>
    tpu.vector_store %arg12[%c48, %c0_23], %33 {strides = array<i32>} : memref<152x512xf32, #tpu.memory_space<vmem>>, vector<16x512xf32>,
    %c64 = arith.constant 64 : index
    %c0_24 = arith.constant 0 : index
    %35 = vector.load %arg12[%c64, %c0_24] : memref<152x512xf32, #tpu.memory_space<vmem>>, vector<16x512xf32>
    tpu.vector_store %arg12[%c64, %c0_24], %17 {strides = array<i32>} : memref<152x512xf32, #tpu.memory_space<vmem>>, vector<16x512xf32>,
    %c0_25 = arith.constant 0 : index
    %c129 = arith.constant 129 : index
    %36 = vector.load %arg11[%c0_25, %c129] : memref<16x768xf32, #tpu.memory_space<vmem>>, vector<16x512xf32>
    %37 = vector.broadcast %8 : vector<1x512xf32> to vector<16x512xf32>
    %38 = arith.mulf %36, %37 : vector<16x512xf32>
    %c80 = arith.constant 80 : index
    %c0_26 = arith.constant 0 : index
    %39 = vector.load %arg12[%c80, %c0_26] : memref<152x512xf32, #tpu.memory_space<vmem>>, vector<16x512xf32>
    tpu.vector_store %arg12[%c80, %c0_26], %38 {strides = array<i32>} : memref<152x512xf32, #tpu.memory_space<vmem>>, vector<16x512xf32>,
    %c0_27 = arith.constant 0 : index
    %c143 = arith.constant 143 : index
    %40 = vector.load %arg11[%c0_27, %c143] : memref<16x768xf32, #tpu.memory_space<vmem>>, vector<16x512xf32>
    %41 = vector.broadcast %9 : vector<1x512xf32> to vector<16x512xf32>
    %42 = arith.mulf %40, %41 : vector<16x512xf32>
    %c96 = arith.constant 96 : index
    %c0_28 = arith.constant 0 : index
    %43 = vector.load %arg12[%c96, %c0_28] : memref<152x512xf32, #tpu.memory_space<vmem>>, vector<16x512xf32>
    tpu.vector_store %arg12[%c96, %c0_28], %42 {strides = array<i32>} : memref<152x512xf32, #tpu.memory_space<vmem>>, vector<16x512xf32>,
    %c0_29 = arith.constant 0 : index
    %c144 = arith.constant 144 : index
    %44 = vector.load %arg11[%c0_29, %c144] : memref<16x768xf32, #tpu.memory_space<vmem>>, vector<16x512xf32>
    %45 = vector.broadcast %10 : vector<1x512xf32> to vector<16x512xf32>
    %46 = arith.mulf %44, %45 : vector<16x512xf32>
    %c112_30 = arith.constant 112 : index
    %c0_31 = arith.constant 0 : index
    %47 = vector.load %arg12[%c112_30, %c0_31] : memref<152x512xf32, #tpu.memory_space<vmem>>, vector<16x512xf32>
    tpu.vector_store %arg12[%c112_30, %c0_31], %46 {strides = array<i32>} : memref<152x512xf32, #tpu.memory_space<vmem>>, vector<16x512xf32>,
    %c0_32 = arith.constant 0 : index
    %c145 = arith.constant 145 : index
    %48 = vector.load %arg11[%c0_32, %c145] : memref<16x768xf32, #tpu.memory_space<vmem>>, vector<16x512xf32>
    %49 = vector.broadcast %11 : vector<1x512xf32> to vector<16x512xf32>
    %50 = arith.mulf %48, %49 : vector<16x512xf32>
    %c128_33 = arith.constant 128 : index
    %c0_34 = arith.constant 0 : index
    %51 = vector.load %arg12[%c128_33, %c0_34] : memref<152x512xf32, #tpu.memory_space<vmem>>, vector<16x512xf32>
    tpu.vector_store %arg12[%c128_33, %c0_34], %50 {strides = array<i32>} : memref<152x512xf32, #tpu.memory_space<vmem>>, vector<16x512xf32>,
    %c144_35 = arith.constant 144 : index
    %c0_36 = arith.constant 0 : index
    %52 = vector.load %arg12[%c144_35, %c0_36] : memref<152x512xf32, #tpu.memory_space<vmem>>, vector<8x512xf32>
    tpu.vector_store %arg12[%c144_35, %c0_36], %16 {strides = array<i32>} : memref<152x512xf32, #tpu.memory_space<vmem>>, vector<8x512xf32>,
    %c0_37 = arith.constant 0 : index
    %c0_38 = arith.constant 0 : index
    %53 = vector.load %arg3[%c0_37, %c0_38] : memref<8x152xbf16, #tpu.memory_space<vmem>>, vector<8x152xbf16>
    %c0_39 = arith.constant 0 : index
    %c0_40 = arith.constant 0 : index
    %54 = vector.load %arg12[%c0_39, %c0_40] : memref<152x512xf32, #tpu.memory_space<vmem>>, vector<152x512xf32>
    %55 = arith.truncf %54 : vector<152x512xf32> to vector<152x512xbf16>
    %cst_41 = arith.constant dense<0.000000e+00> : vector<8x512xf32>
    %56 = tpu.matmul %53, %55, %cst_41 {dimension_numbers = #tpu.dot_dimension_numbers<[1], [0], [0], [1], [0, 0, 1, 1], [], []>} : vector<8x152xbf16>, vector<152x512xbf16>, vector<8x512xf32> -> vector<8x512xf32>
    %cst_42 = arith.constant 0.000000e+00 : f32
    %57 = vector.broadcast %cst_42 : f32 to vector<8x512xf32>
    %58 = arith.maximumf %56, %57 : vector<8x512xf32>
    %c0_43 = arith.constant 0 : index
    %c128_44 = arith.constant 128 : index
    %59 = vector.load %arg11[%c0_43, %c128_44] : memref<16x768xf32, #tpu.memory_space<vmem>>, vector<8x512xf32>
    tpu.vector_store %arg11[%c0_43, %c128_44], %58 {strides = array<i32>} : memref<16x768xf32, #tpu.memory_space<vmem>>, vector<8x512xf32>,
    %c0_45 = arith.constant 0 : index
    %c111_46 = arith.constant 111 : index
    %60 = vector.load %arg11[%c0_45, %c111_46] : memref<16x768xf32, #tpu.memory_space<vmem>>, vector<8x512xf32>
    %61 = vector.broadcast %4 : vector<1x512xf32> to vector<8x512xf32>
    %62 = arith.mulf %60, %61 : vector<8x512xf32>
    %c0_47 = arith.constant 0 : index
    %c0_48 = arith.constant 0 : index
    %63 = vector.load %arg12[%c0_47, %c0_48] : memref<152x512xf32, #tpu.memory_space<vmem>>, vector<8x512xf32>
    tpu.vector_store %arg12[%c0_47, %c0_48], %62 {strides = array<i32>} : memref<152x512xf32, #tpu.memory_space<vmem>>, vector<8x512xf32>,
    %c0_49 = arith.constant 0 : index
    %c112_50 = arith.constant 112 : index
    %64 = vector.load %arg11[%c0_49, %c112_50] : memref<16x768xf32, #tpu.memory_space<vmem>>, vector<8x512xf32>
    %65 = vector.broadcast %5 : vector<1x512xf32> to vector<8x512xf32>
    %66 = arith.mulf %64, %65 : vector<8x512xf32>
    %c8_51 = arith.constant 8 : index
    %c0_52 = arith.constant 0 : index
    %67 = vector.load %arg12[%c8_51, %c0_52] : memref<152x512xf32, #tpu.memory_space<vmem>>, vector<8x512xf32>
    tpu.vector_store %arg12[%c8_51, %c0_52], %66 {strides = array<i32>} : memref<152x512xf32, #tpu.memory_space<vmem>>, vector<8x512xf32>,
    %c0_53 = arith.constant 0 : index
    %c113_54 = arith.constant 113 : index
    %68 = vector.load %arg11[%c0_53, %c113_54] : memref<16x768xf32, #tpu.memory_space<vmem>>, vector<8x512xf32>
    %69 = vector.broadcast %6 : vector<1x512xf32> to vector<8x512xf32>
    %70 = arith.mulf %68, %69 : vector<8x512xf32>
    %c16_55 = arith.constant 16 : index
    %c0_56 = arith.constant 0 : index
    %71 = vector.load %arg12[%c16_55, %c0_56] : memref<152x512xf32, #tpu.memory_space<vmem>>, vector<8x512xf32>
    tpu.vector_store %arg12[%c16_55, %c0_56], %70 {strides = array<i32>} : memref<152x512xf32, #tpu.memory_space<vmem>>, vector<8x512xf32>,
    %c0_57 = arith.constant 0 : index
    %c127_58 = arith.constant 127 : index
    %72 = vector.load %arg11[%c0_57, %c127_58] : memref<16x768xf32, #tpu.memory_space<vmem>>, vector<8x512xf32>
    %73 = vector.broadcast %7 : vector<1x512xf32> to vector<8x512xf32>
    %74 = arith.mulf %72, %73 : vector<8x512xf32>
    %c24 = arith.constant 24 : index
    %c0_59 = arith.constant 0 : index
    %75 = vector.load %arg12[%c24, %c0_59] : memref<152x512xf32, #tpu.memory_space<vmem>>, vector<8x512xf32>
    tpu.vector_store %arg12[%c24, %c0_59], %74 {strides = array<i32>} : memref<152x512xf32, #tpu.memory_space<vmem>>, vector<8x512xf32>,
    %c32_60 = arith.constant 32 : index
    %c0_61 = arith.constant 0 : index
    %76 = vector.load %arg12[%c32_60, %c0_61] : memref<152x512xf32, #tpu.memory_space<vmem>>, vector<8x512xf32>
    tpu.vector_store %arg12[%c32_60, %c0_61], %58 {strides = array<i32>} : memref<152x512xf32, #tpu.memory_space<vmem>>, vector<8x512xf32>,
    %c0_62 = arith.constant 0 : index
    %c129_63 = arith.constant 129 : index
    %77 = vector.load %arg11[%c0_62, %c129_63] : memref<16x768xf32, #tpu.memory_space<vmem>>, vector<8x512xf32>
    %78 = vector.broadcast %8 : vector<1x512xf32> to vector<8x512xf32>
    %79 = arith.mulf %77, %78 : vector<8x512xf32>
    %c40 = arith.constant 40 : index
    %c0_64 = arith.constant 0 : index
    %80 = vector.load %arg12[%c40, %c0_64] : memref<152x512xf32, #tpu.memory_space<vmem>>, vector<8x512xf32>
    tpu.vector_store %arg12[%c40, %c0_64], %79 {strides = array<i32>} : memref<152x512xf32, #tpu.memory_space<vmem>>, vector<8x512xf32>,
    %c0_65 = arith.constant 0 : index
    %c143_66 = arith.constant 143 : index
    %81 = vector.load %arg11[%c0_65, %c143_66] : memref<16x768xf32, #tpu.memory_space<vmem>>, vector<8x512xf32>
    %82 = vector.broadcast %9 : vector<1x512xf32> to vector<8x512xf32>
    %83 = arith.mulf %81, %82 : vector<8x512xf32>
    %c48_67 = arith.constant 48 : index
    %c0_68 = arith.constant 0 : index
    %84 = vector.load %arg12[%c48_67, %c0_68] : memref<152x512xf32, #tpu.memory_space<vmem>>, vector<8x512xf32>
    tpu.vector_store %arg12[%c48_67, %c0_68], %83 {strides = array<i32>} : memref<152x512xf32, #tpu.memory_space<vmem>>, vector<8x512xf32>,
    %c0_69 = arith.constant 0 : index
    %c144_70 = arith.constant 144 : index
    %85 = vector.load %arg11[%c0_69, %c144_70] : memref<16x768xf32, #tpu.memory_space<vmem>>, vector<8x512xf32>
    %86 = vector.broadcast %10 : vector<1x512xf32> to vector<8x512xf32>
    %87 = arith.mulf %85, %86 : vector<8x512xf32>
    %c56 = arith.constant 56 : index
    %c0_71 = arith.constant 0 : index
    %88 = vector.load %arg12[%c56, %c0_71] : memref<152x512xf32, #tpu.memory_space<vmem>>, vector<8x512xf32>
    tpu.vector_store %arg12[%c56, %c0_71], %87 {strides = array<i32>} : memref<152x512xf32, #tpu.memory_space<vmem>>, vector<8x512xf32>,
    %c0_72 = arith.constant 0 : index
    %c145_73 = arith.constant 145 : index
    %89 = vector.load %arg11[%c0_72, %c145_73] : memref<16x768xf32, #tpu.memory_space<vmem>>, vector<8x512xf32>
    %90 = vector.broadcast %11 : vector<1x512xf32> to vector<8x512xf32>
    %91 = arith.mulf %89, %90 : vector<8x512xf32>
    %c64_74 = arith.constant 64 : index
    %c0_75 = arith.constant 0 : index
    %92 = vector.load %arg12[%c64_74, %c0_75] : memref<152x512xf32, #tpu.memory_space<vmem>>, vector<8x512xf32>
    tpu.vector_store %arg12[%c64_74, %c0_75], %91 {strides = array<i32>} : memref<152x512xf32, #tpu.memory_space<vmem>>, vector<8x512xf32>,
    %c72 = arith.constant 72 : index
    %c0_76 = arith.constant 0 : index
    %93 = vector.load %arg12[%c72, %c0_76] : memref<152x512xf32, #tpu.memory_space<vmem>>, vector<8x512xf32>
    tpu.vector_store %arg12[%c72, %c0_76], %16 {strides = array<i32>} : memref<152x512xf32, #tpu.memory_space<vmem>>, vector<8x512xf32>,
    %c0_77 = arith.constant 0 : index
    %c0_78 = arith.constant 0 : index
    %94 = vector.load %arg4[%c0_77, %c0_78] : memref<8x80xbf16, #tpu.memory_space<vmem>>, vector<8x80xbf16>
    %c0_79 = arith.constant 0 : index
    %c0_80 = arith.constant 0 : index
    %95 = vector.load %arg12[%c0_79, %c0_80] : memref<152x512xf32, #tpu.memory_space<vmem>>, vector<80x512xf32>
    %96 = arith.truncf %95 : vector<80x512xf32> to vector<80x512xbf16>
    %cst_81 = arith.constant dense<0.000000e+00> : vector<8x512xf32>
    %97 = tpu.matmul %94, %96, %cst_81 {dimension_numbers = #tpu.dot_dimension_numbers<[1], [0], [0], [1], [0, 0, 1, 1], [], []>} : vector<8x80xbf16>, vector<80x512xbf16>, vector<8x512xf32> -> vector<8x512xf32>
    %cst_82 = arith.constant 0.000000e+00 : f32
    %98 = vector.broadcast %cst_82 : f32 to vector<8x512xf32>
    %99 = arith.maximumf %97, %98 : vector<8x512xf32>
    %c0_83 = arith.constant 0 : index
    %c128_84 = arith.constant 128 : index
    %100 = vector.load %arg11[%c0_83, %c128_84] : memref<16x768xf32, #tpu.memory_space<vmem>>, vector<8x512xf32>
    tpu.vector_store %arg11[%c0_83, %c128_84], %99 {strides = array<i32>} : memref<16x768xf32, #tpu.memory_space<vmem>>, vector<8x512xf32>,
    %c0_85 = arith.constant 0 : index
    %c111_86 = arith.constant 111 : index
    %101 = vector.load %arg11[%c0_85, %c111_86] : memref<16x768xf32, #tpu.memory_space<vmem>>, vector<8x512xf32>
    %102 = vector.broadcast %4 : vector<1x512xf32> to vector<8x512xf32>
    %103 = arith.mulf %101, %102 : vector<8x512xf32>
    %c0_87 = arith.constant 0 : index
    %c0_88 = arith.constant 0 : index
    %104 = vector.load %arg12[%c0_87, %c0_88] : memref<152x512xf32, #tpu.memory_space<vmem>>, vector<8x512xf32>
    tpu.vector_store %arg12[%c0_87, %c0_88], %103 {strides = array<i32>} : memref<152x512xf32, #tpu.memory_space<vmem>>, vector<8x512xf32>,
    %c0_89 = arith.constant 0 : index
    %c112_90 = arith.constant 112 : index
    %105 = vector.load %arg11[%c0_89, %c112_90] : memref<16x768xf32, #tpu.memory_space<vmem>>, vector<8x512xf32>
    %106 = vector.broadcast %5 : vector<1x512xf32> to vector<8x512xf32>
    %107 = arith.mulf %105, %106 : vector<8x512xf32>
    %c8_91 = arith.constant 8 : index
    %c0_92 = arith.constant 0 : index
    %108 = vector.load %arg12[%c8_91, %c0_92] : memref<152x512xf32, #tpu.memory_space<vmem>>, vector<8x512xf32>
    tpu.vector_store %arg12[%c8_91, %c0_92], %107 {strides = array<i32>} : memref<152x512xf32, #tpu.memory_space<vmem>>, vector<8x512xf32>,
    %c0_93 = arith.constant 0 : index
    %c113_94 = arith.constant 113 : index
    %109 = vector.load %arg11[%c0_93, %c113_94] : memref<16x768xf32, #tpu.memory_space<vmem>>, vector<8x512xf32>
    %110 = vector.broadcast %6 : vector<1x512xf32> to vector<8x512xf32>
    %111 = arith.mulf %109, %110 : vector<8x512xf32>
    %c16_95 = arith.constant 16 : index
    %c0_96 = arith.constant 0 : index
    %112 = vector.load %arg12[%c16_95, %c0_96] : memref<152x512xf32, #tpu.memory_space<vmem>>, vector<8x512xf32>
    tpu.vector_store %arg12[%c16_95, %c0_96], %111 {strides = array<i32>} : memref<152x512xf32, #tpu.memory_space<vmem>>, vector<8x512xf32>,
    %c0_97 = arith.constant 0 : index
    %c127_98 = arith.constant 127 : index
    %113 = vector.load %arg11[%c0_97, %c127_98] : memref<16x768xf32, #tpu.memory_space<vmem>>, vector<8x512xf32>
    %114 = vector.broadcast %7 : vector<1x512xf32> to vector<8x512xf32>
    %115 = arith.mulf %113, %114 : vector<8x512xf32>
    %c24_99 = arith.constant 24 : index
    %c0_100 = arith.constant 0 : index
    %116 = vector.load %arg12[%c24_99, %c0_100] : memref<152x512xf32, #tpu.memory_space<vmem>>, vector<8x512xf32>
    tpu.vector_store %arg12[%c24_99, %c0_100], %115 {strides = array<i32>} : memref<152x512xf32, #tpu.memory_space<vmem>>, vector<8x512xf32>,
    %c32_101 = arith.constant 32 : index
    %c0_102 = arith.constant 0 : index
    %117 = vector.load %arg12[%c32_101, %c0_102] : memref<152x512xf32, #tpu.memory_space<vmem>>, vector<8x512xf32>
    tpu.vector_store %arg12[%c32_101, %c0_102], %99 {strides = array<i32>} : memref<152x512xf32, #tpu.memory_space<vmem>>, vector<8x512xf32>,
    %c0_103 = arith.constant 0 : index
    %c129_104 = arith.constant 129 : index
    %118 = vector.load %arg11[%c0_103, %c129_104] : memref<16x768xf32, #tpu.memory_space<vmem>>, vector<8x512xf32>
    %119 = vector.broadcast %8 : vector<1x512xf32> to vector<8x512xf32>
    %120 = arith.mulf %118, %119 : vector<8x512xf32>
    %c40_105 = arith.constant 40 : index
    %c0_106 = arith.constant 0 : index
    %121 = vector.load %arg12[%c40_105, %c0_106] : memref<152x512xf32, #tpu.memory_space<vmem>>, vector<8x512xf32>
    tpu.vector_store %arg12[%c40_105, %c0_106], %120 {strides = array<i32>} : memref<152x512xf32, #tpu.memory_space<vmem>>, vector<8x512xf32>,
    %c0_107 = arith.constant 0 : index
    %c143_108 = arith.constant 143 : index
    %122 = vector.load %arg11[%c0_107, %c143_108] : memref<16x768xf32, #tpu.memory_space<vmem>>, vector<8x512xf32>
    %123 = vector.broadcast %9 : vector<1x512xf32> to vector<8x512xf32>
    %124 = arith.mulf %122, %123 : vector<8x512xf32>
    %c48_109 = arith.constant 48 : index
    %c0_110 = arith.constant 0 : index
    %125 = vector.load %arg12[%c48_109, %c0_110] : memref<152x512xf32, #tpu.memory_space<vmem>>, vector<8x512xf32>
    tpu.vector_store %arg12[%c48_109, %c0_110], %124 {strides = array<i32>} : memref<152x512xf32, #tpu.memory_space<vmem>>, vector<8x512xf32>,
    %c0_111 = arith.constant 0 : index
    %c144_112 = arith.constant 144 : index
    %126 = vector.load %arg11[%c0_111, %c144_112] : memref<16x768xf32, #tpu.memory_space<vmem>>, vector<8x512xf32>
    %127 = vector.broadcast %10 : vector<1x512xf32> to vector<8x512xf32>
    %128 = arith.mulf %126, %127 : vector<8x512xf32>
    %c56_113 = arith.constant 56 : index
    %c0_114 = arith.constant 0 : index
    %129 = vector.load %arg12[%c56_113, %c0_114] : memref<152x512xf32, #tpu.memory_space<vmem>>, vector<8x512xf32>
    tpu.vector_store %arg12[%c56_113, %c0_114], %128 {strides = array<i32>} : memref<152x512xf32, #tpu.memory_space<vmem>>, vector<8x512xf32>,
    %c0_115 = arith.constant 0 : index
    %c145_116 = arith.constant 145 : index
    %130 = vector.load %arg11[%c0_115, %c145_116] : memref<16x768xf32, #tpu.memory_space<vmem>>, vector<8x512xf32>
    %131 = vector.broadcast %11 : vector<1x512xf32> to vector<8x512xf32>
    %132 = arith.mulf %130, %131 : vector<8x512xf32>
    %c64_117 = arith.constant 64 : index
    %c0_118 = arith.constant 0 : index
    %133 = vector.load %arg12[%c64_117, %c0_118] : memref<152x512xf32, #tpu.memory_space<vmem>>, vector<8x512xf32>
    tpu.vector_store %arg12[%c64_117, %c0_118], %132 {strides = array<i32>} : memref<152x512xf32, #tpu.memory_space<vmem>>, vector<8x512xf32>,
    %c72_119 = arith.constant 72 : index
    %c0_120 = arith.constant 0 : index
    %134 = vector.load %arg12[%c72_119, %c0_120] : memref<152x512xf32, #tpu.memory_space<vmem>>, vector<8x512xf32>
    tpu.vector_store %arg12[%c72_119, %c0_120], %16 {strides = array<i32>} : memref<152x512xf32, #tpu.memory_space<vmem>>, vector<8x512xf32>,
    %c0_121 = arith.constant 0 : index
    %c0_122 = arith.constant 0 : index
    %135 = vector.load %arg5[%c0_121, %c0_122] : memref<8x80xbf16, #tpu.memory_space<vmem>>, vector<8x80xbf16>
    %c0_123 = arith.constant 0 : index
    %c0_124 = arith.constant 0 : index
    %136 = vector.load %arg12[%c0_123, %c0_124] : memref<152x512xf32, #tpu.memory_space<vmem>>, vector<80x512xf32>
    %137 = arith.truncf %136 : vector<80x512xf32> to vector<80x512xbf16>
    %cst_125 = arith.constant dense<0.000000e+00> : vector<8x512xf32>
    %138 = tpu.matmul %135, %137, %cst_125 {dimension_numbers = #tpu.dot_dimension_numbers<[1], [0], [0], [1], [0, 0, 1, 1], [], []>} : vector<8x80xbf16>, vector<80x512xbf16>, vector<8x512xf32> -> vector<8x512xf32>
    %139 = arith.addf %56, %138 : vector<8x512xf32>
    %c0_126 = arith.constant 0 : index
    %c0_127 = arith.constant 0 : index
    %140 = vector.load %arg8[%c0_126, %c0_127] : memref<64x256xbf16, #tpu.memory_space<vmem>>, vector<64x256xbf16>
    %c0_128 = arith.constant 0 : index
    %c0_129 = arith.constant 0 : index
    %c0_130 = arith.constant 0 : index
    %141 = vector.load %arg2[%c0_128, %c0_129, %c0_130] : memref<2x8x64xf32, #tpu.memory_space<vmem>>, vector<1x8x64xf32>
    %142 = vector.shape_cast %141 : vector<1x8x64xf32> to vector<8x64xf32>
    %143 = arith.truncf %142 : vector<8x64xf32> to vector<8x64xbf16>
    %cst_131 = arith.constant dense<0.000000e+00> : vector<8x256xf32>
    %144 = tpu.matmul %143, %140, %cst_131 {dimension_numbers = #tpu.dot_dimension_numbers<[1], [0], [0], [1], [0, 0, 1, 1], [], []>} : vector<8x64xbf16>, vector<64x256xbf16>, vector<8x256xf32> -> vector<8x256xf32>
    %c1_132 = arith.constant 1 : index
    %c0_133 = arith.constant 0 : index
    %c0_134 = arith.constant 0 : index
    %145 = vector.load %arg2[%c1_132, %c0_133, %c0_134] : memref<2x8x64xf32, #tpu.memory_space<vmem>>, vector<1x8x64xf32>
    %146 = vector.shape_cast %145 : vector<1x8x64xf32> to vector<8x64xf32>
    %147 = arith.truncf %146 : vector<8x64xf32> to vector<8x64xbf16>
    %cst_135 = arith.constant dense<0.000000e+00> : vector<8x256xf32>
    %148 = tpu.matmul %147, %140, %cst_135 {dimension_numbers = #tpu.dot_dimension_numbers<[1], [0], [0], [1], [0, 0, 1, 1], [], []>} : vector<8x64xbf16>, vector<64x256xbf16>, vector<8x256xf32> -> vector<8x256xf32>
    %149 = tpu.concatenate %144, %148 in 1 : vector<8x256xf32>, vector<8x256xf32> -> vector<8x512xf32>
    %150 = arith.addf %139, %149 : vector<8x512xf32>
    %cst_136 = arith.constant 0.000000e+00 : f32
    %151 = vector.broadcast %cst_136 : f32 to vector<8x512xf32>
    %152 = arith.maximumf %150, %151 : vector<8x512xf32>
    %c0_137 = arith.constant 0 : index
    %c128_138 = arith.constant 128 : index
    %153 = vector.load %arg11[%c0_137, %c128_138] : memref<16x768xf32, #tpu.memory_space<vmem>>, vector<8x512xf32>
    tpu.vector_store %arg11[%c0_137, %c128_138], %152 {strides = array<i32>} : memref<16x768xf32, #tpu.memory_space<vmem>>, vector<8x512xf32>,
    %c0_139 = arith.constant 0 : index
    %c111_140 = arith.constant 111 : index
    %154 = vector.load %arg11[%c0_139, %c111_140] : memref<16x768xf32, #tpu.memory_space<vmem>>, vector<8x512xf32>
    %155 = vector.broadcast %4 : vector<1x512xf32> to vector<8x512xf32>
    %156 = arith.mulf %154, %155 : vector<8x512xf32>
    %c0_141 = arith.constant 0 : index
    %c0_142 = arith.constant 0 : index
    %157 = vector.load %arg12[%c0_141, %c0_142] : memref<152x512xf32, #tpu.memory_space<vmem>>, vector<8x512xf32>
    tpu.vector_store %arg12[%c0_141, %c0_142], %156 {strides = array<i32>} : memref<152x512xf32, #tpu.memory_space<vmem>>, vector<8x512xf32>,
    %c0_143 = arith.constant 0 : index
    %c112_144 = arith.constant 112 : index
    %158 = vector.load %arg11[%c0_143, %c112_144] : memref<16x768xf32, #tpu.memory_space<vmem>>, vector<8x512xf32>
    %159 = vector.broadcast %5 : vector<1x512xf32> to vector<8x512xf32>
    %160 = arith.mulf %158, %159 : vector<8x512xf32>
    %c8_145 = arith.constant 8 : index
    %c0_146 = arith.constant 0 : index
    %161 = vector.load %arg12[%c8_145, %c0_146] : memref<152x512xf32, #tpu.memory_space<vmem>>, vector<8x512xf32>
    tpu.vector_store %arg12[%c8_145, %c0_146], %160 {strides = array<i32>} : memref<152x512xf32, #tpu.memory_space<vmem>>, vector<8x512xf32>,
    %c0_147 = arith.constant 0 : index
    %c113_148 = arith.constant 113 : index
    %162 = vector.load %arg11[%c0_147, %c113_148] : memref<16x768xf32, #tpu.memory_space<vmem>>, vector<8x512xf32>
    %163 = vector.broadcast %6 : vector<1x512xf32> to vector<8x512xf32>
    %164 = arith.mulf %162, %163 : vector<8x512xf32>
    %c16_149 = arith.constant 16 : index
    %c0_150 = arith.constant 0 : index
    %165 = vector.load %arg12[%c16_149, %c0_150] : memref<152x512xf32, #tpu.memory_space<vmem>>, vector<8x512xf32>
    tpu.vector_store %arg12[%c16_149, %c0_150], %164 {strides = array<i32>} : memref<152x512xf32, #tpu.memory_space<vmem>>, vector<8x512xf32>,
    %c0_151 = arith.constant 0 : index
    %c127_152 = arith.constant 127 : index
    %166 = vector.load %arg11[%c0_151, %c127_152] : memref<16x768xf32, #tpu.memory_space<vmem>>, vector<8x512xf32>
    %167 = vector.broadcast %7 : vector<1x512xf32> to vector<8x512xf32>
    %168 = arith.mulf %166, %167 : vector<8x512xf32>
    %c24_153 = arith.constant 24 : index
    %c0_154 = arith.constant 0 : index
    %169 = vector.load %arg12[%c24_153, %c0_154] : memref<152x512xf32, #tpu.memory_space<vmem>>, vector<8x512xf32>
    tpu.vector_store %arg12[%c24_153, %c0_154], %168 {strides = array<i32>} : memref<152x512xf32, #tpu.memory_space<vmem>>, vector<8x512xf32>,
    %c32_155 = arith.constant 32 : index
    %c0_156 = arith.constant 0 : index
    %170 = vector.load %arg12[%c32_155, %c0_156] : memref<152x512xf32, #tpu.memory_space<vmem>>, vector<8x512xf32>
    tpu.vector_store %arg12[%c32_155, %c0_156], %152 {strides = array<i32>} : memref<152x512xf32, #tpu.memory_space<vmem>>, vector<8x512xf32>,
    %c0_157 = arith.constant 0 : index
    %c129_158 = arith.constant 129 : index
    %171 = vector.load %arg11[%c0_157, %c129_158] : memref<16x768xf32, #tpu.memory_space<vmem>>, vector<8x512xf32>
    %172 = vector.broadcast %8 : vector<1x512xf32> to vector<8x512xf32>
    %173 = arith.mulf %171, %172 : vector<8x512xf32>
    %c40_159 = arith.constant 40 : index
    %c0_160 = arith.constant 0 : index
    %174 = vector.load %arg12[%c40_159, %c0_160] : memref<152x512xf32, #tpu.memory_space<vmem>>, vector<8x512xf32>
    tpu.vector_store %arg12[%c40_159, %c0_160], %173 {strides = array<i32>} : memref<152x512xf32, #tpu.memory_space<vmem>>, vector<8x512xf32>,
    %c0_161 = arith.constant 0 : index
    %c143_162 = arith.constant 143 : index
    %175 = vector.load %arg11[%c0_161, %c143_162] : memref<16x768xf32, #tpu.memory_space<vmem>>, vector<8x512xf32>
    %176 = vector.broadcast %9 : vector<1x512xf32> to vector<8x512xf32>
    %177 = arith.mulf %175, %176 : vector<8x512xf32>
    %c48_163 = arith.constant 48 : index
    %c0_164 = arith.constant 0 : index
    %178 = vector.load %arg12[%c48_163, %c0_164] : memref<152x512xf32, #tpu.memory_space<vmem>>, vector<8x512xf32>
    tpu.vector_store %arg12[%c48_163, %c0_164], %177 {strides = array<i32>} : memref<152x512xf32, #tpu.memory_space<vmem>>, vector<8x512xf32>,
    %c0_165 = arith.constant 0 : index
    %c144_166 = arith.constant 144 : index
    %179 = vector.load %arg11[%c0_165, %c144_166] : memref<16x768xf32, #tpu.memory_space<vmem>>, vector<8x512xf32>
    %180 = vector.broadcast %10 : vector<1x512xf32> to vector<8x512xf32>
    %181 = arith.mulf %179, %180 : vector<8x512xf32>
    %c56_167 = arith.constant 56 : index
    %c0_168 = arith.constant 0 : index
    %182 = vector.load %arg12[%c56_167, %c0_168] : memref<152x512xf32, #tpu.memory_space<vmem>>, vector<8x512xf32>
    tpu.vector_store %arg12[%c56_167, %c0_168], %181 {strides = array<i32>} : memref<152x512xf32, #tpu.memory_space<vmem>>, vector<8x512xf32>,
    %c0_169 = arith.constant 0 : index
    %c145_170 = arith.constant 145 : index
    %183 = vector.load %arg11[%c0_169, %c145_170] : memref<16x768xf32, #tpu.memory_space<vmem>>, vector<8x512xf32>
    %184 = vector.broadcast %11 : vector<1x512xf32> to vector<8x512xf32>
    %185 = arith.mulf %183, %184 : vector<8x512xf32>
    %c64_171 = arith.constant 64 : index
    %c0_172 = arith.constant 0 : index
    %186 = vector.load %arg12[%c64_171, %c0_172] : memref<152x512xf32, #tpu.memory_space<vmem>>, vector<8x512xf32>
    tpu.vector_store %arg12[%c64_171, %c0_172], %185 {strides = array<i32>} : memref<152x512xf32, #tpu.memory_space<vmem>>, vector<8x512xf32>,
    %c72_173 = arith.constant 72 : index
    %c0_174 = arith.constant 0 : index
    %187 = vector.load %arg12[%c72_173, %c0_174] : memref<152x512xf32, #tpu.memory_space<vmem>>, vector<8x512xf32>
    tpu.vector_store %arg12[%c72_173, %c0_174], %16 {strides = array<i32>} : memref<152x512xf32, #tpu.memory_space<vmem>>, vector<8x512xf32>,
    %c0_175 = arith.constant 0 : index
    %c0_176 = arith.constant 0 : index
    %188 = vector.load %arg6[%c0_175, %c0_176] : memref<8x80xbf16, #tpu.memory_space<vmem>>, vector<8x80xbf16>
    %c0_177 = arith.constant 0 : index
    %c0_178 = arith.constant 0 : index
    %189 = vector.load %arg12[%c0_177, %c0_178] : memref<152x512xf32, #tpu.memory_space<vmem>>, vector<80x512xf32>
    %190 = arith.truncf %189 : vector<80x512xf32> to vector<80x512xbf16>
    %cst_179 = arith.constant dense<0.000000e+00> : vector<8x512xf32>
    %191 = tpu.matmul %188, %190, %cst_179 {dimension_numbers = #tpu.dot_dimension_numbers<[1], [0], [0], [1], [0, 0, 1, 1], [], []>} : vector<8x80xbf16>, vector<80x512xbf16>, vector<8x512xf32> -> vector<8x512xf32>
    %cst_180 = arith.constant 0.000000e+00 : f32
    %192 = vector.broadcast %cst_180 : f32 to vector<8x512xf32>
    %193 = arith.maximumf %191, %192 : vector<8x512xf32>
    %c0_181 = arith.constant 0 : index
    %c128_182 = arith.constant 128 : index
    %194 = vector.load %arg11[%c0_181, %c128_182] : memref<16x768xf32, #tpu.memory_space<vmem>>, vector<8x512xf32>
    tpu.vector_store %arg11[%c0_181, %c128_182], %193 {strides = array<i32>} : memref<16x768xf32, #tpu.memory_space<vmem>>, vector<8x512xf32>,
    %c0_183 = arith.constant 0 : index
    %c111_184 = arith.constant 111 : index
    %195 = vector.load %arg11[%c0_183, %c111_184] : memref<16x768xf32, #tpu.memory_space<vmem>>, vector<8x512xf32>
    %196 = vector.broadcast %4 : vector<1x512xf32> to vector<8x512xf32>
    %197 = arith.mulf %195, %196 : vector<8x512xf32>
    %c0_185 = arith.constant 0 : index
    %c0_186 = arith.constant 0 : index
    %198 = vector.load %arg12[%c0_185, %c0_186] : memref<152x512xf32, #tpu.memory_space<vmem>>, vector<8x512xf32>
    tpu.vector_store %arg12[%c0_185, %c0_186], %197 {strides = array<i32>} : memref<152x512xf32, #tpu.memory_space<vmem>>, vector<8x512xf32>,
    %c0_187 = arith.constant 0 : index
    %c112_188 = arith.constant 112 : index
    %199 = vector.load %arg11[%c0_187, %c112_188] : memref<16x768xf32, #tpu.memory_space<vmem>>, vector<8x512xf32>
    %200 = vector.broadcast %5 : vector<1x512xf32> to vector<8x512xf32>
    %201 = arith.mulf %199, %200 : vector<8x512xf32>
    %c8_189 = arith.constant 8 : index
    %c0_190 = arith.constant 0 : index
    %202 = vector.load %arg12[%c8_189, %c0_190] : memref<152x512xf32, #tpu.memory_space<vmem>>, vector<8x512xf32>
    tpu.vector_store %arg12[%c8_189, %c0_190], %201 {strides = array<i32>} : memref<152x512xf32, #tpu.memory_space<vmem>>, vector<8x512xf32>,
    %c0_191 = arith.constant 0 : index
    %c113_192 = arith.constant 113 : index
    %203 = vector.load %arg11[%c0_191, %c113_192] : memref<16x768xf32, #tpu.memory_space<vmem>>, vector<8x512xf32>
    %204 = vector.broadcast %6 : vector<1x512xf32> to vector<8x512xf32>
    %205 = arith.mulf %203, %204 : vector<8x512xf32>
    %c16_193 = arith.constant 16 : index
    %c0_194 = arith.constant 0 : index
    %206 = vector.load %arg12[%c16_193, %c0_194] : memref<152x512xf32, #tpu.memory_space<vmem>>, vector<8x512xf32>
    tpu.vector_store %arg12[%c16_193, %c0_194], %205 {strides = array<i32>} : memref<152x512xf32, #tpu.memory_space<vmem>>, vector<8x512xf32>,
    %c0_195 = arith.constant 0 : index
    %c127_196 = arith.constant 127 : index
    %207 = vector.load %arg11[%c0_195, %c127_196] : memref<16x768xf32, #tpu.memory_space<vmem>>, vector<8x512xf32>
    %208 = vector.broadcast %7 : vector<1x512xf32> to vector<8x512xf32>
    %209 = arith.mulf %207, %208 : vector<8x512xf32>
    %c24_197 = arith.constant 24 : index
    %c0_198 = arith.constant 0 : index
    %210 = vector.load %arg12[%c24_197, %c0_198] : memref<152x512xf32, #tpu.memory_space<vmem>>, vector<8x512xf32>
    tpu.vector_store %arg12[%c24_197, %c0_198], %209 {strides = array<i32>} : memref<152x512xf32, #tpu.memory_space<vmem>>, vector<8x512xf32>,
    %c32_199 = arith.constant 32 : index
    %c0_200 = arith.constant 0 : index
    %211 = vector.load %arg12[%c32_199, %c0_200] : memref<152x512xf32, #tpu.memory_space<vmem>>, vector<8x512xf32>
    tpu.vector_store %arg12[%c32_199, %c0_200], %193 {strides = array<i32>} : memref<152x512xf32, #tpu.memory_space<vmem>>, vector<8x512xf32>,
    %c0_201 = arith.constant 0 : index
    %c129_202 = arith.constant 129 : index
    %212 = vector.load %arg11[%c0_201, %c129_202] : memref<16x768xf32, #tpu.memory_space<vmem>>, vector<8x512xf32>
    %213 = vector.broadcast %8 : vector<1x512xf32> to vector<8x512xf32>
    %214 = arith.mulf %212, %213 : vector<8x512xf32>
    %c40_203 = arith.constant 40 : index
    %c0_204 = arith.constant 0 : index
    %215 = vector.load %arg12[%c40_203, %c0_204] : memref<152x512xf32, #tpu.memory_space<vmem>>, vector<8x512xf32>
    tpu.vector_store %arg12[%c40_203, %c0_204], %214 {strides = array<i32>} : memref<152x512xf32, #tpu.memory_space<vmem>>, vector<8x512xf32>,
    %c0_205 = arith.constant 0 : index
    %c143_206 = arith.constant 143 : index
    %216 = vector.load %arg11[%c0_205, %c143_206] : memref<16x768xf32, #tpu.memory_space<vmem>>, vector<8x512xf32>
    %217 = vector.broadcast %9 : vector<1x512xf32> to vector<8x512xf32>
    %218 = arith.mulf %216, %217 : vector<8x512xf32>
    %c48_207 = arith.constant 48 : index
    %c0_208 = arith.constant 0 : index
    %219 = vector.load %arg12[%c48_207, %c0_208] : memref<152x512xf32, #tpu.memory_space<vmem>>, vector<8x512xf32>
    tpu.vector_store %arg12[%c48_207, %c0_208], %218 {strides = array<i32>} : memref<152x512xf32, #tpu.memory_space<vmem>>, vector<8x512xf32>,
    %c0_209 = arith.constant 0 : index
    %c144_210 = arith.constant 144 : index
    %220 = vector.load %arg11[%c0_209, %c144_210] : memref<16x768xf32, #tpu.memory_space<vmem>>, vector<8x512xf32>
    %221 = vector.broadcast %10 : vector<1x512xf32> to vector<8x512xf32>
    %222 = arith.mulf %220, %221 : vector<8x512xf32>
    %c56_211 = arith.constant 56 : index
    %c0_212 = arith.constant 0 : index
    %223 = vector.load %arg12[%c56_211, %c0_212] : memref<152x512xf32, #tpu.memory_space<vmem>>, vector<8x512xf32>
    tpu.vector_store %arg12[%c56_211, %c0_212], %222 {strides = array<i32>} : memref<152x512xf32, #tpu.memory_space<vmem>>, vector<8x512xf32>,
    %c0_213 = arith.constant 0 : index
    %c145_214 = arith.constant 145 : index
    %224 = vector.load %arg11[%c0_213, %c145_214] : memref<16x768xf32, #tpu.memory_space<vmem>>, vector<8x512xf32>
    %225 = vector.broadcast %11 : vector<1x512xf32> to vector<8x512xf32>
    %226 = arith.mulf %224, %225 : vector<8x512xf32>
    %c64_215 = arith.constant 64 : index
    %c0_216 = arith.constant 0 : index
    %227 = vector.load %arg12[%c64_215, %c0_216] : memref<152x512xf32, #tpu.memory_space<vmem>>, vector<8x512xf32>
    tpu.vector_store %arg12[%c64_215, %c0_216], %226 {strides = array<i32>} : memref<152x512xf32, #tpu.memory_space<vmem>>, vector<8x512xf32>,
    %c72_217 = arith.constant 72 : index
    %c0_218 = arith.constant 0 : index
    %228 = vector.load %arg12[%c72_217, %c0_218] : memref<152x512xf32, #tpu.memory_space<vmem>>, vector<8x512xf32>
    tpu.vector_store %arg12[%c72_217, %c0_218], %16 {strides = array<i32>} : memref<152x512xf32, #tpu.memory_space<vmem>>, vector<8x512xf32>,
    %c0_219 = arith.constant 0 : index
    %c0_220 = arith.constant 0 : index
    %229 = vector.load %arg7[%c0_219, %c0_220] : memref<8x80xbf16, #tpu.memory_space<vmem>>, vector<8x80xbf16>
    %c0_221 = arith.constant 0 : index
    %c0_222 = arith.constant 0 : index
    %230 = vector.load %arg12[%c0_221, %c0_222] : memref<152x512xf32, #tpu.memory_space<vmem>>, vector<80x512xf32>
    %231 = arith.truncf %230 : vector<80x512xf32> to vector<80x512xbf16>
    %cst_223 = arith.constant dense<0.000000e+00> : vector<8x512xf32>
    %232 = tpu.matmul %229, %231, %cst_223 {dimension_numbers = #tpu.dot_dimension_numbers<[1], [0], [0], [1], [0, 0, 1, 1], [], []>} : vector<8x80xbf16>, vector<80x512xbf16>, vector<8x512xf32> -> vector<8x512xf32>
    %233 = arith.addf %150, %232 : vector<8x512xf32>
    %c0_224 = arith.constant 0 : index
    %c0_225 = arith.constant 0 : index
    %234 = vector.load %arg10[%c0_224, %c0_225] : memref<8x512xf32, #tpu.memory_space<vmem>>, vector<8x512xf32>
    tpu.vector_store %arg10[%c0_224, %c0_225], %233 {strides = array<i32>} : memref<8x512xf32, #tpu.memory_space<vmem>>, vector<8x512xf32>,
    return
  }
  func.func @transform_0(%arg0: i32) -> (i32, i32) {
    %c0_i32 = arith.constant 0 : i32
    %c0_i32_0 = arith.constant 0 : i32
    return %c0_i32, %arg0 : i32, i32
  }
  func.func @transform_1(%arg0: i32) -> (i32, i32, i32) {
    %c0_i32 = arith.constant 0 : i32
    %c0_i32_0 = arith.constant 0 : i32
    %c0_i32_1 = arith.constant 0 : i32
    return %arg0, %c0_i32, %c0_i32_0 : i32, i32, i32
  }
  func.func @transform_2(%arg0: i32) -> (i32, i32) {
    %c0_i32 = arith.constant 0 : i32
    %c0_i32_0 = arith.constant 0 : i32
    %c0_i32_1 = arith.constant 0 : i32
    return %c0_i32, %c0_i32_0 : i32, i32
  }
  func.func @transform_3(%arg0: i32) -> (i32, i32) {
    %c0_i32 = arith.constant 0 : i32
    %c0_i32_0 = arith.constant 0 : i32
    %c0_i32_1 = arith.constant 0 : i32
    return %c0_i32, %c0_i32_0 : i32, i32
  }
  func.func @transform_4(%arg0: i32) -> (i32, i32) {
    %c0_i32 = arith.constant 0 : i32
    %c0_i32_0 = arith.constant 0 : i32
    %c0_i32_1 = arith.constant 0 : i32
    return %c0_i32, %c0_i32_0 : i32, i32
  }
  func.func @transform_5(%arg0: i32) -> (i32, i32) {
    %c0_i32 = arith.constant 0 : i32
    %c0_i32_0 = arith.constant 0 : i32
    %c0_i32_1 = arith.constant 0 : i32
    return %c0_i32, %c0_i32_0 : i32, i32
  }
  func.func @transform_6(%arg0: i32) -> (i32, i32) {
    %c0_i32 = arith.constant 0 : i32
    %c0_i32_0 = arith.constant 0 : i32
    %c0_i32_1 = arith.constant 0 : i32
    return %c0_i32, %c0_i32_0 : i32, i32
  }
  func.func @transform_7(%arg0: i32) -> (i32, i32) {
    %c0_i32 = arith.constant 0 : i32
    %c0_i32_0 = arith.constant 0 : i32
    %c0_i32_1 = arith.constant 0 : i32
    return %c0_i32, %c0_i32_0 : i32, i32
  }
  func.func @transform_8(%arg0: i32) -> (i32, i32) {
    %c0_i32 = arith.constant 0 : i32
    %c0_i32_0 = arith.constant 0 : i32
    %c0_i32_1 = arith.constant 0 : i32
    return %c0_i32, %c0_i32_0 : i32, i32
  }
  func.func @transform_9(%arg0: i32) -> (i32, i32) {
    %c0_i32 = arith.constant 0 : i32
    %c0_i32_0 = arith.constant 0 : i32
    return %c0_i32, %arg0 : i32, i32
  }
}

</mosaic_0001>

<bundles_post_ra>
// kernel: fwd.1
= control target key start
LH: loop header
LB: loop body
LE: loop exit
PB: predicated region body
PF: predicated region fallthrough
CT: control target
= control target key end

     0   :  { %s4360_s30 = smov 0   ;;  %s4362_s10 = smov 0   ;;  %s5731_s0 = inlined_call_operand.vmem [shape: f32[16,1024], index: 0, kind: input, shape index: {}]   ;;  %s5732_s1 = inlined_call_operand.vmem [shape: f32[4,8,64], index: 1, kind: input, shape index: {}]   ;;  %s5733_s2 = inlined_call_operand.vmem [shape: bf16[8,152], index: 2, kind: input, shape index: {}]   ;;  %s5734_s3 = inlined_call_operand.vmem [shape: bf16[8,80], index: 3, kind: input, shape index: {}]   ;;  %s5735_s4 = inlined_call_operand.vmem [shape: bf16[8,80], index: 4, kind: input, shape index: {}]   ;;  %s5736_s5 = inlined_call_operand.vmem [shape: bf16[8,80], index: 5, kind: input, shape index: {}]   ;;  %s5737_s6 = inlined_call_operand.vmem [shape: bf16[8,80], index: 6, kind: input, shape index: {}]   ;;  %s5738_s7 = inlined_call_operand.vmem [shape: bf16[64,256], index: 7, kind: input, shape index: {}]   ;;  %s5739_s8 = inlined_call_operand.vmem [shape: f32[9,512], index: 8, kind: input, shape index: {}]   ;;  %s5740_s9 = inlined_call_operand.vmem [shape: f32[8,1024], index: 9, kind: output, shape index: {}]  }
   0x1   :  { %s4364_s11 = smov 0  }
   0x2 LB: > { %s5782_s12 = sadd.s32 4294967295, %s4296_s11   ;;  %s4377_s13 = sadd.s32 1, %s4296_s11   ;;  %s4296_s11 = sphi %s4364_s11, %s5881_s11   ;;  %s4292_s10 = sphi %s4362_s10, %s5880_s10   ;;  %s4288_s30 = sphi %s4360_s30, %s5879_s30  }
   0x3   : > { %s23_s14 = ssub.s32 %s4296_s11, %s4377_s13  ;;  %s26_s15 = sadd.s32 1, %s4292_s10 }
   0x4   : > { %p24_p0 = scmp.eq.s32.totalorder %s23_s14, 0  ;;  %p33_p1 = scmp.ne.s32.totalorder %s4292_s10, %s4288_s30 }
   0x5   : > { %p34_p2 = scmp.eq.s32.totalorder %s4296_s11, 0  ;;  %p3598_p4 = scmp.ge.s32.totalorder %s4296_s11, 2 }
   0x6   : > { %s4386_s16 = scalar_select %p24_p0, %s4292_s10, %s26_s15  }
   0x7   : > { %p35_p3 = por %p34_p2, %p33_p1  ;;  %279 = sbr.rel (%p3598_p4) target bundleno = 22 (0x16), region = 44 }
   0xe   : > { %282 = sbr.rel (!%p35_p3) target bundleno = 22 (0x16), region = 48  ;;  %s284_s17 = sand.u32 (%p35_p3), 1, %s4292_s10  }
   0xf   : > { %s3643_s18 = sshll.u32 (%p35_p3), %s4296_s11, 5  ;;  %s3599_s19 = sshll.u32 (%p35_p3), %s284_s17, 6 }
  0x10   : > { %s289_s22 = scalar_lea.vmem (%p35_p3), %s5731_s0, %s3643_s18  ;;  %s286_s23 = scalar_lea.vmem (%p35_p3), [#allocation4], %s3599_s19 }
  0x11   : > { %v302_v0 = vld [vmem:[%s289_s22] sm:$0xff] (%p35_p3)  ;;  %v304_v1 = vld [vmem:[%s289_s22 + $0x8] sm:$0xff] (%p35_p3)  ;;  %v306_v2 = vld [vmem:[%s289_s22 + $0x10] sm:$0xff] (%p35_p3) }
  0x12   : > { %303 = vst [vmem:[%s286_s23] sm:$0xff] (%p35_p3), %v302_v0  ;;  %305 = vst [vmem:[%s286_s23 + $0x8] sm:$0xff] (%p35_p3), %v304_v1  ;;  %v308_v3 = vld [vmem:[%s289_s22 + $0x18] sm:$0xff] (%p35_p3)  ;;  %v310_v4 = vld [vmem:[%s289_s22 + $0x40] sm:$0xff] (%p35_p3) }
  0x13   : > { %307 = vst [vmem:[%s286_s23 + $0x10] sm:$0xff] (%p35_p3), %v306_v2  ;;  %v312_v5 = vld [vmem:[%s289_s22 + $0x48] sm:$0xff] (%p35_p3)  ;;  %309 = vst [vmem:[%s286_s23 + $0x18] sm:$0xff] (%p35_p3), %v308_v3  ;;  %v314_v6 = vld [vmem:[%s289_s22 + $0x50] sm:$0xff] (%p35_p3) }
  0x14   : > { %311 = vst [vmem:[%s286_s23 + $0x20] sm:$0xff] (%p35_p3), %v310_v4  ;;  %313 = vst [vmem:[%s286_s23 + $0x28] sm:$0xff] (%p35_p3), %v312_v5  ;;  %v316_v7 = vld [vmem:[%s289_s22 + $0x58] sm:$0xff] (%p35_p3) }
  0x15   : > { %315 = vst [vmem:[%s286_s23 + $0x30] sm:$0xff] %v314_v6  ;;  %317 = vst [vmem:[%s286_s23 + $0x38] sm:$0xff] %v316_v7 }
  0x16 PF: > { %p3602_p5 = scmp.ge.s32.totalorder %s4296_s11, 1  ;;  %p331_p6 = scmp.lt.s32.totalorder %s4296_s11, 3 }
  0x18   : > { %p332_p7 = pnand %p3602_p5, %p331_p6 }
  0x1a   : > { %335 = sbr.rel (%p332_p7) target bundleno = 2150 (0x866), region = 75 }
  0x21   : > { %v411_v8 = vlaneseq  ;;  %v396_v10 = vld [vmem:[%s5739_s8] ss:$8 sm:$0xf]  ;;  %s5783_s26 = smov 111   ;;  %s4299_s29 = smov 112   ;;  %vm467_vm0 = vcmask 908288  }
  0x22   : > { %v3608_v19 = vld [vmem:[%s5739_s8 + $0x1] ss:$8 sm:$0xf]  ;;  %v3609_v24 = vld [vmem:[%s5739_s8 + $0x2] ss:$8 sm:$0xf] }
  0x23   : > { %v4396_v9 = vshrl.u32 %v411_v8, 7  ;;  %s4300_s17 = smov 113   ;;  %v3610_v29 = vld [vmem:[%s5739_s8 + $0x3] ss:$8 sm:$0xf]  ;;  %s4301_s20 = smov 127  }
  0x24   : > { %v3611_v34 = vld [vmem:[%s5739_s8 + $0x5] ss:$8 sm:$0xf]  ;;  %s4302_s23 = smov 1   ;;  %s4303_s27 = smov 15   ;;  %vm576_vm1 = vcmask 916480  }
  0x25   : > { %v4402_v11 = vsub.s32 2, %v4396_v9  ;;  %v4405_v12 = vsub.s32 0, %v4396_v9  ;;  %v4408_v13 = vsub.s32 3, %v4396_v9  ;;  %v4411_v14 = vsub.s32 1, %v4396_v9  ;;  %s4304_s15 = smov 16   ;;  %s4305_s21 = smov 17  }
  0x26   : > { %v3612_v39 = vld [vmem:[%s5739_s8 + $0x6] ss:$8 sm:$0xf]  ;;  %v3613_v44 = vld [vmem:[%s5739_s8 + $0x7] ss:$8 sm:$0xf] }
  0x27   : > { %v454_v15 = vrot.slane %v396_v10, %v4402_v11  ;;  %v446_v16 = vrot.slane %v396_v10, %v4405_v12  ;;  %v458_v17 = vrot.slane %v396_v10, %v4408_v13  ;;  %v450_v18 = vrot.slane %v396_v10, %v4411_v14  ;;  %v3614_v49 = vld [vmem:[%s5739_s8 + $0x20] ss:$8 sm:$0xf]  ;;  %s338_s22 = sand.u32 1, %s4288_s30   ;;  %s3604_s19 = sshll.u32 %s5782_s12, 1 }
  0x28   : > { %v559_v20 = vrot.slane %v3608_v19, %v4411_v14  ;;  %v555_v21 = vrot.slane %v3608_v19, %v4405_v12  ;;  %v567_v22 = vrot.slane %v3608_v19, %v4408_v13  ;;  %v563_v23 = vrot.slane %v3608_v19, %v4402_v11  ;;  %s3603_s24 = sshll.u32 %s338_s22, 6  ;;  %p380_p8 = scmp.lt.s32.totalorder %s3604_s19, 3 }
  0x29   : > { %463 = vrot.lane.b32.xlu1 %v454_v15, %s5783_s26  ;;  %459 = vrot.lane.b32.xlu0 %v446_v16, %s5783_s26  ;;  %v668_v25 = vrot.slane %v3609_v24, %v4411_v14  ;;  %v664_v26 = vrot.slane %v3609_v24, %v4405_v12  ;;  %v676_v27 = vrot.slane %v3609_v24, %v4408_v13  ;;  %s4541_s30 = scalar_lea.vmem [#allocation4], %s3603_s24  ;;  %vm685_vm2 = vcmask 924672   ;;  %s5859_s12 = smov 111  }
  0x2a   : > { %v672_v28 = vrot.slane %v3609_v24, %v4402_v11  ;;  %v777_v30 = vrot.slane %v3610_v29, %v4411_v14  ;;  %v773_v31 = vrot.slane %v3610_v29, %v4405_v12  ;;  %v785_v32 = vrot.slane %v3610_v29, %v4408_v13  ;;  %v4544_v15 = vld [vmem:[%s4541_s30] sm:$0xff]  ;;  %s5883_s19 = smov (!%p380_p8, %s3604_s19), 3 }
  0x2b   : > { %v781_v33 = vrot.slane %v3610_v29, %v4402_v11  ;;  %v894_v35 = vrot.slane %v3611_v34, %v4411_v14  ;;  %v890_v36 = vrot.slane %v3611_v34, %v4405_v12  ;;  %v902_v37 = vrot.slane %v3611_v34, %v4408_v13  ;;  %v4547_v16 = vld [vmem:[%s4541_s30 + $0x20] sm:$0xff]  ;;  %s3605_s14 = sshll.u32 %s5883_s19, 3 }
  0x2c   : > { %v898_v38 = vrot.slane %v3611_v34, %v4402_v11  ;;  %v1001_v40 = vrot.slane %v3612_v39, %v4411_v14  ;;  %v997_v41 = vrot.slane %v3612_v39, %v4405_v12  ;;  %v1005_v42 = vrot.slane %v3612_v39, %v4402_v11  ;;  %s383_s25 = scalar_lea.vmem %s5732_s1, %s3605_s14 }
  0x2d   : > { %465 = vrot.lane.b32.xlu1 %v458_v17, %s5783_s26  ;;  %461 = vrot.lane.b32.xlu0 %v450_v18, %s5783_s26  ;;  %v1009_v43 = vrot.slane %v3612_v39, %v4408_v13  ;;  %v1104_v45 = vrot.slane %v3613_v44, %v4405_v12  ;;  %v1108_v46 = vrot.slane %v3613_v44, %v4411_v14  ;;  %v4550_v17 = vld [vmem:[%s4541_s30 + $0x8] sm:$0xff]  ;;  %vm794_vm3 = vcmask 1039360  }
  0x2e   : > { %v1112_v47 = vrot.slane %v3613_v44, %v4402_v11  ;;  %v1116_v48 = vrot.slane %v3613_v44, %v4408_v13  ;;  %v1211_v50 = vrot.slane %v3614_v49, %v4405_v12  ;;  %v1215_v51 = vrot.slane %v3614_v49, %v4411_v14 }
  0x2f   : > { %v1219_v52 = vrot.slane %v3614_v49, %v4402_v11  ;;  %v1223_v53 = vrot.slane %v3614_v49, %v4408_v13  ;;  %vm843_vm4 = vcmask 7168   ;;  %vm734_vm5 = vcmask 121856  }
  0x30   : > { %vm625_vm6 = vcmask 130048   ;;  %vm516_vm7 = vcmask 138240   ;;  %vm1431_vm8 = vcmask 195584   ;;  %vm413_vm9 = vcmp.eq.s32.totalorder %v4396_v9, 0 }
  0x31   : > { %570 = vrot.lane.b32.xlu1 %v559_v20, %s4299_s29  ;;  %568 = vrot.lane.b32.xlu0 %v555_v21, %s4299_s29  ;;  %vm1435_vm10 = vcmask 1043456   ;;  %vm4308_vm11 = vmmov 1   ;;  %vm1903_vm13 = vcmask 654336   ;;  %vm2501_vm14 = vcmask 523264  }
  0x32   : > { %vm5142_vm12 = vmpackc.low %vm413_vm9, %vm4308_vm11 }
  0x35   : > { %574 = vrot.lane.b32.xlu1 %v567_v22, %s4299_s29  ;;  %572 = vrot.lane.b32.xlu0 %v563_v23, %s4299_s29 }
  0x39   : > { %679 = vrot.lane.b32.xlu1 %v668_v25, %s4300_s17  ;;  %677 = vrot.lane.b32.xlu0 %v664_v26, %s4300_s17  ;;  %v4569_v26 = vld [vmem:[%s4541_s30 + $0x30] sm:$0xff] }
  0x3d   : > { %683 = vrot.lane.b32.xlu1 %v676_v27, %s4300_s17  ;;  %681 = vrot.lane.b32.xlu0 %v672_v28, %s4300_s17  ;;  %v4572_v27 = vld [vmem:[%s4541_s30 + $0x38] sm:$0xff] }
  0x41   : > { %788 = vrot.lane.b32.xlu1 %v777_v30, %s4301_s20  ;;  %786 = vrot.lane.b32.xlu0 %v773_v31, %s4301_s20 }
  0x45   : > { %792 = vrot.lane.b32.xlu1 %v785_v32, %s4301_s20  ;;  %790 = vrot.lane.b32.xlu0 %v781_v33, %s4301_s20  ;;  %v4585_v33 = vld [vmem:[%s4541_s30 + $0x28] sm:$0xff] }
  0x49   : > { %905 = vrot.lane.b32.xlu1 %v894_v35, %s4302_s23  ;;  %903 = vrot.lane.b32.xlu0 %v890_v36, %s4302_s23 }
  0x4d   : > { %909 = vrot.lane.b32.xlu1 %v902_v37, %s4302_s23  ;;  %907 = vrot.lane.b32.xlu0 %v898_v38, %s4302_s23 }
  0x51   : > { %1012 = vrot.lane.b32.xlu1 %v1001_v40, %s4303_s27  ;;  %1010 = vrot.lane.b32.xlu0 %v997_v41, %s4303_s27 }
  0x55   : > { %1014 = vrot.lane.b32.xlu0 %v1005_v42, %s4303_s27  ;;  %1016 = vrot.lane.b32.xlu1 %v1009_v43, %s4303_s27 }
  0x59   : > { %1117 = vrot.lane.b32.xlu0 %v1104_v45, %s4304_s15  ;;  %1119 = vrot.lane.b32.xlu1 %v1108_v46, %s4304_s15  ;;  %v4608_v45 = vld [vmem:[%s4541_s30 + $0x10] sm:$0xff]  ;;  %v4611_v46 = vld [vmem:[%s4541_s30 + $0x18] sm:$0xff] }
  0x5d   : > { %1121 = vrot.lane.b32.xlu0 %v1112_v47, %s4304_s15  ;;  %1123 = vrot.lane.b32.xlu1 %v1116_v48, %s4304_s15 }
  0x61   : > { %1224 = vrot.lane.b32.xlu0 %v1211_v50, %s4305_s21  ;;  %1226 = vrot.lane.b32.xlu1 %v1215_v51, %s4305_s21 }
  0x65   : > { %1228 = vrot.lane.b32.xlu0 %v1219_v52, %s4305_s21  ;;  %1230 = vrot.lane.b32.xlu1 %v1223_v53, %s4305_s21 }
  0x9b   : > { %v460_v54 = vpop.permute.xlu0 %459  ;;  %v464_v58 = vpop.permute.xlu1 %463 }
  0x9c   : > { %v4498_v55 = vmul.f32 0.0, %v460_v54 }
  0x9e   : > { %v3740_v56 = vpack.i.bf16 %v4498_v55, %v4498_v55 }
  0x9f   : > { %v462_v57 = vpop.permute.xlu0 %461  ;;  %v4505_v61 = vpop.permute.xlu1 %465 }
  0xa0   : > { %3741 = vrot.lane.b32.xlu0 %v3740_v56, %s4305_s21  ;;  %v4534_v12 = vsel %vm467_vm0, %v460_v54, %v462_v57  ;;  %v4537_v13 = vsel %vm467_vm0, %v462_v57, %v464_v58  ;;  %v4558_v20 = vsel %vm467_vm0, %v464_v58, %v4505_v61  ;;  %v485_v29 = vmul.f32 %v4505_v61, %v4572_v27 }
  0xa1   : > { %v477_v23 = vmul.f32 %v4534_v12, %v4544_v15  ;;  %v478_v24 = vmul.f32 %v4537_v13, %v4550_v17  ;;  %v484_v28 = vmul.f32 %v4558_v20, %v4569_v26  ;;  %v482_v40 = vmul.f32 %v4534_v12, %v4547_v16 }
  0xa2   : > { %v483_v41 = vmul.f32 %v4537_v13, %v4585_v33  ;;  %v479_v48 = vmul.f32 %v4558_v20, %v4608_v45  ;;  %v480_v49 = vmul.f32 %v4505_v61, %v4611_v46 }
  0xa3   : > { %v569_v59 = vpop.permute.xlu0 %568  ;;  %v571_v1 = vpop.permute.xlu1 %570  ;;  %v3770_v30 = vpack.i.bf16 %v478_v24, %v477_v23  ;;  %v3785_v37 = vpack.i.bf16 %v485_v29, %v484_v28 }
  0xa4   : > { %v4503_v60 = vmul.f32 0.0, %v569_v59  ;;  %v4593_v38 = vsel %vm576_vm1, %v569_v59, %v571_v1  ;;  %v3775_v51 = vpack.i.bf16 %v483_v41, %v482_v40  ;;  %v3780_v59 = vpack.i.bf16 %v480_v49, %v479_v48 }
  0xa5   : > { %v591_v47 = vmul.f32 %v4593_v38, %v4547_v16 }
  0xa6   : > { %v3745_v62 = vpack.i.bf16 %v4503_v60, %v4503_v60 }
  0xa7   : > { %v573_v63 = vpop.permute.xlu0 %572  ;;  %v4520_v5 = vpop.permute.xlu1 %574 }
  0xa8   : > { %3746 = vrot.lane.b32.xlu1 %v3745_v62, %s4304_s15  ;;  %v4580_v31 = vsel %vm576_vm1, %v571_v1, %v573_v63  ;;  %v4603_v43 = vsel %vm576_vm1, %v573_v63, %v4520_v5  ;;  %v589_v54 = vmul.f32 %v4520_v5, %v4611_v46 }
  0xa9   : > { %v592_v42 = vmul.f32 %v4580_v31, %v4585_v33  ;;  %v588_v53 = vmul.f32 %v4603_v43, %v4608_v45  ;;  %v587_v63 = vmul.f32 %v4580_v31, %v4550_v17 }
  0xab   : > { %v4510_v0 = vpop.permute.xlu0 %677  ;;  %v680_v11 = vpop.permute.xlu1 %679  ;;  %v3795_v52 = vpack.i.bf16 %v592_v42, %v591_v47  ;;  %v3800_v62 = vpack.i.bf16 %v589_v54, %v588_v53 }
  0xac   : > { %v4513_v2 = vmul.f32 0.0, %v4510_v0  ;;  %v4637_v58 = vsel %vm685_vm2, %v4510_v0, %v680_v11  ;;  %v586_v0 = vmul.f32 %v4593_v38, %v4544_v15 }
  0xae   : > { %v3750_v3 = vpack.i.bf16 %v4513_v2, %v4513_v2 }
  0xaf   : > { %v4517_v4 = vpop.permute.xlu0 %681  ;;  %v4560_v21 = vpop.permute.xlu1 %683 }
  0xb0   : > { %3751 = vrot.lane.b32.xlu0 %v3750_v3, %s4303_s27  ;;  %v4629_v56 = vsel %vm685_vm2, %v680_v11, %v4517_v4  ;;  %v4646_v3 = vsel %vm685_vm2, %v4517_v4, %v4560_v21  ;;  %v695_v11 = vmul.f32 %v4637_v58, %v4544_v15  ;;  %v594_v4 = vmul.f32 %v4520_v5, %v4572_v27 }
  0xb1   : > { %v696_v1 = vmul.f32 %v4629_v56, %v4550_v17  ;;  %v702_v24 = vmul.f32 %v4646_v3, %v4569_v26  ;;  %v703_v28 = vmul.f32 %v4560_v21, %v4572_v27  ;;  %v701_v42 = vmul.f32 %v4629_v56, %v4585_v33 }
  0xb3   : > { %v4523_v6 = vpop.permute.xlu0 %786  ;;  %v789_v34 = vpop.permute.xlu1 %788  ;;  %v3810_v23 = vpack.i.bf16 %v696_v1, %v695_v11  ;;  %v3825_v41 = vpack.i.bf16 %v703_v28, %v702_v24 }
  0xb4   : > { %v4526_v7 = vmul.f32 0.0, %v4523_v6 }
  0xb6   : > { %v3755_v8 = vpack.i.bf16 %v4526_v7, %v4526_v7 }
  0xb7   : > { %v4530_v10 = vpop.permute.xlu0 %790  ;;  %v4621_v50 = vpop.permute.xlu1 %792 }
  0xb8   : > { %3756 = vrot.lane.b32.xlu1 %v3755_v8, %s4302_s23  ;;  %v4666_v29 = vsel %vm794_vm3, %v789_v34, %v4530_v10  ;;  %v4693_v49 = vsel %vm794_vm3, %v4530_v10, %v4621_v50 }
  0xb9   : > { %v810_v47 = vmul.f32 %v4666_v29, %v4585_v33  ;;  %v806_v54 = vmul.f32 %v4693_v49, %v4608_v45 }
  0xbb   : > { %v4539_v14 = vpop.permute.xlu0 %903 }
  0xbc   : > { %v919_v18 = vmul.f32 %v4539_v14, %v4544_v15  ;;  %v924_v19 = vmul.f32 %v4539_v14, %v4547_v16 }
  0xbe   : > { %v3760_v22 = vpack.i.bf16 %v924_v19, %v919_v18  ;;  %v906_v18 = vpop.permute.xlu1 %905  ;;  %v593_v19 = vmul.f32 %v4603_v43, %v4569_v26 }
  0xbf   : > { %v4566_v25 = vpop.permute.xlu0 %907  ;;  %v4717_v1 = vsel %vm843_vm4, %v4539_v14, %v906_v18 }
  0xc0   : > { %3761 = vrot.lane.b32.xlu0 %v3760_v22, %s4301_s20  ;;  %v3790_v22 = vpack.i.bf16 %v587_v63, %v586_v0  ;;  %v920_v24 = vmul.f32 %v4717_v1, %v4550_v17 }
  0xc2   : > { %v910_v40 = vpop.permute.xlu1 %909 }
  0xc3   : > { %v4582_v32 = vpop.permute.xlu0 %1010 }
  0xc4   : > { %5790 = vst [vmem:[#allocation5_spill] sm:$0xff] %v4582_v32  ;;  %3771 = vrot.lane.b32.xlu0 %v3770_v30, %s4305_s21  ;;  %v1026_v35 = vmul.f32 %v4582_v32, %v4544_v15  ;;  %v1031_v36 = vmul.f32 %v4582_v32, %v4547_v16 }
  0xc6   : > { %v3765_v39 = vpack.i.bf16 %v1031_v36, %v1026_v35  ;;  %v1013_v63 = vpop.permute.xlu1 %1012 }
  0xc7   : > { %v4605_v44 = vpop.permute.xlu0 %1014 }
  0xc8   : > { %3766 = vrot.lane.b32.xlu1 %v3765_v39, %s4300_s17  ;;  %3786 = vrot.lane.b32.xlu0 %v3785_v37, %s4305_s21  ;;  %v4682_v37 = vsel %vm794_vm3, %v4523_v6, %v789_v34  ;;  %v3805_v39 = vpack.i.bf16 %v594_v4, %v593_v19  ;;  %v700_v6 = vmul.f32 %v4637_v58, %v4547_v16 }
  0xc9   : > { %v809_v34 = vmul.f32 %v4682_v37, %v4547_v16  ;;  %v805_v19 = vmul.f32 %v4666_v29, %v4550_v17 }
  0xca   : > { %v3815_v53 = vpack.i.bf16 %v701_v42, %v700_v6  ;;  %v1017_v28 = vpop.permute.xlu1 %1016  ;;  %v4741_v42 = vmul.f32 0.0, %v910_v40 }
  0xcb   : > { %v4631_v57 = vpop.permute.xlu0 %1117  ;;  %v3835_v10 = vpack.i.bf16 %v810_v47, %v809_v34 }
  0xcc   : > { %5791 = vst [vmem:[#allocation6_spill] sm:$0xff] %v4631_v57  ;;  %3776 = vrot.lane.b32.xlu1 %v3775_v51, %s4305_s21  ;;  %3796 = vrot.lane.b32.xlu0 %v3795_v52, %s4304_s15  ;;  %v697_v51 = vmul.f32 %v4646_v3, %v4608_v45  ;;  %v698_v52 = vmul.f32 %v4560_v21, %v4611_v46  ;;  %5793 = vst [vmem:[#allocation8_spill] sm:$0xff] %v4741_v42 }
  0xce   : > { %v3820_v0 = vpack.i.bf16 %v698_v52, %v697_v51  ;;  %v4747_v51 = vsel %vm734_vm5, %v1013_v63, %v4605_v44  ;;  %v4753_v52 = vsel %vm734_vm5, %v4605_v44, %v1017_v28  ;;  %v4766_v44 = vmul.f32 0.0, %v1017_v28 }
  0xcf   : > { %v4648_v8 = vpop.permute.xlu0 %1121  ;;  %5794 = vst [vmem:[#allocation9_spill] sm:$0xff] %v4747_v51  ;;  %5795 = vst [vmem:[#allocation10_spill] sm:$0xff] %v4753_v52 }
  0xd0   : > { %3781 = vrot.lane.b32.xlu1 %v3780_v59, %s4305_s21  ;;  %3801 = vrot.lane.b32.xlu0 %v3800_v62, %s4304_s15  ;;  %v807_v59 = vmul.f32 %v4621_v50, %v4611_v46  ;;  %v4711_v62 = vsel %vm843_vm4, %v906_v18, %v4566_v25  ;;  %v804_v18 = vmul.f32 %v4682_v37, %v4544_v15 }
  0xd1   : > { %v921_v4 = vmul.f32 %v4711_v62, %v4608_v45  ;;  %5797 = vst [vmem:[#allocation12_spill] sm:$0xff] %v4766_v44 }
  0xd2   : > { %v3840_v11 = vpack.i.bf16 %v807_v59, %v806_v54  ;;  %v3830_v47 = vpack.i.bf16 %v805_v19, %v804_v18  ;;  %v926_v54 = vmul.f32 %v4711_v62, %v4569_v26  ;;  %v1033_v59 = vmul.f32 %v4747_v51, %v4569_v26 }
  0xd3   : > { %v4668_v30 = vpop.permute.xlu0 %1224  ;;  %v3850_v6 = vpack.i.bf16 %v921_v4, %v920_v24  ;;  %v1029_v19 = vmul.f32 %v4753_v52, %v4611_v46 }
  0xd4   : > { %5792 = vst [vmem:[#allocation7_spill] sm:$0xff] %v4668_v30  ;;  %3791 = vrot.lane.b32.xlu1 %v3790_v22, %s4304_s15  ;;  %3811 = vrot.lane.b32.xlu0 %v3810_v23, %s4303_s27  ;;  %v4674_v35 = vmul.f32 %v4668_v30, %v4544_v15  ;;  %v4678_v36 = vmul.f32 %v4668_v30, %v4547_v16 }
  0xd5   : > { %v4725_v22 = vsel %vm843_vm4, %v4566_v25, %v910_v40  ;;  %v811_v25 = vmul.f32 %v4693_v49, %v4569_v26  ;;  %v4757_v40 = vsel %vm734_vm5, %v4582_v32, %v1013_v63  ;;  %v925_v63 = vmul.f32 %v4717_v1, %v4585_v33 }
  0xd6   : > { %v3925_v48 = vpack.i.bf16 %v4678_v36, %v4674_v35  ;;  %v927_v34 = vmul.f32 %v4725_v22, %v4572_v27  ;;  %5796 = vst [vmem:[#allocation11_spill] sm:$0xff] %v4757_v40 }
  0xd7   : > { %v3855_v24 = vpack.i.bf16 %v926_v54, %v925_v63  ;;  %v1027_v54 = vmul.f32 %v4757_v40, %v4550_v17  ;;  %v1138_v63 = vmul.f32 %v4631_v57, %v4547_v16 }
  0xd8   : > { %3806 = vrot.lane.b32.xlu1 %v3805_v39, %s4304_s15  ;;  %3826 = vrot.lane.b32.xlu0 %v3825_v41, %s4303_s27  ;;  %v812_v41 = vmul.f32 %v4621_v50, %v4572_v27 }
  0xdc   : > { %3816 = vrot.lane.b32.xlu1 %v3815_v53, %s4303_s27  ;;  %3836 = vrot.lane.b32.xlu0 %v3835_v10, %s4302_s23  ;;  %v3845_v53 = vpack.i.bf16 %v812_v41, %v811_v25  ;;  %v3865_v10 = vpack.i.bf16 %v4741_v42, %v927_v34  ;;  %v922_v25 = vmul.f32 %v4725_v22, %v4611_v46 }
  0xe0   : > { %3821 = vrot.lane.b32.xlu1 %v3820_v0, %s4303_s27  ;;  %3841 = vrot.lane.b32.xlu0 %v3840_v11, %s4302_s23  ;;  %v1120_v0 = vpop.permute.xlu1 %1119  ;;  %v1032_v11 = vmul.f32 %v4757_v40, %v4585_v33 }
  0xe1   : > { %v4776_v4 = vsel %vm625_vm6, %v4631_v57, %v1120_v0  ;;  %v4780_v18 = vsel %vm625_vm6, %v1120_v0, %v4648_v8  ;;  %v1133_v0 = vmul.f32 %v4631_v57, %v4544_v15 }
  0xe2   : > { %5798 = vst [vmem:[#allocation13_spill] sm:$0xff] %v4776_v4  ;;  %5799 = vst [vmem:[#allocation14_spill] sm:$0xff] %v4780_v18  ;;  %v3875_v28 = vpack.i.bf16 %v1033_v59, %v1032_v11  ;;  %v1135_v34 = vmul.f32 %v4780_v18, %v4608_v45 }
  0xe4   : > { %3831 = vrot.lane.b32.xlu1 %v3830_v47, %s4302_s23  ;;  %3851 = vrot.lane.b32.xlu0 %v3850_v6, %s4301_s20  ;;  %v1124_v41 = vpop.permute.xlu1 %1123  ;;  %v3880_v47 = vpack.i.bf16 %v4766_v44, %v1029_v19  ;;  %v1134_v6 = vmul.f32 %v4776_v4, %v4550_v17 }
  0xe5   : > { %v4804_v19 = vsel %vm625_vm6, %v4648_v8, %v1124_v41 }
  0xe6   : > { %v3890_v59 = vpack.i.bf16 %v1135_v34, %v1134_v6  ;;  %5800 = vst [vmem:[#allocation15_spill] sm:$0xff] %v4804_v19  ;;  %v3895_v6 = vpack.i.bf16 %v1138_v63, %v1133_v0  ;;  %v1141_v34 = vmul.f32 %v4804_v19, %v4572_v27  ;;  %v1136_v39 = vmul.f32 %v4804_v19, %v4611_v46 }
  0xe8   : > { %3846 = vrot.lane.b32.xlu1 %v3845_v53, %s4302_s23  ;;  %3866 = vrot.lane.b32.xlu0 %v3865_v10, %s4301_s20  ;;  %v3860_v53 = vpack.i.bf16 %v4741_v42, %v922_v25  ;;  %v1028_v10 = vmul.f32 %v4747_v51, %v4608_v45  ;;  %v1227_v11 = vpop.permute.xlu1 %1226  ;;  %v1229_v25 = vpop.permute.xlu0 %1228 }
  0xe9   : > { %v4816_v8 = vsel %vm516_vm7, %v4668_v30, %v1227_v11 }
  0xea   : > { %5802 = vst [vmem:[#allocation17_spill] sm:$0xff] %v4816_v8  ;;  %v1246_v63 = vmul.f32 %v4816_v8, %v4585_v33 }
  0xec   : > { %3856 = vrot.lane.b32.xlu1 %v3855_v24, %s4301_s20  ;;  %3876 = vrot.lane.b32.xlu0 %v3875_v28, %s4300_s17  ;;  %v3870_v24 = vpack.i.bf16 %v1028_v10, %v1027_v54  ;;  %v1034_v28 = vmul.f32 %v4753_v52, %v4572_v27  ;;  %v1139_v54 = vmul.f32 %v4776_v4, %v4585_v33 }
  0xee   : > { %v3885_v10 = vpack.i.bf16 %v4766_v44, %v1034_v28 }
  0xf0   : > { %3861 = vrot.lane.b32.xlu1 %v3860_v53, %s4301_s20  ;;  %3881 = vrot.lane.b32.xlu0 %v3880_v47, %s4300_s17  ;;  %v4810_v47 = vmul.f32 0.0, %v1124_v41  ;;  %v4819_v53 = vsel %vm516_vm7, %v1227_v11, %v1229_v25  ;;  %v1140_v41 = vmul.f32 %v4780_v18, %v4569_v26 }
  0xf1   : > { %5803 = vst [vmem:[#allocation18_spill] sm:$0xff] %v4819_v53  ;;  %v1247_v11 = vmul.f32 %v4819_v53, %v4569_v26 }
  0xf2   : > { %5801 = vst [vmem:[#allocation16_spill] sm:$0xff] %v4810_v47  ;;  %v3910_v0 = vpack.i.bf16 %v4810_v47, %v1141_v34  ;;  %v3900_v28 = vpack.i.bf16 %v1140_v41, %v1139_v54  ;;  %v3905_v23 = vpack.i.bf16 %v4810_v47, %v1136_v39  ;;  %v1242_v54 = vmul.f32 %v4819_v53, %v4608_v45  ;;  %v4857_v39 = vld [vmem:[%s5733_s2] sm:$0xff] }
  0xf3   : > { %v3920_v34 = vpack.i.bf16 %v1247_v11, %v1246_v63 }
  0xf4   : > { %3871 = vrot.lane.b32.xlu1 %v3870_v24, %s4300_s17  ;;  %3891 = vrot.lane.b32.xlu0 %v3890_v59, %s4299_s29  ;;  %v1231_v59 = vpop.permute.xlu1 %1230 }
  0xf5   : > { %v4834_v24 = vsel %vm516_vm7, %v1229_v25, %v1231_v59  ;;  %v1241_v25 = vmul.f32 %v4816_v8, %v4550_v17 }
  0xf6   : > { %5804 = vst [vmem:[#allocation19_spill] sm:$0xff] %v4834_v24 }
  0xf8   : > { %3886 = vrot.lane.b32.xlu1 %v3885_v10, %s4300_s17  ;;  %3896 = vrot.lane.b32.xlu0 %v3895_v6, %s4299_s29  ;;  %v4840_v6 = vmul.f32 0.0, %v1231_v59  ;;  %v1243_v10 = vmul.f32 %v4834_v24, %v4611_v46  ;;  %v3915_v59 = vpack.i.bf16 %v1242_v54, %v1241_v25 }
  0xfa   : > { %5805 = vst [vmem:[#allocation20_spill] sm:$0xff] %v4840_v6  ;;  %v3930_v41 = vpack.i.bf16 %v4840_v6, %v1243_v10 }
  0xfc   : > { %3901 = vrot.lane.b32.xlu1 %v3900_v28, %s4299_s29  ;;  %3911 = vrot.lane.b32.xlu0 %v3910_v0, %s4299_s29  ;;  %v3617_v0 = vcombine.high %v4857_v39, %v4857_v39 }
  0xfe   : > { %3619 = vmatprep.mubr.msk.bf16.mxu0 %vm1431_vm8, %v3617_v0  ;;  %3621 = vmatprep.mubr.msk.bf16.mxu1 %vm1431_vm8, %v3617_v0 }
 0x100   : > { %3906 = vrot.lane.b32.xlu1 %v3905_v23, %s4299_s29  ;;  %3921 = vrot.lane.b32.xlu0 %v3920_v34, %s5783_s26  ;;  %v1248_v23 = vmul.f32 %v4834_v24, %v4572_v27 }
 0x102   : > { %v3935_v63 = vpack.i.bf16 %v4840_v6, %v1248_v23 }
 0x104   : > { %3916 = vrot.lane.b32.xlu1 %v3915_v59, %s5783_s26  ;;  %3931 = vrot.lane.b32.xlu0 %v3930_v41, %s5783_s26 }
 0x108   : > { %3926 = vrot.lane.b32.xlu1 %v3925_v48, %s5783_s26  ;;  %1713 = vrot.lane.b32.xlu0 %v4741_v42, %s4301_s20 }
 0x10c   : > { %3936 = vrot.lane.b32.xlu1 %v3935_v63, %s5783_s26  ;;  %1787 = vrot.lane.b32.xlu0 %v4810_v47, %s4299_s29 }
 0x110   : > { %1750 = vrot.lane.b32.xlu1 %v4766_v44, %s4300_s17 }
 0x112   : > { %v3742_v11 = vpop.permute.xlu0 %3741 }
 0x113   : > { %v3743_v59 = vunpack.i.l.bf16 %v3742_v11  ;;  %v3744_v63 = vunpack.i.h.bf16 %v3742_v11 }
 0x11a   : > { %v3747_v34 = vpop.permute.xlu1 %3746 }
 0x11b   : > { %v3749_v18 = vunpack.i.h.bf16 %v3747_v34 }
 0x122   : > { %v4875_v28 = vpop.permute.xlu0 %3751 }
 0x12a   : > { %v4879_v35 = vpop.permute.xlu1 %3756 }
 0x132   : > { %v4877_v10 = vpop.permute.xlu0 %3761 }
 0x136   : > { %v3772_v36 = vpop.permute.xlu0 %3771 }
 0x137   : > { %v3774_v54 = vunpack.i.h.bf16 %v3772_v36  ;;  %v3773_v41 = vunpack.i.l.bf16 %v3772_v36 }
 0x139   : > { %v518_v42 = vsel %vm516_vm7, %v3773_v41, %v3774_v54  ;;  %v517_v6 = vsel %vm516_vm7, %v3743_v59, %v3773_v41 }
 0x13a   : > { %v4881_v48 = vpop.permute.xlu1 %3766  ;;  %v3787_v25 = vpop.permute.xlu0 %3786 }
 0x13b   : > { %v3789_v30 = vunpack.i.h.bf16 %v3787_v25  ;;  %v3788_v8 = vunpack.i.l.bf16 %v3787_v25 }
 0x13d   : > { %v524_v41 = vsel %vm516_vm7, %v3788_v8, %v3789_v30 }
 0x13e   : > { %v3777_v0 = vpop.permute.xlu1 %3776  ;;  %v3797_v23 = vpop.permute.xlu0 %3796 }
 0x13f   : > { %v3779_v47 = vunpack.i.h.bf16 %v3777_v0  ;;  %v3778_v44 = vunpack.i.l.bf16 %v3777_v0  ;;  %v3799_v40 = vunpack.i.h.bf16 %v3797_v23  ;;  %v3798_v11 = vunpack.i.l.bf16 %v3797_v23 }
 0x141   : > { %v522_v24 = vsel %vm516_vm7, %v3778_v44, %v3779_v47  ;;  %v521_v53 = vsel %vm516_vm7, %v3744_v63, %v3778_v44  ;;  %v523_v59 = vsel %vm516_vm7, %v3779_v47, %v3788_v8 }
 0x142   : > { %v3782_v57 = vpop.permute.xlu1 %3781  ;;  %v3802_v32 = vpop.permute.xlu0 %3801  ;;  %v1386_v19 = vpack.c.bf16 %v522_v24, %v518_v42  ;;  %v1385_v36 = vpack.c.bf16 %v521_v53, %v517_v6  ;;  %v3748_v53 = vunpack.i.l.bf16 %v3747_v34  ;;  %v630_v6 = vsel %vm625_vm6, %v3749_v18, %v3798_v11 }
 0x143   : > { %v3784_v52 = vunpack.i.h.bf16 %v3782_v57  ;;  %v3783_v4 = vunpack.i.l.bf16 %v3782_v57  ;;  %v3803_v23 = vunpack.i.l.bf16 %v3802_v32 }
 0x144   : > { %1448 = vmatprep.subr.bf16.mxu0 %v1386_v19  ;;  %v631_v19 = vsel %vm625_vm6, %v3798_v11, %v3799_v40 }
 0x145   : > { %1449 = vmatpush1.bf16.msra.mxu0 %v1385_v36  ;;  %v520_v0 = vsel %vm516_vm7, %v3783_v4, %v3784_v52  ;;  %v519_v25 = vsel %vm516_vm7, %v3774_v54, %v3783_v4  ;;  %v3804_v52 = vunpack.i.h.bf16 %v3802_v32 }
 0x146   : > { %v3792_v44 = vpop.permute.xlu1 %3791  ;;  %v3812_v63 = vpop.permute.xlu0 %3811  ;;  %v1388_v51 = vpack.c.bf16 %v524_v41, %v520_v0  ;;  %v1387_v42 = vpack.c.bf16 %v523_v59, %v519_v25  ;;  %v3753_v59 = vunpack.i.l.bf16 %v4875_v28 }
 0x147   : > { %v3794_v24 = vunpack.i.h.bf16 %v3792_v44  ;;  %v3793_v57 = vunpack.i.l.bf16 %v3792_v44  ;;  %v3814_v41 = vunpack.i.h.bf16 %v3812_v63  ;;  %v3813_v25 = vunpack.i.l.bf16 %v3812_v63 }
 0x148   : > { %1489 = vmatprep.subr.bf16.mxu1 %v1388_v51  ;;  %v629_v51 = vsel %vm625_vm6, %v3803_v23, %v3804_v52 }
 0x149   : > { %1490 = vmatpush1.bf16.msra.mxu1 %v1387_v42  ;;  %v627_v30 = vsel %vm625_vm6, %v3793_v57, %v3794_v24  ;;  %v626_v4 = vsel %vm625_vm6, %v3748_v53, %v3793_v57  ;;  %v628_v32 = vsel %vm625_vm6, %v3794_v24, %v3803_v23  ;;  %v735_v52 = vsel %vm734_vm5, %v3753_v59, %v3813_v25 }
 0x14a   : > { %v3807_v47 = vpop.permute.xlu1 %3806  ;;  %v3827_v8 = vpop.permute.xlu0 %3826  ;;  %v1390_v54 = vpack.c.bf16 %v631_v19, %v627_v30  ;;  %v1389_v36 = vpack.c.bf16 %v630_v6, %v626_v4  ;;  %v3754_v19 = vunpack.i.h.bf16 %v4875_v28  ;;  %v736_v30 = vsel %vm734_vm5, %v3813_v25, %v3814_v41 }
 0x14b   : > { %v3809_v0 = vunpack.i.h.bf16 %v3807_v47  ;;  %v3808_v34 = vunpack.i.l.bf16 %v3807_v47  ;;  %v3829_v4 = vunpack.i.h.bf16 %v3827_v8  ;;  %v3828_v47 = vunpack.i.l.bf16 %v3827_v8 }
 0x14c   : > { %1450 = vmatprep.subr.bf16.mxu0 %v1390_v54  ;;  %v3759_v59 = vunpack.i.h.bf16 %v4879_v35 }
 0x14d   : > { %1451 = vmatpush1.bf16.msra.mxu0 %v1389_v36  ;;  %v633_v18 = vsel %vm625_vm6, %v3808_v34, %v3809_v0  ;;  %v632_v11 = vsel %vm625_vm6, %v3799_v40, %v3808_v34  ;;  %v742_v25 = vsel %vm734_vm5, %v3828_v47, %v3829_v4 }
 0x14e   : > { %v3817_v44 = vpop.permute.xlu1 %3816  ;;  %v3837_v42 = vpop.permute.xlu0 %3836  ;;  %v1392_v53 = vpack.c.bf16 %v633_v18, %v629_v51  ;;  %v1391_v57 = vpack.c.bf16 %v632_v11, %v628_v32 }
 0x14f   : > { %v3819_v6 = vunpack.i.h.bf16 %v3817_v44  ;;  %v3818_v63 = vunpack.i.l.bf16 %v3817_v44  ;;  %v3839_v51 = vunpack.i.h.bf16 %v3837_v42  ;;  %v3838_v18 = vunpack.i.l.bf16 %v3837_v42 }
 0x150   : > { %1491 = vmatprep.subr.bf16.mxu1 %v1392_v53 }
 0x151   : > { %1492 = vmatpush1.bf16.msra.mxu1 %v1391_v57  ;;  %v740_v40 = vsel %vm734_vm5, %v3818_v63, %v3819_v6  ;;  %v739_v24 = vsel %vm734_vm5, %v3754_v19, %v3818_v63  ;;  %v741_v11 = vsel %vm734_vm5, %v3819_v6, %v3828_v47  ;;  %v3758_v63 = vunpack.i.l.bf16 %v4879_v35 }
 0x152   : > { %v3822_v23 = vpop.permute.xlu1 %3821  ;;  %v3842_v54 = vpop.permute.xlu0 %3841  ;;  %v1394_v36 = vpack.c.bf16 %v740_v40, %v736_v30  ;;  %v1393_v0 = vpack.c.bf16 %v739_v24, %v735_v52  ;;  %v849_v52 = vsel %vm843_vm4, %v3838_v18, %v3839_v51  ;;  %v848_v4 = vsel %vm843_vm4, %v3759_v59, %v3838_v18 }
 0x153   : > { %v3824_v34 = vunpack.i.h.bf16 %v3822_v23  ;;  %v3823_v28 = vunpack.i.l.bf16 %v3822_v23  ;;  %v3844_v40 = vunpack.i.h.bf16 %v3842_v54 }
 0x154   : > { %1452 = vmatprep.subr.bf16.mxu0 %v1394_v36 }
 0x155   : > { %1453 = vmatpush1.bf16.msra.mxu0 %v1393_v0  ;;  %v738_v32 = vsel %vm734_vm5, %v3823_v28, %v3824_v34  ;;  %v737_v8 = vsel %vm734_vm5, %v3814_v41, %v3823_v28  ;;  %v3843_v41 = vunpack.i.l.bf16 %v3842_v54 }
 0x156   : > { %v3832_v44 = vpop.permute.xlu1 %3831  ;;  %v4910_v53 = vpop.permute.xlu0 %3851  ;;  %v1396_v57 = vpack.c.bf16 %v742_v25, %v738_v32  ;;  %v1395_v19 = vpack.c.bf16 %v741_v11, %v737_v8 }
 0x157   : > { %v3834_v42 = vunpack.i.h.bf16 %v3832_v44  ;;  %v3833_v30 = vunpack.i.l.bf16 %v3832_v44  ;;  %v3854_v28 = vunpack.i.h.bf16 %v4910_v53  ;;  %v3853_v32 = vunpack.i.l.bf16 %v4910_v53 }
 0x158   : > { %1493 = vmatprep.subr.bf16.mxu1 %v1396_v57  ;;  %v847_v18 = vsel %vm843_vm4, %v3843_v41, %v3844_v40  ;;  %v5806_v44 = vpack.c.bf16 %v4585_v33, %v4550_v17  ;;  %v1404_v53 = vpack.c.bf16 %v4572_v27, %v4611_v46  ;;  %v1403_v17 = vpack.c.bf16 %v4569_v26, %v4608_v45 }
 0x159   : > { %1494 = vmatpush1.bf16.msra.mxu1 %v1395_v19  ;;  %v845_v6 = vsel %vm843_vm4, %v3833_v30, %v3834_v42  ;;  %v844_v47 = vsel %vm843_vm4, %v3758_v63, %v3833_v30  ;;  %v846_v25 = vsel %vm843_vm4, %v3834_v42, %v3843_v41  ;;  %v3764_v63 = vunpack.i.h.bf16 %v4877_v10 }
 0x15a   : > { %v3847_v24 = vpop.permute.xlu1 %3846  ;;  %v3867_v23 = vpop.permute.xlu0 %3866  ;;  %v1398_v36 = vpack.c.bf16 %v849_v52, %v845_v6  ;;  %v1397_v0 = vpack.c.bf16 %v848_v4, %v844_v47  ;;  %v3763_v30 = vunpack.i.l.bf16 %v4877_v10  ;;  %v960_v40 = vsel %vm794_vm3, %v3853_v32, %v3854_v28 }
 0x15b   : > { %v3849_v34 = vunpack.i.h.bf16 %v3847_v24  ;;  %v3848_v35 = vunpack.i.l.bf16 %v3847_v24  ;;  %v3869_v4 = vunpack.i.h.bf16 %v3867_v23  ;;  %v5807_v33 = vpack.c.bf16 %v4547_v16, %v4544_v15 }
 0x15c   : > { %1454 = vmatprep.subr.bf16.mxu0 %v1398_v36  ;;  %v959_v46 = vsel %vm794_vm3, %v3763_v30, %v3853_v32 }
 0x15d   : > { %1455 = vmatpush1.bf16.msra.mxu0 %v1397_v0  ;;  %v851_v54 = vsel %vm843_vm4, %v3848_v35, %v3849_v34  ;;  %v850_v8 = vsel %vm843_vm4, %v3839_v51, %v3848_v35  ;;  %v3868_v51 = vunpack.i.l.bf16 %v3867_v23 }
 0x15e   : > { %v3857_v11 = vpop.permute.xlu1 %3856  ;;  %v4923_v59 = vpop.permute.xlu0 %3876  ;;  %1456 = vmatprep.subr.bf16.mxu0 %v5806_v44  ;;  %v1400_v57 = vpack.c.bf16 %v851_v54, %v847_v18  ;;  %v1399_v19 = vpack.c.bf16 %v850_v8, %v846_v25  ;;  %v3769_v25 = vunpack.i.h.bf16 %v4881_v48  ;;  %v3768_v8 = vunpack.i.l.bf16 %v4881_v48 }
 0x15f   : > { %v3859_v52 = vunpack.i.h.bf16 %v3857_v11  ;;  %v3858_v42 = vunpack.i.l.bf16 %v3857_v11  ;;  %v3879_v26 = vunpack.i.h.bf16 %v4923_v59  ;;  %v966_v15 = vsel %vm794_vm3, %v3868_v51, %v3869_v4 }
 0x160   : > { %1495 = vmatprep.subr.bf16.mxu1 %v1400_v57  ;;  %v3878_v16 = vunpack.i.l.bf16 %v4923_v59 }
 0x161   : > { %1457 = vmatpush1.bf16.msra.mxu0 %v5807_v33  ;;  %1496 = vmatpush1.bf16.msra.mxu1 %v1399_v19  ;;  %v964_v27 = vsel %vm794_vm3, %v3858_v42, %v3859_v52  ;;  %v963_v10 = vsel %vm794_vm3, %v3764_v63, %v3858_v42  ;;  %v965_v34 = vsel %vm794_vm3, %v3859_v52, %v3868_v51 }
 0x162   : > { %v3862_v41 = vpop.permute.xlu1 %3861  ;;  %v3882_v6 = vpop.permute.xlu0 %3881  ;;  %v1406_v47 = vpack.c.bf16 %v964_v27, %v960_v40  ;;  %1497 = vmatprep.subr.bf16.mxu1 %v1404_v53  ;;  %v1405_v24 = vpack.c.bf16 %v963_v10, %v959_v46  ;;  %v1070_v63 = vsel %vm685_vm2, %v3769_v25, %v3878_v16 }
 0x163   : > { %v3864_v23 = vunpack.i.h.bf16 %v3862_v41  ;;  %v3863_v36 = vunpack.i.l.bf16 %v3862_v41  ;;  %v3884_v57 = vunpack.i.h.bf16 %v3882_v6  ;;  %v3883_v59 = vunpack.i.l.bf16 %v3882_v6 }
 0x164   : > { %1458 = vmatprep.subr.bf16.mxu0 %v1406_v47 }
 0x165   : > { %1459 = vmatpush1.bf16.msra.mxu0 %v1405_v24  ;;  %1498 = vmatpush1.bf16.msra.mxu1 %v1403_v17  ;;  %v962_v45 = vsel %vm794_vm3, %v3863_v36, %v3864_v23  ;;  %v961_v0 = vsel %vm794_vm3, %v3854_v28, %v3863_v36  ;;  %v1071_v28 = vsel %vm685_vm2, %v3878_v16, %v3879_v26 }
 0x166   : > { %v3872_v35 = vpop.permute.xlu1 %3871  ;;  %v3892_v32 = vpop.permute.xlu0 %3891  ;;  %v1408_v18 = vpack.c.bf16 %v966_v15, %v962_v45  ;;  %v1407_v54 = vpack.c.bf16 %v965_v34, %v961_v0  ;;  %v1069_v33 = vsel %vm685_vm2, %v3883_v59, %v3884_v57 }
 0x167   : > { %v3874_v11 = vunpack.i.h.bf16 %v3872_v35  ;;  %v3873_v44 = vunpack.i.l.bf16 %v3872_v35  ;;  %v3894_v40 = vunpack.i.h.bf16 %v3892_v32  ;;  %v3893_v17 = vunpack.i.l.bf16 %v3892_v32 }
 0x168   : > { %1499 = vmatprep.subr.bf16.mxu1 %v1408_v18 }
 0x169   : > { %1500 = vmatpush1.bf16.msra.mxu1 %v1407_v54  ;;  %v1067_v19 = vsel %vm685_vm2, %v3873_v44, %v3874_v11  ;;  %v1066_v53 = vsel %vm685_vm2, %v3768_v8, %v3873_v44  ;;  %v1068_v10 = vsel %vm685_vm2, %v3874_v11, %v3883_v59  ;;  %v1174_v34 = vsel %vm576_vm1, %v3893_v17, %v3894_v40 }
 0x16a   : > { %v3887_v30 = vpop.permute.xlu1 %3886  ;;  %v3897_v52 = vpop.permute.xlu0 %3896  ;;  %v1410_v42 = vpack.c.bf16 %v1071_v28, %v1067_v19  ;;  %v1409_v4 = vpack.c.bf16 %v1070_v63, %v1066_v53 }
 0x16b   : > { %v3889_v51 = vunpack.i.h.bf16 %v3887_v30  ;;  %v3888_v48 = vunpack.i.l.bf16 %v3887_v30  ;;  %v3898_v27 = vunpack.i.l.bf16 %v3897_v52  ;;  %v3899_v36 = vunpack.i.h.bf16 %v3897_v52 }
 0x16c   : > { %1460 = vmatprep.subr.bf16.mxu0 %v1410_v42 }
 0x16d   : > { %1461 = vmatpush1.bf16.msra.mxu0 %v1409_v4  ;;  %v1073_v46 = vsel %vm685_vm2, %v3888_v48, %v3889_v51  ;;  %v1072_v41 = vsel %vm685_vm2, %v3879_v26, %v3888_v48  ;;  %v1173_v32 = vsel %vm576_vm1, %v3898_v27, %v3893_v17 }
 0x16e   : > { %v3902_v6 = vpop.permute.xlu1 %3901  ;;  %v3912_v47 = vpop.permute.xlu0 %3911  ;;  %v1412_v24 = vpack.c.bf16 %v1073_v46, %v1069_v33  ;;  %v1411_v23 = vpack.c.bf16 %v1072_v41, %v1068_v10  ;;  %v4306_v33 = vmov 0.0  }
 0x16f   : > { %v3904_v15 = vunpack.i.h.bf16 %v3902_v6  ;;  %v3903_v16 = vunpack.i.l.bf16 %v3902_v6  ;;  %v3914_v45 = vunpack.i.h.bf16 %v3912_v47  ;;  %v3913_v0 = vunpack.i.l.bf16 %v3912_v47 }
 0x170   : > { %1501 = vmatprep.subr.bf16.mxu1 %v1412_v24  ;;  %v3615_v27 = vsel %vm413_vm9, 1.0, %v4306_v33 }
 0x171   : > { %1502 = vmatpush1.bf16.msra.mxu1 %v1411_v23  ;;  %v1178_v35 = vsel %vm576_vm1, %v3903_v16, %v3904_v15  ;;  %v1177_v18 = vsel %vm576_vm1, %v3899_v36, %v3903_v16  ;;  %v1180_v57 = vsel %vm576_vm1, %v3913_v0, %v3914_v45  ;;  %v1179_v59 = vsel %vm576_vm1, %v3904_v15, %v3913_v0 }
 0x172   : > { %v3907_v26 = vpop.permute.xlu1 %3906  ;;  %v3922_v54 = vpop.permute.xlu0 %3921  ;;  %v1414_v25 = vpack.c.bf16 %v1178_v35, %v1174_v34  ;;  %v1413_v8 = vpack.c.bf16 %v1177_v18, %v1173_v32  ;;  %v1421_v47 = vpack.c.bf16 %v3615_v27, %v3615_v27 }
 0x173   : > { %v3909_v11 = vunpack.i.h.bf16 %v3907_v26  ;;  %v3908_v44 = vunpack.i.l.bf16 %v3907_v26  ;;  %v3924_v19 = vunpack.i.h.bf16 %v3922_v54  ;;  %v3923_v28 = vunpack.i.l.bf16 %v3922_v54 }
 0x174   : > { %1462 = vmatprep.subr.bf16.mxu0 %v1414_v25  ;;  %v1437_v35 = vsel %vm1435_vm10, %v1421_v47, 0 }
 0x175   : > { %1463 = vmatpush1.bf16.msra.mxu0 %v1413_v8  ;;  %v1176_v53 = vsel %vm576_vm1, %v3908_v44, %v3909_v11  ;;  %v1175_v63 = vsel %vm576_vm1, %v3894_v40, %v3908_v44  ;;  %v1285_v17 = vsel %vm467_vm0, %v3923_v28, %v3924_v19  ;;  %v3616_v11 = vcombine.low %v4857_v39, %v4857_v39 }
 0x176   : > { %v3917_v30 = vpop.permute.xlu1 %3916  ;;  %v1416_v52 = vpack.c.bf16 %v1180_v57, %v1176_v53  ;;  %v1415_v42 = vpack.c.bf16 %v1179_v59, %v1175_v63  ;;  %v3932_v46 = vpop.permute.xlu0 %3931 }
 0x177   : > { %v3919_v4 = vunpack.i.h.bf16 %v3917_v30  ;;  %v3918_v51 = vunpack.i.l.bf16 %v3917_v30  ;;  %v3934_v24 = vunpack.i.h.bf16 %v3932_v46  ;;  %v3933_v23 = vunpack.i.l.bf16 %v3932_v46 }
 0x178   : > { %1503 = vmatprep.subr.bf16.mxu1 %v1416_v52 }
 0x179   : > { %1504 = vmatpush1.bf16.msra.mxu1 %v1415_v42  ;;  %v1281_v48 = vsel %vm467_vm0, %v3918_v51, %v3919_v4  ;;  %v1283_v32 = vsel %vm467_vm0, %v3933_v23, %v3934_v24  ;;  %v1282_v26 = vsel %vm467_vm0, %v3919_v4, %v3933_v23 }
 0x17a   : > { %v3927_v10 = vpop.permute.xlu1 %3926  ;;  %v1418_v40 = vpack.c.bf16 %v1285_v17, %v1281_v48 }
 0x17b   : > { %v3929_v41 = vunpack.i.h.bf16 %v3927_v10  ;;  %v3928_v6 = vunpack.i.l.bf16 %v3927_v10 }
 0x17c   : > { %1464 = vmatprep.subr.bf16.mxu0 %v1418_v40 }
 0x17d   : > { %v1280_v36 = vsel %vm467_vm0, %v3928_v6, %v3918_v51  ;;  %v1284_v15 = vsel %vm467_vm0, %v3929_v41, %v3923_v28 }
 0x17e   : > { %v3937_v16 = vpop.permute.xlu1 %3936  ;;  %v1417_v45 = vpack.c.bf16 %v1284_v15, %v1280_v36 }
 0x17f   : > { %v3939_v0 = vunpack.i.h.bf16 %v3937_v16  ;;  %v3938_v34 = vunpack.i.l.bf16 %v3937_v16 }
 0x180   : > { %1465 = vmatpush1.bf16.msra.mxu0 %v1417_v45 }
 0x181   : > { %3618 = vmatprep.subr.msk.bf16.mxu0 %vm1435_vm10, %v1421_v47  ;;  %v1287_v18 = vsel %vm467_vm0, %v3938_v34, %v3939_v0  ;;  %v1286_v54 = vsel %vm467_vm0, %v3924_v19, %v3938_v34 }
 0x182   : > { %v1420_v25 = vpack.c.bf16 %v1287_v18, %v1283_v32  ;;  %v1419_v8 = vpack.c.bf16 %v1286_v54, %v1282_v26 }
 0x184   : > { %1467 = vmatpush1.bf16.msra.mxu0 %v1437_v35  ;;  %1505 = vmatprep.subr.bf16.mxu1 %v1420_v25 }
 0x185   : > { %1506 = vmatpush1.bf16.msra.mxu1 %v1419_v8 }
 0x186   : > { %3620 = vmatprep.subr.msk.bf16.mxu1 %vm1435_vm10, %v1421_v47 }
 0x187   : > { %1481 = vmatmul.mubr.bf16.vlgmr.msra.gmra.mrb[0].mxu0 %v3616_v11 }
 0x189   : > { %1508 = vmatpush1.bf16.msra.mxu1 %v1437_v35 }
 0x18c   : > { %1522 = vmatmul.mubr.bf16.vlgmr.msra.gmra.mrb[0].mxu1 %v3616_v11 }
 0x25a   : > { %v4981_v44 = vpop.f32.mrb[0].mxu0 }
 0x25b   : > { %5808 = vst [vmem:[#allocation21_spill] sm:$0xff] %v4981_v44  ;;  %v4983_v57 = vpop.f32.mrb[1].mxu0  ;;  %v4997_v4 = vmax.f32 %v4981_v44, 0.0 }
 0x25c   : > { %5809 = vst [vmem:[#allocation22_spill] sm:$0xff] %v4983_v57  ;;  %v1486_v59 = vpop.f32.mrb[2].mxu0  ;;  %v5000_v51 = vmax.f32 %v4983_v57, 0.0 }
 0x25d   : > { %v1487_v28 = vpop.f32.mrb[3].mxu0  ;;  %v1581_v46 = vmul.f32 %v4997_v4, %v4593_v38  ;;  %v1544_v10 = vmul.f32 %v4997_v4, %v4534_v12  ;;  %v1655_v15 = vmul.f32 %v4997_v4, %v4682_v37  ;;  %v1618_v16 = vmul.f32 %v4997_v4, %v4637_v58 }
 0x25e   : > { %v1582_v6 = vmul.f32 %v5000_v51, %v4580_v31  ;;  %v1545_v47 = vmul.f32 %v5000_v51, %v4537_v13  ;;  %v1656_v34 = vmul.f32 %v5000_v51, %v4666_v29  ;;  %v1619_v35 = vmul.f32 %v5000_v51, %v4629_v56 }
 0x25f   : > { %v4985_v19 = vpop.f32.mrb[0].mxu1  ;;  %v1695_v11 = vmul.f32 %v4997_v4, %v4539_v14  ;;  %v1696_v59 = vmul.f32 %v5000_v51, %v4717_v1 }
 0x260   : > { %5810 = vst [vmem:[#allocation23_spill] sm:$0xff] %v4985_v19  ;;  %v4988_v53 = vmax.f32 %v4985_v19, 0.0  ;;  %v4990_v39 = vpop.f32.mrb[1].mxu1  ;;  %v3965_v23 = vpack.i.bf16 %v1582_v6, %v1581_v46  ;;  %v3960_v36 = vpack.i.bf16 %v1545_v47, %v1544_v10  ;;  %v3975_v32 = vpack.i.bf16 %v1656_v34, %v1655_v15  ;;  %v5816_v10 = vld [vmem:[#allocation10_spill] sm:$0xff]  ;;  %v5817_v47 = vld [vmem:[#allocation15_spill] sm:$0xff] }
 0x261   : > { %5811 = vst [vmem:[#allocation24_spill] sm:$0xff] %v4990_v39  ;;  %v1527_v63 = vpop.f32.mrb[2].mxu1  ;;  %v5023_v24 = vmax.f32 %v4990_v39, 0.0  ;;  %v3970_v18 = vpack.i.bf16 %v1619_v35, %v1618_v16  ;;  %v5819_v16 = vld [vmem:[#allocation6_spill] sm:$0xff] }
 0x262   : > { %v1528_v30 = vpop.f32.mrb[3].mxu1  ;;  %v1583_v52 = vmul.f32 %v4988_v53, %v4603_v43  ;;  %v1546_v42 = vmul.f32 %v4988_v53, %v4558_v20  ;;  %v1657_v33 = vmul.f32 %v4988_v53, %v4693_v49  ;;  %v1620_v27 = vmul.f32 %v4988_v53, %v4646_v3  ;;  %v5820_v35 = vld [vmem:[#allocation18_spill] sm:$0xff] }
 0x263   : > { %v1584_v45 = vmul.f32 %v5023_v24, %v4520_v5  ;;  %v1547_v0 = vmul.f32 %v5023_v24, %v4505_v61  ;;  %v1658_v26 = vmul.f32 %v5023_v24, %v4621_v50  ;;  %v1621_v54 = vmul.f32 %v5023_v24, %v4560_v21  ;;  %v5812_v30 = vld [vmem:[#allocation9_spill] sm:$0xff] }
 0x264   : > { %v3945_v48 = vpack.i.bf16 %v1583_v52, %v4503_v60  ;;  %v3940_v17 = vpack.i.bf16 %v1546_v42, %v4498_v55  ;;  %v3955_v40 = vpack.i.bf16 %v1657_v33, %v4526_v7  ;;  %v3950_v41 = vpack.i.bf16 %v1620_v27, %v4513_v2  ;;  %v5813_v42 = vld [vmem:[#allocation14_spill] sm:$0xff]  ;;  %v5815_v27 = vld [vmem:[#allocation13_spill] sm:$0xff] }
 0x265   : > { %v1698_v25 = vmul.f32 %v5023_v24, %v4725_v22  ;;  %v1697_v8 = vmul.f32 %v4988_v53, %v4711_v62  ;;  %v1734_v52 = vmul.f32 %v4988_v53, %v5812_v30  ;;  %v1770_v46 = vmul.f32 %v5000_v51, %v5815_v27 }
 0x266   : > { %3946 = vrot.lane.b32.xlu1 %v3945_v48, %s4304_s15  ;;  %3941 = vrot.lane.b32.xlu0 %v3940_v17, %s4305_s21  ;;  %v1771_v48 = vmul.f32 %v4988_v53, %v5813_v42  ;;  %v5814_v17 = vld [vmem:[#allocation11_spill] sm:$0xff] }
 0x267   : > { %v3985_v28 = vpack.i.bf16 %v1698_v25, %v1695_v11  ;;  %v3980_v63 = vpack.i.bf16 %v1697_v8, %v1696_v59  ;;  %v1733_v33 = vmul.f32 %v5000_v51, %v5814_v17  ;;  %v5822_v25 = vld [vmem:[#allocation17_spill] sm:$0xff]  ;;  %v5823_v11 = vld [vmem:[#allocation7_spill] sm:$0xff] }
 0x268   : > { %v3995_v6 = vpack.i.bf16 %v1771_v48, %v1770_v46  ;;  %v1807_v8 = vmul.f32 %v5000_v51, %v5822_v25  ;;  %v1806_v59 = vmul.f32 %v4997_v4, %v5823_v11  ;;  %v5825_v48 = vld [vmem:[#allocation8_spill] sm:$0xff] }
 0x269   : > { %v5827_v46 = vld [vmem:[#allocation16_spill] sm:$0xff] }
 0x26a   : > { %3956 = vrot.lane.b32.xlu1 %v3955_v40, %s4302_s23  ;;  %3951 = vrot.lane.b32.xlu0 %v3950_v41, %s4303_s27  ;;  %v1735_v40 = vmul.f32 %v5023_v24, %v5816_v10  ;;  %v3990_v41 = vpack.i.bf16 %v1734_v52, %v1733_v33  ;;  %v5824_v52 = vld [vmem:[#allocation20_spill] sm:$0xff] }
 0x26b   : > { %v5826_v33 = vld [vmem:[#allocation12_spill] sm:$0xff] }
 0x26e   : > { %3966 = vrot.lane.b32.xlu1 %v3965_v23, %s4304_s15  ;;  %3961 = vrot.lane.b32.xlu0 %v3960_v36, %s4305_s21  ;;  %v1772_v23 = vmul.f32 %v5023_v24, %v5817_v47  ;;  %v5818_v36 = vld [vmem:[#allocation5_spill] sm:$0xff] }
 0x26f   : > { %v1732_v15 = vmul.f32 %v4997_v4, %v5818_v36 }
 0x272   : > { %1598 = vrot.lane.b32.xlu1 %v1584_v45, %s4304_s15  ;;  %1561 = vrot.lane.b32.xlu0 %v1547_v0, %s4305_s21  ;;  %v1769_v45 = vmul.f32 %v4997_v4, %v5819_v16  ;;  %v4000_v0 = vpack.i.bf16 %v1735_v40, %v1732_v15  ;;  %v5099_v40 = vpop.permute.xlu0 %1713 }
 0x274   : > { %v4005_v34 = vpack.i.bf16 %v1772_v23, %v1769_v45 }
 0x276   : > { %3976 = vrot.lane.b32.xlu1 %v3975_v32, %s4302_s23  ;;  %3971 = vrot.lane.b32.xlu0 %v3970_v18, %s4303_s27  ;;  %v1808_v32 = vmul.f32 %v4988_v53, %v5820_v35  ;;  %v5821_v18 = vld [vmem:[#allocation19_spill] sm:$0xff] }
 0x27a   : > { %1672 = vrot.lane.b32.xlu1 %v1658_v26, %s4302_s23  ;;  %1635 = vrot.lane.b32.xlu0 %v1621_v54, %s4303_s27  ;;  %v1809_v26 = vmul.f32 %v5023_v24, %v5821_v18  ;;  %v5773_v54 = vmov 0  }
 0x27b   : > { %1939 = vmatprep.mubr.bf16.mxu0 %v5773_v54  ;;  %1980 = vmatprep.mubr.bf16.mxu1 %v5773_v54 }
 0x27e   : > { %3986 = vrot.lane.b32.xlu1 %v3985_v28, %s4301_s20  ;;  %3981 = vrot.lane.b32.xlu0 %v3980_v63, %s4301_s20  ;;  %v4010_v28 = vpack.i.bf16 %v1808_v32, %v1807_v8  ;;  %v4015_v63 = vpack.i.bf16 %v1809_v26, %v1806_v59 }
 0x282   : > { %3991 = vrot.lane.b32.xlu1 %v3990_v41, %s4300_s17  ;;  %3996 = vrot.lane.b32.xlu0 %v3995_v6, %s4299_s29  ;;  %v5101_v41 = vpop.permute.xlu0 %1787  ;;  %v5103_v6 = vpop.permute.xlu1 %1750 }
 0x286   : > { %4001 = vrot.lane.b32.xlu1 %v4000_v0, %s4300_s17  ;;  %4006 = vrot.lane.b32.xlu0 %v4005_v34, %s4299_s29 }
 0x28a   : > { %4011 = vrot.lane.b32.xlu1 %v4010_v28, %s5783_s26  ;;  %4016 = vrot.lane.b32.xlu0 %v4015_v63, %s5783_s26 }
 0x28e   : > { %1824 = vrot.lane.b32.xlu1 %v5824_v52, %s5783_s26  ;;  %2172 = vrot.lane.b32.xlu0 %v5825_v48, %s4301_s20 }
 0x292   : > { %2209 = vrot.lane.b32.xlu1 %v5826_v33, %s4300_s17  ;;  %2246 = vrot.lane.b32.xlu0 %v5827_v46, %s4299_s29 }
 0x2d8   : > { %v3947_v23 = vpop.permute.xlu1 %3946  ;;  %v3942_v15 = vpop.permute.xlu0 %3941 }
 0x2d9   : > { %v3949_v34 = vunpack.i.h.bf16 %v3947_v23  ;;  %v3948_v32 = vunpack.i.l.bf16 %v3947_v23  ;;  %v3943_v26 = vunpack.i.l.bf16 %v3942_v15  ;;  %v3944_v19 = vunpack.i.h.bf16 %v3942_v15 }
 0x2dc   : > { %v3957_v45 = vpop.permute.xlu1 %3956  ;;  %v3952_v0 = vpop.permute.xlu0 %3951 }
 0x2dd   : > { %v3958_v16 = vunpack.i.l.bf16 %v3957_v45 }
 0x2e0   : > { %v3967_v8 = vpop.permute.xlu1 %3966  ;;  %v3962_v59 = vpop.permute.xlu0 %3961 }
 0x2e1   : > { %v3969_v28 = vunpack.i.h.bf16 %v3967_v8  ;;  %v3968_v63 = vunpack.i.l.bf16 %v3967_v8  ;;  %v3964_v54 = vunpack.i.h.bf16 %v3962_v59  ;;  %v3963_v39 = vunpack.i.l.bf16 %v3962_v59 }
 0x2e3   : > { %v1602_v57 = vsel %vm625_vm6, %v3969_v28, %v3949_v34  ;;  %v1600_v44 = vsel %vm625_vm6, %v3948_v32, %v3968_v63  ;;  %v1563_v46 = vsel %vm516_vm7, %v3943_v26, %v3963_v39  ;;  %v1565_v33 = vsel %vm516_vm7, %v3964_v54, %v3944_v19 }
 0x2e4   : > { %v1883_v48 = vpack.c.bf16 %v1600_v44, %v1563_v46  ;;  %v1599_v52 = vpop.permute.xlu1 %1598  ;;  %v1562_v11 = vpop.permute.xlu0 %1561  ;;  %v1564_v23 = vsel %vm516_vm7, %v3963_v39, %v3964_v54  ;;  %v1601_v18 = vsel %vm625_vm6, %v3968_v63, %v3969_v28  ;;  %v1885_v25 = vpack.c.bf16 %v1602_v57, %v1565_v33 }
 0x2e5   : > { %v1603_v8 = vsel %vm625_vm6, %v3949_v34, %v1599_v52  ;;  %v1566_v59 = vsel %vm516_vm7, %v3944_v19, %v1562_v11  ;;  %v1884_v15 = vpack.c.bf16 %v1601_v18, %v1564_v23  ;;  %v3959_v32 = vunpack.i.h.bf16 %v3957_v45 }
 0x2e6   : > { %v1886_v35 = vpack.c.bf16 %v1603_v8, %v1566_v59  ;;  %v3953_v26 = vunpack.i.l.bf16 %v3952_v0  ;;  %v3954_v28 = vunpack.i.h.bf16 %v3952_v0 }
 0x2e7   : > { %1907 = vmatprep.subr.bf16.mxu0 %v1884_v15 }
 0x2e8   : > { %1908 = vmatpush1.bf16.msra.mxu0 %v1883_v48  ;;  %v3977_v36 = vpop.permute.xlu1 %3976  ;;  %1948 = vmatprep.subr.bf16.mxu1 %v1886_v35  ;;  %v3972_v44 = vpop.permute.xlu0 %3971 }
 0x2e9   : > { %v3979_v46 = vunpack.i.h.bf16 %v3977_v36  ;;  %v3978_v47 = vunpack.i.l.bf16 %v3977_v36  ;;  %v3974_v39 = vunpack.i.h.bf16 %v3972_v44  ;;  %v3973_v54 = vunpack.i.l.bf16 %v3972_v44  ;;  %1949 = vmatpush1.bf16.msra.mxu1 %v1885_v25 }
 0x2eb   : > { %v1676_v52 = vsel %vm843_vm4, %v3979_v46, %v3959_v32  ;;  %v1674_v19 = vsel %vm843_vm4, %v3958_v16, %v3978_v47  ;;  %v1637_v57 = vsel %vm734_vm5, %v3953_v26, %v3973_v54  ;;  %v1639_v18 = vsel %vm734_vm5, %v3974_v39, %v3954_v28 }
 0x2ec   : > { %v1887_v11 = vpack.c.bf16 %v1674_v19, %v1637_v57  ;;  %v1673_v33 = vpop.permute.xlu1 %1672  ;;  %v1636_v48 = vpop.permute.xlu0 %1635  ;;  %v1638_v35 = vsel %vm734_vm5, %v3973_v54, %v3974_v39  ;;  %v1675_v45 = vsel %vm843_vm4, %v3978_v47, %v3979_v46  ;;  %v1889_v63 = vpack.c.bf16 %v1676_v52, %v1639_v18 }
 0x2ed   : > { %v1677_v36 = vsel %vm843_vm4, %v3959_v32, %v1673_v33  ;;  %v1640_v25 = vsel %vm734_vm5, %v3954_v28, %v1636_v48  ;;  %v1888_v0 = vpack.c.bf16 %v1675_v45, %v1638_v35 }
 0x2ee   : > { %v1890_v34 = vpack.c.bf16 %v1677_v36, %v1640_v25 }
 0x2ef   : > { %1909 = vmatprep.subr.bf16.mxu0 %v1888_v0 }
 0x2f0   : > { %1910 = vmatpush1.bf16.msra.mxu0 %v1887_v11  ;;  %v3987_v16 = vpop.permute.xlu1 %3986  ;;  %v3982_v23 = vpop.permute.xlu0 %3981  ;;  %1950 = vmatprep.subr.bf16.mxu1 %v1890_v34 }
 0x2f1   : > { %v3989_v8 = vunpack.i.h.bf16 %v3987_v16  ;;  %v3988_v59 = vunpack.i.l.bf16 %v3987_v16  ;;  %v3984_v15 = vunpack.i.h.bf16 %v3982_v23  ;;  %v3983_v26 = vunpack.i.l.bf16 %v3982_v23  ;;  %1951 = vmatpush1.bf16.msra.mxu1 %v1889_v63 }
 0x2f3   : > { %v1717_v44 = vsel %vm794_vm3, %v3984_v15, %v3989_v8  ;;  %v1715_v47 = vsel %vm794_vm3, %v3988_v59, %v3983_v26  ;;  %v1716_v32 = vsel %vm794_vm3, %v3983_v26, %v3984_v15  ;;  %v1718_v46 = vsel %vm794_vm3, %v3989_v8, %v5099_v40 }
 0x2f4   : > { %v1893_v39 = vpack.c.bf16 %v1717_v44, %v4988_v53  ;;  %v1891_v54 = vpack.c.bf16 %v1715_v47, %v4997_v4  ;;  %v3992_v28 = vpop.permute.xlu1 %3991  ;;  %v3997_v52 = vpop.permute.xlu0 %3996  ;;  %v1892_v19 = vpack.c.bf16 %v1716_v32, %v5000_v51  ;;  %v1894_v57 = vpack.c.bf16 %v1718_v46, %v5023_v24 }
 0x2f5   : > { %v3994_v18 = vunpack.i.h.bf16 %v3992_v28  ;;  %v3993_v11 = vunpack.i.l.bf16 %v3992_v28  ;;  %v3999_v33 = vunpack.i.h.bf16 %v3997_v52  ;;  %v3998_v48 = vunpack.i.l.bf16 %v3997_v52 }
 0x2f6   : > { %1911 = vmatprep.subr.bf16.mxu0 %v1892_v19  ;;  %1952 = vmatprep.subr.bf16.mxu1 %v1894_v57  ;;  %v5779_v19 = vmov 1.0  }
 0x2f7   : > { %1912 = vmatpush1.bf16.msra.mxu0 %v1891_v54  ;;  %1953 = vmatpush1.bf16.msra.mxu1 %v1893_v39  ;;  %v1753_v40 = vsel %vm685_vm2, %v3993_v11, %v3994_v18  ;;  %v1790_v53 = vsel %vm576_vm1, %v3998_v48, %v3999_v33 }
 0x2f8   : > { %v4002_v35 = vpop.permute.xlu1 %4001  ;;  %v4007_v4 = vpop.permute.xlu0 %4006  ;;  %v1896_v45 = vpack.c.bf16 %v1790_v53, %v1753_v40  ;;  %v1842_v40 = vld [vmem:[%s5734_s3] sm:$0xf]  ;;  %v5830_v53 = vmov 0  }
 0x2f9   : > { %v4004_v36 = vunpack.i.h.bf16 %v4002_v35  ;;  %v4003_v25 = vunpack.i.l.bf16 %v4002_v35  ;;  %v4009_v51 = vunpack.i.h.bf16 %v4007_v4  ;;  %v4008_v0 = vunpack.i.l.bf16 %v4007_v4 }
 0x2fa   : > { %1913 = vmatprep.subr.bf16.mxu0 %v1896_v45 }
 0x2fb   : > { %v1752_v24 = vsel %vm685_vm2, %v4003_v25, %v3993_v11  ;;  %v1754_v34 = vsel %vm685_vm2, %v3994_v18, %v4004_v36  ;;  %v1789_v63 = vsel %vm576_vm1, %v4008_v0, %v3998_v48  ;;  %v1791_v16 = vsel %vm576_vm1, %v3999_v33, %v4009_v51 }
 0x2fc   : > { %v1895_v23 = vpack.c.bf16 %v1789_v63, %v1752_v24  ;;  %v1897_v8 = vpack.c.bf16 %v1791_v16, %v1754_v34  ;;  %v4012_v59 = vpop.permute.xlu1 %4011  ;;  %v4017_v15 = vpop.permute.xlu0 %4016  ;;  %v1755_v26 = vsel %vm685_vm2, %v4004_v36, %v5103_v6  ;;  %v1792_v44 = vsel %vm576_vm1, %v4009_v51, %v5101_v41 }
 0x2fd   : > { %v4014_v47 = vunpack.i.h.bf16 %v4012_v59  ;;  %v4013_v32 = vunpack.i.l.bf16 %v4012_v59  ;;  %v4019_v46 = vunpack.i.h.bf16 %v4017_v15  ;;  %v4018_v39 = vunpack.i.l.bf16 %v4017_v15 }
 0x2fe   : > { %1914 = vmatpush1.bf16.msra.mxu0 %v1895_v23  ;;  %v1898_v54 = vpack.c.bf16 %v1792_v44, %v1755_v26 }
 0x2ff   : > { %v1827_v52 = vsel %vm467_vm0, %v4013_v32, %v4014_v47  ;;  %v1826_v6 = vsel %vm467_vm0, %v4018_v39, %v4013_v32  ;;  %v1828_v57 = vsel %vm467_vm0, %v4014_v47, %v4019_v46 }
 0x300   : > { %v3645_v41 = vpack.c.bf16 %v5779_v19, %v1827_v52  ;;  %v3648_v18 = vpack.c.bf16 %v5779_v19, %v1826_v6  ;;  %1954 = vmatprep.subr.bf16.mxu1 %v1898_v54  ;;  %v1825_v11 = vpop.permute.xlu1 %1824  ;;  %v3654_v48 = vpack.c.bf16 %v5779_v19, %v1828_v57 }
 0x301   : > { %1955 = vmatpush1.bf16.msra.mxu1 %v1897_v8  ;;  %v1829_v9 = vsel %vm467_vm0, %v4019_v46, %v1825_v11 }
 0x302   : > { %v3651_v33 = vpack.c.bf16 %v5779_v19, %v1829_v9  ;;  %3646 = vmatprep.subr.msk.bf16.mxu0 %vm5142_vm12, %v3645_v41 }
 0x303   : > { %3649 = vmatpush1.bf16.msk.msra.mxu0 %vm5142_vm12, %v3648_v18 }
 0x304   : > { %3652 = vmatprep.subr.msk.bf16.mxu1 %vm5142_vm12, %v3651_v33 }
 0x305   : > { %3655 = vmatpush1.bf16.msk.msra.mxu1 %vm5142_vm12, %v3654_v48 }
 0x306   : > { %3622 = vmatmul.mubr.msk.bf16.vlgmr.msra.gmra.mrb[4].mxu0 %vm1903_vm13, %v1842_v40 }
 0x307   : > { %2397 = vmatprep.mubr.bf16.mxu0 %v5830_v53 }
 0x308   : > { %3623 = vmatmul.mubr.msk.bf16.vlgmr.msra.gmra.mrb[4].mxu1 %vm1903_vm13, %v1842_v40 }
 0x309   : > { %2438 = vmatprep.mubr.bf16.mxu1 %v5830_v53 }
 0x3d9   : > { %v1941_v35 = vpop.f32.mrb[4].mxu0 }
 0x3da   : > { %v1943_v4 = vpop.f32.mrb[5].mxu0  ;;  %v5175_v23 = vmax.f32 %v1941_v35, 0.0 }
 0x3db   : > { %v1982_v45 = vpop.f32.mrb[4].mxu1  ;;  %v1945_v36 = vpop.f32.mrb[6].mxu0  ;;  %v5177_v8 = vmax.f32 %v1943_v4, 0.0 }
 0x3dc   : > { %v5169_v25 = vmax.f32 %v1982_v45, 0.0  ;;  %v1984_v51 = vpop.f32.mrb[5].mxu1  ;;  %v1946_v0 = vpop.f32.mrb[7].mxu0  ;;  %v2040_v47 = vmul.f32 %v5175_v23, %v4593_v38  ;;  %v2003_v32 = vmul.f32 %v5175_v23, %v4534_v12  ;;  %v2114_v18 = vmul.f32 %v5175_v23, %v4682_v37 }
 0x3dd   : > { %v1986_v24 = vpop.f32.mrb[6].mxu1  ;;  %v2041_v54 = vmul.f32 %v5177_v8, %v4580_v31  ;;  %v2004_v52 = vmul.f32 %v5177_v8, %v4537_v13  ;;  %v5199_v6 = vmax.f32 %v1984_v51, 0.0  ;;  %v2115_v11 = vmul.f32 %v5177_v8, %v4666_v29 }
 0x3de   : > { %v1987_v34 = vpop.f32.mrb[7].mxu1  ;;  %v2042_v63 = vmul.f32 %v5169_v25, %v4603_v43  ;;  %v2005_v16 = vmul.f32 %v5169_v25, %v4558_v20  ;;  %v2116_v26 = vmul.f32 %v5169_v25, %v4693_v49  ;;  %v2079_v44 = vmul.f32 %v5169_v25, %v4646_v3 }
 0x3df   : > { %v4045_v41 = vpack.i.bf16 %v2041_v54, %v2040_v47  ;;  %v4040_v57 = vpack.i.bf16 %v2004_v52, %v2003_v32  ;;  %v2043_v9 = vmul.f32 %v5199_v6, %v4520_v5  ;;  %v2006_v33 = vmul.f32 %v5199_v6, %v4505_v61  ;;  %v5832_v52 = vld [vmem:[#allocation5_spill] sm:$0xff] }
 0x3e0   : > { %v4025_v59 = vpack.i.bf16 %v2042_v63, %v4503_v60  ;;  %v4020_v15 = vpack.i.bf16 %v2005_v16, %v4498_v55  ;;  %v4035_v46 = vpack.i.bf16 %v2116_v26, %v4526_v7  ;;  %v4030_v39 = vpack.i.bf16 %v2079_v44, %v4513_v2 }
 0x3e1   : > { %v2077_v48 = vmul.f32 %v5175_v23, %v4637_v58  ;;  %v2078_v40 = vmul.f32 %v5177_v8, %v4629_v56  ;;  %v4055_v35 = vpack.i.bf16 %v2115_v11, %v2114_v18  ;;  %v2157_v45 = vmul.f32 %v5199_v6, %v4725_v22 }
 0x3e2   : > { %4026 = vrot.lane.b32.xlu1 %v4025_v59, %s4304_s15  ;;  %4021 = vrot.lane.b32.xlu0 %v4020_v15, %s4305_s21  ;;  %v2117_v36 = vmul.f32 %v5199_v6, %v4621_v50  ;;  %v2080_v51 = vmul.f32 %v5199_v6, %v4560_v21  ;;  %v2155_v0 = vmul.f32 %v5177_v8, %v4717_v1 }
 0x3e3   : > { %v4050_v4 = vpack.i.bf16 %v2078_v40, %v2077_v48  ;;  %v2156_v24 = vmul.f32 %v5169_v25, %v4711_v62  ;;  %v2154_v34 = vmul.f32 %v5175_v23, %v4539_v14  ;;  %v2192_v16 = vmul.f32 %v5177_v8, %v5814_v17  ;;  %v5835_v40 = vld [vmem:[#allocation18_spill] sm:$0xff] }
 0x3e4   : > { %v2193_v15 = vmul.f32 %v5169_v25, %v5812_v30  ;;  %v2229_v26 = vmul.f32 %v5177_v8, %v5815_v27  ;;  %v2230_v44 = vmul.f32 %v5169_v25, %v5813_v42  ;;  %v2194_v47 = vmul.f32 %v5199_v6, %v5816_v10 }
 0x3e5   : > { %v4065_v63 = vpack.i.bf16 %v2157_v45, %v2154_v34  ;;  %v4060_v59 = vpack.i.bf16 %v2156_v24, %v2155_v0  ;;  %v5838_v34 = vld [vmem:[#allocation20_spill] sm:$0xff] }
 0x3e6   : > { %4036 = vrot.lane.b32.xlu1 %v4035_v46, %s4302_s23  ;;  %4031 = vrot.lane.b32.xlu0 %v4030_v39, %s4303_s27  ;;  %v4070_v32 = vpack.i.bf16 %v2193_v15, %v2192_v16  ;;  %v4075_v46 = vpack.i.bf16 %v2230_v44, %v2229_v26  ;;  %v5831_v39 = vld [vmem:[#allocation15_spill] sm:$0xff]  ;;  %v5840_v16 = vld [vmem:[#allocation12_spill] sm:$0xff]  ;;  %v5273_v15 = vpop.permute.xlu0 %2172  ;;  %v5275_v26 = vpop.permute.xlu1 %2209 }
 0x3e7   : > { %v2231_v54 = vmul.f32 %v5199_v6, %v5831_v39 }
 0x3ea   : > { %4046 = vrot.lane.b32.xlu1 %v4045_v41, %s4304_s15  ;;  %4041 = vrot.lane.b32.xlu0 %v4040_v57, %s4305_s21  ;;  %v2191_v41 = vmul.f32 %v5175_v23, %v5832_v52  ;;  %v5833_v57 = vld [vmem:[#allocation6_spill] sm:$0xff]  ;;  %v5277_v44 = vpop.permute.xlu0 %2246 }
 0x3eb   : > { %v2228_v18 = vmul.f32 %v5175_v23, %v5833_v57 }
 0x3ec   : > { %v4080_v11 = vpack.i.bf16 %v2194_v47, %v2191_v41 }
 0x3ee   : > { %2057 = vrot.lane.b32.xlu1 %v2043_v9, %s4304_s15  ;;  %2020 = vrot.lane.b32.xlu0 %v2006_v33, %s4305_s21  ;;  %v4085_v9 = vpack.i.bf16 %v2231_v54, %v2228_v18  ;;  %v5834_v33 = vld [vmem:[#allocation17_spill] sm:$0xff] }
 0x3ef   : > { %v2266_v48 = vmul.f32 %v5177_v8, %v5834_v33 }
 0x3f2   : > { %4056 = vrot.lane.b32.xlu1 %v4055_v35, %s4302_s23  ;;  %4051 = vrot.lane.b32.xlu0 %v4050_v4, %s4303_s27  ;;  %v2267_v35 = vmul.f32 %v5169_v25, %v5835_v40  ;;  %v5836_v4 = vld [vmem:[#allocation19_spill] sm:$0xff] }
 0x3f3   : > { %v2268_v45 = vmul.f32 %v5199_v6, %v5836_v4 }
 0x3f4   : > { %v4090_v0 = vpack.i.bf16 %v2267_v35, %v2266_v48 }
 0x3f6   : > { %2131 = vrot.lane.b32.xlu1 %v2117_v36, %s4302_s23  ;;  %2094 = vrot.lane.b32.xlu0 %v2080_v51, %s4303_s27  ;;  %v5837_v36 = vld [vmem:[#allocation7_spill] sm:$0xff] }
 0x3f7   : > { %v2265_v51 = vmul.f32 %v5175_v23, %v5837_v36 }
 0x3f9   : > { %v4095_v24 = vpack.i.bf16 %v2268_v45, %v2265_v51 }
 0x3fa   : > { %4066 = vrot.lane.b32.xlu1 %v4065_v63, %s4301_s20  ;;  %4061 = vrot.lane.b32.xlu0 %v4060_v59, %s4301_s20  ;;  %v5839_v63 = vld [vmem:[#allocation8_spill] sm:$0xff] }
 0x3fb   : > { %v5841_v59 = vld [vmem:[#allocation16_spill] sm:$0xff] }
 0x3fe   : > { %4071 = vrot.lane.b32.xlu1 %v4070_v32, %s4300_s17  ;;  %4076 = vrot.lane.b32.xlu0 %v4075_v46, %s4299_s29 }
 0x402   : > { %4081 = vrot.lane.b32.xlu1 %v4080_v11, %s4300_s17  ;;  %4086 = vrot.lane.b32.xlu0 %v4085_v9, %s4299_s29 }
 0x406   : > { %4091 = vrot.lane.b32.xlu1 %v4090_v0, %s5783_s26  ;;  %4096 = vrot.lane.b32.xlu0 %v4095_v24, %s5783_s26 }
 0x40a   : > { %2283 = vrot.lane.b32.xlu1 %v5838_v34, %s5783_s26  ;;  %2780 = vrot.lane.b32.xlu0 %v5839_v63, %s4301_s20 }
 0x40e   : > { %2817 = vrot.lane.b32.xlu1 %v5840_v16, %s4300_s17  ;;  %2854 = vrot.lane.b32.xlu0 %v5841_v59, %s4299_s29 }
 0x454   : > { %v4027_v47 = vpop.permute.xlu1 %4026  ;;  %v4022_v32 = vpop.permute.xlu0 %4021 }
 0x455   : > { %v4029_v41 = vunpack.i.h.bf16 %v4027_v47  ;;  %v4028_v18 = vunpack.i.l.bf16 %v4027_v47  ;;  %v4023_v11 = vunpack.i.l.bf16 %v4022_v32  ;;  %v4024_v24 = vunpack.i.h.bf16 %v4022_v32 }
 0x458   : > { %v4037_v46 = vpop.permute.xlu1 %4036  ;;  %v4032_v54 = vpop.permute.xlu0 %4031 }
 0x459   : > { %v4038_v52 = vunpack.i.l.bf16 %v4037_v46 }
 0x45c   : > { %v4047_v9 = vpop.permute.xlu1 %4046  ;;  %v4042_v48 = vpop.permute.xlu0 %4041 }
 0x45d   : > { %v4049_v35 = vunpack.i.h.bf16 %v4047_v9  ;;  %v4048_v45 = vunpack.i.l.bf16 %v4047_v9  ;;  %v4044_v51 = vunpack.i.h.bf16 %v4042_v48  ;;  %v4043_v0 = vunpack.i.l.bf16 %v4042_v48 }
 0x45f   : > { %v2061_v19 = vsel %vm625_vm6, %v4049_v35, %v4029_v41  ;;  %v2059_v59 = vsel %vm625_vm6, %v4028_v18, %v4048_v45  ;;  %v2022_v16 = vsel %vm516_vm7, %v4023_v11, %v4043_v0  ;;  %v2024_v63 = vsel %vm516_vm7, %v4044_v51, %v4024_v24 }
 0x460   : > { %v2342_v34 = vpack.c.bf16 %v2059_v59, %v2022_v16  ;;  %v2058_v36 = vpop.permute.xlu1 %2057  ;;  %v2021_v4 = vpop.permute.xlu0 %2020  ;;  %v2023_v47 = vsel %vm516_vm7, %v4043_v0, %v4044_v51  ;;  %v2060_v40 = vsel %vm625_vm6, %v4048_v45, %v4049_v35  ;;  %v2344_v57 = vpack.c.bf16 %v2061_v19, %v2024_v63 }
 0x461   : > { %v2062_v9 = vsel %vm625_vm6, %v4029_v41, %v2058_v36  ;;  %v2025_v48 = vsel %vm516_vm7, %v4024_v24, %v2021_v4  ;;  %v2343_v32 = vpack.c.bf16 %v2060_v40, %v2023_v47  ;;  %v4039_v18 = vunpack.i.h.bf16 %v4037_v46 }
 0x462   : > { %v2345_v33 = vpack.c.bf16 %v2062_v9, %v2025_v48  ;;  %v4033_v11 = vunpack.i.l.bf16 %v4032_v54  ;;  %v4034_v35 = vunpack.i.h.bf16 %v4032_v54 }
 0x463   : > { %2365 = vmatprep.subr.bf16.mxu0 %v2343_v32 }
 0x464   : > { %2366 = vmatpush1.bf16.msra.mxu0 %v2342_v34  ;;  %v4057_v39 = vpop.permute.xlu1 %4056  ;;  %2406 = vmatprep.subr.bf16.mxu1 %v2345_v33  ;;  %v4052_v16 = vpop.permute.xlu0 %4051 }
 0x465   : > { %v4059_v59 = vunpack.i.h.bf16 %v4057_v39  ;;  %v4058_v10 = vunpack.i.l.bf16 %v4057_v39  ;;  %v4054_v51 = vunpack.i.h.bf16 %v4052_v16  ;;  %v4053_v0 = vunpack.i.l.bf16 %v4052_v16  ;;  %2407 = vmatpush1.bf16.msra.mxu1 %v2344_v57 }
 0x467   : > { %v2135_v36 = vsel %vm843_vm4, %v4059_v59, %v4039_v18  ;;  %v2133_v40 = vsel %vm843_vm4, %v4038_v52, %v4058_v10  ;;  %v2096_v19 = vsel %vm734_vm5, %v4033_v11, %v4053_v0  ;;  %v2098_v4 = vsel %vm734_vm5, %v4054_v51, %v4034_v35 }
 0x468   : > { %v2346_v63 = vpack.c.bf16 %v2133_v40, %v2096_v19  ;;  %v2132_v46 = vpop.permute.xlu1 %2131  ;;  %v2095_v34 = vpop.permute.xlu0 %2094  ;;  %v2097_v33 = vsel %vm734_vm5, %v4053_v0, %v4054_v51  ;;  %v2134_v41 = vsel %vm843_vm4, %v4058_v10, %v4059_v59  ;;  %v2348_v24 = vpack.c.bf16 %v2135_v36, %v2098_v4 }
 0x469   : > { %v2136_v39 = vsel %vm843_vm4, %v4039_v18, %v2132_v46  ;;  %v2099_v57 = vsel %vm734_vm5, %v4034_v35, %v2095_v34  ;;  %v2347_v54 = vpack.c.bf16 %v2134_v41, %v2097_v33 }
 0x46a   : > { %v2349_v45 = vpack.c.bf16 %v2136_v39, %v2099_v57 }
 0x46b   : > { %2367 = vmatprep.subr.bf16.mxu0 %v2347_v54 }
 0x46c   : > { %2368 = vmatpush1.bf16.msra.mxu0 %v2346_v63  ;;  %v4067_v52 = vpop.permute.xlu1 %4066  ;;  %v4062_v47 = vpop.permute.xlu0 %4061  ;;  %2408 = vmatprep.subr.bf16.mxu1 %v2349_v45 }
 0x46d   : > { %v4069_v9 = vunpack.i.h.bf16 %v4067_v52  ;;  %v4068_v48 = vunpack.i.l.bf16 %v4067_v52  ;;  %v4064_v32 = vunpack.i.h.bf16 %v4062_v47  ;;  %v4063_v11 = vunpack.i.l.bf16 %v4062_v47  ;;  %2409 = vmatpush1.bf16.msra.mxu1 %v2348_v24 }
 0x46f   : > { %v2176_v16 = vsel %vm794_vm3, %v4064_v32, %v4069_v9  ;;  %v2174_v10 = vsel %vm794_vm3, %v4068_v48, %v4063_v11  ;;  %v2175_v18 = vsel %vm794_vm3, %v4063_v11, %v4064_v32  ;;  %v2177_v59 = vsel %vm794_vm3, %v4069_v9, %v5273_v15 }
 0x470   : > { %v2352_v51 = vpack.c.bf16 %v2176_v16, %v5169_v25  ;;  %v2350_v0 = vpack.c.bf16 %v2174_v10, %v5175_v23  ;;  %v4072_v35 = vpop.permute.xlu1 %4071  ;;  %v4077_v36 = vpop.permute.xlu0 %4076  ;;  %v2351_v40 = vpack.c.bf16 %v2175_v18, %v5177_v8  ;;  %v2353_v19 = vpack.c.bf16 %v2177_v59, %v5199_v6 }
 0x471   : > { %v4074_v4 = vunpack.i.h.bf16 %v4072_v35  ;;  %v4073_v63 = vunpack.i.l.bf16 %v4072_v35  ;;  %v4079_v46 = vunpack.i.h.bf16 %v4077_v36  ;;  %v4078_v34 = vunpack.i.l.bf16 %v4077_v36 }
 0x472   : > { %2369 = vmatprep.subr.bf16.mxu0 %v2351_v40  ;;  %2410 = vmatprep.subr.bf16.mxu1 %v2353_v19  ;;  %v5842_v40 = vmov 1.0  }
 0x473   : > { %2370 = vmatpush1.bf16.msra.mxu0 %v2350_v0  ;;  %2411 = vmatpush1.bf16.msra.mxu1 %v2352_v51  ;;  %v2212_v15 = vsel %vm685_vm2, %v4073_v63, %v4074_v4  ;;  %v2249_v25 = vsel %vm576_vm1, %v4078_v34, %v4079_v46 }
 0x474   : > { %v4082_v33 = vpop.permute.xlu1 %4081  ;;  %v4087_v23 = vpop.permute.xlu0 %4086  ;;  %v2355_v41 = vpack.c.bf16 %v2249_v25, %v2212_v15  ;;  %v4262_v25 = vld [vmem:[%s5738_s7] ss:$8 sps:$4 sm:$0xff]  }
 0x475   : > { %v4084_v39 = vunpack.i.h.bf16 %v4082_v33  ;;  %v4083_v57 = vunpack.i.l.bf16 %v4082_v33  ;;  %v4089_v8 = vunpack.i.h.bf16 %v4087_v23  ;;  %v4088_v54 = vunpack.i.l.bf16 %v4087_v23  ;;  %v2301_v33 = vld [vmem:[%s5735_s4] sm:$0xf]  ;;  %v4267_v23 = vld [vmem:[%s5738_s7 + $0x14] ss:$8 sps:$4 sm:$0xff]  }
 0x476   : > { %2371 = vmatprep.subr.bf16.mxu0 %v2355_v41  ;;  %v4265_v41 = vld [vmem:[%s5738_s7 + $0x10] ss:$8 sps:$4 sm:$0xff]  }
 0x477   : > { %v2211_v6 = vsel %vm685_vm2, %v4083_v57, %v4073_v63  ;;  %v2213_v45 = vsel %vm685_vm2, %v4074_v4, %v4084_v39  ;;  %v2248_v24 = vsel %vm576_vm1, %v4088_v54, %v4078_v34  ;;  %v2250_v52 = vsel %vm576_vm1, %v4079_v46, %v4089_v8  ;;  %v4264_v63 = vld [vmem:[%s5738_s7 + $0x4] ss:$8 sps:$4 sm:$0xff]   ;;  %v4268_v57 = vld [vmem:[%s5738_s7 + $0x20] ss:$8 sps:$4 sm:$0xff]   ;;  %v4271_v54 = vld [vmem:[%s5738_s7 + $0x30] ss:$8 sps:$4 sm:$0xff]  }
 0x478   : > { %v2354_v47 = vpack.c.bf16 %v2248_v24, %v2211_v6  ;;  %v2356_v9 = vpack.c.bf16 %v2250_v52, %v2213_v45  ;;  %v4092_v48 = vpop.permute.xlu1 %4091  ;;  %v4097_v32 = vpop.permute.xlu0 %4096  ;;  %v2214_v11 = vsel %vm685_vm2, %v4084_v39, %v5275_v26  ;;  %v2251_v16 = vsel %vm576_vm1, %v4089_v8, %v5277_v44  ;;  %v4270_v39 = vld [vmem:[%s5738_s7 + $0x24] ss:$8 sps:$4 sm:$0xff]   ;;  %v4273_v8 = vld [vmem:[%s5738_s7 + $0x34] ss:$8 sps:$4 sm:$0xff]  }
 0x479   : > { %v4094_v10 = vunpack.i.h.bf16 %v4092_v48  ;;  %v4093_v18 = vunpack.i.l.bf16 %v4092_v48  ;;  %v4099_v59 = vunpack.i.h.bf16 %v4097_v32  ;;  %v4098_v51 = vunpack.i.l.bf16 %v4097_v32  ;;  %v2459_v6 = vld [vmem:[%s383_s25] sm:$0xff]  ;;  %v3635_v45 = vld [vmem:[%s383_s25 + $0x8] sm:$0xff] }
 0x47a   : > { %2372 = vmatpush1.bf16.msra.mxu0 %v2354_v47  ;;  %v2357_v0 = vpack.c.bf16 %v2251_v16, %v2214_v11  ;;  %v2460_v24 = vpack.c.bf16 %v2459_v6, %v2459_v6  ;;  %v2548_v52 = vpack.c.bf16 %v3635_v45, %v3635_v45  ;;  %v5845_v11 = vld [vmem:[#allocation22_spill] sm:$0xff] }
 0x47b   : > { %v2286_v35 = vsel %vm467_vm0, %v4093_v18, %v4094_v10  ;;  %v2285_v36 = vsel %vm467_vm0, %v4098_v51, %v4093_v18  ;;  %v2287_v4 = vsel %vm467_vm0, %v4094_v10, %v4099_v59 }
 0x47c   : > { %v3657_v19 = vpack.c.bf16 %v5842_v40, %v2286_v35  ;;  %v3660_v26 = vpack.c.bf16 %v5842_v40, %v2285_v36  ;;  %2412 = vmatprep.subr.bf16.mxu1 %v2357_v0  ;;  %v2284_v44 = vpop.permute.xlu1 %2283  ;;  %v3666_v15 = vpack.c.bf16 %v5842_v40, %v2287_v4  ;;  %v5849_v36 = vld [vmem:[#allocation24_spill] sm:$0xff] }
 0x47d   : > { %2413 = vmatpush1.bf16.msra.mxu1 %v2356_v9  ;;  %v2288_v46 = vsel %vm467_vm0, %v4099_v59, %v2284_v44  ;;  %v5843_v9 = vld [vmem:[#allocation21_spill] sm:$0xff]  ;;  %v5847_v59 = vld [vmem:[#allocation23_spill] sm:$0xff] }
 0x47e   : > { %v3663_v34 = vpack.c.bf16 %v5842_v40, %v2288_v46  ;;  %3658 = vmatprep.subr.msk.bf16.mxu0 %vm5142_vm12, %v3657_v19 }
 0x47f   : > { %3661 = vmatpush1.bf16.msk.msra.mxu0 %vm5142_vm12, %v3660_v26 }
 0x480   : > { %3664 = vmatprep.subr.msk.bf16.mxu1 %vm5142_vm12, %v3663_v34  ;;  %2505 = vmatprep.subr.bf16.mxu0 %v4264_v63 }
 0x481   : > { %3667 = vmatpush1.bf16.msk.msra.mxu1 %vm5142_vm12, %v3666_v15 }
 0x482   : > { %3624 = vmatmul.mubr.msk.bf16.vlgmr.msra.gmra.mrb[8].mxu0 %vm1903_vm13, %v2301_v33  ;;  %2552 = vmatprep.subr.bf16.mxu1 %v4264_v63 }
 0x483   : > { %2506 = vmatpush1.bf16.msra.mxu0 %v4262_v25  ;;  %2537 = vmatprep.mubr.bf16.mxu0 %v5830_v53 }
 0x484   : > { %3625 = vmatmul.mubr.msk.bf16.vlgmr.msra.gmra.mrb[8].mxu1 %vm1903_vm13, %v2301_v33  ;;  %2507 = vmatprep.subr.bf16.mxu0 %v4267_v23 }
 0x485   : > { %2553 = vmatpush1.bf16.msra.mxu1 %v4262_v25  ;;  %2584 = vmatprep.mubr.bf16.mxu1 %v5830_v53 }
 0x486   : > { %2554 = vmatprep.subr.bf16.mxu1 %v4267_v23 }
 0x487   : > { %2508 = vmatpush1.bf16.msra.mxu0 %v4265_v41 }
 0x488   : > { %2509 = vmatprep.subr.bf16.mxu0 %v4270_v39 }
 0x489   : > { %2555 = vmatpush1.bf16.msra.mxu1 %v4265_v41 }
 0x48a   : > { %2556 = vmatprep.subr.bf16.mxu1 %v4270_v39 }
 0x48b   : > { %2510 = vmatpush1.bf16.msra.mxu0 %v4268_v57 }
 0x48c   : > { %2511 = vmatprep.subr.bf16.mxu0 %v4273_v8 }
 0x48d   : > { %2557 = vmatpush1.bf16.msra.mxu1 %v4268_v57 }
 0x48e   : > { %2558 = vmatprep.subr.bf16.mxu1 %v4273_v8 }
 0x48f   : > { %2512 = vmatpush1.bf16.msra.mxu0 %v4271_v54 }
 0x491   : > { %2559 = vmatpush1.bf16.msra.mxu1 %v4271_v54 }
 0x492   : > { %3634 = vmatmul.mubr.msk.bf16.vlgmr.msra.gmra.mrb[8].mxu0 %vm2501_vm14, %v2460_v24 }
 0x493   : > { %3005 = vmatprep.mubr.bf16.mxu0 %v5830_v53 }
 0x494   : > { %3636 = vmatmul.mubr.msk.bf16.vlgmr.msra.gmra.mrb[8].mxu1 %vm2501_vm14, %v2548_v52 }
 0x495   : > { %3046 = vmatprep.mubr.bf16.mxu1 %v5830_v53 }
 0x565   : > { %v2539_v47 = vpop.f32.mrb[8].mxu0 }
 0x566   : > { %v5369_v48 = vadd.f32 %v2539_v47, %v5843_v9  ;;  %v2541_v32 = vpop.f32.mrb[9].mxu0 }
 0x567   : > { %v5372_v16 = vadd.f32 %v2541_v32, %v5845_v11  ;;  %v2543_v10 = vpop.f32.mrb[10].mxu0  ;;  %v2586_v18 = vpop.f32.mrb[8].mxu1 }
 0x568   : > { %5844 = vst [vmem:[#allocation9_spill] sm:$0xff] %v5369_v48  ;;  %v5375_v51 = vadd.f32 %v2586_v18, %v5847_v59  ;;  %v2544_v0 = vpop.f32.mrb[11].mxu0  ;;  %v2588_v35 = vpop.f32.mrb[9].mxu1  ;;  %v5388_v34 = vmax.f32 %v5369_v48, 0.0 }
 0x569   : > { %5846 = vst [vmem:[#allocation11_spill] sm:$0xff] %v5372_v16  ;;  %v5378_v19 = vadd.f32 %v2588_v35, %v5849_v36  ;;  %v2590_v4 = vpop.f32.mrb[10].mxu1  ;;  %v5391_v15 = vmax.f32 %v5372_v16, 0.0 }
 0x56a   : > { %5848 = vst [vmem:[#allocation13_spill] sm:$0xff] %v5375_v51  ;;  %v5381_v26 = vmax.f32 %v5375_v51, 0.0  ;;  %v2591_v44 = vpop.f32.mrb[11].mxu1  ;;  %v2648_v39 = vmul.f32 %v5388_v34, %v4593_v38  ;;  %v2611_v57 = vmul.f32 %v5388_v34, %v4534_v12  ;;  %v2722_v9 = vmul.f32 %v5388_v34, %v4682_v37 }
 0x56b   : > { %5850 = vst [vmem:[#allocation21_spill] sm:$0xff] %v5378_v19  ;;  %v2649_v6 = vmul.f32 %v5391_v15, %v4580_v31  ;;  %v2612_v45 = vmul.f32 %v5391_v15, %v4537_v13  ;;  %v5414_v24 = vmax.f32 %v5378_v19, 0.0  ;;  %v2723_v32 = vmul.f32 %v5391_v15, %v4666_v29 }
 0x56c   : > { %v2650_v63 = vmul.f32 %v5381_v26, %v4603_v43  ;;  %v2613_v46 = vmul.f32 %v5381_v26, %v4558_v20  ;;  %v2724_v23 = vmul.f32 %v5381_v26, %v4693_v49  ;;  %v2687_v41 = vmul.f32 %v5381_v26, %v4646_v3 }
 0x56d   : > { %v4125_v52 = vpack.i.bf16 %v2649_v6, %v2648_v39  ;;  %v4120_v47 = vpack.i.bf16 %v2612_v45, %v2611_v57  ;;  %v2651_v11 = vmul.f32 %v5414_v24, %v4520_v5  ;;  %v2614_v10 = vmul.f32 %v5414_v24, %v4505_v61 }
 0x56e   : > { %v4105_v25 = vpack.i.bf16 %v2650_v63, %v4503_v60  ;;  %v4100_v33 = vpack.i.bf16 %v2613_v46, %v4498_v55  ;;  %v4115_v8 = vpack.i.bf16 %v2724_v23, %v4526_v7  ;;  %v4110_v54 = vpack.i.bf16 %v2687_v41, %v4513_v2 }
 0x56f   : > { %v2685_v18 = vmul.f32 %v5388_v34, %v4637_v58  ;;  %v2686_v59 = vmul.f32 %v5391_v15, %v4629_v56  ;;  %v4135_v0 = vpack.i.bf16 %v2723_v32, %v2722_v9  ;;  %v2765_v36 = vmul.f32 %v5414_v24, %v4725_v22  ;;  %v5853_v32 = vld [vmem:[#allocation5_spill] sm:$0xff] }
 0x570   : > { %4106 = vrot.lane.b32.xlu1 %v4105_v25, %s4304_s15  ;;  %4101 = vrot.lane.b32.xlu0 %v4100_v33, %s4305_s21  ;;  %v2725_v4 = vmul.f32 %v5414_v24, %v4621_v50  ;;  %v2688_v44 = vmul.f32 %v5414_v24, %v4560_v21  ;;  %v2763_v63 = vmul.f32 %v5391_v15, %v4717_v1 }
 0x571   : > { %v4130_v35 = vpack.i.bf16 %v2686_v59, %v2685_v18  ;;  %v2764_v46 = vmul.f32 %v5381_v26, %v4711_v62  ;;  %v2762_v25 = vmul.f32 %v5388_v34, %v4539_v14  ;;  %v2800_v23 = vmul.f32 %v5391_v15, %v5814_v17 }
 0x572   : > { %v2801_v39 = vmul.f32 %v5381_v26, %v5812_v30  ;;  %v2837_v57 = vmul.f32 %v5391_v15, %v5815_v27 }
 0x573   : > { %v4145_v33 = vpack.i.bf16 %v2765_v36, %v2762_v25  ;;  %v4140_v41 = vpack.i.bf16 %v2764_v46, %v2763_v63  ;;  %v5857_v63 = vld [vmem:[#allocation19_spill] sm:$0xff] }
 0x574   : > { %4116 = vrot.lane.b32.xlu1 %v4115_v8, %s4302_s23  ;;  %4111 = vrot.lane.b32.xlu0 %v4110_v54, %s4303_s27  ;;  %v2838_v8 = vmul.f32 %v5381_v26, %v5813_v42  ;;  %v5851_v54 = vld [vmem:[#allocation10_spill] sm:$0xff]  ;;  %v4150_v45 = vpack.i.bf16 %v2801_v39, %v2800_v23  ;;  %v2876_v46 = vmul.f32 %v5414_v24, %v5857_v63  ;;  %v5858_v25 = vld [vmem:[#allocation7_spill] sm:$0xff]  ;;  %v5860_v39 = vld [vmem:[#allocation20_spill] sm:$0xff] }
 0x575   : > { %v2802_v6 = vmul.f32 %v5414_v24, %v5851_v54 }
 0x578   : > { %4126 = vrot.lane.b32.xlu1 %v4125_v52, %s4304_s15  ;;  %4121 = vrot.lane.b32.xlu0 %v4120_v47, %s4305_s21  ;;  %v4155_v52 = vpack.i.bf16 %v2838_v8, %v2837_v57  ;;  %v5852_v47 = vld [vmem:[#allocation15_spill] sm:$0xff]  ;;  %v5861_v57 = vld [vmem:[#allocation8_spill] sm:$0xff] }
 0x579   : > { %v2839_v9 = vmul.f32 %v5414_v24, %v5852_v47  ;;  %v5862_v8 = vld [vmem:[#allocation12_spill] sm:$0xff] }
 0x57c   : > { %2665 = vrot.lane.b32.xlu1 %v2651_v11, %s4304_s15  ;;  %2628 = vrot.lane.b32.xlu0 %v2614_v10, %s4305_s21  ;;  %v2799_v11 = vmul.f32 %v5388_v34, %v5853_v32  ;;  %v5854_v10 = vld [vmem:[#allocation6_spill] sm:$0xff] }
 0x57d   : > { %v2836_v18 = vmul.f32 %v5388_v34, %v5854_v10 }
 0x57e   : > { %v4160_v59 = vpack.i.bf16 %v2802_v6, %v2799_v11  ;;  %v5863_v6 = vld [vmem:[#allocation16_spill] sm:$0xff] }
 0x580   : > { %4136 = vrot.lane.b32.xlu1 %v4135_v0, %s4302_s23  ;;  %4131 = vrot.lane.b32.xlu0 %v4130_v35, %s4303_s27  ;;  %v4165_v0 = vpack.i.bf16 %v2839_v9, %v2836_v18  ;;  %v5855_v35 = vld [vmem:[#allocation17_spill] sm:$0xff] }
 0x581   : > { %v2874_v36 = vmul.f32 %v5391_v15, %v5855_v35 }
 0x584   : > { %2739 = vrot.lane.b32.xlu1 %v2725_v4, %s4302_s23  ;;  %2702 = vrot.lane.b32.xlu0 %v2688_v44, %s4303_s27  ;;  %v5856_v4 = vld [vmem:[#allocation18_spill] sm:$0xff] }
 0x585   : > { %v2875_v44 = vmul.f32 %v5381_v26, %v5856_v4 }
 0x587   : > { %v4170_v23 = vpack.i.bf16 %v2875_v44, %v2874_v36 }
 0x588   : > { %4146 = vrot.lane.b32.xlu1 %v4145_v33, %s4301_s20  ;;  %4141 = vrot.lane.b32.xlu0 %v4140_v41, %s4301_s20  ;;  %v2873_v33 = vmul.f32 %v5388_v34, %v5858_v25 }
 0x58a   : > { %v4175_v41 = vpack.i.bf16 %v2876_v46, %v2873_v33 }
 0x58c   : > { %4151 = vrot.lane.b32.xlu1 %v4150_v45, %s4300_s17  ;;  %4156 = vrot.lane.b32.xlu0 %v4155_v52, %s4299_s29  ;;  %v5488_v45 = vpop.permute.xlu0 %2780  ;;  %v5490_v52 = vpop.permute.xlu1 %2817 }
 0x590   : > { %4161 = vrot.lane.b32.xlu1 %v4160_v59, %s4300_s17  ;;  %4166 = vrot.lane.b32.xlu0 %v4165_v0, %s4299_s29  ;;  %v5492_v9 = vpop.permute.xlu0 %2854 }
 0x594   : > { %4171 = vrot.lane.b32.xlu1 %v4170_v23, %s5859_s12  ;;  %4176 = vrot.lane.b32.xlu0 %v4175_v41, %s5859_s12 }
 0x598   : > { %2891 = vrot.lane.b32.xlu1 %v5860_v39, %s5859_s12  ;;  %3238 = vrot.lane.b32.xlu0 %v5861_v57, %s4301_s20 }
 0x59c   : > { %3275 = vrot.lane.b32.xlu1 %v5862_v8, %s4300_s17  ;;  %3312 = vrot.lane.b32.xlu0 %v5863_v6, %s4299_s29 }
 0x5e2   : > { %v4107_v11 = vpop.permute.xlu1 %4106  ;;  %v4102_v18 = vpop.permute.xlu0 %4101 }
 0x5e3   : > { %v4109_v36 = vunpack.i.h.bf16 %v4107_v11  ;;  %v4108_v44 = vunpack.i.l.bf16 %v4107_v11  ;;  %v4103_v46 = vunpack.i.l.bf16 %v4102_v18  ;;  %v4104_v6 = vunpack.i.h.bf16 %v4102_v18 }
 0x5e6   : > { %v4117_v59 = vpop.permute.xlu1 %4116  ;;  %v4112_v0 = vpop.permute.xlu0 %4111 }
 0x5e7   : > { %v4118_v47 = vunpack.i.l.bf16 %v4117_v59 }
 0x5ea   : > { %v4127_v33 = vpop.permute.xlu1 %4126  ;;  %v4122_v23 = vpop.permute.xlu0 %4121 }
 0x5eb   : > { %v4129_v41 = vunpack.i.h.bf16 %v4127_v33  ;;  %v4128_v57 = vunpack.i.l.bf16 %v4127_v33  ;;  %v4124_v8 = vunpack.i.h.bf16 %v4122_v23  ;;  %v4123_v19 = vunpack.i.l.bf16 %v4122_v23 }
 0x5ed   : > { %v2669_v51 = vsel %vm625_vm6, %v4129_v41, %v4109_v36  ;;  %v2667_v16 = vsel %vm625_vm6, %v4108_v44, %v4128_v57  ;;  %v2630_v48 = vsel %vm516_vm7, %v4103_v46, %v4123_v19  ;;  %v2632_v39 = vsel %vm516_vm7, %v4124_v8, %v4104_v6 }
 0x5ee   : > { %v2950_v25 = vpack.c.bf16 %v2667_v16, %v2630_v48  ;;  %v2666_v63 = vpop.permute.xlu1 %2665  ;;  %v2629_v4 = vpop.permute.xlu0 %2628  ;;  %v2631_v11 = vsel %vm516_vm7, %v4123_v19, %v4124_v8  ;;  %v2668_v35 = vsel %vm625_vm6, %v4128_v57, %v4129_v41  ;;  %v2952_v32 = vpack.c.bf16 %v2669_v51, %v2632_v39 }
 0x5ef   : > { %v2670_v33 = vsel %vm625_vm6, %v4109_v36, %v2666_v63  ;;  %v2633_v23 = vsel %vm516_vm7, %v4104_v6, %v2629_v4  ;;  %v2951_v18 = vpack.c.bf16 %v2668_v35, %v2631_v11  ;;  %v4119_v44 = vunpack.i.h.bf16 %v4117_v59 }
 0x5f0   : > { %v2953_v10 = vpack.c.bf16 %v2670_v33, %v2633_v23  ;;  %v4113_v46 = vunpack.i.l.bf16 %v4112_v0  ;;  %v4114_v41 = vunpack.i.h.bf16 %v4112_v0 }
 0x5f1   : > { %2973 = vmatprep.subr.bf16.mxu0 %v2951_v18 }
 0x5f2   : > { %2974 = vmatpush1.bf16.msra.mxu0 %v2950_v25  ;;  %v4137_v54 = vpop.permute.xlu1 %4136  ;;  %3014 = vmatprep.subr.bf16.mxu1 %v2953_v10  ;;  %v4132_v48 = vpop.permute.xlu0 %4131 }
 0x5f3   : > { %v4139_v16 = vunpack.i.h.bf16 %v4137_v54  ;;  %v4138_v42 = vunpack.i.l.bf16 %v4137_v54  ;;  %v4134_v19 = vunpack.i.h.bf16 %v4132_v48  ;;  %v4133_v8 = vunpack.i.l.bf16 %v4132_v48  ;;  %3015 = vmatpush1.bf16.msra.mxu1 %v2952_v32 }
 0x5f5   : > { %v2743_v63 = vsel %vm843_vm4, %v4139_v16, %v4119_v44  ;;  %v2741_v35 = vsel %vm843_vm4, %v4118_v47, %v4138_v42  ;;  %v2704_v51 = vsel %vm734_vm5, %v4113_v46, %v4133_v8  ;;  %v2706_v4 = vsel %vm734_vm5, %v4134_v19, %v4114_v41 }
 0x5f6   : > { %v2954_v39 = vpack.c.bf16 %v2741_v35, %v2704_v51  ;;  %v2740_v59 = vpop.permute.xlu1 %2739  ;;  %v2703_v25 = vpop.permute.xlu0 %2702  ;;  %v2705_v10 = vsel %vm734_vm5, %v4133_v8, %v4134_v19  ;;  %v2742_v36 = vsel %vm843_vm4, %v4138_v42, %v4139_v16  ;;  %v2956_v6 = vpack.c.bf16 %v2743_v63, %v2706_v4 }
 0x5f7   : > { %v2744_v54 = vsel %vm843_vm4, %v4119_v44, %v2740_v59  ;;  %v2707_v32 = vsel %vm734_vm5, %v4114_v41, %v2703_v25  ;;  %v2955_v0 = vpack.c.bf16 %v2742_v36, %v2705_v10 }
 0x5f8   : > { %v2957_v57 = vpack.c.bf16 %v2744_v54, %v2707_v32 }
 0x5f9   : > { %2975 = vmatprep.subr.bf16.mxu0 %v2955_v0 }
 0x5fa   : > { %2976 = vmatpush1.bf16.msra.mxu0 %v2954_v39  ;;  %v4147_v47 = vpop.permute.xlu1 %4146  ;;  %v4142_v11 = vpop.permute.xlu0 %4141  ;;  %3016 = vmatprep.subr.bf16.mxu1 %v2957_v57 }
 0x5fb   : > { %v4149_v33 = vunpack.i.h.bf16 %v4147_v47  ;;  %v4148_v23 = vunpack.i.l.bf16 %v4147_v47  ;;  %v4144_v18 = vunpack.i.h.bf16 %v4142_v11  ;;  %v4143_v46 = vunpack.i.l.bf16 %v4142_v11  ;;  %3017 = vmatpush1.bf16.msra.mxu1 %v2956_v6 }
 0x5fd   : > { %v2784_v48 = vsel %vm794_vm3, %v4144_v18, %v4149_v33  ;;  %v2782_v42 = vsel %vm794_vm3, %v4148_v23, %v4143_v46  ;;  %v2783_v44 = vsel %vm794_vm3, %v4143_v46, %v4144_v18  ;;  %v2785_v16 = vsel %vm794_vm3, %v4149_v33, %v5488_v45 }
 0x5fe   : > { %v2960_v19 = vpack.c.bf16 %v2784_v48, %v5381_v26  ;;  %v2958_v8 = vpack.c.bf16 %v2782_v42, %v5388_v34  ;;  %v4152_v41 = vpop.permute.xlu1 %4151  ;;  %v4157_v63 = vpop.permute.xlu0 %4156  ;;  %v2959_v35 = vpack.c.bf16 %v2783_v44, %v5391_v15  ;;  %v2961_v51 = vpack.c.bf16 %v2785_v16, %v5414_v24 }
 0x5ff   : > { %v4154_v4 = vunpack.i.h.bf16 %v4152_v41  ;;  %v4153_v39 = vunpack.i.l.bf16 %v4152_v41  ;;  %v4159_v59 = vunpack.i.h.bf16 %v4157_v63  ;;  %v4158_v25 = vunpack.i.l.bf16 %v4157_v63 }
 0x600   : > { %2977 = vmatprep.subr.bf16.mxu0 %v2959_v35  ;;  %3018 = vmatprep.subr.bf16.mxu1 %v2961_v51 }
 0x601   : > { %2978 = vmatpush1.bf16.msra.mxu0 %v2958_v8  ;;  %3019 = vmatpush1.bf16.msra.mxu1 %v2960_v19  ;;  %v2820_v45 = vsel %vm685_vm2, %v4153_v39, %v4154_v4  ;;  %v2857_v26 = vsel %vm576_vm1, %v4158_v25, %v4159_v59 }
 0x602   : > { %v4162_v10 = vpop.permute.xlu1 %4161  ;;  %v4167_v34 = vpop.permute.xlu0 %4166  ;;  %v2963_v36 = vpack.c.bf16 %v2857_v26, %v2820_v45 }
 0x603   : > { %v4164_v54 = vunpack.i.h.bf16 %v4162_v10  ;;  %v4163_v32 = vunpack.i.l.bf16 %v4162_v10  ;;  %v4169_v15 = vunpack.i.h.bf16 %v4167_v34  ;;  %v4168_v0 = vunpack.i.l.bf16 %v4167_v34 }
 0x604   : > { %2979 = vmatprep.subr.bf16.mxu0 %v2963_v36 }
 0x605   : > { %v2819_v24 = vsel %vm685_vm2, %v4163_v32, %v4153_v39  ;;  %v2821_v57 = vsel %vm685_vm2, %v4154_v4, %v4164_v54  ;;  %v2856_v6 = vsel %vm576_vm1, %v4168_v0, %v4158_v25  ;;  %v2858_v47 = vsel %vm576_vm1, %v4159_v59, %v4169_v15  ;;  %v2909_v25 = vld [vmem:[%s5736_s5] sm:$0xf] }
 0x606   : > { %v2962_v11 = vpack.c.bf16 %v2856_v6, %v2819_v24  ;;  %v2964_v33 = vpack.c.bf16 %v2858_v47, %v2821_v57  ;;  %v4172_v23 = vpop.permute.xlu1 %4171  ;;  %v4177_v18 = vpop.permute.xlu0 %4176  ;;  %v2822_v46 = vsel %vm685_vm2, %v4164_v54, %v5490_v52  ;;  %v2859_v48 = vsel %vm576_vm1, %v4169_v15, %v5492_v9 }
 0x607   : > { %v4174_v42 = vunpack.i.h.bf16 %v4172_v23  ;;  %v4173_v44 = vunpack.i.l.bf16 %v4172_v23  ;;  %v4179_v16 = vunpack.i.h.bf16 %v4177_v18  ;;  %v4178_v19 = vunpack.i.l.bf16 %v4177_v18 }
 0x608   : > { %2980 = vmatpush1.bf16.msra.mxu0 %v2962_v11  ;;  %v2965_v8 = vpack.c.bf16 %v2859_v48, %v2822_v46 }
 0x609   : > { %v2894_v41 = vsel %vm467_vm0, %v4173_v44, %v4174_v42  ;;  %v2893_v63 = vsel %vm467_vm0, %v4178_v19, %v4173_v44  ;;  %v2895_v51 = vsel %vm467_vm0, %v4174_v42, %v4179_v16  ;;  %v5864_v19 = vld [vmem:[#allocation14_spill] sm:$0xff] }
 0x60a   : > { %v3669_v35 = vpack.c.bf16 %v5842_v40, %v2894_v41  ;;  %v3672_v4 = vpack.c.bf16 %v5842_v40, %v2893_v63  ;;  %3020 = vmatprep.subr.bf16.mxu1 %v2965_v8  ;;  %v2892_v52 = vpop.permute.xlu1 %2891  ;;  %v3678_v59 = vpack.c.bf16 %v5842_v40, %v2895_v51  ;;  %v5867_v51 = vld [vmem:[#allocation5_spill] sm:$0xff] }
 0x60b   : > { %3021 = vmatpush1.bf16.msra.mxu1 %v2964_v33  ;;  %v2896_v9 = vsel %vm467_vm0, %v4179_v16, %v2892_v52 }
 0x60c   : > { %v3675_v39 = vpack.c.bf16 %v5842_v40, %v2896_v9  ;;  %3670 = vmatprep.subr.msk.bf16.mxu0 %vm5142_vm12, %v3669_v35 }
 0x60d   : > { %3673 = vmatpush1.bf16.msk.msra.mxu0 %vm5142_vm12, %v3672_v4 }
 0x60e   : > { %3676 = vmatprep.subr.msk.bf16.mxu1 %vm5142_vm12, %v3675_v39  ;;  %v5869_v39 = vld [vmem:[#allocation17_spill] sm:$0xff] }
 0x60f   : > { %3679 = vmatpush1.bf16.msk.msra.mxu1 %vm5142_vm12, %v3678_v59 }
 0x610   : > { %3637 = vmatmul.mubr.msk.bf16.vlgmr.msra.gmra.mrb[12].mxu0 %vm1903_vm13, %v2909_v25 }
 0x611   : > { %3463 = vmatprep.mubr.bf16.mxu0 %v5830_v53 }
 0x612   : > { %3638 = vmatmul.mubr.msk.bf16.vlgmr.msra.gmra.mrb[12].mxu1 %vm1903_vm13, %v2909_v25  ;;  %v5870_v25 = vld [vmem:[#allocation18_spill] sm:$0xff] }
 0x613   : > { %3504 = vmatprep.mubr.bf16.mxu1 %v5830_v53 }
 0x6e3   : > { %v3007_v45 = vpop.f32.mrb[12].mxu0 }
 0x6e4   : > { %v3009_v26 = vpop.f32.mrb[13].mxu0  ;;  %v5558_v6 = vmax.f32 %v3007_v45, 0.0 }
 0x6e5   : > { %v3048_v10 = vpop.f32.mrb[12].mxu1  ;;  %v3011_v34 = vpop.f32.mrb[14].mxu0  ;;  %v5560_v47 = vmax.f32 %v3009_v26, 0.0  ;;  %v5871_v26 = vld [vmem:[#allocation19_spill] sm:$0xff] }
 0x6e6   : > { %v5552_v36 = vmax.f32 %v3048_v10, 0.0  ;;  %v3050_v54 = vpop.f32.mrb[13].mxu1  ;;  %v3012_v32 = vpop.f32.mrb[15].mxu0  ;;  %v3220_v44 = vmul.f32 %v5558_v6, %v4539_v14  ;;  %v5865_v14 = vld [vmem:[#allocation10_spill] sm:$0xff]  ;;  %v5872_v34 = vld [vmem:[#allocation7_spill] sm:$0xff] }
 0x6e7   : > { %v3052_v15 = vpop.f32.mrb[14].mxu1  ;;  %v5582_v18 = vmax.f32 %v3050_v54, 0.0  ;;  %v3144_v48 = vmul.f32 %v5560_v47, %v4629_v56  ;;  %v3221_v56 = vmul.f32 %v5560_v47, %v4717_v1  ;;  %v3295_v1 = vmul.f32 %v5560_v47, %v5815_v27  ;;  %v5868_v27 = vld [vmem:[#allocation6_spill] sm:$0xff] }
 0x6e8   : > { %v3053_v0 = vpop.f32.mrb[15].mxu1  ;;  %v3108_v24 = vmul.f32 %v5552_v36, %v4603_v43  ;;  %v3071_v57 = vmul.f32 %v5552_v36, %v4558_v20  ;;  %v3182_v33 = vmul.f32 %v5552_v36, %v4693_v49  ;;  %v3145_v23 = vmul.f32 %v5552_v36, %v4646_v3 }
 0x6e9   : > { %v3106_v20 = vmul.f32 %v5558_v6, %v4593_v38  ;;  %v3069_v43 = vmul.f32 %v5558_v6, %v4534_v12  ;;  %v3107_v49 = vmul.f32 %v5560_v47, %v4580_v31  ;;  %v3070_v3 = vmul.f32 %v5560_v47, %v4537_v13  ;;  %v5873_v0 = vld [vmem:[#allocation20_spill] sm:$0xff] }
 0x6ea   : > { %v4185_v53 = vpack.i.bf16 %v3108_v24, %v4503_v60  ;;  %v4180_v11 = vpack.i.bf16 %v3071_v57, %v4498_v55  ;;  %v4195_v60 = vpack.i.bf16 %v3182_v33, %v4526_v7  ;;  %v4190_v55 = vpack.i.bf16 %v3145_v23, %v4513_v2  ;;  %v5650_v24 = vpop.permute.xlu0 %3238  ;;  %v5652_v57 = vpop.permute.xlu1 %3275 }
 0x6eb   : > { %v4205_v38 = vpack.i.bf16 %v3107_v49, %v3106_v20  ;;  %v4200_v46 = vpack.i.bf16 %v3070_v3, %v3069_v43  ;;  %v3180_v2 = vmul.f32 %v5558_v6, %v4682_v37  ;;  %v3181_v7 = vmul.f32 %v5560_v47, %v4666_v29 }
 0x6ec   : > { %4186 = vrot.lane.b32.xlu1 %v4185_v53, %s4304_s15  ;;  %4181 = vrot.lane.b32.xlu0 %v4180_v11, %s4305_s21  ;;  %v3109_v12 = vmul.f32 %v5582_v18, %v4520_v5  ;;  %v3072_v13 = vmul.f32 %v5582_v18, %v4505_v61  ;;  %v3143_v31 = vmul.f32 %v5558_v6, %v4637_v58 }
 0x6ed   : > { %v4215_v37 = vpack.i.bf16 %v3181_v7, %v3180_v2  ;;  %v3223_v5 = vmul.f32 %v5582_v18, %v4725_v22  ;;  %v3183_v61 = vmul.f32 %v5582_v18, %v4621_v50  ;;  %v3146_v58 = vmul.f32 %v5582_v18, %v4560_v21 }
 0x6ee   : > { %v4210_v42 = vpack.i.bf16 %v3144_v48, %v3143_v31  ;;  %v3222_v29 = vmul.f32 %v5552_v36, %v4711_v62  ;;  %v3258_v50 = vmul.f32 %v5560_v47, %v5814_v17  ;;  %v3259_v21 = vmul.f32 %v5552_v36, %v5812_v30  ;;  %v5866_v17 = vld [vmem:[#allocation15_spill] sm:$0xff]  ;;  %v5654_v53 = vpop.permute.xlu0 %3312 }
 0x6ef   : > { %v4225_v22 = vpack.i.bf16 %v3223_v5, %v3220_v44  ;;  %v3296_v62 = vmul.f32 %v5552_v36, %v5864_v19  ;;  %v3260_v8 = vmul.f32 %v5582_v18, %v5865_v14  ;;  %v3297_v35 = vmul.f32 %v5582_v18, %v5866_v17 }
 0x6f0   : > { %4196 = vrot.lane.b32.xlu1 %v4195_v60, %s4302_s23  ;;  %4191 = vrot.lane.b32.xlu0 %v4190_v55, %s4303_s27  ;;  %v4220_v16 = vpack.i.bf16 %v3222_v29, %v3221_v56  ;;  %v4230_v41 = vpack.i.bf16 %v3259_v21, %v3258_v50  ;;  %v3257_v30 = vmul.f32 %v5558_v6, %v5867_v51 }
 0x6f1   : > { %v4235_v63 = vpack.i.bf16 %v3296_v62, %v3295_v1  ;;  %v3294_v4 = vmul.f32 %v5558_v6, %v5868_v27  ;;  %v3332_v59 = vmul.f32 %v5560_v47, %v5869_v39  ;;  %v3333_v45 = vmul.f32 %v5552_v36, %v5870_v25 }
 0x6f2   : > { %v4240_v52 = vpack.i.bf16 %v3260_v8, %v3257_v30  ;;  %v3334_v10 = vmul.f32 %v5582_v18, %v5871_v26  ;;  %v3331_v54 = vmul.f32 %v5558_v6, %v5872_v34 }
 0x6f3   : > { %v4245_v9 = vpack.i.bf16 %v3297_v35, %v3294_v4  ;;  %v4250_v32 = vpack.i.bf16 %v3333_v45, %v3332_v59 }
 0x6f4   : > { %4206 = vrot.lane.b32.xlu1 %v4205_v38, %s4304_s15  ;;  %4201 = vrot.lane.b32.xlu0 %v4200_v46, %s4305_s21  ;;  %v4255_v15 = vpack.i.bf16 %v3334_v10, %v3331_v54 }
 0x6f8   : > { %3123 = vrot.lane.b32.xlu1 %v3109_v12, %s4304_s15  ;;  %3086 = vrot.lane.b32.xlu0 %v3072_v13, %s4305_s21 }
 0x6fc   : > { %4216 = vrot.lane.b32.xlu1 %v4215_v37, %s4302_s23  ;;  %4211 = vrot.lane.b32.xlu0 %v4210_v42, %s4303_s27 }
 0x700   : > { %3197 = vrot.lane.b32.xlu1 %v3183_v61, %s4302_s23  ;;  %3160 = vrot.lane.b32.xlu0 %v3146_v58, %s4303_s27 }
 0x704   : > { %4226 = vrot.lane.b32.xlu1 %v4225_v22, %s4301_s20  ;;  %4221 = vrot.lane.b32.xlu0 %v4220_v16, %s4301_s20  ;;  %s5874_s20 = sadd.s32 4294967295, %s4296_s11  }
 0x705   : > { %s3606_s23 = sshll.u32 %s5874_s20, 2 }
 0x706   : > { %p386_p9 = scmp.lt.s32.totalorder %s3606_s23, 7 }
 0x708   : > { %4231 = vrot.lane.b32.xlu1 %v4230_v41, %s4300_s17  ;;  %4236 = vrot.lane.b32.xlu0 %v4235_v63, %s4299_s29  ;;  %s5885_s23 = smov (!%p386_p9, %s3606_s23), 7 }
 0x709   : > { %s3607_s27 = sshll.u32 %s5885_s23, 3 }
 0x70a   : > { %s389_s18 = scalar_lea.vmem %s5740_s9, %s3607_s27 }
 0x70c   : > { %4241 = vrot.lane.b32.xlu1 %v4240_v52, %s4300_s17  ;;  %4246 = vrot.lane.b32.xlu0 %v4245_v9, %s4299_s29 }
 0x710   : > { %4251 = vrot.lane.b32.xlu1 %v4250_v32, %s5859_s12  ;;  %4256 = vrot.lane.b32.xlu0 %v4255_v15, %s5859_s12 }
 0x714   : > { %3349 = vrot.lane.b32.xlu1 %v5873_v0, %s5859_s12 }
 0x75e   : > { %v4187_v11 = vpop.permute.xlu1 %4186  ;;  %v4182_v33 = vpop.permute.xlu0 %4181 }
 0x75f   : > { %v4189_v43 = vunpack.i.h.bf16 %v4187_v11  ;;  %v4188_v60 = vunpack.i.l.bf16 %v4187_v11  ;;  %v4183_v55 = vunpack.i.l.bf16 %v4182_v33  ;;  %v4184_v12 = vunpack.i.h.bf16 %v4182_v33 }
 0x762   : > { %v4197_v23 = vpop.permute.xlu1 %4196  ;;  %v4192_v20 = vpop.permute.xlu0 %4191 }
 0x763   : > { %v4199_v21 = vunpack.i.h.bf16 %v4197_v23  ;;  %v4198_v1 = vunpack.i.l.bf16 %v4197_v23  ;;  %v4193_v19 = vunpack.i.l.bf16 %v4192_v20  ;;  %v4194_v35 = vunpack.i.h.bf16 %v4192_v20 }
 0x766   : > { %v4207_v49 = vpop.permute.xlu1 %4206  ;;  %v4202_v3 = vpop.permute.xlu0 %4201 }
 0x767   : > { %v4209_v38 = vunpack.i.h.bf16 %v4207_v49  ;;  %v4208_v46 = vunpack.i.l.bf16 %v4207_v49  ;;  %v4204_v2 = vunpack.i.h.bf16 %v4202_v3  ;;  %v4203_v7 = vunpack.i.l.bf16 %v4202_v3 }
 0x769   : > { %v3127_v13 = vsel %vm625_vm6, %v4209_v38, %v4189_v43  ;;  %v3125_v31 = vsel %vm625_vm6, %v4188_v60, %v4208_v46  ;;  %v3088_v48 = vsel %vm516_vm7, %v4183_v55, %v4203_v7  ;;  %v3090_v37 = vsel %vm516_vm7, %v4204_v2, %v4184_v12 }
 0x76a   : > { %v3408_v42 = vpack.c.bf16 %v3125_v31, %v3088_v48  ;;  %v3124_v5 = vpop.permute.xlu1 %3123  ;;  %v3087_v61 = vpop.permute.xlu0 %3086  ;;  %v3089_v58 = vsel %vm516_vm7, %v4203_v7, %v4204_v2  ;;  %v3126_v56 = vsel %vm625_vm6, %v4208_v46, %v4209_v38  ;;  %v3410_v16 = vpack.c.bf16 %v3127_v13, %v3090_v37 }
 0x76b   : > { %v3128_v29 = vsel %vm625_vm6, %v4189_v43, %v3124_v5  ;;  %v3091_v44 = vsel %vm516_vm7, %v4184_v12, %v3087_v61  ;;  %v3409_v22 = vpack.c.bf16 %v3126_v56, %v3089_v58 }
 0x76c   : > { %v3411_v50 = vpack.c.bf16 %v3128_v29, %v3091_v44 }
 0x76d   : > { %3431 = vmatprep.subr.bf16.mxu0 %v3409_v22 }
 0x76e   : > { %3432 = vmatpush1.bf16.msra.mxu0 %v3408_v42  ;;  %v4217_v62 = vpop.permute.xlu1 %4216  ;;  %3472 = vmatprep.subr.bf16.mxu1 %v3411_v50  ;;  %v4212_v14 = vpop.permute.xlu0 %4211 }
 0x76f   : > { %v4219_v8 = vunpack.i.h.bf16 %v4217_v62  ;;  %v4218_v41 = vunpack.i.l.bf16 %v4217_v62  ;;  %v4214_v63 = vunpack.i.h.bf16 %v4212_v14  ;;  %v4213_v17 = vunpack.i.l.bf16 %v4212_v14  ;;  %3473 = vmatpush1.bf16.msra.mxu1 %v3410_v16 }
 0x771   : > { %v3201_v51 = vsel %vm843_vm4, %v4219_v8, %v4199_v21  ;;  %v3199_v30 = vsel %vm843_vm4, %v4198_v1, %v4218_v41  ;;  %v3162_v27 = vsel %vm734_vm5, %v4193_v19, %v4213_v17  ;;  %v3164_v4 = vsel %vm734_vm5, %v4214_v63, %v4194_v35 }
 0x772   : > { %v3412_v52 = vpack.c.bf16 %v3199_v30, %v3162_v27  ;;  %v3198_v9 = vpop.permute.xlu1 %3197  ;;  %v3161_v39 = vpop.permute.xlu0 %3160  ;;  %v3163_v59 = vsel %vm734_vm5, %v4213_v17, %v4214_v63  ;;  %v3200_v25 = vsel %vm843_vm4, %v4218_v41, %v4219_v8  ;;  %v3414_v54 = vpack.c.bf16 %v3201_v51, %v3164_v4 }
 0x773   : > { %v3202_v45 = vsel %vm843_vm4, %v4199_v21, %v3198_v9  ;;  %v3165_v26 = vsel %vm734_vm5, %v4194_v35, %v3161_v39  ;;  %v3413_v10 = vpack.c.bf16 %v3200_v25, %v3163_v59  ;;  %v3367_v9 = vld [vmem:[%s5737_s6] sm:$0xf] }
 0x774   : > { %v3415_v34 = vpack.c.bf16 %v3202_v45, %v3165_v26  ;;  %v5875_v39 = vld [vmem:[#allocation9_spill] sm:$0xff]  ;;  %v5876_v45 = vld [vmem:[#allocation11_spill] sm:$0xff] }
 0x775   : > { %3433 = vmatprep.subr.bf16.mxu0 %v3413_v10 }
 0x776   : > { %3434 = vmatpush1.bf16.msra.mxu0 %v3412_v52  ;;  %v4227_v32 = vpop.permute.xlu1 %4226  ;;  %v4222_v15 = vpop.permute.xlu0 %4221  ;;  %3474 = vmatprep.subr.bf16.mxu1 %v3415_v34  ;;  %v5877_v34 = vld [vmem:[#allocation13_spill] sm:$0xff] }
 0x777   : > { %v4229_v0 = vunpack.i.h.bf16 %v4227_v32  ;;  %v4228_v11 = vunpack.i.l.bf16 %v4227_v32  ;;  %v4224_v33 = vunpack.i.h.bf16 %v4222_v15  ;;  %v4223_v23 = vunpack.i.l.bf16 %v4222_v15  ;;  %3475 = vmatpush1.bf16.msra.mxu1 %v3414_v54 }
 0x779   : > { %v3242_v20 = vsel %vm794_vm3, %v4224_v33, %v4229_v0  ;;  %v3240_v43 = vsel %vm794_vm3, %v4228_v11, %v4223_v23  ;;  %v3241_v60 = vsel %vm794_vm3, %v4223_v23, %v4224_v33  ;;  %v3243_v55 = vsel %vm794_vm3, %v4229_v0, %v5650_v24  ;;  %v5878_v0 = vld [vmem:[#allocation21_spill] sm:$0xff] }
 0x77a   : > { %v3418_v49 = vpack.c.bf16 %v3242_v20, %v5552_v36  ;;  %v3416_v3 = vpack.c.bf16 %v3240_v43, %v5558_v6  ;;  %v4232_v38 = vpop.permute.xlu1 %4231  ;;  %v4237_v46 = vpop.permute.xlu0 %4236  ;;  %v3417_v2 = vpack.c.bf16 %v3241_v60, %v5560_v47  ;;  %v3419_v7 = vpack.c.bf16 %v3243_v55, %v5582_v18 }
 0x77b   : > { %v4234_v12 = vunpack.i.h.bf16 %v4232_v38  ;;  %v4233_v13 = vunpack.i.l.bf16 %v4232_v38  ;;  %v4239_v31 = vunpack.i.h.bf16 %v4237_v46  ;;  %v4238_v48 = vunpack.i.l.bf16 %v4237_v46 }
 0x77c   : > { %3435 = vmatprep.subr.bf16.mxu0 %v3417_v2  ;;  %3476 = vmatprep.subr.bf16.mxu1 %v3419_v7 }
 0x77d   : > { %3436 = vmatpush1.bf16.msra.mxu0 %v3416_v3  ;;  %3477 = vmatpush1.bf16.msra.mxu1 %v3418_v49  ;;  %v3278_v24 = vsel %vm685_vm2, %v4233_v13, %v4234_v12  ;;  %v3315_v36 = vsel %vm576_vm1, %v4238_v48, %v4239_v31 }
 0x77e   : > { %v4242_v37 = vpop.permute.xlu1 %4241  ;;  %v4247_v6 = vpop.permute.xlu0 %4246  ;;  %v3421_v42 = vpack.c.bf16 %v3315_v36, %v3278_v24 }
 0x77f   : > { %v4244_v5 = vunpack.i.h.bf16 %v4242_v37  ;;  %v4243_v61 = vunpack.i.l.bf16 %v4242_v37  ;;  %v4249_v47 = vunpack.i.h.bf16 %v4247_v6  ;;  %v4248_v58 = vunpack.i.l.bf16 %v4247_v6 }
 0x780   : > { %3437 = vmatprep.subr.bf16.mxu0 %v3421_v42 }
 0x781   : > { %v3277_v18 = vsel %vm685_vm2, %v4243_v61, %v4233_v13  ;;  %v3279_v56 = vsel %vm685_vm2, %v4234_v12, %v4244_v5  ;;  %v3314_v29 = vsel %vm576_vm1, %v4248_v58, %v4238_v48  ;;  %v3316_v44 = vsel %vm576_vm1, %v4239_v31, %v4249_v47 }
 0x782   : > { %v3420_v22 = vpack.c.bf16 %v3314_v29, %v3277_v18  ;;  %v3422_v50 = vpack.c.bf16 %v3316_v44, %v3279_v56  ;;  %v4252_v16 = vpop.permute.xlu1 %4251  ;;  %v4257_v21 = vpop.permute.xlu0 %4256  ;;  %v3280_v1 = vsel %vm685_vm2, %v4244_v5, %v5652_v57  ;;  %v3317_v19 = vsel %vm576_vm1, %v4249_v47, %v5654_v53 }
 0x783   : > { %v4254_v62 = vunpack.i.h.bf16 %v4252_v16  ;;  %v4253_v14 = vunpack.i.l.bf16 %v4252_v16  ;;  %v4259_v8 = vunpack.i.h.bf16 %v4257_v21  ;;  %v4258_v41 = vunpack.i.l.bf16 %v4257_v21 }
 0x784   : > { %3438 = vmatpush1.bf16.msra.mxu0 %v3420_v22  ;;  %v3423_v63 = vpack.c.bf16 %v3317_v19, %v3280_v1 }
 0x785   : > { %v3352_v17 = vsel %vm467_vm0, %v4253_v14, %v4254_v62  ;;  %v3351_v35 = vsel %vm467_vm0, %v4258_v41, %v4253_v14  ;;  %v3353_v30 = vsel %vm467_vm0, %v4254_v62, %v4259_v8 }
 0x786   : > { %v3681_v51 = vpack.c.bf16 %v5842_v40, %v3352_v17  ;;  %v3684_v57 = vpack.c.bf16 %v5842_v40, %v3351_v35  ;;  %3478 = vmatprep.subr.bf16.mxu1 %v3423_v63  ;;  %v3350_v27 = vpop.permute.xlu1 %3349  ;;  %v3690_v52 = vpack.c.bf16 %v5842_v40, %v3353_v30 }
 0x787   : > { %3479 = vmatpush1.bf16.msra.mxu1 %v3422_v50  ;;  %v3354_v53 = vsel %vm467_vm0, %v4259_v8, %v3350_v27 }
 0x788   : > { %v3687_v4 = vpack.c.bf16 %v5842_v40, %v3354_v53  ;;  %3682 = vmatprep.subr.msk.bf16.mxu0 %vm5142_vm12, %v3681_v51 }
 0x789   : > { %3685 = vmatpush1.bf16.msk.msra.mxu0 %vm5142_vm12, %v3684_v57 }
 0x78a   : > { %3688 = vmatprep.subr.msk.bf16.mxu1 %vm5142_vm12, %v3687_v4 }
 0x78b   : > { %3691 = vmatpush1.bf16.msk.msra.mxu1 %vm5142_vm12, %v3690_v52 }
 0x78c   : > { %3639 = vmatmul.mubr.msk.bf16.vlgmr.msra.gmra.mrb[16].mxu0 %vm1903_vm13, %v3367_v9 }
 0x78e   : > { %3640 = vmatmul.mubr.msk.bf16.vlgmr.msra.gmra.mrb[16].mxu1 %vm1903_vm13, %v3367_v9 }
 0x85f   : > { %v3465_v40 = vpop.f32.mrb[16].mxu0 }
 0x860   : > { %v3513_v59 = vadd.f32 %v5875_v39, %v3465_v40  ;;  %v3467_v25 = vpop.f32.mrb[17].mxu0 }
 0x861   : > { %v3514_v28 = vadd.f32 %v5876_v45, %v3467_v25  ;;  %v3469_v26 = vpop.f32.mrb[18].mxu0  ;;  %v3506_v10 = vpop.f32.mrb[16].mxu1 }
 0x862   : > { %3517 = vst [vmem:[%s389_s18] sm:$0xff] %v3513_v59  ;;  %v3515_v54 = vadd.f32 %v5877_v34, %v3506_v10  ;;  %v3470_v32 = vpop.f32.mrb[19].mxu0  ;;  %v3508_v15 = vpop.f32.mrb[17].mxu1 }
 0x863   : > { %3518 = vst [vmem:[%s389_s18 + $0x8] sm:$0xff] %v3514_v28  ;;  %v3516_v11 = vadd.f32 %v5878_v0, %v3508_v15  ;;  %v3510_v33 = vpop.f32.mrb[18].mxu1 }
 0x864   : > { %3519 = vst [vmem:[%s389_s18 + $0x10] sm:$0xff] %v3515_v54  ;;  %v3511_v23 = vpop.f32.mrb[19].mxu1 }
 0x865   : > { %3520 = vst [vmem:[%s389_s18 + $0x18] sm:$0xff] %v3516_v11 }
 0x866 PF: > { %p16_p10 = scmp.ge.s32.totalorder %s4377_s13, 4   ;;  %s5879_s30 = smov %s4292_s10 }
 0x867   : > { %s5880_s10 = smov %s4386_s16  ;;  %s5881_s11 = smov %s4377_s13 }
 0x868   :  { %18 = sbr.rel (!%p16_p10) target bundleno = 2 (0x2), region = 125 }

// kernel: fwd.1
= control target key start
LH: loop header
LB: loop body
LE: loop exit
PB: predicated region body
PF: predicated region fallthrough
CT: control target
= control target key end

     0   :  { %s4360_s30 = smov 0   ;;  %s4362_s10 = smov 0   ;;  %s5731_s0 = inlined_call_operand.vmem [shape: f32[16,1024], index: 0, kind: input, shape index: {}]   ;;  %s5732_s1 = inlined_call_operand.vmem [shape: f32[4,8,64], index: 1, kind: input, shape index: {}]   ;;  %s5733_s2 = inlined_call_operand.vmem [shape: bf16[8,152], index: 2, kind: input, shape index: {}]   ;;  %s5734_s3 = inlined_call_operand.vmem [shape: bf16[8,80], index: 3, kind: input, shape index: {}]   ;;  %s5735_s4 = inlined_call_operand.vmem [shape: bf16[8,80], index: 4, kind: input, shape index: {}]   ;;  %s5736_s5 = inlined_call_operand.vmem [shape: bf16[8,80], index: 5, kind: input, shape index: {}]   ;;  %s5737_s6 = inlined_call_operand.vmem [shape: bf16[8,80], index: 6, kind: input, shape index: {}]   ;;  %s5738_s7 = inlined_call_operand.vmem [shape: bf16[64,256], index: 7, kind: input, shape index: {}]   ;;  %s5739_s8 = inlined_call_operand.vmem [shape: f32[9,512], index: 8, kind: input, shape index: {}]   ;;  %s5740_s9 = inlined_call_operand.vmem [shape: f32[8,1024], index: 9, kind: output, shape index: {}]  }
   0x1   :  { %s4364_s11 = smov 0  }
   0x2 LB: > { %s5782_s12 = sadd.s32 4294967295, %s4296_s11   ;;  %s4377_s13 = sadd.s32 1, %s4296_s11   ;;  %s4296_s11 = sphi %s4364_s11, %s5881_s11   ;;  %s4292_s10 = sphi %s4362_s10, %s5880_s10   ;;  %s4288_s30 = sphi %s4360_s30, %s5879_s30  }
   0x3   : > { %s23_s14 = ssub.s32 %s4296_s11, %s4377_s13  ;;  %s26_s15 = sadd.s32 1, %s4292_s10 }
   0x4   : > { %p24_p0 = scmp.eq.s32.totalorder %s23_s14, 0  ;;  %p33_p1 = scmp.ne.s32.totalorder %s4292_s10, %s4288_s30 }
   0x5   : > { %p34_p2 = scmp.eq.s32.totalorder %s4296_s11, 0  ;;  %p3598_p4 = scmp.ge.s32.totalorder %s4296_s11, 2 }
   0x6   : > { %s4386_s16 = scalar_select %p24_p0, %s4292_s10, %s26_s15  }
   0x7   : > { %p35_p3 = por %p34_p2, %p33_p1  ;;  %279 = sbr.rel (%p3598_p4) target bundleno = 22 (0x16), region = 44 }
   0xe   : > { %282 = sbr.rel (!%p35_p3) target bundleno = 22 (0x16), region = 48  ;;  %s284_s17 = sand.u32 (%p35_p3), 1, %s4292_s10  }
   0xf   : > { %s3643_s18 = sshll.u32 (%p35_p3), %s4296_s11, 5  ;;  %s3599_s19 = sshll.u32 (%p35_p3), %s284_s17, 6 }
  0x10   : > { %s289_s22 = scalar_lea.vmem (%p35_p3), %s5731_s0, %s3643_s18  ;;  %s286_s23 = scalar_lea.vmem (%p35_p3), [#allocation4], %s3599_s19 }
  0x11   : > { %v302_v0 = vld [vmem:[%s289_s22] sm:$0xff] (%p35_p3)  ;;  %v304_v1 = vld [vmem:[%s289_s22 + $0x8] sm:$0xff] (%p35_p3)  ;;  %v306_v2 = vld [vmem:[%s289_s22 + $0x10] sm:$0xff] (%p35_p3) }
  0x12   : > { %303 = vst [vmem:[%s286_s23] sm:$0xff] (%p35_p3), %v302_v0  ;;  %305 = vst [vmem:[%s286_s23 + $0x8] sm:$0xff] (%p35_p3), %v304_v1  ;;  %v308_v3 = vld [vmem:[%s289_s22 + $0x18] sm:$0xff] (%p35_p3)  ;;  %v310_v4 = vld [vmem:[%s289_s22 + $0x40] sm:$0xff] (%p35_p3) }
  0x13   : > { %307 = vst [vmem:[%s286_s23 + $0x10] sm:$0xff] (%p35_p3), %v306_v2  ;;  %v312_v5 = vld [vmem:[%s289_s22 + $0x48] sm:$0xff] (%p35_p3)  ;;  %309 = vst [vmem:[%s286_s23 + $0x18] sm:$0xff] (%p35_p3), %v308_v3  ;;  %v314_v6 = vld [vmem:[%s289_s22 + $0x50] sm:$0xff] (%p35_p3) }
  0x14   : > { %311 = vst [vmem:[%s286_s23 + $0x20] sm:$0xff] (%p35_p3), %v310_v4  ;;  %313 = vst [vmem:[%s286_s23 + $0x28] sm:$0xff] (%p35_p3), %v312_v5  ;;  %v316_v7 = vld [vmem:[%s289_s22 + $0x58] sm:$0xff] (%p35_p3) }
  0x15   : > { %315 = vst [vmem:[%s286_s23 + $0x30] sm:$0xff] %v314_v6  ;;  %317 = vst [vmem:[%s286_s23 + $0x38] sm:$0xff] %v316_v7 }
  0x16 PF: > { %p3602_p5 = scmp.ge.s32.totalorder %s4296_s11, 1  ;;  %p331_p6 = scmp.lt.s32.totalorder %s4296_s11, 3 }
  0x18   : > { %p332_p7 = pnand %p3602_p5, %p331_p6 }
  0x1a   : > { %335 = sbr.rel (%p332_p7) target bundleno = 2150 (0x866), region = 75 }
  0x21   : > { %v411_v8 = vlaneseq  ;;  %v396_v10 = vld [vmem:[%s5739_s8] ss:$8 sm:$0xf]  ;;  %s5783_s26 = smov 111   ;;  %s4299_s29 = smov 112   ;;  %vm467_vm0 = vcmask 908288  }
  0x22   : > { %v3608_v19 = vld [vmem:[%s5739_s8 + $0x1] ss:$8 sm:$0xf]  ;;  %v3609_v24 = vld [vmem:[%s5739_s8 + $0x2] ss:$8 sm:$0xf] }
  0x23   : > { %v4396_v9 = vshrl.u32 %v411_v8, 7  ;;  %s4300_s17 = smov 113   ;;  %v3610_v29 = vld [vmem:[%s5739_s8 + $0x3] ss:$8 sm:$0xf]  ;;  %s4301_s20 = smov 127  }
  0x24   : > { %v3611_v34 = vld [vmem:[%s5739_s8 + $0x5] ss:$8 sm:$0xf]  ;;  %s4302_s23 = smov 1   ;;  %s4303_s27 = smov 15   ;;  %vm576_vm1 = vcmask 916480  }
  0x25   : > { %v4402_v11 = vsub.s32 2, %v4396_v9  ;;  %v4405_v12 = vsub.s32 0, %v4396_v9  ;;  %v4408_v13 = vsub.s32 3, %v4396_v9  ;;  %v4411_v14 = vsub.s32 1, %v4396_v9  ;;  %s4304_s15 = smov 16   ;;  %s4305_s21 = smov 17  }
  0x26   : > { %v3612_v39 = vld [vmem:[%s5739_s8 + $0x6] ss:$8 sm:$0xf]  ;;  %v3613_v44 = vld [vmem:[%s5739_s8 + $0x7] ss:$8 sm:$0xf] }
  0x27   : > { %v454_v15 = vrot.slane %v396_v10, %v4402_v11  ;;  %v446_v16 = vrot.slane %v396_v10, %v4405_v12  ;;  %v458_v17 = vrot.slane %v396_v10, %v4408_v13  ;;  %v450_v18 = vrot.slane %v396_v10, %v4411_v14  ;;  %v3614_v49 = vld [vmem:[%s5739_s8 + $0x20] ss:$8 sm:$0xf]  ;;  %s338_s22 = sand.u32 1, %s4288_s30   ;;  %s3604_s19 = sshll.u32 %s5782_s12, 1 }
  0x28   : > { %v559_v20 = vrot.slane %v3608_v19, %v4411_v14  ;;  %v555_v21 = vrot.slane %v3608_v19, %v4405_v12  ;;  %v567_v22 = vrot.slane %v3608_v19, %v4408_v13  ;;  %v563_v23 = vrot.slane %v3608_v19, %v4402_v11  ;;  %s3603_s24 = sshll.u32 %s338_s22, 6  ;;  %p380_p8 = scmp.lt.s32.totalorder %s3604_s19, 3 }
  0x29   : > { %463 = vrot.lane.b32.xlu1 %v454_v15, %s5783_s26  ;;  %459 = vrot.lane.b32.xlu0 %v446_v16, %s5783_s26  ;;  %v668_v25 = vrot.slane %v3609_v24, %v4411_v14  ;;  %v664_v26 = vrot.slane %v3609_v24, %v4405_v12  ;;  %v676_v27 = vrot.slane %v3609_v24, %v4408_v13  ;;  %s4541_s30 = scalar_lea.vmem [#allocation4], %s3603_s24  ;;  %vm685_vm2 = vcmask 924672   ;;  %s5859_s12 = smov 111  }
  0x2a   : > { %v672_v28 = vrot.slane %v3609_v24, %v4402_v11  ;;  %v777_v30 = vrot.slane %v3610_v29, %v4411_v14  ;;  %v773_v31 = vrot.slane %v3610_v29, %v4405_v12  ;;  %v785_v32 = vrot.slane %v3610_v29, %v4408_v13  ;;  %v4544_v15 = vld [vmem:[%s4541_s30] sm:$0xff]  ;;  %s5883_s19 = smov (!%p380_p8, %s3604_s19), 3 }
  0x2b   : > { %v781_v33 = vrot.slane %v3610_v29, %v4402_v11  ;;  %v894_v35 = vrot.slane %v3611_v34, %v4411_v14  ;;  %v890_v36 = vrot.slane %v3611_v34, %v4405_v12  ;;  %v902_v37 = vrot.slane %v3611_v34, %v4408_v13  ;;  %v4547_v16 = vld [vmem:[%s4541_s30 + $0x20] sm:$0xff]  ;;  %s3605_s14 = sshll.u32 %s5883_s19, 3 }
  0x2c   : > { %v898_v38 = vrot.slane %v3611_v34, %v4402_v11  ;;  %v1001_v40 = vrot.slane %v3612_v39, %v4411_v14  ;;  %v997_v41 = vrot.slane %v3612_v39, %v4405_v12  ;;  %v1005_v42 = vrot.slane %v3612_v39, %v4402_v11  ;;  %s383_s25 = scalar_lea.vmem %s5732_s1, %s3605_s14 }
  0x2d   : > { %465 = vrot.lane.b32.xlu1 %v458_v17, %s5783_s26  ;;  %461 = vrot.lane.b32.xlu0 %v450_v18, %s5783_s26  ;;  %v1009_v43 = vrot.slane %v3612_v39, %v4408_v13  ;;  %v1104_v45 = vrot.slane %v3613_v44, %v4405_v12  ;;  %v1108_v46 = vrot.slane %v3613_v44, %v4411_v14  ;;  %v4550_v17 = vld [vmem:[%s4541_s30 + $0x8] sm:$0xff]  ;;  %vm794_vm3 = vcmask 1039360  }
  0x2e   : > { %v1112_v47 = vrot.slane %v3613_v44, %v4402_v11  ;;  %v1116_v48 = vrot.slane %v3613_v44, %v4408_v13  ;;  %v1211_v50 = vrot.slane %v3614_v49, %v4405_v12  ;;  %v1215_v51 = vrot.slane %v3614_v49, %v4411_v14 }
  0x2f   : > { %v1219_v52 = vrot.slane %v3614_v49, %v4402_v11  ;;  %v1223_v53 = vrot.slane %v3614_v49, %v4408_v13  ;;  %vm843_vm4 = vcmask 7168   ;;  %vm734_vm5 = vcmask 121856  }
  0x30   : > { %vm625_vm6 = vcmask 130048   ;;  %vm516_vm7 = vcmask 138240   ;;  %vm1431_vm8 = vcmask 195584   ;;  %vm413_vm9 = vcmp.eq.s32.totalorder %v4396_v9, 0 }
  0x31   : > { %570 = vrot.lane.b32.xlu1 %v559_v20, %s4299_s29  ;;  %568 = vrot.lane.b32.xlu0 %v555_v21, %s4299_s29  ;;  %vm1435_vm10 = vcmask 1043456   ;;  %vm4308_vm11 = vmmov 1   ;;  %vm1903_vm13 = vcmask 654336   ;;  %vm2501_vm14 = vcmask 523264  }
  0x32   : > { %vm5142_vm12 = vmpackc.low %vm413_vm9, %vm4308_vm11 }
  0x35   : > { %574 = vrot.lane.b32.xlu1 %v567_v22, %s4299_s29  ;;  %572 = vrot.lane.b32.xlu0 %v563_v23, %s4299_s29 }
  0x39   : > { %679 = vrot.lane.b32.xlu1 %v668_v25, %s4300_s17  ;;  %677 = vrot.lane.b32.xlu0 %v664_v26, %s4300_s17  ;;  %v4569_v26 = vld [vmem:[%s4541_s30 + $0x30] sm:$0xff] }
  0x3d   : > { %683 = vrot.lane.b32.xlu1 %v676_v27, %s4300_s17  ;;  %681 = vrot.lane.b32.xlu0 %v672_v28, %s4300_s17  ;;  %v4572_v27 = vld [vmem:[%s4541_s30 + $0x38] sm:$0xff] }
  0x41   : > { %788 = vrot.lane.b32.xlu1 %v777_v30, %s4301_s20  ;;  %786 = vrot.lane.b32.xlu0 %v773_v31, %s4301_s20 }
  0x45   : > { %792 = vrot.lane.b32.xlu1 %v785_v32, %s4301_s20  ;;  %790 = vrot.lane.b32.xlu0 %v781_v33, %s4301_s20  ;;  %v4585_v33 = vld [vmem:[%s4541_s30 + $0x28] sm:$0xff] }
  0x49   : > { %905 = vrot.lane.b32.xlu1 %v894_v35, %s4302_s23  ;;  %903 = vrot.lane.b32.xlu0 %v890_v36, %s4302_s23 }
  0x4d   : > { %909 = vrot.lane.b32.xlu1 %v902_v37, %s4302_s23  ;;  %907 = vrot.lane.b32.xlu0 %v898_v38, %s4302_s23 }
  0x51   : > { %1012 = vrot.lane.b32.xlu1 %v1001_v40, %s4303_s27  ;;  %1010 = vrot.lane.b32.xlu0 %v997_v41, %s4303_s27 }
  0x55   : > { %1014 = vrot.lane.b32.xlu0 %v1005_v42, %s4303_s27  ;;  %1016 = vrot.lane.b32.xlu1 %v1009_v43, %s4303_s27 }
  0x59   : > { %1117 = vrot.lane.b32.xlu0 %v1104_v45, %s4304_s15  ;;  %1119 = vrot.lane.b32.xlu1 %v1108_v46, %s4304_s15  ;;  %v4608_v45 = vld [vmem:[%s4541_s30 + $0x10] sm:$0xff]  ;;  %v4611_v46 = vld [vmem:[%s4541_s30 + $0x18] sm:$0xff] }
  0x5d   : > { %1121 = vrot.lane.b32.xlu0 %v1112_v47, %s4304_s15  ;;  %1123 = vrot.lane.b32.xlu1 %v1116_v48, %s4304_s15 }
  0x61   : > { %1224 = vrot.lane.b32.xlu0 %v1211_v50, %s4305_s21  ;;  %1226 = vrot.lane.b32.xlu1 %v1215_v51, %s4305_s21 }
  0x65   : > { %1228 = vrot.lane.b32.xlu0 %v1219_v52, %s4305_s21  ;;  %1230 = vrot.lane.b32.xlu1 %v1223_v53, %s4305_s21 }
  0x9b   : > { %v460_v54 = vpop.permute.xlu0 %459  ;;  %v464_v58 = vpop.permute.xlu1 %463 }
  0x9c   : > { %v4498_v55 = vmul.f32 0.0, %v460_v54 }
  0x9e   : > { %v3740_v56 = vpack.i.bf16 %v4498_v55, %v4498_v55 }
  0x9f   : > { %v462_v57 = vpop.permute.xlu0 %461  ;;  %v4505_v61 = vpop.permute.xlu1 %465 }
  0xa0   : > { %3741 = vrot.lane.b32.xlu0 %v3740_v56, %s4305_s21  ;;  %v4534_v12 = vsel %vm467_vm0, %v460_v54, %v462_v57  ;;  %v4537_v13 = vsel %vm467_vm0, %v462_v57, %v464_v58  ;;  %v4558_v20 = vsel %vm467_vm0, %v464_v58, %v4505_v61  ;;  %v485_v29 = vmul.f32 %v4505_v61, %v4572_v27 }
  0xa1   : > { %v477_v23 = vmul.f32 %v4534_v12, %v4544_v15  ;;  %v478_v24 = vmul.f32 %v4537_v13, %v4550_v17  ;;  %v484_v28 = vmul.f32 %v4558_v20, %v4569_v26  ;;  %v482_v40 = vmul.f32 %v4534_v12, %v4547_v16 }
  0xa2   : > { %v483_v41 = vmul.f32 %v4537_v13, %v4585_v33  ;;  %v479_v48 = vmul.f32 %v4558_v20, %v4608_v45  ;;  %v480_v49 = vmul.f32 %v4505_v61, %v4611_v46 }
  0xa3   : > { %v569_v59 = vpop.permute.xlu0 %568  ;;  %v571_v1 = vpop.permute.xlu1 %570  ;;  %v3770_v30 = vpack.i.bf16 %v478_v24, %v477_v23  ;;  %v3785_v37 = vpack.i.bf16 %v485_v29, %v484_v28 }
  0xa4   : > { %v4503_v60 = vmul.f32 0.0, %v569_v59  ;;  %v4593_v38 = vsel %vm576_vm1, %v569_v59, %v571_v1  ;;  %v3775_v51 = vpack.i.bf16 %v483_v41, %v482_v40  ;;  %v3780_v59 = vpack.i.bf16 %v480_v49, %v479_v48 }
  0xa5   : > { %v591_v47 = vmul.f32 %v4593_v38, %v4547_v16 }
  0xa6   : > { %v3745_v62 = vpack.i.bf16 %v4503_v60, %v4503_v60 }
  0xa7   : > { %v573_v63 = vpop.permute.xlu0 %572  ;;  %v4520_v5 = vpop.permute.xlu1 %574 }
  0xa8   : > { %3746 = vrot.lane.b32.xlu1 %v3745_v62, %s4304_s15  ;;  %v4580_v31 = vsel %vm576_vm1, %v571_v1, %v573_v63  ;;  %v4603_v43 = vsel %vm576_vm1, %v573_v63, %v4520_v5  ;;  %v589_v54 = vmul.f32 %v4520_v5, %v4611_v46 }
  0xa9   : > { %v592_v42 = vmul.f32 %v4580_v31, %v4585_v33  ;;  %v588_v53 = vmul.f32 %v4603_v43, %v4608_v45  ;;  %v587_v63 = vmul.f32 %v4580_v31, %v4550_v17 }
  0xab   : > { %v4510_v0 = vpop.permute.xlu0 %677  ;;  %v680_v11 = vpop.permute.xlu1 %679  ;;  %v3795_v52 = vpack.i.bf16 %v592_v42, %v591_v47  ;;  %v3800_v62 = vpack.i.bf16 %v589_v54, %v588_v53 }
  0xac   : > { %v4513_v2 = vmul.f32 0.0, %v4510_v0  ;;  %v4637_v58 = vsel %vm685_vm2, %v4510_v0, %v680_v11  ;;  %v586_v0 = vmul.f32 %v4593_v38, %v4544_v15 }
  0xae   : > { %v3750_v3 = vpack.i.bf16 %v4513_v2, %v4513_v2 }
  0xaf   : > { %v4517_v4 = vpop.permute.xlu0 %681  ;;  %v4560_v21 = vpop.permute.xlu1 %683 }
  0xb0   : > { %3751 = vrot.lane.b32.xlu0 %v3750_v3, %s4303_s27  ;;  %v4629_v56 = vsel %vm685_vm2, %v680_v11, %v4517_v4  ;;  %v4646_v3 = vsel %vm685_vm2, %v4517_v4, %v4560_v21  ;;  %v695_v11 = vmul.f32 %v4637_v58, %v4544_v15  ;;  %v594_v4 = vmul.f32 %v4520_v5, %v4572_v27 }
  0xb1   : > { %v696_v1 = vmul.f32 %v4629_v56, %v4550_v17  ;;  %v702_v24 = vmul.f32 %v4646_v3, %v4569_v26  ;;  %v703_v28 = vmul.f32 %v4560_v21, %v4572_v27  ;;  %v701_v42 = vmul.f32 %v4629_v56, %v4585_v33 }
  0xb3   : > { %v4523_v6 = vpop.permute.xlu0 %786  ;;  %v789_v34 = vpop.permute.xlu1 %788  ;;  %v3810_v23 = vpack.i.bf16 %v696_v1, %v695_v11  ;;  %v3825_v41 = vpack.i.bf16 %v703_v28, %v702_v24 }
  0xb4   : > { %v4526_v7 = vmul.f32 0.0, %v4523_v6 }
  0xb6   : > { %v3755_v8 = vpack.i.bf16 %v4526_v7, %v4526_v7 }
  0xb7   : > { %v4530_v10 = vpop.permute.xlu0 %790  ;;  %v4621_v50 = vpop.permute.xlu1 %792 }
  0xb8   : > { %3756 = vrot.lane.b32.xlu1 %v3755_v8, %s4302_s23  ;;  %v4666_v29 = vsel %vm794_vm3, %v789_v34, %v4530_v10  ;;  %v4693_v49 = vsel %vm794_vm3, %v4530_v10, %v4621_v50 }
  0xb9   : > { %v810_v47 = vmul.f32 %v4666_v29, %v4585_v33  ;;  %v806_v54 = vmul.f32 %v4693_v49, %v4608_v45 }
  0xbb   : > { %v4539_v14 = vpop.permute.xlu0 %903 }
  0xbc   : > { %v919_v18 = vmul.f32 %v4539_v14, %v4544_v15  ;;  %v924_v19 = vmul.f32 %v4539_v14, %v4547_v16 }
  0xbe   : > { %v3760_v22 = vpack.i.bf16 %v924_v19, %v919_v18  ;;  %v906_v18 = vpop.permute.xlu1 %905  ;;  %v593_v19 = vmul.f32 %v4603_v43, %v4569_v26 }
  0xbf   : > { %v4566_v25 = vpop.permute.xlu0 %907  ;;  %v4717_v1 = vsel %vm843_vm4, %v4539_v14, %v906_v18 }
  0xc0   : > { %3761 = vrot.lane.b32.xlu0 %v3760_v22, %s4301_s20  ;;  %v3790_v22 = vpack.i.bf16 %v587_v63, %v586_v0  ;;  %v920_v24 = vmul.f32 %v4717_v1, %v4550_v17 }
  0xc2   : > { %v910_v40 = vpop.permute.xlu1 %909 }
  0xc3   : > { %v4582_v32 = vpop.permute.xlu0 %1010 }
  0xc4   : > { %5790 = vst [vmem:[#allocation5_spill] sm:$0xff] %v4582_v32  ;;  %3771 = vrot.lane.b32.xlu0 %v3770_v30, %s4305_s21  ;;  %v1026_v35 = vmul.f32 %v4582_v32, %v4544_v15  ;;  %v1031_v36 = vmul.f32 %v4582_v32, %v4547_v16 }
  0xc6   : > { %v3765_v39 = vpack.i.bf16 %v1031_v36, %v1026_v35  ;;  %v1013_v63 = vpop.permute.xlu1 %1012 }
  0xc7   : > { %v4605_v44 = vpop.permute.xlu0 %1014 }
  0xc8   : > { %3766 = vrot.lane.b32.xlu1 %v3765_v39, %s4300_s17  ;;  %3786 = vrot.lane.b32.xlu0 %v3785_v37, %s4305_s21  ;;  %v4682_v37 = vsel %vm794_vm3, %v4523_v6, %v789_v34  ;;  %v3805_v39 = vpack.i.bf16 %v594_v4, %v593_v19  ;;  %v700_v6 = vmul.f32 %v4637_v58, %v4547_v16 }
  0xc9   : > { %v809_v34 = vmul.f32 %v4682_v37, %v4547_v16  ;;  %v805_v19 = vmul.f32 %v4666_v29, %v4550_v17 }
  0xca   : > { %v3815_v53 = vpack.i.bf16 %v701_v42, %v700_v6  ;;  %v1017_v28 = vpop.permute.xlu1 %1016  ;;  %v4741_v42 = vmul.f32 0.0, %v910_v40 }
  0xcb   : > { %v4631_v57 = vpop.permute.xlu0 %1117  ;;  %v3835_v10 = vpack.i.bf16 %v810_v47, %v809_v34 }
  0xcc   : > { %5791 = vst [vmem:[#allocation6_spill] sm:$0xff] %v4631_v57  ;;  %3776 = vrot.lane.b32.xlu1 %v3775_v51, %s4305_s21  ;;  %3796 = vrot.lane.b32.xlu0 %v3795_v52, %s4304_s15  ;;  %v697_v51 = vmul.f32 %v4646_v3, %v4608_v45  ;;  %v698_v52 = vmul.f32 %v4560_v21, %v4611_v46  ;;  %5793 = vst [vmem:[#allocation8_spill] sm:$0xff] %v4741_v42 }
  0xce   : > { %v3820_v0 = vpack.i.bf16 %v698_v52, %v697_v51  ;;  %v4747_v51 = vsel %vm734_vm5, %v1013_v63, %v4605_v44  ;;  %v4753_v52 = vsel %vm734_vm5, %v4605_v44, %v1017_v28  ;;  %v4766_v44 = vmul.f32 0.0, %v1017_v28 }
  0xcf   : > { %v4648_v8 = vpop.permute.xlu0 %1121  ;;  %5794 = vst [vmem:[#allocation9_spill] sm:$0xff] %v4747_v51  ;;  %5795 = vst [vmem:[#allocation10_spill] sm:$0xff] %v4753_v52 }
  0xd0   : > { %3781 = vrot.lane.b32.xlu1 %v3780_v59, %s4305_s21  ;;  %3801 = vrot.lane.b32.xlu0 %v3800_v62, %s4304_s15  ;;  %v807_v59 = vmul.f32 %v4621_v50, %v4611_v46  ;;  %v4711_v62 = vsel %vm843_vm4, %v906_v18, %v4566_v25  ;;  %v804_v18 = vmul.f32 %v4682_v37, %v4544_v15 }
  0xd1   : > { %v921_v4 = vmul.f32 %v4711_v62, %v4608_v45  ;;  %5797 = vst [vmem:[#allocation12_spill] sm:$0xff] %v4766_v44 }
  0xd2   : > { %v3840_v11 = vpack.i.bf16 %v807_v59, %v806_v54  ;;  %v3830_v47 = vpack.i.bf16 %v805_v19, %v804_v18  ;;  %v926_v54 = vmul.f32 %v4711_v62, %v4569_v26  ;;  %v1033_v59 = vmul.f32 %v4747_v51, %v4569_v26 }
  0xd3   : > { %v4668_v30 = vpop.permute.xlu0 %1224  ;;  %v3850_v6 = vpack.i.bf16 %v921_v4, %v920_v24  ;;  %v1029_v19 = vmul.f32 %v4753_v52, %v4611_v46 }
  0xd4   : > { %5792 = vst [vmem:[#allocation7_spill] sm:$0xff] %v4668_v30  ;;  %3791 = vrot.lane.b32.xlu1 %v3790_v22, %s4304_s15  ;;  %3811 = vrot.lane.b32.xlu0 %v3810_v23, %s4303_s27  ;;  %v4674_v35 = vmul.f32 %v4668_v30, %v4544_v15  ;;  %v4678_v36 = vmul.f32 %v4668_v30, %v4547_v16 }
  0xd5   : > { %v4725_v22 = vsel %vm843_vm4, %v4566_v25, %v910_v40  ;;  %v811_v25 = vmul.f32 %v4693_v49, %v4569_v26  ;;  %v4757_v40 = vsel %vm734_vm5, %v4582_v32, %v1013_v63  ;;  %v925_v63 = vmul.f32 %v4717_v1, %v4585_v33 }
  0xd6   : > { %v3925_v48 = vpack.i.bf16 %v4678_v36, %v4674_v35  ;;  %v927_v34 = vmul.f32 %v4725_v22, %v4572_v27  ;;  %5796 = vst [vmem:[#allocation11_spill] sm:$0xff] %v4757_v40 }
  0xd7   : > { %v3855_v24 = vpack.i.bf16 %v926_v54, %v925_v63  ;;  %v1027_v54 = vmul.f32 %v4757_v40, %v4550_v17  ;;  %v1138_v63 = vmul.f32 %v4631_v57, %v4547_v16 }
  0xd8   : > { %3806 = vrot.lane.b32.xlu1 %v3805_v39, %s4304_s15  ;;  %3826 = vrot.lane.b32.xlu0 %v3825_v41, %s4303_s27  ;;  %v812_v41 = vmul.f32 %v4621_v50, %v4572_v27 }
  0xdc   : > { %3816 = vrot.lane.b32.xlu1 %v3815_v53, %s4303_s27  ;;  %3836 = vrot.lane.b32.xlu0 %v3835_v10, %s4302_s23  ;;  %v3845_v53 = vpack.i.bf16 %v812_v41, %v811_v25  ;;  %v3865_v10 = vpack.i.bf16 %v4741_v42, %v927_v34  ;;  %v922_v25 = vmul.f32 %v4725_v22, %v4611_v46 }
  0xe0   : > { %3821 = vrot.lane.b32.xlu1 %v3820_v0, %s4303_s27  ;;  %3841 = vrot.lane.b32.xlu0 %v3840_v11, %s4302_s23  ;;  %v1120_v0 = vpop.permute.xlu1 %1119  ;;  %v1032_v11 = vmul.f32 %v4757_v40, %v4585_v33 }
  0xe1   : > { %v4776_v4 = vsel %vm625_vm6, %v4631_v57, %v1120_v0  ;;  %v4780_v18 = vsel %vm625_vm6, %v1120_v0, %v4648_v8  ;;  %v1133_v0 = vmul.f32 %v4631_v57, %v4544_v15 }
  0xe2   : > { %5798 = vst [vmem:[#allocation13_spill] sm:$0xff] %v4776_v4  ;;  %5799 = vst [vmem:[#allocation14_spill] sm:$0xff] %v4780_v18  ;;  %v3875_v28 = vpack.i.bf16 %v1033_v59, %v1032_v11  ;;  %v1135_v34 = vmul.f32 %v4780_v18, %v4608_v45 }
  0xe4   : > { %3831 = vrot.lane.b32.xlu1 %v3830_v47, %s4302_s23  ;;  %3851 = vrot.lane.b32.xlu0 %v3850_v6, %s4301_s20  ;;  %v1124_v41 = vpop.permute.xlu1 %1123  ;;  %v3880_v47 = vpack.i.bf16 %v4766_v44, %v1029_v19  ;;  %v1134_v6 = vmul.f32 %v4776_v4, %v4550_v17 }
  0xe5   : > { %v4804_v19 = vsel %vm625_vm6, %v4648_v8, %v1124_v41 }
  0xe6   : > { %v3890_v59 = vpack.i.bf16 %v1135_v34, %v1134_v6  ;;  %5800 = vst [vmem:[#allocation15_spill] sm:$0xff] %v4804_v19  ;;  %v3895_v6 = vpack.i.bf16 %v1138_v63, %v1133_v0  ;;  %v1141_v34 = vmul.f32 %v4804_v19, %v4572_v27  ;;  %v1136_v39 = vmul.f32 %v4804_v19, %v4611_v46 }
  0xe8   : > { %3846 = vrot.lane.b32.xlu1 %v3845_v53, %s4302_s23  ;;  %3866 = vrot.lane.b32.xlu0 %v3865_v10, %s4301_s20  ;;  %v3860_v53 = vpack.i.bf16 %v4741_v42, %v922_v25  ;;  %v1028_v10 = vmul.f32 %v4747_v51, %v4608_v45  ;;  %v1227_v11 = vpop.permute.xlu1 %1226  ;;  %v1229_v25 = vpop.permute.xlu0 %1228 }
  0xe9   : > { %v4816_v8 = vsel %vm516_vm7, %v4668_v30, %v1227_v11 }
  0xea   : > { %5802 = vst [vmem:[#allocation17_spill] sm:$0xff] %v4816_v8  ;;  %v1246_v63 = vmul.f32 %v4816_v8, %v4585_v33 }
  0xec   : > { %3856 = vrot.lane.b32.xlu1 %v3855_v24, %s4301_s20  ;;  %3876 = vrot.lane.b32.xlu0 %v3875_v28, %s4300_s17  ;;  %v3870_v24 = vpack.i.bf16 %v1028_v10, %v1027_v54  ;;  %v1034_v28 = vmul.f32 %v4753_v52, %v4572_v27  ;;  %v1139_v54 = vmul.f32 %v4776_v4, %v4585_v33 }
  0xee   : > { %v3885_v10 = vpack.i.bf16 %v4766_v44, %v1034_v28 }
  0xf0   : > { %3861 = vrot.lane.b32.xlu1 %v3860_v53, %s4301_s20  ;;  %3881 = vrot.lane.b32.xlu0 %v3880_v47, %s4300_s17  ;;  %v4810_v47 = vmul.f32 0.0, %v1124_v41  ;;  %v4819_v53 = vsel %vm516_vm7, %v1227_v11, %v1229_v25  ;;  %v1140_v41 = vmul.f32 %v4780_v18, %v4569_v26 }
  0xf1   : > { %5803 = vst [vmem:[#allocation18_spill] sm:$0xff] %v4819_v53  ;;  %v1247_v11 = vmul.f32 %v4819_v53, %v4569_v26 }
  0xf2   : > { %5801 = vst [vmem:[#allocation16_spill] sm:$0xff] %v4810_v47  ;;  %v3910_v0 = vpack.i.bf16 %v4810_v47, %v1141_v34  ;;  %v3900_v28 = vpack.i.bf16 %v1140_v41, %v1139_v54  ;;  %v3905_v23 = vpack.i.bf16 %v4810_v47, %v1136_v39  ;;  %v1242_v54 = vmul.f32 %v4819_v53, %v4608_v45  ;;  %v4857_v39 = vld [vmem:[%s5733_s2] sm:$0xff] }
  0xf3   : > { %v3920_v34 = vpack.i.bf16 %v1247_v11, %v1246_v63 }
  0xf4   : > { %3871 = vrot.lane.b32.xlu1 %v3870_v24, %s4300_s17  ;;  %3891 = vrot.lane.b32.xlu0 %v3890_v59, %s4299_s29  ;;  %v1231_v59 = vpop.permute.xlu1 %1230 }
  0xf5   : > { %v4834_v24 = vsel %vm516_vm7, %v1229_v25, %v1231_v59  ;;  %v1241_v25 = vmul.f32 %v4816_v8, %v4550_v17 }
  0xf6   : > { %5804 = vst [vmem:[#allocation19_spill] sm:$0xff] %v4834_v24 }
  0xf8   : > { %3886 = vrot.lane.b32.xlu1 %v3885_v10, %s4300_s17  ;;  %3896 = vrot.lane.b32.xlu0 %v3895_v6, %s4299_s29  ;;  %v4840_v6 = vmul.f32 0.0, %v1231_v59  ;;  %v1243_v10 = vmul.f32 %v4834_v24, %v4611_v46  ;;  %v3915_v59 = vpack.i.bf16 %v1242_v54, %v1241_v25 }
  0xfa   : > { %5805 = vst [vmem:[#allocation20_spill] sm:$0xff] %v4840_v6  ;;  %v3930_v41 = vpack.i.bf16 %v4840_v6, %v1243_v10 }
  0xfc   : > { %3901 = vrot.lane.b32.xlu1 %v3900_v28, %s4299_s29  ;;  %3911 = vrot.lane.b32.xlu0 %v3910_v0, %s4299_s29  ;;  %v3617_v0 = vcombine.high %v4857_v39, %v4857_v39 }
  0xfe   : > { %3619 = vmatprep.mubr.msk.bf16.mxu0 %vm1431_vm8, %v3617_v0  ;;  %3621 = vmatprep.mubr.msk.bf16.mxu1 %vm1431_vm8, %v3617_v0 }
 0x100   : > { %3906 = vrot.lane.b32.xlu1 %v3905_v23, %s4299_s29  ;;  %3921 = vrot.lane.b32.xlu0 %v3920_v34, %s5783_s26  ;;  %v1248_v23 = vmul.f32 %v4834_v24, %v4572_v27 }
 0x102   : > { %v3935_v63 = vpack.i.bf16 %v4840_v6, %v1248_v23 }
 0x104   : > { %3916 = vrot.lane.b32.xlu1 %v3915_v59, %s5783_s26  ;;  %3931 = vrot.lane.b32.xlu0 %v3930_v41, %s5783_s26 }
 0x108   : > { %3926 = vrot.lane.b32.xlu1 %v3925_v48, %s5783_s26  ;;  %1713 = vrot.lane.b32.xlu0 %v4741_v42, %s4301_s20 }
 0x10c   : > { %3936 = vrot.lane.b32.xlu1 %v3935_v63, %s5783_s26  ;;  %1787 = vrot.lane.b32.xlu0 %v4810_v47, %s4299_s29 }
 0x110   : > { %1750 = vrot.lane.b32.xlu1 %v4766_v44, %s4300_s17 }
 0x112   : > { %v3742_v11 = vpop.permute.xlu0 %3741 }
 0x113   : > { %v3743_v59 = vunpack.i.l.bf16 %v3742_v11  ;;  %v3744_v63 = vunpack.i.h.bf16 %v3742_v11 }
 0x11a   : > { %v3747_v34 = vpop.permute.xlu1 %3746 }
 0x11b   : > { %v3749_v18 = vunpack.i.h.bf16 %v3747_v34 }
 0x122   : > { %v4875_v28 = vpop.permute.xlu0 %3751 }
 0x12a   : > { %v4879_v35 = vpop.permute.xlu1 %3756 }
 0x132   : > { %v4877_v10 = vpop.permute.xlu0 %3761 }
 0x136   : > { %v3772_v36 = vpop.permute.xlu0 %3771 }
 0x137   : > { %v3774_v54 = vunpack.i.h.bf16 %v3772_v36  ;;  %v3773_v41 = vunpack.i.l.bf16 %v3772_v36 }
 0x139   : > { %v518_v42 = vsel %vm516_vm7, %v3773_v41, %v3774_v54  ;;  %v517_v6 = vsel %vm516_vm7, %v3743_v59, %v3773_v41 }
 0x13a   : > { %v4881_v48 = vpop.permute.xlu1 %3766  ;;  %v3787_v25 = vpop.permute.xlu0 %3786 }
 0x13b   : > { %v3789_v30 = vunpack.i.h.bf16 %v3787_v25  ;;  %v3788_v8 = vunpack.i.l.bf16 %v3787_v25 }
 0x13d   : > { %v524_v41 = vsel %vm516_vm7, %v3788_v8, %v3789_v30 }
 0x13e   : > { %v3777_v0 = vpop.permute.xlu1 %3776  ;;  %v3797_v23 = vpop.permute.xlu0 %3796 }
 0x13f   : > { %v3779_v47 = vunpack.i.h.bf16 %v3777_v0  ;;  %v3778_v44 = vunpack.i.l.bf16 %v3777_v0  ;;  %v3799_v40 = vunpack.i.h.bf16 %v3797_v23  ;;  %v3798_v11 = vunpack.i.l.bf16 %v3797_v23 }
 0x141   : > { %v522_v24 = vsel %vm516_vm7, %v3778_v44, %v3779_v47  ;;  %v521_v53 = vsel %vm516_vm7, %v3744_v63, %v3778_v44  ;;  %v523_v59 = vsel %vm516_vm7, %v3779_v47, %v3788_v8 }
 0x142   : > { %v3782_v57 = vpop.permute.xlu1 %3781  ;;  %v3802_v32 = vpop.permute.xlu0 %3801  ;;  %v1386_v19 = vpack.c.bf16 %v522_v24, %v518_v42  ;;  %v1385_v36 = vpack.c.bf16 %v521_v53, %v517_v6  ;;  %v3748_v53 = vunpack.i.l.bf16 %v3747_v34  ;;  %v630_v6 = vsel %vm625_vm6, %v3749_v18, %v3798_v11 }
 0x143   : > { %v3784_v52 = vunpack.i.h.bf16 %v3782_v57  ;;  %v3783_v4 = vunpack.i.l.bf16 %v3782_v57  ;;  %v3803_v23 = vunpack.i.l.bf16 %v3802_v32 }
 0x144   : > { %1448 = vmatprep.subr.bf16.mxu0 %v1386_v19  ;;  %v631_v19 = vsel %vm625_vm6, %v3798_v11, %v3799_v40 }
 0x145   : > { %1449 = vmatpush1.bf16.msra.mxu0 %v1385_v36  ;;  %v520_v0 = vsel %vm516_vm7, %v3783_v4, %v3784_v52  ;;  %v519_v25 = vsel %vm516_vm7, %v3774_v54, %v3783_v4  ;;  %v3804_v52 = vunpack.i.h.bf16 %v3802_v32 }
 0x146   : > { %v3792_v44 = vpop.permute.xlu1 %3791  ;;  %v3812_v63 = vpop.permute.xlu0 %3811  ;;  %v1388_v51 = vpack.c.bf16 %v524_v41, %v520_v0  ;;  %v1387_v42 = vpack.c.bf16 %v523_v59, %v519_v25  ;;  %v3753_v59 = vunpack.i.l.bf16 %v4875_v28 }
 0x147   : > { %v3794_v24 = vunpack.i.h.bf16 %v3792_v44  ;;  %v3793_v57 = vunpack.i.l.bf16 %v3792_v44  ;;  %v3814_v41 = vunpack.i.h.bf16 %v3812_v63  ;;  %v3813_v25 = vunpack.i.l.bf16 %v3812_v63 }
 0x148   : > { %1489 = vmatprep.subr.bf16.mxu1 %v1388_v51  ;;  %v629_v51 = vsel %vm625_vm6, %v3803_v23, %v3804_v52 }
 0x149   : > { %1490 = vmatpush1.bf16.msra.mxu1 %v1387_v42  ;;  %v627_v30 = vsel %vm625_vm6, %v3793_v57, %v3794_v24  ;;  %v626_v4 = vsel %vm625_vm6, %v3748_v53, %v3793_v57  ;;  %v628_v32 = vsel %vm625_vm6, %v3794_v24, %v3803_v23  ;;  %v735_v52 = vsel %vm734_vm5, %v3753_v59, %v3813_v25 }
 0x14a   : > { %v3807_v47 = vpop.permute.xlu1 %3806  ;;  %v3827_v8 = vpop.permute.xlu0 %3826  ;;  %v1390_v54 = vpack.c.bf16 %v631_v19, %v627_v30  ;;  %v1389_v36 = vpack.c.bf16 %v630_v6, %v626_v4  ;;  %v3754_v19 = vunpack.i.h.bf16 %v4875_v28  ;;  %v736_v30 = vsel %vm734_vm5, %v3813_v25, %v3814_v41 }
 0x14b   : > { %v3809_v0 = vunpack.i.h.bf16 %v3807_v47  ;;  %v3808_v34 = vunpack.i.l.bf16 %v3807_v47  ;;  %v3829_v4 = vunpack.i.h.bf16 %v3827_v8  ;;  %v3828_v47 = vunpack.i.l.bf16 %v3827_v8 }
 0x14c   : > { %1450 = vmatprep.subr.bf16.mxu0 %v1390_v54  ;;  %v3759_v59 = vunpack.i.h.bf16 %v4879_v35 }
 0x14d   : > { %1451 = vmatpush1.bf16.msra.mxu0 %v1389_v36  ;;  %v633_v18 = vsel %vm625_vm6, %v3808_v34, %v3809_v0  ;;  %v632_v11 = vsel %vm625_vm6, %v3799_v40, %v3808_v34  ;;  %v742_v25 = vsel %vm734_vm5, %v3828_v47, %v3829_v4 }
 0x14e   : > { %v3817_v44 = vpop.permute.xlu1 %3816  ;;  %v3837_v42 = vpop.permute.xlu0 %3836  ;;  %v1392_v53 = vpack.c.bf16 %v633_v18, %v629_v51  ;;  %v1391_v57 = vpack.c.bf16 %v632_v11, %v628_v32 }
 0x14f   : > { %v3819_v6 = vunpack.i.h.bf16 %v3817_v44  ;;  %v3818_v63 = vunpack.i.l.bf16 %v3817_v44  ;;  %v3839_v51 = vunpack.i.h.bf16 %v3837_v42  ;;  %v3838_v18 = vunpack.i.l.bf16 %v3837_v42 }
 0x150   : > { %1491 = vmatprep.subr.bf16.mxu1 %v1392_v53 }
 0x151   : > { %1492 = vmatpush1.bf16.msra.mxu1 %v1391_v57  ;;  %v740_v40 = vsel %vm734_vm5, %v3818_v63, %v3819_v6  ;;  %v739_v24 = vsel %vm734_vm5, %v3754_v19, %v3818_v63  ;;  %v741_v11 = vsel %vm734_vm5, %v3819_v6, %v3828_v47  ;;  %v3758_v63 = vunpack.i.l.bf16 %v4879_v35 }
 0x152   : > { %v3822_v23 = vpop.permute.xlu1 %3821  ;;  %v3842_v54 = vpop.permute.xlu0 %3841  ;;  %v1394_v36 = vpack.c.bf16 %v740_v40, %v736_v30  ;;  %v1393_v0 = vpack.c.bf16 %v739_v24, %v735_v52  ;;  %v849_v52 = vsel %vm843_vm4, %v3838_v18, %v3839_v51  ;;  %v848_v4 = vsel %vm843_vm4, %v3759_v59, %v3838_v18 }
 0x153   : > { %v3824_v34 = vunpack.i.h.bf16 %v3822_v23  ;;  %v3823_v28 = vunpack.i.l.bf16 %v3822_v23  ;;  %v3844_v40 = vunpack.i.h.bf16 %v3842_v54 }
 0x154   : > { %1452 = vmatprep.subr.bf16.mxu0 %v1394_v36 }
 0x155   : > { %1453 = vmatpush1.bf16.msra.mxu0 %v1393_v0  ;;  %v738_v32 = vsel %vm734_vm5, %v3823_v28, %v3824_v34  ;;  %v737_v8 = vsel %vm734_vm5, %v3814_v41, %v3823_v28  ;;  %v3843_v41 = vunpack.i.l.bf16 %v3842_v54 }
 0x156   : > { %v3832_v44 = vpop.permute.xlu1 %3831  ;;  %v4910_v53 = vpop.permute.xlu0 %3851  ;;  %v1396_v57 = vpack.c.bf16 %v742_v25, %v738_v32  ;;  %v1395_v19 = vpack.c.bf16 %v741_v11, %v737_v8 }
 0x157   : > { %v3834_v42 = vunpack.i.h.bf16 %v3832_v44  ;;  %v3833_v30 = vunpack.i.l.bf16 %v3832_v44  ;;  %v3854_v28 = vunpack.i.h.bf16 %v4910_v53  ;;  %v3853_v32 = vunpack.i.l.bf16 %v4910_v53 }
 0x158   : > { %1493 = vmatprep.subr.bf16.mxu1 %v1396_v57  ;;  %v847_v18 = vsel %vm843_vm4, %v3843_v41, %v3844_v40  ;;  %v5806_v44 = vpack.c.bf16 %v4585_v33, %v4550_v17  ;;  %v1404_v53 = vpack.c.bf16 %v4572_v27, %v4611_v46  ;;  %v1403_v17 = vpack.c.bf16 %v4569_v26, %v4608_v45 }
 0x159   : > { %1494 = vmatpush1.bf16.msra.mxu1 %v1395_v19  ;;  %v845_v6 = vsel %vm843_vm4, %v3833_v30, %v3834_v42  ;;  %v844_v47 = vsel %vm843_vm4, %v3758_v63, %v3833_v30  ;;  %v846_v25 = vsel %vm843_vm4, %v3834_v42, %v3843_v41  ;;  %v3764_v63 = vunpack.i.h.bf16 %v4877_v10 }
 0x15a   : > { %v3847_v24 = vpop.permute.xlu1 %3846  ;;  %v3867_v23 = vpop.permute.xlu0 %3866  ;;  %v1398_v36 = vpack.c.bf16 %v849_v52, %v845_v6  ;;  %v1397_v0 = vpack.c.bf16 %v848_v4, %v844_v47  ;;  %v3763_v30 = vunpack.i.l.bf16 %v4877_v10  ;;  %v960_v40 = vsel %vm794_vm3, %v3853_v32, %v3854_v28 }
 0x15b   : > { %v3849_v34 = vunpack.i.h.bf16 %v3847_v24  ;;  %v3848_v35 = vunpack.i.l.bf16 %v3847_v24  ;;  %v3869_v4 = vunpack.i.h.bf16 %v3867_v23  ;;  %v5807_v33 = vpack.c.bf16 %v4547_v16, %v4544_v15 }
 0x15c   : > { %1454 = vmatprep.subr.bf16.mxu0 %v1398_v36  ;;  %v959_v46 = vsel %vm794_vm3, %v3763_v30, %v3853_v32 }
 0x15d   : > { %1455 = vmatpush1.bf16.msra.mxu0 %v1397_v0  ;;  %v851_v54 = vsel %vm843_vm4, %v3848_v35, %v3849_v34  ;;  %v850_v8 = vsel %vm843_vm4, %v3839_v51, %v3848_v35  ;;  %v3868_v51 = vunpack.i.l.bf16 %v3867_v23 }
 0x15e   : > { %v3857_v11 = vpop.permute.xlu1 %3856  ;;  %v4923_v59 = vpop.permute.xlu0 %3876  ;;  %1456 = vmatprep.subr.bf16.mxu0 %v5806_v44  ;;  %v1400_v57 = vpack.c.bf16 %v851_v54, %v847_v18  ;;  %v1399_v19 = vpack.c.bf16 %v850_v8, %v846_v25  ;;  %v3769_v25 = vunpack.i.h.bf16 %v4881_v48  ;;  %v3768_v8 = vunpack.i.l.bf16 %v4881_v48 }
 0x15f   : > { %v3859_v52 = vunpack.i.h.bf16 %v3857_v11  ;;  %v3858_v42 = vunpack.i.l.bf16 %v3857_v11  ;;  %v3879_v26 = vunpack.i.h.bf16 %v4923_v59  ;;  %v966_v15 = vsel %vm794_vm3, %v3868_v51, %v3869_v4 }
 0x160   : > { %1495 = vmatprep.subr.bf16.mxu1 %v1400_v57  ;;  %v3878_v16 = vunpack.i.l.bf16 %v4923_v59 }
 0x161   : > { %1457 = vmatpush1.bf16.msra.mxu0 %v5807_v33  ;;  %1496 = vmatpush1.bf16.msra.mxu1 %v1399_v19  ;;  %v964_v27 = vsel %vm794_vm3, %v3858_v42, %v3859_v52  ;;  %v963_v10 = vsel %vm794_vm3, %v3764_v63, %v3858_v42  ;;  %v965_v34 = vsel %vm794_vm3, %v3859_v52, %v3868_v51 }
 0x162   : > { %v3862_v41 = vpop.permute.xlu1 %3861  ;;  %v3882_v6 = vpop.permute.xlu0 %3881  ;;  %v1406_v47 = vpack.c.bf16 %v964_v27, %v960_v40  ;;  %1497 = vmatprep.subr.bf16.mxu1 %v1404_v53  ;;  %v1405_v24 = vpack.c.bf16 %v963_v10, %v959_v46  ;;  %v1070_v63 = vsel %vm685_vm2, %v3769_v25, %v3878_v16 }
 0x163   : > { %v3864_v23 = vunpack.i.h.bf16 %v3862_v41  ;;  %v3863_v36 = vunpack.i.l.bf16 %v3862_v41  ;;  %v3884_v57 = vunpack.i.h.bf16 %v3882_v6  ;;  %v3883_v59 = vunpack.i.l.bf16 %v3882_v6 }
 0x164   : > { %1458 = vmatprep.subr.bf16.mxu0 %v1406_v47 }
 0x165   : > { %1459 = vmatpush1.bf16.msra.mxu0 %v1405_v24  ;;  %1498 = vmatpush1.bf16.msra.mxu1 %v1403_v17  ;;  %v962_v45 = vsel %vm794_vm3, %v3863_v36, %v3864_v23  ;;  %v961_v0 = vsel %vm794_vm3, %v3854_v28, %v3863_v36  ;;  %v1071_v28 = vsel %vm685_vm2, %v3878_v16, %v3879_v26 }
 0x166   : > { %v3872_v35 = vpop.permute.xlu1 %3871  ;;  %v3892_v32 = vpop.permute.xlu0 %3891  ;;  %v1408_v18 = vpack.c.bf16 %v966_v15, %v962_v45  ;;  %v1407_v54 = vpack.c.bf16 %v965_v34, %v961_v0  ;;  %v1069_v33 = vsel %vm685_vm2, %v3883_v59, %v3884_v57 }
 0x167   : > { %v3874_v11 = vunpack.i.h.bf16 %v3872_v35  ;;  %v3873_v44 = vunpack.i.l.bf16 %v3872_v35  ;;  %v3894_v40 = vunpack.i.h.bf16 %v3892_v32  ;;  %v3893_v17 = vunpack.i.l.bf16 %v3892_v32 }
 0x168   : > { %1499 = vmatprep.subr.bf16.mxu1 %v1408_v18 }
 0x169   : > { %1500 = vmatpush1.bf16.msra.mxu1 %v1407_v54  ;;  %v1067_v19 = vsel %vm685_vm2, %v3873_v44, %v3874_v11  ;;  %v1066_v53 = vsel %vm685_vm2, %v3768_v8, %v3873_v44  ;;  %v1068_v10 = vsel %vm685_vm2, %v3874_v11, %v3883_v59  ;;  %v1174_v34 = vsel %vm576_vm1, %v3893_v17, %v3894_v40 }
 0x16a   : > { %v3887_v30 = vpop.permute.xlu1 %3886  ;;  %v3897_v52 = vpop.permute.xlu0 %3896  ;;  %v1410_v42 = vpack.c.bf16 %v1071_v28, %v1067_v19  ;;  %v1409_v4 = vpack.c.bf16 %v1070_v63, %v1066_v53 }
 0x16b   : > { %v3889_v51 = vunpack.i.h.bf16 %v3887_v30  ;;  %v3888_v48 = vunpack.i.l.bf16 %v3887_v30  ;;  %v3898_v27 = vunpack.i.l.bf16 %v3897_v52  ;;  %v3899_v36 = vunpack.i.h.bf16 %v3897_v52 }
 0x16c   : > { %1460 = vmatprep.subr.bf16.mxu0 %v1410_v42 }
 0x16d   : > { %1461 = vmatpush1.bf16.msra.mxu0 %v1409_v4  ;;  %v1073_v46 = vsel %vm685_vm2, %v3888_v48, %v3889_v51  ;;  %v1072_v41 = vsel %vm685_vm2, %v3879_v26, %v3888_v48  ;;  %v1173_v32 = vsel %vm576_vm1, %v3898_v27, %v3893_v17 }
 0x16e   : > { %v3902_v6 = vpop.permute.xlu1 %3901  ;;  %v3912_v47 = vpop.permute.xlu0 %3911  ;;  %v1412_v24 = vpack.c.bf16 %v1073_v46, %v1069_v33  ;;  %v1411_v23 = vpack.c.bf16 %v1072_v41, %v1068_v10  ;;  %v4306_v33 = vmov 0.0  }
 0x16f   : > { %v3904_v15 = vunpack.i.h.bf16 %v3902_v6  ;;  %v3903_v16 = vunpack.i.l.bf16 %v3902_v6  ;;  %v3914_v45 = vunpack.i.h.bf16 %v3912_v47  ;;  %v3913_v0 = vunpack.i.l.bf16 %v3912_v47 }
 0x170   : > { %1501 = vmatprep.subr.bf16.mxu1 %v1412_v24  ;;  %v3615_v27 = vsel %vm413_vm9, 1.0, %v4306_v33 }
 0x171   : > { %1502 = vmatpush1.bf16.msra.mxu1 %v1411_v23  ;;  %v1178_v35 = vsel %vm576_vm1, %v3903_v16, %v3904_v15  ;;  %v1177_v18 = vsel %vm576_vm1, %v3899_v36, %v3903_v16  ;;  %v1180_v57 = vsel %vm576_vm1, %v3913_v0, %v3914_v45  ;;  %v1179_v59 = vsel %vm576_vm1, %v3904_v15, %v3913_v0 }
 0x172   : > { %v3907_v26 = vpop.permute.xlu1 %3906  ;;  %v3922_v54 = vpop.permute.xlu0 %3921  ;;  %v1414_v25 = vpack.c.bf16 %v1178_v35, %v1174_v34  ;;  %v1413_v8 = vpack.c.bf16 %v1177_v18, %v1173_v32  ;;  %v1421_v47 = vpack.c.bf16 %v3615_v27, %v3615_v27 }
 0x173   : > { %v3909_v11 = vunpack.i.h.bf16 %v3907_v26  ;;  %v3908_v44 = vunpack.i.l.bf16 %v3907_v26  ;;  %v3924_v19 = vunpack.i.h.bf16 %v3922_v54  ;;  %v3923_v28 = vunpack.i.l.bf16 %v3922_v54 }
 0x174   : > { %1462 = vmatprep.subr.bf16.mxu0 %v1414_v25  ;;  %v1437_v35 = vsel %vm1435_vm10, %v1421_v47, 0 }
 0x175   : > { %1463 = vmatpush1.bf16.msra.mxu0 %v1413_v8  ;;  %v1176_v53 = vsel %vm576_vm1, %v3908_v44, %v3909_v11  ;;  %v1175_v63 = vsel %vm576_vm1, %v3894_v40, %v3908_v44  ;;  %v1285_v17 = vsel %vm467_vm0, %v3923_v28, %v3924_v19  ;;  %v3616_v11 = vcombine.low %v4857_v39, %v4857_v39 }
 0x176   : > { %v3917_v30 = vpop.permute.xlu1 %3916  ;;  %v1416_v52 = vpack.c.bf16 %v1180_v57, %v1176_v53  ;;  %v1415_v42 = vpack.c.bf16 %v1179_v59, %v1175_v63  ;;  %v3932_v46 = vpop.permute.xlu0 %3931 }
 0x177   : > { %v3919_v4 = vunpack.i.h.bf16 %v3917_v30  ;;  %v3918_v51 = vunpack.i.l.bf16 %v3917_v30  ;;  %v3934_v24 = vunpack.i.h.bf16 %v3932_v46  ;;  %v3933_v23 = vunpack.i.l.bf16 %v3932_v46 }
 0x178   : > { %1503 = vmatprep.subr.bf16.mxu1 %v1416_v52 }
 0x179   : > { %1504 = vmatpush1.bf16.msra.mxu1 %v1415_v42  ;;  %v1281_v48 = vsel %vm467_vm0, %v3918_v51, %v3919_v4  ;;  %v1283_v32 = vsel %vm467_vm0, %v3933_v23, %v3934_v24  ;;  %v1282_v26 = vsel %vm467_vm0, %v3919_v4, %v3933_v23 }
 0x17a   : > { %v3927_v10 = vpop.permute.xlu1 %3926  ;;  %v1418_v40 = vpack.c.bf16 %v1285_v17, %v1281_v48 }
 0x17b   : > { %v3929_v41 = vunpack.i.h.bf16 %v3927_v10  ;;  %v3928_v6 = vunpack.i.l.bf16 %v3927_v10 }
 0x17c   : > { %1464 = vmatprep.subr.bf16.mxu0 %v1418_v40 }
 0x17d   : > { %v1280_v36 = vsel %vm467_vm0, %v3928_v6, %v3918_v51  ;;  %v1284_v15 = vsel %vm467_vm0, %v3929_v41, %v3923_v28 }
 0x17e   : > { %v3937_v16 = vpop.permute.xlu1 %3936  ;;  %v1417_v45 = vpack.c.bf16 %v1284_v15, %v1280_v36 }
 0x17f   : > { %v3939_v0 = vunpack.i.h.bf16 %v3937_v16  ;;  %v3938_v34 = vunpack.i.l.bf16 %v3937_v16 }
 0x180   : > { %1465 = vmatpush1.bf16.msra.mxu0 %v1417_v45 }
 0x181   : > { %3618 = vmatprep.subr.msk.bf16.mxu0 %vm1435_vm10, %v1421_v47  ;;  %v1287_v18 = vsel %vm467_vm0, %v3938_v34, %v3939_v0  ;;  %v1286_v54 = vsel %vm467_vm0, %v3924_v19, %v3938_v34 }
 0x182   : > { %v1420_v25 = vpack.c.bf16 %v1287_v18, %v1283_v32  ;;  %v1419_v8 = vpack.c.bf16 %v1286_v54, %v1282_v26 }
 0x184   : > { %1467 = vmatpush1.bf16.msra.mxu0 %v1437_v35  ;;  %1505 = vmatprep.subr.bf16.mxu1 %v1420_v25 }
 0x185   : > { %1506 = vmatpush1.bf16.msra.mxu1 %v1419_v8 }
 0x186   : > { %3620 = vmatprep.subr.msk.bf16.mxu1 %vm1435_vm10, %v1421_v47 }
 0x187   : > { %1481 = vmatmul.mubr.bf16.vlgmr.msra.gmra.mrb[0].mxu0 %v3616_v11 }
 0x189   : > { %1508 = vmatpush1.bf16.msra.mxu1 %v1437_v35 }
 0x18c   : > { %1522 = vmatmul.mubr.bf16.vlgmr.msra.gmra.mrb[0].mxu1 %v3616_v11 }
 0x25a   : > { %v4981_v44 = vpop.f32.mrb[0].mxu0 }
 0x25b   : > { %5808 = vst [vmem:[#allocation21_spill] sm:$0xff] %v4981_v44  ;;  %v4983_v57 = vpop.f32.mrb[1].mxu0  ;;  %v4997_v4 = vmax.f32 %v4981_v44, 0.0 }
 0x25c   : > { %5809 = vst [vmem:[#allocation22_spill] sm:$0xff] %v4983_v57  ;;  %v1486_v59 = vpop.f32.mrb[2].mxu0  ;;  %v5000_v51 = vmax.f32 %v4983_v57, 0.0 }
 0x25d   : > { %v1487_v28 = vpop.f32.mrb[3].mxu0  ;;  %v1581_v46 = vmul.f32 %v4997_v4, %v4593_v38  ;;  %v1544_v10 = vmul.f32 %v4997_v4, %v4534_v12  ;;  %v1655_v15 = vmul.f32 %v4997_v4, %v4682_v37  ;;  %v1618_v16 = vmul.f32 %v4997_v4, %v4637_v58 }
 0x25e   : > { %v1582_v6 = vmul.f32 %v5000_v51, %v4580_v31  ;;  %v1545_v47 = vmul.f32 %v5000_v51, %v4537_v13  ;;  %v1656_v34 = vmul.f32 %v5000_v51, %v4666_v29  ;;  %v1619_v35 = vmul.f32 %v5000_v51, %v4629_v56 }
 0x25f   : > { %v4985_v19 = vpop.f32.mrb[0].mxu1  ;;  %v1695_v11 = vmul.f32 %v4997_v4, %v4539_v14  ;;  %v1696_v59 = vmul.f32 %v5000_v51, %v4717_v1 }
 0x260   : > { %5810 = vst [vmem:[#allocation23_spill] sm:$0xff] %v4985_v19  ;;  %v4988_v53 = vmax.f32 %v4985_v19, 0.0  ;;  %v4990_v39 = vpop.f32.mrb[1].mxu1  ;;  %v3965_v23 = vpack.i.bf16 %v1582_v6, %v1581_v46  ;;  %v3960_v36 = vpack.i.bf16 %v1545_v47, %v1544_v10  ;;  %v3975_v32 = vpack.i.bf16 %v1656_v34, %v1655_v15  ;;  %v5816_v10 = vld [vmem:[#allocation10_spill] sm:$0xff]  ;;  %v5817_v47 = vld [vmem:[#allocation15_spill] sm:$0xff] }
 0x261   : > { %5811 = vst [vmem:[#allocation24_spill] sm:$0xff] %v4990_v39  ;;  %v1527_v63 = vpop.f32.mrb[2].mxu1  ;;  %v5023_v24 = vmax.f32 %v4990_v39, 0.0  ;;  %v3970_v18 = vpack.i.bf16 %v1619_v35, %v1618_v16  ;;  %v5819_v16 = vld [vmem:[#allocation6_spill] sm:$0xff] }
 0x262   : > { %v1528_v30 = vpop.f32.mrb[3].mxu1  ;;  %v1583_v52 = vmul.f32 %v4988_v53, %v4603_v43  ;;  %v1546_v42 = vmul.f32 %v4988_v53, %v4558_v20  ;;  %v1657_v33 = vmul.f32 %v4988_v53, %v4693_v49  ;;  %v1620_v27 = vmul.f32 %v4988_v53, %v4646_v3  ;;  %v5820_v35 = vld [vmem:[#allocation18_spill] sm:$0xff] }
 0x263   : > { %v1584_v45 = vmul.f32 %v5023_v24, %v4520_v5  ;;  %v1547_v0 = vmul.f32 %v5023_v24, %v4505_v61  ;;  %v1658_v26 = vmul.f32 %v5023_v24, %v4621_v50  ;;  %v1621_v54 = vmul.f32 %v5023_v24, %v4560_v21  ;;  %v5812_v30 = vld [vmem:[#allocation9_spill] sm:$0xff] }
 0x264   : > { %v3945_v48 = vpack.i.bf16 %v1583_v52, %v4503_v60  ;;  %v3940_v17 = vpack.i.bf16 %v1546_v42, %v4498_v55  ;;  %v3955_v40 = vpack.i.bf16 %v1657_v33, %v4526_v7  ;;  %v3950_v41 = vpack.i.bf16 %v1620_v27, %v4513_v2  ;;  %v5813_v42 = vld [vmem:[#allocation14_spill] sm:$0xff]  ;;  %v5815_v27 = vld [vmem:[#allocation13_spill] sm:$0xff] }
 0x265   : > { %v1698_v25 = vmul.f32 %v5023_v24, %v4725_v22  ;;  %v1697_v8 = vmul.f32 %v4988_v53, %v4711_v62  ;;  %v1734_v52 = vmul.f32 %v4988_v53, %v5812_v30  ;;  %v1770_v46 = vmul.f32 %v5000_v51, %v5815_v27 }
 0x266   : > { %3946 = vrot.lane.b32.xlu1 %v3945_v48, %s4304_s15  ;;  %3941 = vrot.lane.b32.xlu0 %v3940_v17, %s4305_s21  ;;  %v1771_v48 = vmul.f32 %v4988_v53, %v5813_v42  ;;  %v5814_v17 = vld [vmem:[#allocation11_spill] sm:$0xff] }
 0x267   : > { %v3985_v28 = vpack.i.bf16 %v1698_v25, %v1695_v11  ;;  %v3980_v63 = vpack.i.bf16 %v1697_v8, %v1696_v59  ;;  %v1733_v33 = vmul.f32 %v5000_v51, %v5814_v17  ;;  %v5822_v25 = vld [vmem:[#allocation17_spill] sm:$0xff]  ;;  %v5823_v11 = vld [vmem:[#allocation7_spill] sm:$0xff] }
 0x268   : > { %v3995_v6 = vpack.i.bf16 %v1771_v48, %v1770_v46  ;;  %v1807_v8 = vmul.f32 %v5000_v51, %v5822_v25  ;;  %v1806_v59 = vmul.f32 %v4997_v4, %v5823_v11  ;;  %v5825_v48 = vld [vmem:[#allocation8_spill] sm:$0xff] }
 0x269   : > { %v5827_v46 = vld [vmem:[#allocation16_spill] sm:$0xff] }
 0x26a   : > { %3956 = vrot.lane.b32.xlu1 %v3955_v40, %s4302_s23  ;;  %3951 = vrot.lane.b32.xlu0 %v3950_v41, %s4303_s27  ;;  %v1735_v40 = vmul.f32 %v5023_v24, %v5816_v10  ;;  %v3990_v41 = vpack.i.bf16 %v1734_v52, %v1733_v33  ;;  %v5824_v52 = vld [vmem:[#allocation20_spill] sm:$0xff] }
 0x26b   : > { %v5826_v33 = vld [vmem:[#allocation12_spill] sm:$0xff] }
 0x26e   : > { %3966 = vrot.lane.b32.xlu1 %v3965_v23, %s4304_s15  ;;  %3961 = vrot.lane.b32.xlu0 %v3960_v36, %s4305_s21  ;;  %v1772_v23 = vmul.f32 %v5023_v24, %v5817_v47  ;;  %v5818_v36 = vld [vmem:[#allocation5_spill] sm:$0xff] }
 0x26f   : > { %v1732_v15 = vmul.f32 %v4997_v4, %v5818_v36 }
 0x272   : > { %1598 = vrot.lane.b32.xlu1 %v1584_v45, %s4304_s15  ;;  %1561 = vrot.lane.b32.xlu0 %v1547_v0, %s4305_s21  ;;  %v1769_v45 = vmul.f32 %v4997_v4, %v5819_v16  ;;  %v4000_v0 = vpack.i.bf16 %v1735_v40, %v1732_v15  ;;  %v5099_v40 = vpop.permute.xlu0 %1713 }
 0x274   : > { %v4005_v34 = vpack.i.bf16 %v1772_v23, %v1769_v45 }
 0x276   : > { %3976 = vrot.lane.b32.xlu1 %v3975_v32, %s4302_s23  ;;  %3971 = vrot.lane.b32.xlu0 %v3970_v18, %s4303_s27  ;;  %v1808_v32 = vmul.f32 %v4988_v53, %v5820_v35  ;;  %v5821_v18 = vld [vmem:[#allocation19_spill] sm:$0xff] }
 0x27a   : > { %1672 = vrot.lane.b32.xlu1 %v1658_v26, %s4302_s23  ;;  %1635 = vrot.lane.b32.xlu0 %v1621_v54, %s4303_s27  ;;  %v1809_v26 = vmul.f32 %v5023_v24, %v5821_v18  ;;  %v5773_v54 = vmov 0  }
 0x27b   : > { %1939 = vmatprep.mubr.bf16.mxu0 %v5773_v54  ;;  %1980 = vmatprep.mubr.bf16.mxu1 %v5773_v54 }
 0x27e   : > { %3986 = vrot.lane.b32.xlu1 %v3985_v28, %s4301_s20  ;;  %3981 = vrot.lane.b32.xlu0 %v3980_v63, %s4301_s20  ;;  %v4010_v28 = vpack.i.bf16 %v1808_v32, %v1807_v8  ;;  %v4015_v63 = vpack.i.bf16 %v1809_v26, %v1806_v59 }
 0x282   : > { %3991 = vrot.lane.b32.xlu1 %v3990_v41, %s4300_s17  ;;  %3996 = vrot.lane.b32.xlu0 %v3995_v6, %s4299_s29  ;;  %v5101_v41 = vpop.permute.xlu0 %1787  ;;  %v5103_v6 = vpop.permute.xlu1 %1750 }
 0x286   : > { %4001 = vrot.lane.b32.xlu1 %v4000_v0, %s4300_s17  ;;  %4006 = vrot.lane.b32.xlu0 %v4005_v34, %s4299_s29 }
 0x28a   : > { %4011 = vrot.lane.b32.xlu1 %v4010_v28, %s5783_s26  ;;  %4016 = vrot.lane.b32.xlu0 %v4015_v63, %s5783_s26 }
 0x28e   : > { %1824 = vrot.lane.b32.xlu1 %v5824_v52, %s5783_s26  ;;  %2172 = vrot.lane.b32.xlu0 %v5825_v48, %s4301_s20 }
 0x292   : > { %2209 = vrot.lane.b32.xlu1 %v5826_v33, %s4300_s17  ;;  %2246 = vrot.lane.b32.xlu0 %v5827_v46, %s4299_s29 }
 0x2d8   : > { %v3947_v23 = vpop.permute.xlu1 %3946  ;;  %v3942_v15 = vpop.permute.xlu0 %3941 }
 0x2d9   : > { %v3949_v34 = vunpack.i.h.bf16 %v3947_v23  ;;  %v3948_v32 = vunpack.i.l.bf16 %v3947_v23  ;;  %v3943_v26 = vunpack.i.l.bf16 %v3942_v15  ;;  %v3944_v19 = vunpack.i.h.bf16 %v3942_v15 }
 0x2dc   : > { %v3957_v45 = vpop.permute.xlu1 %3956  ;;  %v3952_v0 = vpop.permute.xlu0 %3951 }
 0x2dd   : > { %v3958_v16 = vunpack.i.l.bf16 %v3957_v45 }
 0x2e0   : > { %v3967_v8 = vpop.permute.xlu1 %3966  ;;  %v3962_v59 = vpop.permute.xlu0 %3961 }
 0x2e1   : > { %v3969_v28 = vunpack.i.h.bf16 %v3967_v8  ;;  %v3968_v63 = vunpack.i.l.bf16 %v3967_v8  ;;  %v3964_v54 = vunpack.i.h.bf16 %v3962_v59  ;;  %v3963_v39 = vunpack.i.l.bf16 %v3962_v59 }
 0x2e3   : > { %v1602_v57 = vsel %vm625_vm6, %v3969_v28, %v3949_v34  ;;  %v1600_v44 = vsel %vm625_vm6, %v3948_v32, %v3968_v63  ;;  %v1563_v46 = vsel %vm516_vm7, %v3943_v26, %v3963_v39  ;;  %v1565_v33 = vsel %vm516_vm7, %v3964_v54, %v3944_v19 }
 0x2e4   : > { %v1883_v48 = vpack.c.bf16 %v1600_v44, %v1563_v46  ;;  %v1599_v52 = vpop.permute.xlu1 %1598  ;;  %v1562_v11 = vpop.permute.xlu0 %1561  ;;  %v1564_v23 = vsel %vm516_vm7, %v3963_v39, %v3964_v54  ;;  %v1601_v18 = vsel %vm625_vm6, %v3968_v63, %v3969_v28  ;;  %v1885_v25 = vpack.c.bf16 %v1602_v57, %v1565_v33 }
 0x2e5   : > { %v1603_v8 = vsel %vm625_vm6, %v3949_v34, %v1599_v52  ;;  %v1566_v59 = vsel %vm516_vm7, %v3944_v19, %v1562_v11  ;;  %v1884_v15 = vpack.c.bf16 %v1601_v18, %v1564_v23  ;;  %v3959_v32 = vunpack.i.h.bf16 %v3957_v45 }
 0x2e6   : > { %v1886_v35 = vpack.c.bf16 %v1603_v8, %v1566_v59  ;;  %v3953_v26 = vunpack.i.l.bf16 %v3952_v0  ;;  %v3954_v28 = vunpack.i.h.bf16 %v3952_v0 }
 0x2e7   : > { %1907 = vmatprep.subr.bf16.mxu0 %v1884_v15 }
 0x2e8   : > { %1908 = vmatpush1.bf16.msra.mxu0 %v1883_v48  ;;  %v3977_v36 = vpop.permute.xlu1 %3976  ;;  %1948 = vmatprep.subr.bf16.mxu1 %v1886_v35  ;;  %v3972_v44 = vpop.permute.xlu0 %3971 }
 0x2e9   : > { %v3979_v46 = vunpack.i.h.bf16 %v3977_v36  ;;  %v3978_v47 = vunpack.i.l.bf16 %v3977_v36  ;;  %v3974_v39 = vunpack.i.h.bf16 %v3972_v44  ;;  %v3973_v54 = vunpack.i.l.bf16 %v3972_v44  ;;  %1949 = vmatpush1.bf16.msra.mxu1 %v1885_v25 }
 0x2eb   : > { %v1676_v52 = vsel %vm843_vm4, %v3979_v46, %v3959_v32  ;;  %v1674_v19 = vsel %vm843_vm4, %v3958_v16, %v3978_v47  ;;  %v1637_v57 = vsel %vm734_vm5, %v3953_v26, %v3973_v54  ;;  %v1639_v18 = vsel %vm734_vm5, %v3974_v39, %v3954_v28 }
 0x2ec   : > { %v1887_v11 = vpack.c.bf16 %v1674_v19, %v1637_v57  ;;  %v1673_v33 = vpop.permute.xlu1 %1672  ;;  %v1636_v48 = vpop.permute.xlu0 %1635  ;;  %v1638_v35 = vsel %vm734_vm5, %v3973_v54, %v3974_v39  ;;  %v1675_v45 = vsel %vm843_vm4, %v3978_v47, %v3979_v46  ;;  %v1889_v63 = vpack.c.bf16 %v1676_v52, %v1639_v18 }
 0x2ed   : > { %v1677_v36 = vsel %vm843_vm4, %v3959_v32, %v1673_v33  ;;  %v1640_v25 = vsel %vm734_vm5, %v3954_v28, %v1636_v48  ;;  %v1888_v0 = vpack.c.bf16 %v1675_v45, %v1638_v35 }
 0x2ee   : > { %v1890_v34 = vpack.c.bf16 %v1677_v36, %v1640_v25 }
 0x2ef   : > { %1909 = vmatprep.subr.bf16.mxu0 %v1888_v0 }
 0x2f0   : > { %1910 = vmatpush1.bf16.msra.mxu0 %v1887_v11  ;;  %v3987_v16 = vpop.permute.xlu1 %3986  ;;  %v3982_v23 = vpop.permute.xlu0 %3981  ;;  %1950 = vmatprep.subr.bf16.mxu1 %v1890_v34 }
 0x2f1   : > { %v3989_v8 = vunpack.i.h.bf16 %v3987_v16  ;;  %v3988_v59 = vunpack.i.l.bf16 %v3987_v16  ;;  %v3984_v15 = vunpack.i.h.bf16 %v3982_v23  ;;  %v3983_v26 = vunpack.i.l.bf16 %v3982_v23  ;;  %1951 = vmatpush1.bf16.msra.mxu1 %v1889_v63 }
 0x2f3   : > { %v1717_v44 = vsel %vm794_vm3, %v3984_v15, %v3989_v8  ;;  %v1715_v47 = vsel %vm794_vm3, %v3988_v59, %v3983_v26  ;;  %v1716_v32 = vsel %vm794_vm3, %v3983_v26, %v3984_v15  ;;  %v1718_v46 = vsel %vm794_vm3, %v3989_v8, %v5099_v40 }
 0x2f4   : > { %v1893_v39 = vpack.c.bf16 %v1717_v44, %v4988_v53  ;;  %v1891_v54 = vpack.c.bf16 %v1715_v47, %v4997_v4  ;;  %v3992_v28 = vpop.permute.xlu1 %3991  ;;  %v3997_v52 = vpop.permute.xlu0 %3996  ;;  %v1892_v19 = vpack.c.bf16 %v1716_v32, %v5000_v51  ;;  %v1894_v57 = vpack.c.bf16 %v1718_v46, %v5023_v24 }
 0x2f5   : > { %v3994_v18 = vunpack.i.h.bf16 %v3992_v28  ;;  %v3993_v11 = vunpack.i.l.bf16 %v3992_v28  ;;  %v3999_v33 = vunpack.i.h.bf16 %v3997_v52  ;;  %v3998_v48 = vunpack.i.l.bf16 %v3997_v52 }
 0x2f6   : > { %1911 = vmatprep.subr.bf16.mxu0 %v1892_v19  ;;  %1952 = vmatprep.subr.bf16.mxu1 %v1894_v57  ;;  %v5779_v19 = vmov 1.0  }
 0x2f7   : > { %1912 = vmatpush1.bf16.msra.mxu0 %v1891_v54  ;;  %1953 = vmatpush1.bf16.msra.mxu1 %v1893_v39  ;;  %v1753_v40 = vsel %vm685_vm2, %v3993_v11, %v3994_v18  ;;  %v1790_v53 = vsel %vm576_vm1, %v3998_v48, %v3999_v33 }
 0x2f8   : > { %v4002_v35 = vpop.permute.xlu1 %4001  ;;  %v4007_v4 = vpop.permute.xlu0 %4006  ;;  %v1896_v45 = vpack.c.bf16 %v1790_v53, %v1753_v40  ;;  %v1842_v40 = vld [vmem:[%s5734_s3] sm:$0xf]  ;;  %v5830_v53 = vmov 0  }
 0x2f9   : > { %v4004_v36 = vunpack.i.h.bf16 %v4002_v35  ;;  %v4003_v25 = vunpack.i.l.bf16 %v4002_v35  ;;  %v4009_v51 = vunpack.i.h.bf16 %v4007_v4  ;;  %v4008_v0 = vunpack.i.l.bf16 %v4007_v4 }
 0x2fa   : > { %1913 = vmatprep.subr.bf16.mxu0 %v1896_v45 }
 0x2fb   : > { %v1752_v24 = vsel %vm685_vm2, %v4003_v25, %v3993_v11  ;;  %v1754_v34 = vsel %vm685_vm2, %v3994_v18, %v4004_v36  ;;  %v1789_v63 = vsel %vm576_vm1, %v4008_v0, %v3998_v48  ;;  %v1791_v16 = vsel %vm576_vm1, %v3999_v33, %v4009_v51 }
 0x2fc   : > { %v1895_v23 = vpack.c.bf16 %v1789_v63, %v1752_v24  ;;  %v1897_v8 = vpack.c.bf16 %v1791_v16, %v1754_v34  ;;  %v4012_v59 = vpop.permute.xlu1 %4011  ;;  %v4017_v15 = vpop.permute.xlu0 %4016  ;;  %v1755_v26 = vsel %vm685_vm2, %v4004_v36, %v5103_v6  ;;  %v1792_v44 = vsel %vm576_vm1, %v4009_v51, %v5101_v41 }
 0x2fd   : > { %v4014_v47 = vunpack.i.h.bf16 %v4012_v59  ;;  %v4013_v32 = vunpack.i.l.bf16 %v4012_v59  ;;  %v4019_v46 = vunpack.i.h.bf16 %v4017_v15  ;;  %v4018_v39 = vunpack.i.l.bf16 %v4017_v15 }
 0x2fe   : > { %1914 = vmatpush1.bf16.msra.mxu0 %v1895_v23  ;;  %v1898_v54 = vpack.c.bf16 %v1792_v44, %v1755_v26 }
 0x2ff   : > { %v1827_v52 = vsel %vm467_vm0, %v4013_v32, %v4014_v47  ;;  %v1826_v6 = vsel %vm467_vm0, %v4018_v39, %v4013_v32  ;;  %v1828_v57 = vsel %vm467_vm0, %v4014_v47, %v4019_v46 }
 0x300   : > { %v3645_v41 = vpack.c.bf16 %v5779_v19, %v1827_v52  ;;  %v3648_v18 = vpack.c.bf16 %v5779_v19, %v1826_v6  ;;  %1954 = vmatprep.subr.bf16.mxu1 %v1898_v54  ;;  %v1825_v11 = vpop.permute.xlu1 %1824  ;;  %v3654_v48 = vpack.c.bf16 %v5779_v19, %v1828_v57 }
 0x301   : > { %1955 = vmatpush1.bf16.msra.mxu1 %v1897_v8  ;;  %v1829_v9 = vsel %vm467_vm0, %v4019_v46, %v1825_v11 }
 0x302   : > { %v3651_v33 = vpack.c.bf16 %v5779_v19, %v1829_v9  ;;  %3646 = vmatprep.subr.msk.bf16.mxu0 %vm5142_vm12, %v3645_v41 }
 0x303   : > { %3649 = vmatpush1.bf16.msk.msra.mxu0 %vm5142_vm12, %v3648_v18 }
 0x304   : > { %3652 = vmatprep.subr.msk.bf16.mxu1 %vm5142_vm12, %v3651_v33 }
 0x305   : > { %3655 = vmatpush1.bf16.msk.msra.mxu1 %vm5142_vm12, %v3654_v48 }
 0x306   : > { %3622 = vmatmul.mubr.msk.bf16.vlgmr.msra.gmra.mrb[4].mxu0 %vm1903_vm13, %v1842_v40 }
 0x307   : > { %2397 = vmatprep.mubr.bf16.mxu0 %v5830_v53 }
 0x308   : > { %3623 = vmatmul.mubr.msk.bf16.vlgmr.msra.gmra.mrb[4].mxu1 %vm1903_vm13, %v1842_v40 }
 0x309   : > { %2438 = vmatprep.mubr.bf16.mxu1 %v5830_v53 }
 0x3d9   : > { %v1941_v35 = vpop.f32.mrb[4].mxu0 }
 0x3da   : > { %v1943_v4 = vpop.f32.mrb[5].mxu0  ;;  %v5175_v23 = vmax.f32 %v1941_v35, 0.0 }
 0x3db   : > { %v1982_v45 = vpop.f32.mrb[4].mxu1  ;;  %v1945_v36 = vpop.f32.mrb[6].mxu0  ;;  %v5177_v8 = vmax.f32 %v1943_v4, 0.0 }
 0x3dc   : > { %v5169_v25 = vmax.f32 %v1982_v45, 0.0  ;;  %v1984_v51 = vpop.f32.mrb[5].mxu1  ;;  %v1946_v0 = vpop.f32.mrb[7].mxu0  ;;  %v2040_v47 = vmul.f32 %v5175_v23, %v4593_v38  ;;  %v2003_v32 = vmul.f32 %v5175_v23, %v4534_v12  ;;  %v2114_v18 = vmul.f32 %v5175_v23, %v4682_v37 }
 0x3dd   : > { %v1986_v24 = vpop.f32.mrb[6].mxu1  ;;  %v2041_v54 = vmul.f32 %v5177_v8, %v4580_v31  ;;  %v2004_v52 = vmul.f32 %v5177_v8, %v4537_v13  ;;  %v5199_v6 = vmax.f32 %v1984_v51, 0.0  ;;  %v2115_v11 = vmul.f32 %v5177_v8, %v4666_v29 }
 0x3de   : > { %v1987_v34 = vpop.f32.mrb[7].mxu1  ;;  %v2042_v63 = vmul.f32 %v5169_v25, %v4603_v43  ;;  %v2005_v16 = vmul.f32 %v5169_v25, %v4558_v20  ;;  %v2116_v26 = vmul.f32 %v5169_v25, %v4693_v49  ;;  %v2079_v44 = vmul.f32 %v5169_v25, %v4646_v3 }
 0x3df   : > { %v4045_v41 = vpack.i.bf16 %v2041_v54, %v2040_v47  ;;  %v4040_v57 = vpack.i.bf16 %v2004_v52, %v2003_v32  ;;  %v2043_v9 = vmul.f32 %v5199_v6, %v4520_v5  ;;  %v2006_v33 = vmul.f32 %v5199_v6, %v4505_v61  ;;  %v5832_v52 = vld [vmem:[#allocation5_spill] sm:$0xff] }
 0x3e0   : > { %v4025_v59 = vpack.i.bf16 %v2042_v63, %v4503_v60  ;;  %v4020_v15 = vpack.i.bf16 %v2005_v16, %v4498_v55  ;;  %v4035_v46 = vpack.i.bf16 %v2116_v26, %v4526_v7  ;;  %v4030_v39 = vpack.i.bf16 %v2079_v44, %v4513_v2 }
 0x3e1   : > { %v2077_v48 = vmul.f32 %v5175_v23, %v4637_v58  ;;  %v2078_v40 = vmul.f32 %v5177_v8, %v4629_v56  ;;  %v4055_v35 = vpack.i.bf16 %v2115_v11, %v2114_v18  ;;  %v2157_v45 = vmul.f32 %v5199_v6, %v4725_v22 }
 0x3e2   : > { %4026 = vrot.lane.b32.xlu1 %v4025_v59, %s4304_s15  ;;  %4021 = vrot.lane.b32.xlu0 %v4020_v15, %s4305_s21  ;;  %v2117_v36 = vmul.f32 %v5199_v6, %v4621_v50  ;;  %v2080_v51 = vmul.f32 %v5199_v6, %v4560_v21  ;;  %v2155_v0 = vmul.f32 %v5177_v8, %v4717_v1 }
 0x3e3   : > { %v4050_v4 = vpack.i.bf16 %v2078_v40, %v2077_v48  ;;  %v2156_v24 = vmul.f32 %v5169_v25, %v4711_v62  ;;  %v2154_v34 = vmul.f32 %v5175_v23, %v4539_v14  ;;  %v2192_v16 = vmul.f32 %v5177_v8, %v5814_v17  ;;  %v5835_v40 = vld [vmem:[#allocation18_spill] sm:$0xff] }
 0x3e4   : > { %v2193_v15 = vmul.f32 %v5169_v25, %v5812_v30  ;;  %v2229_v26 = vmul.f32 %v5177_v8, %v5815_v27  ;;  %v2230_v44 = vmul.f32 %v5169_v25, %v5813_v42  ;;  %v2194_v47 = vmul.f32 %v5199_v6, %v5816_v10 }
 0x3e5   : > { %v4065_v63 = vpack.i.bf16 %v2157_v45, %v2154_v34  ;;  %v4060_v59 = vpack.i.bf16 %v2156_v24, %v2155_v0  ;;  %v5838_v34 = vld [vmem:[#allocation20_spill] sm:$0xff] }
 0x3e6   : > { %4036 = vrot.lane.b32.xlu1 %v4035_v46, %s4302_s23  ;;  %4031 = vrot.lane.b32.xlu0 %v4030_v39, %s4303_s27  ;;  %v4070_v32 = vpack.i.bf16 %v2193_v15, %v2192_v16  ;;  %v4075_v46 = vpack.i.bf16 %v2230_v44, %v2229_v26  ;;  %v5831_v39 = vld [vmem:[#allocation15_spill] sm:$0xff]  ;;  %v5840_v16 = vld [vmem:[#allocation12_spill] sm:$0xff]  ;;  %v5273_v15 = vpop.permute.xlu0 %2172  ;;  %v5275_v26 = vpop.permute.xlu1 %2209 }
 0x3e7   : > { %v2231_v54 = vmul.f32 %v5199_v6, %v5831_v39 }
 0x3ea   : > { %4046 = vrot.lane.b32.xlu1 %v4045_v41, %s4304_s15  ;;  %4041 = vrot.lane.b32.xlu0 %v4040_v57, %s4305_s21  ;;  %v2191_v41 = vmul.f32 %v5175_v23, %v5832_v52  ;;  %v5833_v57 = vld [vmem:[#allocation6_spill] sm:$0xff]  ;;  %v5277_v44 = vpop.permute.xlu0 %2246 }
 0x3eb   : > { %v2228_v18 = vmul.f32 %v5175_v23, %v5833_v57 }
 0x3ec   : > { %v4080_v11 = vpack.i.bf16 %v2194_v47, %v2191_v41 }
 0x3ee   : > { %2057 = vrot.lane.b32.xlu1 %v2043_v9, %s4304_s15  ;;  %2020 = vrot.lane.b32.xlu0 %v2006_v33, %s4305_s21  ;;  %v4085_v9 = vpack.i.bf16 %v2231_v54, %v2228_v18  ;;  %v5834_v33 = vld [vmem:[#allocation17_spill] sm:$0xff] }
 0x3ef   : > { %v2266_v48 = vmul.f32 %v5177_v8, %v5834_v33 }
 0x3f2   : > { %4056 = vrot.lane.b32.xlu1 %v4055_v35, %s4302_s23  ;;  %4051 = vrot.lane.b32.xlu0 %v4050_v4, %s4303_s27  ;;  %v2267_v35 = vmul.f32 %v5169_v25, %v5835_v40  ;;  %v5836_v4 = vld [vmem:[#allocation19_spill] sm:$0xff] }
 0x3f3   : > { %v2268_v45 = vmul.f32 %v5199_v6, %v5836_v4 }
 0x3f4   : > { %v4090_v0 = vpack.i.bf16 %v2267_v35, %v2266_v48 }
 0x3f6   : > { %2131 = vrot.lane.b32.xlu1 %v2117_v36, %s4302_s23  ;;  %2094 = vrot.lane.b32.xlu0 %v2080_v51, %s4303_s27  ;;  %v5837_v36 = vld [vmem:[#allocation7_spill] sm:$0xff] }
 0x3f7   : > { %v2265_v51 = vmul.f32 %v5175_v23, %v5837_v36 }
 0x3f9   : > { %v4095_v24 = vpack.i.bf16 %v2268_v45, %v2265_v51 }
 0x3fa   : > { %4066 = vrot.lane.b32.xlu1 %v4065_v63, %s4301_s20  ;;  %4061 = vrot.lane.b32.xlu0 %v4060_v59, %s4301_s20  ;;  %v5839_v63 = vld [vmem:[#allocation8_spill] sm:$0xff] }
 0x3fb   : > { %v5841_v59 = vld [vmem:[#allocation16_spill] sm:$0xff] }
 0x3fe   : > { %4071 = vrot.lane.b32.xlu1 %v4070_v32, %s4300_s17  ;;  %4076 = vrot.lane.b32.xlu0 %v4075_v46, %s4299_s29 }
 0x402   : > { %4081 = vrot.lane.b32.xlu1 %v4080_v11, %s4300_s17  ;;  %4086 = vrot.lane.b32.xlu0 %v4085_v9, %s4299_s29 }
 0x406   : > { %4091 = vrot.lane.b32.xlu1 %v4090_v0, %s5783_s26  ;;  %4096 = vrot.lane.b32.xlu0 %v4095_v24, %s5783_s26 }
 0x40a   : > { %2283 = vrot.lane.b32.xlu1 %v5838_v34, %s5783_s26  ;;  %2780 = vrot.lane.b32.xlu0 %v5839_v63, %s4301_s20 }
 0x40e   : > { %2817 = vrot.lane.b32.xlu1 %v5840_v16, %s4300_s17  ;;  %2854 = vrot.lane.b32.xlu0 %v5841_v59, %s4299_s29 }
 0x454   : > { %v4027_v47 = vpop.permute.xlu1 %4026  ;;  %v4022_v32 = vpop.permute.xlu0 %4021 }
 0x455   : > { %v4029_v41 = vunpack.i.h.bf16 %v4027_v47  ;;  %v4028_v18 = vunpack.i.l.bf16 %v4027_v47  ;;  %v4023_v11 = vunpack.i.l.bf16 %v4022_v32  ;;  %v4024_v24 = vunpack.i.h.bf16 %v4022_v32 }
 0x458   : > { %v4037_v46 = vpop.permute.xlu1 %4036  ;;  %v4032_v54 = vpop.permute.xlu0 %4031 }
 0x459   : > { %v4038_v52 = vunpack.i.l.bf16 %v4037_v46 }
 0x45c   : > { %v4047_v9 = vpop.permute.xlu1 %4046  ;;  %v4042_v48 = vpop.permute.xlu0 %4041 }
 0x45d   : > { %v4049_v35 = vunpack.i.h.bf16 %v4047_v9  ;;  %v4048_v45 = vunpack.i.l.bf16 %v4047_v9  ;;  %v4044_v51 = vunpack.i.h.bf16 %v4042_v48  ;;  %v4043_v0 = vunpack.i.l.bf16 %v4042_v48 }
 0x45f   : > { %v2061_v19 = vsel %vm625_vm6, %v4049_v35, %v4029_v41  ;;  %v2059_v59 = vsel %vm625_vm6, %v4028_v18, %v4048_v45  ;;  %v2022_v16 = vsel %vm516_vm7, %v4023_v11, %v4043_v0  ;;  %v2024_v63 = vsel %vm516_vm7, %v4044_v51, %v4024_v24 }
 0x460   : > { %v2342_v34 = vpack.c.bf16 %v2059_v59, %v2022_v16  ;;  %v2058_v36 = vpop.permute.xlu1 %2057  ;;  %v2021_v4 = vpop.permute.xlu0 %2020  ;;  %v2023_v47 = vsel %vm516_vm7, %v4043_v0, %v4044_v51  ;;  %v2060_v40 = vsel %vm625_vm6, %v4048_v45, %v4049_v35  ;;  %v2344_v57 = vpack.c.bf16 %v2061_v19, %v2024_v63 }
 0x461   : > { %v2062_v9 = vsel %vm625_vm6, %v4029_v41, %v2058_v36  ;;  %v2025_v48 = vsel %vm516_vm7, %v4024_v24, %v2021_v4  ;;  %v2343_v32 = vpack.c.bf16 %v2060_v40, %v2023_v47  ;;  %v4039_v18 = vunpack.i.h.bf16 %v4037_v46 }
 0x462   : > { %v2345_v33 = vpack.c.bf16 %v2062_v9, %v2025_v48  ;;  %v4033_v11 = vunpack.i.l.bf16 %v4032_v54  ;;  %v4034_v35 = vunpack.i.h.bf16 %v4032_v54 }
 0x463   : > { %2365 = vmatprep.subr.bf16.mxu0 %v2343_v32 }
 0x464   : > { %2366 = vmatpush1.bf16.msra.mxu0 %v2342_v34  ;;  %v4057_v39 = vpop.permute.xlu1 %4056  ;;  %2406 = vmatprep.subr.bf16.mxu1 %v2345_v33  ;;  %v4052_v16 = vpop.permute.xlu0 %4051 }
 0x465   : > { %v4059_v59 = vunpack.i.h.bf16 %v4057_v39  ;;  %v4058_v10 = vunpack.i.l.bf16 %v4057_v39  ;;  %v4054_v51 = vunpack.i.h.bf16 %v4052_v16  ;;  %v4053_v0 = vunpack.i.l.bf16 %v4052_v16  ;;  %2407 = vmatpush1.bf16.msra.mxu1 %v2344_v57 }
 0x467   : > { %v2135_v36 = vsel %vm843_vm4, %v4059_v59, %v4039_v18  ;;  %v2133_v40 = vsel %vm843_vm4, %v4038_v52, %v4058_v10  ;;  %v2096_v19 = vsel %vm734_vm5, %v4033_v11, %v4053_v0  ;;  %v2098_v4 = vsel %vm734_vm5, %v4054_v51, %v4034_v35 }
 0x468   : > { %v2346_v63 = vpack.c.bf16 %v2133_v40, %v2096_v19  ;;  %v2132_v46 = vpop.permute.xlu1 %2131  ;;  %v2095_v34 = vpop.permute.xlu0 %2094  ;;  %v2097_v33 = vsel %vm734_vm5, %v4053_v0, %v4054_v51  ;;  %v2134_v41 = vsel %vm843_vm4, %v4058_v10, %v4059_v59  ;;  %v2348_v24 = vpack.c.bf16 %v2135_v36, %v2098_v4 }
 0x469   : > { %v2136_v39 = vsel %vm843_vm4, %v4039_v18, %v2132_v46  ;;  %v2099_v57 = vsel %vm734_vm5, %v4034_v35, %v2095_v34  ;;  %v2347_v54 = vpack.c.bf16 %v2134_v41, %v2097_v33 }
 0x46a   : > { %v2349_v45 = vpack.c.bf16 %v2136_v39, %v2099_v57 }
 0x46b   : > { %2367 = vmatprep.subr.bf16.mxu0 %v2347_v54 }
 0x46c   : > { %2368 = vmatpush1.bf16.msra.mxu0 %v2346_v63  ;;  %v4067_v52 = vpop.permute.xlu1 %4066  ;;  %v4062_v47 = vpop.permute.xlu0 %4061  ;;  %2408 = vmatprep.subr.bf16.mxu1 %v2349_v45 }
 0x46d   : > { %v4069_v9 = vunpack.i.h.bf16 %v4067_v52  ;;  %v4068_v48 = vunpack.i.l.bf16 %v4067_v52  ;;  %v4064_v32 = vunpack.i.h.bf16 %v4062_v47  ;;  %v4063_v11 = vunpack.i.l.bf16 %v4062_v47  ;;  %2409 = vmatpush1.bf16.msra.mxu1 %v2348_v24 }
 0x46f   : > { %v2176_v16 = vsel %vm794_vm3, %v4064_v32, %v4069_v9  ;;  %v2174_v10 = vsel %vm794_vm3, %v4068_v48, %v4063_v11  ;;  %v2175_v18 = vsel %vm794_vm3, %v4063_v11, %v4064_v32  ;;  %v2177_v59 = vsel %vm794_vm3, %v4069_v9, %v5273_v15 }
 0x470   : > { %v2352_v51 = vpack.c.bf16 %v2176_v16, %v5169_v25  ;;  %v2350_v0 = vpack.c.bf16 %v2174_v10, %v5175_v23  ;;  %v4072_v35 = vpop.permute.xlu1 %4071  ;;  %v4077_v36 = vpop.permute.xlu0 %4076  ;;  %v2351_v40 = vpack.c.bf16 %v2175_v18, %v5177_v8  ;;  %v2353_v19 = vpack.c.bf16 %v2177_v59, %v5199_v6 }
 0x471   : > { %v4074_v4 = vunpack.i.h.bf16 %v4072_v35  ;;  %v4073_v63 = vunpack.i.l.bf16 %v4072_v35  ;;  %v4079_v46 = vunpack.i.h.bf16 %v4077_v36  ;;  %v4078_v34 = vunpack.i.l.bf16 %v4077_v36 }
 0x472   : > { %2369 = vmatprep.subr.bf16.mxu0 %v2351_v40  ;;  %2410 = vmatprep.subr.bf16.mxu1 %v2353_v19  ;;  %v5842_v40 = vmov 1.0  }
 0x473   : > { %2370 = vmatpush1.bf16.msra.mxu0 %v2350_v0  ;;  %2411 = vmatpush1.bf16.msra.mxu1 %v2352_v51  ;;  %v2212_v15 = vsel %vm685_vm2, %v4073_v63, %v4074_v4  ;;  %v2249_v25 = vsel %vm576_vm1, %v4078_v34, %v4079_v46 }
 0x474   : > { %v4082_v33 = vpop.permute.xlu1 %4081  ;;  %v4087_v23 = vpop.permute.xlu0 %4086  ;;  %v2355_v41 = vpack.c.bf16 %v2249_v25, %v2212_v15  ;;  %v4262_v25 = vld [vmem:[%s5738_s7] ss:$8 sps:$4 sm:$0xff]  }
 0x475   : > { %v4084_v39 = vunpack.i.h.bf16 %v4082_v33  ;;  %v4083_v57 = vunpack.i.l.bf16 %v4082_v33  ;;  %v4089_v8 = vunpack.i.h.bf16 %v4087_v23  ;;  %v4088_v54 = vunpack.i.l.bf16 %v4087_v23  ;;  %v2301_v33 = vld [vmem:[%s5735_s4] sm:$0xf]  ;;  %v4267_v23 = vld [vmem:[%s5738_s7 + $0x14] ss:$8 sps:$4 sm:$0xff]  }
 0x476   : > { %2371 = vmatprep.subr.bf16.mxu0 %v2355_v41  ;;  %v4265_v41 = vld [vmem:[%s5738_s7 + $0x10] ss:$8 sps:$4 sm:$0xff]  }
 0x477   : > { %v2211_v6 = vsel %vm685_vm2, %v4083_v57, %v4073_v63  ;;  %v2213_v45 = vsel %vm685_vm2, %v4074_v4, %v4084_v39  ;;  %v2248_v24 = vsel %vm576_vm1, %v4088_v54, %v4078_v34  ;;  %v2250_v52 = vsel %vm576_vm1, %v4079_v46, %v4089_v8  ;;  %v4264_v63 = vld [vmem:[%s5738_s7 + $0x4] ss:$8 sps:$4 sm:$0xff]   ;;  %v4268_v57 = vld [vmem:[%s5738_s7 + $0x20] ss:$8 sps:$4 sm:$0xff]   ;;  %v4271_v54 = vld [vmem:[%s5738_s7 + $0x30] ss:$8 sps:$4 sm:$0xff]  }
 0x478   : > { %v2354_v47 = vpack.c.bf16 %v2248_v24, %v2211_v6  ;;  %v2356_v9 = vpack.c.bf16 %v2250_v52, %v2213_v45  ;;  %v4092_v48 = vpop.permute.xlu1 %4091  ;;  %v4097_v32 = vpop.permute.xlu0 %4096  ;;  %v2214_v11 = vsel %vm685_vm2, %v4084_v39, %v5275_v26  ;;  %v2251_v16 = vsel %vm576_vm1, %v4089_v8, %v5277_v44  ;;  %v4270_v39 = vld [vmem:[%s5738_s7 + $0x24] ss:$8 sps:$4 sm:$0xff]   ;;  %v4273_v8 = vld [vmem:[%s5738_s7 + $0x34] ss:$8 sps:$4 sm:$0xff]  }
 0x479   : > { %v4094_v10 = vunpack.i.h.bf16 %v4092_v48  ;;  %v4093_v18 = vunpack.i.l.bf16 %v4092_v48  ;;  %v4099_v59 = vunpack.i.h.bf16 %v4097_v32  ;;  %v4098_v51 = vunpack.i.l.bf16 %v4097_v32  ;;  %v2459_v6 = vld [vmem:[%s383_s25] sm:$0xff]  ;;  %v3635_v45 = vld [vmem:[%s383_s25 + $0x8] sm:$0xff] }
 0x47a   : > { %2372 = vmatpush1.bf16.msra.mxu0 %v2354_v47  ;;  %v2357_v0 = vpack.c.bf16 %v2251_v16, %v2214_v11  ;;  %v2460_v24 = vpack.c.bf16 %v2459_v6, %v2459_v6  ;;  %v2548_v52 = vpack.c.bf16 %v3635_v45, %v3635_v45  ;;  %v5845_v11 = vld [vmem:[#allocation22_spill] sm:$0xff] }
 0x47b   : > { %v2286_v35 = vsel %vm467_vm0, %v4093_v18, %v4094_v10  ;;  %v2285_v36 = vsel %vm467_vm0, %v4098_v51, %v4093_v18  ;;  %v2287_v4 = vsel %vm467_vm0, %v4094_v10, %v4099_v59 }
 0x47c   : > { %v3657_v19 = vpack.c.bf16 %v5842_v40, %v2286_v35  ;;  %v3660_v26 = vpack.c.bf16 %v5842_v40, %v2285_v36  ;;  %2412 = vmatprep.subr.bf16.mxu1 %v2357_v0  ;;  %v2284_v44 = vpop.permute.xlu1 %2283  ;;  %v3666_v15 = vpack.c.bf16 %v5842_v40, %v2287_v4  ;;  %v5849_v36 = vld [vmem:[#allocation24_spill] sm:$0xff] }
 0x47d   : > { %2413 = vmatpush1.bf16.msra.mxu1 %v2356_v9  ;;  %v2288_v46 = vsel %vm467_vm0, %v4099_v59, %v2284_v44  ;;  %v5843_v9 = vld [vmem:[#allocation21_spill] sm:$0xff]  ;;  %v5847_v59 = vld [vmem:[#allocation23_spill] sm:$0xff] }
 0x47e   : > { %v3663_v34 = vpack.c.bf16 %v5842_v40, %v2288_v46  ;;  %3658 = vmatprep.subr.msk.bf16.mxu0 %vm5142_vm12, %v3657_v19 }
 0x47f   : > { %3661 = vmatpush1.bf16.msk.msra.mxu0 %vm5142_vm12, %v3660_v26 }
 0x480   : > { %3664 = vmatprep.subr.msk.bf16.mxu1 %vm5142_vm12, %v3663_v34  ;;  %2505 = vmatprep.subr.bf16.mxu0 %v4264_v63 }
 0x481   : > { %3667 = vmatpush1.bf16.msk.msra.mxu1 %vm5142_vm12, %v3666_v15 }
 0x482   : > { %3624 = vmatmul.mubr.msk.bf16.vlgmr.msra.gmra.mrb[8].mxu0 %vm1903_vm13, %v2301_v33  ;;  %2552 = vmatprep.subr.bf16.mxu1 %v4264_v63 }
 0x483   : > { %2506 = vmatpush1.bf16.msra.mxu0 %v4262_v25  ;;  %2537 = vmatprep.mubr.bf16.mxu0 %v5830_v53 }
 0x484   : > { %3625 = vmatmul.mubr.msk.bf16.vlgmr.msra.gmra.mrb[8].mxu1 %vm1903_vm13, %v2301_v33  ;;  %2507 = vmatprep.subr.bf16.mxu0 %v4267_v23 }
 0x485   : > { %2553 = vmatpush1.bf16.msra.mxu1 %v4262_v25  ;;  %2584 = vmatprep.mubr.bf16.mxu1 %v5830_v53 }
 0x486   : > { %2554 = vmatprep.subr.bf16.mxu1 %v4267_v23 }
 0x487   : > { %2508 = vmatpush1.bf16.msra.mxu0 %v4265_v41 }
 0x488   : > { %2509 = vmatprep.subr.bf16.mxu0 %v4270_v39 }
 0x489   : > { %2555 = vmatpush1.bf16.msra.mxu1 %v4265_v41 }
 0x48a   : > { %2556 = vmatprep.subr.bf16.mxu1 %v4270_v39 }
 0x48b   : > { %2510 = vmatpush1.bf16.msra.mxu0 %v4268_v57 }
 0x48c   : > { %2511 = vmatprep.subr.bf16.mxu0 %v4273_v8 }
 0x48d   : > { %2557 = vmatpush1.bf16.msra.mxu1 %v4268_v57 }
 0x48e   : > { %2558 = vmatprep.subr.bf16.mxu1 %v4273_v8 }
 0x48f   : > { %2512 = vmatpush1.bf16.msra.mxu0 %v4271_v54 }
 0x491   : > { %2559 = vmatpush1.bf16.msra.mxu1 %v4271_v54 }
 0x492   : > { %3634 = vmatmul.mubr.msk.bf16.vlgmr.msra.gmra.mrb[8].mxu0 %vm2501_vm14, %v2460_v24 }
 0x493   : > { %3005 = vmatprep.mubr.bf16.mxu0 %v5830_v53 }
 0x494   : > { %3636 = vmatmul.mubr.msk.bf16.vlgmr.msra.gmra.mrb[8].mxu1 %vm2501_vm14, %v2548_v52 }
 0x495   : > { %3046 = vmatprep.mubr.bf16.mxu1 %v5830_v53 }
 0x565   : > { %v2539_v47 = vpop.f32.mrb[8].mxu0 }
 0x566   : > { %v5369_v48 = vadd.f32 %v2539_v47, %v5843_v9  ;;  %v2541_v32 = vpop.f32.mrb[9].mxu0 }
 0x567   : > { %v5372_v16 = vadd.f32 %v2541_v32, %v5845_v11  ;;  %v2543_v10 = vpop.f32.mrb[10].mxu0  ;;  %v2586_v18 = vpop.f32.mrb[8].mxu1 }
 0x568   : > { %5844 = vst [vmem:[#allocation9_spill] sm:$0xff] %v5369_v48  ;;  %v5375_v51 = vadd.f32 %v2586_v18, %v5847_v59  ;;  %v2544_v0 = vpop.f32.mrb[11].mxu0  ;;  %v2588_v35 = vpop.f32.mrb[9].mxu1  ;;  %v5388_v34 = vmax.f32 %v5369_v48, 0.0 }
 0x569   : > { %5846 = vst [vmem:[#allocation11_spill] sm:$0xff] %v5372_v16  ;;  %v5378_v19 = vadd.f32 %v2588_v35, %v5849_v36  ;;  %v2590_v4 = vpop.f32.mrb[10].mxu1  ;;  %v5391_v15 = vmax.f32 %v5372_v16, 0.0 }
 0x56a   : > { %5848 = vst [vmem:[#allocation13_spill] sm:$0xff] %v5375_v51  ;;  %v5381_v26 = vmax.f32 %v5375_v51, 0.0  ;;  %v2591_v44 = vpop.f32.mrb[11].mxu1  ;;  %v2648_v39 = vmul.f32 %v5388_v34, %v4593_v38  ;;  %v2611_v57 = vmul.f32 %v5388_v34, %v4534_v12  ;;  %v2722_v9 = vmul.f32 %v5388_v34, %v4682_v37 }
 0x56b   : > { %5850 = vst [vmem:[#allocation21_spill] sm:$0xff] %v5378_v19  ;;  %v2649_v6 = vmul.f32 %v5391_v15, %v4580_v31  ;;  %v2612_v45 = vmul.f32 %v5391_v15, %v4537_v13  ;;  %v5414_v24 = vmax.f32 %v5378_v19, 0.0  ;;  %v2723_v32 = vmul.f32 %v5391_v15, %v4666_v29 }
 0x56c   : > { %v2650_v63 = vmul.f32 %v5381_v26, %v4603_v43  ;;  %v2613_v46 = vmul.f32 %v5381_v26, %v4558_v20  ;;  %v2724_v23 = vmul.f32 %v5381_v26, %v4693_v49  ;;  %v2687_v41 = vmul.f32 %v5381_v26, %v4646_v3 }
 0x56d   : > { %v4125_v52 = vpack.i.bf16 %v2649_v6, %v2648_v39  ;;  %v4120_v47 = vpack.i.bf16 %v2612_v45, %v2611_v57  ;;  %v2651_v11 = vmul.f32 %v5414_v24, %v4520_v5  ;;  %v2614_v10 = vmul.f32 %v5414_v24, %v4505_v61 }
 0x56e   : > { %v4105_v25 = vpack.i.bf16 %v2650_v63, %v4503_v60  ;;  %v4100_v33 = vpack.i.bf16 %v2613_v46, %v4498_v55  ;;  %v4115_v8 = vpack.i.bf16 %v2724_v23, %v4526_v7  ;;  %v4110_v54 = vpack.i.bf16 %v2687_v41, %v4513_v2 }
 0x56f   : > { %v2685_v18 = vmul.f32 %v5388_v34, %v4637_v58  ;;  %v2686_v59 = vmul.f32 %v5391_v15, %v4629_v56  ;;  %v4135_v0 = vpack.i.bf16 %v2723_v32, %v2722_v9  ;;  %v2765_v36 = vmul.f32 %v5414_v24, %v4725_v22  ;;  %v5853_v32 = vld [vmem:[#allocation5_spill] sm:$0xff] }
 0x570   : > { %4106 = vrot.lane.b32.xlu1 %v4105_v25, %s4304_s15  ;;  %4101 = vrot.lane.b32.xlu0 %v4100_v33, %s4305_s21  ;;  %v2725_v4 = vmul.f32 %v5414_v24, %v4621_v50  ;;  %v2688_v44 = vmul.f32 %v5414_v24, %v4560_v21  ;;  %v2763_v63 = vmul.f32 %v5391_v15, %v4717_v1 }
 0x571   : > { %v4130_v35 = vpack.i.bf16 %v2686_v59, %v2685_v18  ;;  %v2764_v46 = vmul.f32 %v5381_v26, %v4711_v62  ;;  %v2762_v25 = vmul.f32 %v5388_v34, %v4539_v14  ;;  %v2800_v23 = vmul.f32 %v5391_v15, %v5814_v17 }
 0x572   : > { %v2801_v39 = vmul.f32 %v5381_v26, %v5812_v30  ;;  %v2837_v57 = vmul.f32 %v5391_v15, %v5815_v27 }
 0x573   : > { %v4145_v33 = vpack.i.bf16 %v2765_v36, %v2762_v25  ;;  %v4140_v41 = vpack.i.bf16 %v2764_v46, %v2763_v63  ;;  %v5857_v63 = vld [vmem:[#allocation19_spill] sm:$0xff] }
 0x574   : > { %4116 = vrot.lane.b32.xlu1 %v4115_v8, %s4302_s23  ;;  %4111 = vrot.lane.b32.xlu0 %v4110_v54, %s4303_s27  ;;  %v2838_v8 = vmul.f32 %v5381_v26, %v5813_v42  ;;  %v5851_v54 = vld [vmem:[#allocation10_spill] sm:$0xff]  ;;  %v4150_v45 = vpack.i.bf16 %v2801_v39, %v2800_v23  ;;  %v2876_v46 = vmul.f32 %v5414_v24, %v5857_v63  ;;  %v5858_v25 = vld [vmem:[#allocation7_spill] sm:$0xff]  ;;  %v5860_v39 = vld [vmem:[#allocation20_spill] sm:$0xff] }
 0x575   : > { %v2802_v6 = vmul.f32 %v5414_v24, %v5851_v54 }
 0x578   : > { %4126 = vrot.lane.b32.xlu1 %v4125_v52, %s4304_s15  ;;  %4121 = vrot.lane.b32.xlu0 %v4120_v47, %s4305_s21  ;;  %v4155_v52 = vpack.i.bf16 %v2838_v8, %v2837_v57  ;;  %v5852_v47 = vld [vmem:[#allocation15_spill] sm:$0xff]  ;;  %v5861_v57 = vld [vmem:[#allocation8_spill] sm:$0xff] }
 0x579   : > { %v2839_v9 = vmul.f32 %v5414_v24, %v5852_v47  ;;  %v5862_v8 = vld [vmem:[#allocation12_spill] sm:$0xff] }
 0x57c   : > { %2665 = vrot.lane.b32.xlu1 %v2651_v11, %s4304_s15  ;;  %2628 = vrot.lane.b32.xlu0 %v2614_v10, %s4305_s21  ;;  %v2799_v11 = vmul.f32 %v5388_v34, %v5853_v32  ;;  %v5854_v10 = vld [vmem:[#allocation6_spill] sm:$0xff] }
 0x57d   : > { %v2836_v18 = vmul.f32 %v5388_v34, %v5854_v10 }
 0x57e   : > { %v4160_v59 = vpack.i.bf16 %v2802_v6, %v2799_v11  ;;  %v5863_v6 = vld [vmem:[#allocation16_spill] sm:$0xff] }
 0x580   : > { %4136 = vrot.lane.b32.xlu1 %v4135_v0, %s4302_s23  ;;  %4131 = vrot.lane.b32.xlu0 %v4130_v35, %s4303_s27  ;;  %v4165_v0 = vpack.i.bf16 %v2839_v9, %v2836_v18  ;;  %v5855_v35 = vld [vmem:[#allocation17_spill] sm:$0xff] }
 0x581   : > { %v2874_v36 = vmul.f32 %v5391_v15, %v5855_v35 }
 0x584   : > { %2739 = vrot.lane.b32.xlu1 %v2725_v4, %s4302_s23  ;;  %2702 = vrot.lane.b32.xlu0 %v2688_v44, %s4303_s27  ;;  %v5856_v4 = vld [vmem:[#allocation18_spill] sm:$0xff] }
 0x585   : > { %v2875_v44 = vmul.f32 %v5381_v26, %v5856_v4 }
 0x587   : > { %v4170_v23 = vpack.i.bf16 %v2875_v44, %v2874_v36 }
 0x588   : > { %4146 = vrot.lane.b32.xlu1 %v4145_v33, %s4301_s20  ;;  %4141 = vrot.lane.b32.xlu0 %v4140_v41, %s4301_s20  ;;  %v2873_v33 = vmul.f32 %v5388_v34, %v5858_v25 }
 0x58a   : > { %v4175_v41 = vpack.i.bf16 %v2876_v46, %v2873_v33 }
 0x58c   : > { %4151 = vrot.lane.b32.xlu1 %v4150_v45, %s4300_s17  ;;  %4156 = vrot.lane.b32.xlu0 %v4155_v52, %s4299_s29  ;;  %v5488_v45 = vpop.permute.xlu0 %2780  ;;  %v5490_v52 = vpop.permute.xlu1 %2817 }
 0x590   : > { %4161 = vrot.lane.b32.xlu1 %v4160_v59, %s4300_s17  ;;  %4166 = vrot.lane.b32.xlu0 %v4165_v0, %s4299_s29  ;;  %v5492_v9 = vpop.permute.xlu0 %2854 }
 0x594   : > { %4171 = vrot.lane.b32.xlu1 %v4170_v23, %s5859_s12  ;;  %4176 = vrot.lane.b32.xlu0 %v4175_v41, %s5859_s12 }
 0x598   : > { %2891 = vrot.lane.b32.xlu1 %v5860_v39, %s5859_s12  ;;  %3238 = vrot.lane.b32.xlu0 %v5861_v57, %s4301_s20 }
 0x59c   : > { %3275 = vrot.lane.b32.xlu1 %v5862_v8, %s4300_s17  ;;  %3312 = vrot.lane.b32.xlu0 %v5863_v6, %s4299_s29 }
 0x5e2   : > { %v4107_v11 = vpop.permute.xlu1 %4106  ;;  %v4102_v18 = vpop.permute.xlu0 %4101 }
 0x5e3   : > { %v4109_v36 = vunpack.i.h.bf16 %v4107_v11  ;;  %v4108_v44 = vunpack.i.l.bf16 %v4107_v11  ;;  %v4103_v46 = vunpack.i.l.bf16 %v4102_v18  ;;  %v4104_v6 = vunpack.i.h.bf16 %v4102_v18 }
 0x5e6   : > { %v4117_v59 = vpop.permute.xlu1 %4116  ;;  %v4112_v0 = vpop.permute.xlu0 %4111 }
 0x5e7   : > { %v4118_v47 = vunpack.i.l.bf16 %v4117_v59 }
 0x5ea   : > { %v4127_v33 = vpop.permute.xlu1 %4126  ;;  %v4122_v23 = vpop.permute.xlu0 %4121 }
 0x5eb   : > { %v4129_v41 = vunpack.i.h.bf16 %v4127_v33  ;;  %v4128_v57 = vunpack.i.l.bf16 %v4127_v33  ;;  %v4124_v8 = vunpack.i.h.bf16 %v4122_v23  ;;  %v4123_v19 = vunpack.i.l.bf16 %v4122_v23 }
 0x5ed   : > { %v2669_v51 = vsel %vm625_vm6, %v4129_v41, %v4109_v36  ;;  %v2667_v16 = vsel %vm625_vm6, %v4108_v44, %v4128_v57  ;;  %v2630_v48 = vsel %vm516_vm7, %v4103_v46, %v4123_v19  ;;  %v2632_v39 = vsel %vm516_vm7, %v4124_v8, %v4104_v6 }
 0x5ee   : > { %v2950_v25 = vpack.c.bf16 %v2667_v16, %v2630_v48  ;;  %v2666_v63 = vpop.permute.xlu1 %2665  ;;  %v2629_v4 = vpop.permute.xlu0 %2628  ;;  %v2631_v11 = vsel %vm516_vm7, %v4123_v19, %v4124_v8  ;;  %v2668_v35 = vsel %vm625_vm6, %v4128_v57, %v4129_v41  ;;  %v2952_v32 = vpack.c.bf16 %v2669_v51, %v2632_v39 }
 0x5ef   : > { %v2670_v33 = vsel %vm625_vm6, %v4109_v36, %v2666_v63  ;;  %v2633_v23 = vsel %vm516_vm7, %v4104_v6, %v2629_v4  ;;  %v2951_v18 = vpack.c.bf16 %v2668_v35, %v2631_v11  ;;  %v4119_v44 = vunpack.i.h.bf16 %v4117_v59 }
 0x5f0   : > { %v2953_v10 = vpack.c.bf16 %v2670_v33, %v2633_v23  ;;  %v4113_v46 = vunpack.i.l.bf16 %v4112_v0  ;;  %v4114_v41 = vunpack.i.h.bf16 %v4112_v0 }
 0x5f1   : > { %2973 = vmatprep.subr.bf16.mxu0 %v2951_v18 }
 0x5f2   : > { %2974 = vmatpush1.bf16.msra.mxu0 %v2950_v25  ;;  %v4137_v54 = vpop.permute.xlu1 %4136  ;;  %3014 = vmatprep.subr.bf16.mxu1 %v2953_v10  ;;  %v4132_v48 = vpop.permute.xlu0 %4131 }
 0x5f3   : > { %v4139_v16 = vunpack.i.h.bf16 %v4137_v54  ;;  %v4138_v42 = vunpack.i.l.bf16 %v4137_v54  ;;  %v4134_v19 = vunpack.i.h.bf16 %v4132_v48  ;;  %v4133_v8 = vunpack.i.l.bf16 %v4132_v48  ;;  %3015 = vmatpush1.bf16.msra.mxu1 %v2952_v32 }
 0x5f5   : > { %v2743_v63 = vsel %vm843_vm4, %v4139_v16, %v4119_v44  ;;  %v2741_v35 = vsel %vm843_vm4, %v4118_v47, %v4138_v42  ;;  %v2704_v51 = vsel %vm734_vm5, %v4113_v46, %v4133_v8  ;;  %v2706_v4 = vsel %vm734_vm5, %v4134_v19, %v4114_v41 }
 0x5f6   : > { %v2954_v39 = vpack.c.bf16 %v2741_v35, %v2704_v51  ;;  %v2740_v59 = vpop.permute.xlu1 %2739  ;;  %v2703_v25 = vpop.permute.xlu0 %2702  ;;  %v2705_v10 = vsel %vm734_vm5, %v4133_v8, %v4134_v19  ;;  %v2742_v36 = vsel %vm843_vm4, %v4138_v42, %v4139_v16  ;;  %v2956_v6 = vpack.c.bf16 %v2743_v63, %v2706_v4 }
 0x5f7   : > { %v2744_v54 = vsel %vm843_vm4, %v4119_v44, %v2740_v59  ;;  %v2707_v32 = vsel %vm734_vm5, %v4114_v41, %v2703_v25  ;;  %v2955_v0 = vpack.c.bf16 %v2742_v36, %v2705_v10 }
 0x5f8   : > { %v2957_v57 = vpack.c.bf16 %v2744_v54, %v2707_v32 }
 0x5f9   : > { %2975 = vmatprep.subr.bf16.mxu0 %v2955_v0 }
 0x5fa   : > { %2976 = vmatpush1.bf16.msra.mxu0 %v2954_v39  ;;  %v4147_v47 = vpop.permute.xlu1 %4146  ;;  %v4142_v11 = vpop.permute.xlu0 %4141  ;;  %3016 = vmatprep.subr.bf16.mxu1 %v2957_v57 }
 0x5fb   : > { %v4149_v33 = vunpack.i.h.bf16 %v4147_v47  ;;  %v4148_v23 = vunpack.i.l.bf16 %v4147_v47  ;;  %v4144_v18 = vunpack.i.h.bf16 %v4142_v11  ;;  %v4143_v46 = vunpack.i.l.bf16 %v4142_v11  ;;  %3017 = vmatpush1.bf16.msra.mxu1 %v2956_v6 }
 0x5fd   : > { %v2784_v48 = vsel %vm794_vm3, %v4144_v18, %v4149_v33  ;;  %v2782_v42 = vsel %vm794_vm3, %v4148_v23, %v4143_v46  ;;  %v2783_v44 = vsel %vm794_vm3, %v4143_v46, %v4144_v18  ;;  %v2785_v16 = vsel %vm794_vm3, %v4149_v33, %v5488_v45 }
 0x5fe   : > { %v2960_v19 = vpack.c.bf16 %v2784_v48, %v5381_v26  ;;  %v2958_v8 = vpack.c.bf16 %v2782_v42, %v5388_v34  ;;  %v4152_v41 = vpop.permute.xlu1 %4151  ;;  %v4157_v63 = vpop.permute.xlu0 %4156  ;;  %v2959_v35 = vpack.c.bf16 %v2783_v44, %v5391_v15  ;;  %v2961_v51 = vpack.c.bf16 %v2785_v16, %v5414_v24 }
 0x5ff   : > { %v4154_v4 = vunpack.i.h.bf16 %v4152_v41  ;;  %v4153_v39 = vunpack.i.l.bf16 %v4152_v41  ;;  %v4159_v59 = vunpack.i.h.bf16 %v4157_v63  ;;  %v4158_v25 = vunpack.i.l.bf16 %v4157_v63 }
 0x600   : > { %2977 = vmatprep.subr.bf16.mxu0 %v2959_v35  ;;  %3018 = vmatprep.subr.bf16.mxu1 %v2961_v51 }
 0x601   : > { %2978 = vmatpush1.bf16.msra.mxu0 %v2958_v8  ;;  %3019 = vmatpush1.bf16.msra.mxu1 %v2960_v19  ;;  %v2820_v45 = vsel %vm685_vm2, %v4153_v39, %v4154_v4  ;;  %v2857_v26 = vsel %vm576_vm1, %v4158_v25, %v4159_v59 }
 0x602   : > { %v4162_v10 = vpop.permute.xlu1 %4161  ;;  %v4167_v34 = vpop.permute.xlu0 %4166  ;;  %v2963_v36 = vpack.c.bf16 %v2857_v26, %v2820_v45 }
 0x603   : > { %v4164_v54 = vunpack.i.h.bf16 %v4162_v10  ;;  %v4163_v32 = vunpack.i.l.bf16 %v4162_v10  ;;  %v4169_v15 = vunpack.i.h.bf16 %v4167_v34  ;;  %v4168_v0 = vunpack.i.l.bf16 %v4167_v34 }
 0x604   : > { %2979 = vmatprep.subr.bf16.mxu0 %v2963_v36 }
 0x605   : > { %v2819_v24 = vsel %vm685_vm2, %v4163_v32, %v4153_v39  ;;  %v2821_v57 = vsel %vm685_vm2, %v4154_v4, %v4164_v54  ;;  %v2856_v6 = vsel %vm576_vm1, %v4168_v0, %v4158_v25  ;;  %v2858_v47 = vsel %vm576_vm1, %v4159_v59, %v4169_v15  ;;  %v2909_v25 = vld [vmem:[%s5736_s5] sm:$0xf] }
 0x606   : > { %v2962_v11 = vpack.c.bf16 %v2856_v6, %v2819_v24  ;;  %v2964_v33 = vpack.c.bf16 %v2858_v47, %v2821_v57  ;;  %v4172_v23 = vpop.permute.xlu1 %4171  ;;  %v4177_v18 = vpop.permute.xlu0 %4176  ;;  %v2822_v46 = vsel %vm685_vm2, %v4164_v54, %v5490_v52  ;;  %v2859_v48 = vsel %vm576_vm1, %v4169_v15, %v5492_v9 }
 0x607   : > { %v4174_v42 = vunpack.i.h.bf16 %v4172_v23  ;;  %v4173_v44 = vunpack.i.l.bf16 %v4172_v23  ;;  %v4179_v16 = vunpack.i.h.bf16 %v4177_v18  ;;  %v4178_v19 = vunpack.i.l.bf16 %v4177_v18 }
 0x608   : > { %2980 = vmatpush1.bf16.msra.mxu0 %v2962_v11  ;;  %v2965_v8 = vpack.c.bf16 %v2859_v48, %v2822_v46 }
 0x609   : > { %v2894_v41 = vsel %vm467_vm0, %v4173_v44, %v4174_v42  ;;  %v2893_v63 = vsel %vm467_vm0, %v4178_v19, %v4173_v44  ;;  %v2895_v51 = vsel %vm467_vm0, %v4174_v42, %v4179_v16  ;;  %v5864_v19 = vld [vmem:[#allocation14_spill] sm:$0xff] }
 0x60a   : > { %v3669_v35 = vpack.c.bf16 %v5842_v40, %v2894_v41  ;;  %v3672_v4 = vpack.c.bf16 %v5842_v40, %v2893_v63  ;;  %3020 = vmatprep.subr.bf16.mxu1 %v2965_v8  ;;  %v2892_v52 = vpop.permute.xlu1 %2891  ;;  %v3678_v59 = vpack.c.bf16 %v5842_v40, %v2895_v51  ;;  %v5867_v51 = vld [vmem:[#allocation5_spill] sm:$0xff] }
 0x60b   : > { %3021 = vmatpush1.bf16.msra.mxu1 %v2964_v33  ;;  %v2896_v9 = vsel %vm467_vm0, %v4179_v16, %v2892_v52 }
 0x60c   : > { %v3675_v39 = vpack.c.bf16 %v5842_v40, %v2896_v9  ;;  %3670 = vmatprep.subr.msk.bf16.mxu0 %vm5142_vm12, %v3669_v35 }
 0x60d   : > { %3673 = vmatpush1.bf16.msk.msra.mxu0 %vm5142_vm12, %v3672_v4 }
 0x60e   : > { %3676 = vmatprep.subr.msk.bf16.mxu1 %vm5142_vm12, %v3675_v39  ;;  %v5869_v39 = vld [vmem:[#allocation17_spill] sm:$0xff] }
 0x60f   : > { %3679 = vmatpush1.bf16.msk.msra.mxu1 %vm5142_vm12, %v3678_v59 }
 0x610   : > { %3637 = vmatmul.mubr.msk.bf16.vlgmr.msra.gmra.mrb[12].mxu0 %vm1903_vm13, %v2909_v25 }
 0x611   : > { %3463 = vmatprep.mubr.bf16.mxu0 %v5830_v53 }
 0x612   : > { %3638 = vmatmul.mubr.msk.bf16.vlgmr.msra.gmra.mrb[12].mxu1 %vm1903_vm13, %v2909_v25  ;;  %v5870_v25 = vld [vmem:[#allocation18_spill] sm:$0xff] }
 0x613   : > { %3504 = vmatprep.mubr.bf16.mxu1 %v5830_v53 }
 0x6e3   : > { %v3007_v45 = vpop.f32.mrb[12].mxu0 }
 0x6e4   : > { %v3009_v26 = vpop.f32.mrb[13].mxu0  ;;  %v5558_v6 = vmax.f32 %v3007_v45, 0.0 }
 0x6e5   : > { %v3048_v10 = vpop.f32.mrb[12].mxu1  ;;  %v3011_v34 = vpop.f32.mrb[14].mxu0  ;;  %v5560_v47 = vmax.f32 %v3009_v26, 0.0  ;;  %v5871_v26 = vld [vmem:[#allocation19_spill] sm:$0xff] }
 0x6e6   : > { %v5552_v36 = vmax.f32 %v3048_v10, 0.0  ;;  %v3050_v54 = vpop.f32.mrb[13].mxu1  ;;  %v3012_v32 = vpop.f32.mrb[15].mxu0  ;;  %v3220_v44 = vmul.f32 %v5558_v6, %v4539_v14  ;;  %v5865_v14 = vld [vmem:[#allocation10_spill] sm:$0xff]  ;;  %v5872_v34 = vld [vmem:[#allocation7_spill] sm:$0xff] }
 0x6e7   : > { %v3052_v15 = vpop.f32.mrb[14].mxu1  ;;  %v5582_v18 = vmax.f32 %v3050_v54, 0.0  ;;  %v3144_v48 = vmul.f32 %v5560_v47, %v4629_v56  ;;  %v3221_v56 = vmul.f32 %v5560_v47, %v4717_v1  ;;  %v3295_v1 = vmul.f32 %v5560_v47, %v5815_v27  ;;  %v5868_v27 = vld [vmem:[#allocation6_spill] sm:$0xff] }
 0x6e8   : > { %v3053_v0 = vpop.f32.mrb[15].mxu1  ;;  %v3108_v24 = vmul.f32 %v5552_v36, %v4603_v43  ;;  %v3071_v57 = vmul.f32 %v5552_v36, %v4558_v20  ;;  %v3182_v33 = vmul.f32 %v5552_v36, %v4693_v49  ;;  %v3145_v23 = vmul.f32 %v5552_v36, %v4646_v3 }
 0x6e9   : > { %v3106_v20 = vmul.f32 %v5558_v6, %v4593_v38  ;;  %v3069_v43 = vmul.f32 %v5558_v6, %v4534_v12  ;;  %v3107_v49 = vmul.f32 %v5560_v47, %v4580_v31  ;;  %v3070_v3 = vmul.f32 %v5560_v47, %v4537_v13  ;;  %v5873_v0 = vld [vmem:[#allocation20_spill] sm:$0xff] }
 0x6ea   : > { %v4185_v53 = vpack.i.bf16 %v3108_v24, %v4503_v60  ;;  %v4180_v11 = vpack.i.bf16 %v3071_v57, %v4498_v55  ;;  %v4195_v60 = vpack.i.bf16 %v3182_v33, %v4526_v7  ;;  %v4190_v55 = vpack.i.bf16 %v3145_v23, %v4513_v2  ;;  %v5650_v24 = vpop.permute.xlu0 %3238  ;;  %v5652_v57 = vpop.permute.xlu1 %3275 }
 0x6eb   : > { %v4205_v38 = vpack.i.bf16 %v3107_v49, %v3106_v20  ;;  %v4200_v46 = vpack.i.bf16 %v3070_v3, %v3069_v43  ;;  %v3180_v2 = vmul.f32 %v5558_v6, %v4682_v37  ;;  %v3181_v7 = vmul.f32 %v5560_v47, %v4666_v29 }
 0x6ec   : > { %4186 = vrot.lane.b32.xlu1 %v4185_v53, %s4304_s15  ;;  %4181 = vrot.lane.b32.xlu0 %v4180_v11, %s4305_s21  ;;  %v3109_v12 = vmul.f32 %v5582_v18, %v4520_v5  ;;  %v3072_v13 = vmul.f32 %v5582_v18, %v4505_v61  ;;  %v3143_v31 = vmul.f32 %v5558_v6, %v4637_v58 }
 0x6ed   : > { %v4215_v37 = vpack.i.bf16 %v3181_v7, %v3180_v2  ;;  %v3223_v5 = vmul.f32 %v5582_v18, %v4725_v22  ;;  %v3183_v61 = vmul.f32 %v5582_v18, %v4621_v50  ;;  %v3146_v58 = vmul.f32 %v5582_v18, %v4560_v21 }
 0x6ee   : > { %v4210_v42 = vpack.i.bf16 %v3144_v48, %v3143_v31  ;;  %v3222_v29 = vmul.f32 %v5552_v36, %v4711_v62  ;;  %v3258_v50 = vmul.f32 %v5560_v47, %v5814_v17  ;;  %v3259_v21 = vmul.f32 %v5552_v36, %v5812_v30  ;;  %v5866_v17 = vld [vmem:[#allocation15_spill] sm:$0xff]  ;;  %v5654_v53 = vpop.permute.xlu0 %3312 }
 0x6ef   : > { %v4225_v22 = vpack.i.bf16 %v3223_v5, %v3220_v44  ;;  %v3296_v62 = vmul.f32 %v5552_v36, %v5864_v19  ;;  %v3260_v8 = vmul.f32 %v5582_v18, %v5865_v14  ;;  %v3297_v35 = vmul.f32 %v5582_v18, %v5866_v17 }
 0x6f0   : > { %4196 = vrot.lane.b32.xlu1 %v4195_v60, %s4302_s23  ;;  %4191 = vrot.lane.b32.xlu0 %v4190_v55, %s4303_s27  ;;  %v4220_v16 = vpack.i.bf16 %v3222_v29, %v3221_v56  ;;  %v4230_v41 = vpack.i.bf16 %v3259_v21, %v3258_v50  ;;  %v3257_v30 = vmul.f32 %v5558_v6, %v5867_v51 }
 0x6f1   : > { %v4235_v63 = vpack.i.bf16 %v3296_v62, %v3295_v1  ;;  %v3294_v4 = vmul.f32 %v5558_v6, %v5868_v27  ;;  %v3332_v59 = vmul.f32 %v5560_v47, %v5869_v39  ;;  %v3333_v45 = vmul.f32 %v5552_v36, %v5870_v25 }
 0x6f2   : > { %v4240_v52 = vpack.i.bf16 %v3260_v8, %v3257_v30  ;;  %v3334_v10 = vmul.f32 %v5582_v18, %v5871_v26  ;;  %v3331_v54 = vmul.f32 %v5558_v6, %v5872_v34 }
 0x6f3   : > { %v4245_v9 = vpack.i.bf16 %v3297_v35, %v3294_v4  ;;  %v4250_v32 = vpack.i.bf16 %v3333_v45, %v3332_v59 }
 0x6f4   : > { %4206 = vrot.lane.b32.xlu1 %v4205_v38, %s4304_s15  ;;  %4201 = vrot.lane.b32.xlu0 %v4200_v46, %s4305_s21  ;;  %v4255_v15 = vpack.i.bf16 %v3334_v10, %v3331_v54 }
 0x6f8   : > { %3123 = vrot.lane.b32.xlu1 %v3109_v12, %s4304_s15  ;;  %3086 = vrot.lane.b32.xlu0 %v3072_v13, %s4305_s21 }
 0x6fc   : > { %4216 = vrot.lane.b32.xlu1 %v4215_v37, %s4302_s23  ;;  %4211 = vrot.lane.b32.xlu0 %v4210_v42, %s4303_s27 }
 0x700   : > { %3197 = vrot.lane.b32.xlu1 %v3183_v61, %s4302_s23  ;;  %3160 = vrot.lane.b32.xlu0 %v3146_v58, %s4303_s27 }
 0x704   : > { %4226 = vrot.lane.b32.xlu1 %v4225_v22, %s4301_s20  ;;  %4221 = vrot.lane.b32.xlu0 %v4220_v16, %s4301_s20  ;;  %s5874_s20 = sadd.s32 4294967295, %s4296_s11  }
 0x705   : > { %s3606_s23 = sshll.u32 %s5874_s20, 2 }
 0x706   : > { %p386_p9 = scmp.lt.s32.totalorder %s3606_s23, 7 }
 0x708   : > { %4231 = vrot.lane.b32.xlu1 %v4230_v41, %s4300_s17  ;;  %4236 = vrot.lane.b32.xlu0 %v4235_v63, %s4299_s29  ;;  %s5885_s23 = smov (!%p386_p9, %s3606_s23), 7 }
 0x709   : > { %s3607_s27 = sshll.u32 %s5885_s23, 3 }
 0x70a   : > { %s389_s18 = scalar_lea.vmem %s5740_s9, %s3607_s27 }
 0x70c   : > { %4241 = vrot.lane.b32.xlu1 %v4240_v52, %s4300_s17  ;;  %4246 = vrot.lane.b32.xlu0 %v4245_v9, %s4299_s29 }
 0x710   : > { %4251 = vrot.lane.b32.xlu1 %v4250_v32, %s5859_s12  ;;  %4256 = vrot.lane.b32.xlu0 %v4255_v15, %s5859_s12 }
 0x714   : > { %3349 = vrot.lane.b32.xlu1 %v5873_v0, %s5859_s12 }
 0x75e   : > { %v4187_v11 = vpop.permute.xlu1 %4186  ;;  %v4182_v33 = vpop.permute.xlu0 %4181 }
 0x75f   : > { %v4189_v43 = vunpack.i.h.bf16 %v4187_v11  ;;  %v4188_v60 = vunpack.i.l.bf16 %v4187_v11  ;;  %v4183_v55 = vunpack.i.l.bf16 %v4182_v33  ;;  %v4184_v12 = vunpack.i.h.bf16 %v4182_v33 }
 0x762   : > { %v4197_v23 = vpop.permute.xlu1 %4196  ;;  %v4192_v20 = vpop.permute.xlu0 %4191 }
 0x763   : > { %v4199_v21 = vunpack.i.h.bf16 %v4197_v23  ;;  %v4198_v1 = vunpack.i.l.bf16 %v4197_v23  ;;  %v4193_v19 = vunpack.i.l.bf16 %v4192_v20  ;;  %v4194_v35 = vunpack.i.h.bf16 %v4192_v20 }
 0x766   : > { %v4207_v49 = vpop.permute.xlu1 %4206  ;;  %v4202_v3 = vpop.permute.xlu0 %4201 }
 0x767   : > { %v4209_v38 = vunpack.i.h.bf16 %v4207_v49  ;;  %v4208_v46 = vunpack.i.l.bf16 %v4207_v49  ;;  %v4204_v2 = vunpack.i.h.bf16 %v4202_v3  ;;  %v4203_v7 = vunpack.i.l.bf16 %v4202_v3 }
 0x769   : > { %v3127_v13 = vsel %vm625_vm6, %v4209_v38, %v4189_v43  ;;  %v3125_v31 = vsel %vm625_vm6, %v4188_v60, %v4208_v46  ;;  %v3088_v48 = vsel %vm516_vm7, %v4183_v55, %v4203_v7  ;;  %v3090_v37 = vsel %vm516_vm7, %v4204_v2, %v4184_v12 }
 0x76a   : > { %v3408_v42 = vpack.c.bf16 %v3125_v31, %v3088_v48  ;;  %v3124_v5 = vpop.permute.xlu1 %3123  ;;  %v3087_v61 = vpop.permute.xlu0 %3086  ;;  %v3089_v58 = vsel %vm516_vm7, %v4203_v7, %v4204_v2  ;;  %v3126_v56 = vsel %vm625_vm6, %v4208_v46, %v4209_v38  ;;  %v3410_v16 = vpack.c.bf16 %v3127_v13, %v3090_v37 }
 0x76b   : > { %v3128_v29 = vsel %vm625_vm6, %v4189_v43, %v3124_v5  ;;  %v3091_v44 = vsel %vm516_vm7, %v4184_v12, %v3087_v61  ;;  %v3409_v22 = vpack.c.bf16 %v3126_v56, %v3089_v58 }
 0x76c   : > { %v3411_v50 = vpack.c.bf16 %v3128_v29, %v3091_v44 }
 0x76d   : > { %3431 = vmatprep.subr.bf16.mxu0 %v3409_v22 }
 0x76e   : > { %3432 = vmatpush1.bf16.msra.mxu0 %v3408_v42  ;;  %v4217_v62 = vpop.permute.xlu1 %4216  ;;  %3472 = vmatprep.subr.bf16.mxu1 %v3411_v50  ;;  %v4212_v14 = vpop.permute.xlu0 %4211 }
 0x76f   : > { %v4219_v8 = vunpack.i.h.bf16 %v4217_v62  ;;  %v4218_v41 = vunpack.i.l.bf16 %v4217_v62  ;;  %v4214_v63 = vunpack.i.h.bf16 %v4212_v14  ;;  %v4213_v17 = vunpack.i.l.bf16 %v4212_v14  ;;  %3473 = vmatpush1.bf16.msra.mxu1 %v3410_v16 }
 0x771   : > { %v3201_v51 = vsel %vm843_vm4, %v4219_v8, %v4199_v21  ;;  %v3199_v30 = vsel %vm843_vm4, %v4198_v1, %v4218_v41  ;;  %v3162_v27 = vsel %vm734_vm5, %v4193_v19, %v4213_v17  ;;  %v3164_v4 = vsel %vm734_vm5, %v4214_v63, %v4194_v35 }
 0x772   : > { %v3412_v52 = vpack.c.bf16 %v3199_v30, %v3162_v27  ;;  %v3198_v9 = vpop.permute.xlu1 %3197  ;;  %v3161_v39 = vpop.permute.xlu0 %3160  ;;  %v3163_v59 = vsel %vm734_vm5, %v4213_v17, %v4214_v63  ;;  %v3200_v25 = vsel %vm843_vm4, %v4218_v41, %v4219_v8  ;;  %v3414_v54 = vpack.c.bf16 %v3201_v51, %v3164_v4 }
 0x773   : > { %v3202_v45 = vsel %vm843_vm4, %v4199_v21, %v3198_v9  ;;  %v3165_v26 = vsel %vm734_vm5, %v4194_v35, %v3161_v39  ;;  %v3413_v10 = vpack.c.bf16 %v3200_v25, %v3163_v59  ;;  %v3367_v9 = vld [vmem:[%s5737_s6] sm:$0xf] }
 0x774   : > { %v3415_v34 = vpack.c.bf16 %v3202_v45, %v3165_v26  ;;  %v5875_v39 = vld [vmem:[#allocation9_spill] sm:$0xff]  ;;  %v5876_v45 = vld [vmem:[#allocation11_spill] sm:$0xff] }
 0x775   : > { %3433 = vmatprep.subr.bf16.mxu0 %v3413_v10 }
 0x776   : > { %3434 = vmatpush1.bf16.msra.mxu0 %v3412_v52  ;;  %v4227_v32 = vpop.permute.xlu1 %4226  ;;  %v4222_v15 = vpop.permute.xlu0 %4221  ;;  %3474 = vmatprep.subr.bf16.mxu1 %v3415_v34  ;;  %v5877_v34 = vld [vmem:[#allocation13_spill] sm:$0xff] }
 0x777   : > { %v4229_v0 = vunpack.i.h.bf16 %v4227_v32  ;;  %v4228_v11 = vunpack.i.l.bf16 %v4227_v32  ;;  %v4224_v33 = vunpack.i.h.bf16 %v4222_v15  ;;  %v4223_v23 = vunpack.i.l.bf16 %v4222_v15  ;;  %3475 = vmatpush1.bf16.msra.mxu1 %v3414_v54 }
 0x779   : > { %v3242_v20 = vsel %vm794_vm3, %v4224_v33, %v4229_v0  ;;  %v3240_v43 = vsel %vm794_vm3, %v4228_v11, %v4223_v23  ;;  %v3241_v60 = vsel %vm794_vm3, %v4223_v23, %v4224_v33  ;;  %v3243_v55 = vsel %vm794_vm3, %v4229_v0, %v5650_v24  ;;  %v5878_v0 = vld [vmem:[#allocation21_spill] sm:$0xff] }
 0x77a   : > { %v3418_v49 = vpack.c.bf16 %v3242_v20, %v5552_v36  ;;  %v3416_v3 = vpack.c.bf16 %v3240_v43, %v5558_v6  ;;  %v4232_v38 = vpop.permute.xlu1 %4231  ;;  %v4237_v46 = vpop.permute.xlu0 %4236  ;;  %v3417_v2 = vpack.c.bf16 %v3241_v60, %v5560_v47  ;;  %v3419_v7 = vpack.c.bf16 %v3243_v55, %v5582_v18 }
 0x77b   : > { %v4234_v12 = vunpack.i.h.bf16 %v4232_v38  ;;  %v4233_v13 = vunpack.i.l.bf16 %v4232_v38  ;;  %v4239_v31 = vunpack.i.h.bf16 %v4237_v46  ;;  %v4238_v48 = vunpack.i.l.bf16 %v4237_v46 }
 0x77c   : > { %3435 = vmatprep.subr.bf16.mxu0 %v3417_v2  ;;  %3476 = vmatprep.subr.bf16.mxu1 %v3419_v7 }
 0x77d   : > { %3436 = vmatpush1.bf16.msra.mxu0 %v3416_v3  ;;  %3477 = vmatpush1.bf16.msra.mxu1 %v3418_v49  ;;  %v3278_v24 = vsel %vm685_vm2, %v4233_v13, %v4234_v12  ;;  %v3315_v36 = vsel %vm576_vm1, %v4238_v48, %v4239_v31 }
 0x77e   : > { %v4242_v37 = vpop.permute.xlu1 %4241  ;;  %v4247_v6 = vpop.permute.xlu0 %4246  ;;  %v3421_v42 = vpack.c.bf16 %v3315_v36, %v3278_v24 }
 0x77f   : > { %v4244_v5 = vunpack.i.h.bf16 %v4242_v37  ;;  %v4243_v61 = vunpack.i.l.bf16 %v4242_v37  ;;  %v4249_v47 = vunpack.i.h.bf16 %v4247_v6  ;;  %v4248_v58 = vunpack.i.l.bf16 %v4247_v6 }
 0x780   : > { %3437 = vmatprep.subr.bf16.mxu0 %v3421_v42 }
 0x781   : > { %v3277_v18 = vsel %vm685_vm2, %v4243_v61, %v4233_v13  ;;  %v3279_v56 = vsel %vm685_vm2, %v4234_v12, %v4244_v5  ;;  %v3314_v29 = vsel %vm576_vm1, %v4248_v58, %v4238_v48  ;;  %v3316_v44 = vsel %vm576_vm1, %v4239_v31, %v4249_v47 }
 0x782   : > { %v3420_v22 = vpack.c.bf16 %v3314_v29, %v3277_v18  ;;  %v3422_v50 = vpack.c.bf16 %v3316_v44, %v3279_v56  ;;  %v4252_v16 = vpop.permute.xlu1 %4251  ;;  %v4257_v21 = vpop.permute.xlu0 %4256  ;;  %v3280_v1 = vsel %vm685_vm2, %v4244_v5, %v5652_v57  ;;  %v3317_v19 = vsel %vm576_vm1, %v4249_v47, %v5654_v53 }
 0x783   : > { %v4254_v62 = vunpack.i.h.bf16 %v4252_v16  ;;  %v4253_v14 = vunpack.i.l.bf16 %v4252_v16  ;;  %v4259_v8 = vunpack.i.h.bf16 %v4257_v21  ;;  %v4258_v41 = vunpack.i.l.bf16 %v4257_v21 }
 0x784   : > { %3438 = vmatpush1.bf16.msra.mxu0 %v3420_v22  ;;  %v3423_v63 = vpack.c.bf16 %v3317_v19, %v3280_v1 }
 0x785   : > { %v3352_v17 = vsel %vm467_vm0, %v4253_v14, %v4254_v62  ;;  %v3351_v35 = vsel %vm467_vm0, %v4258_v41, %v4253_v14  ;;  %v3353_v30 = vsel %vm467_vm0, %v4254_v62, %v4259_v8 }
 0x786   : > { %v3681_v51 = vpack.c.bf16 %v5842_v40, %v3352_v17  ;;  %v3684_v57 = vpack.c.bf16 %v5842_v40, %v3351_v35  ;;  %3478 = vmatprep.subr.bf16.mxu1 %v3423_v63  ;;  %v3350_v27 = vpop.permute.xlu1 %3349  ;;  %v3690_v52 = vpack.c.bf16 %v5842_v40, %v3353_v30 }
 0x787   : > { %3479 = vmatpush1.bf16.msra.mxu1 %v3422_v50  ;;  %v3354_v53 = vsel %vm467_vm0, %v4259_v8, %v3350_v27 }
 0x788   : > { %v3687_v4 = vpack.c.bf16 %v5842_v40, %v3354_v53  ;;  %3682 = vmatprep.subr.msk.bf16.mxu0 %vm5142_vm12, %v3681_v51 }
 0x789   : > { %3685 = vmatpush1.bf16.msk.msra.mxu0 %vm5142_vm12, %v3684_v57 }
 0x78a   : > { %3688 = vmatprep.subr.msk.bf16.mxu1 %vm5142_vm12, %v3687_v4 }
 0x78b   : > { %3691 = vmatpush1.bf16.msk.msra.mxu1 %vm5142_vm12, %v3690_v52 }
 0x78c   : > { %3639 = vmatmul.mubr.msk.bf16.vlgmr.msra.gmra.mrb[16].mxu0 %vm1903_vm13, %v3367_v9 }
 0x78e   : > { %3640 = vmatmul.mubr.msk.bf16.vlgmr.msra.gmra.mrb[16].mxu1 %vm1903_vm13, %v3367_v9 }
 0x85f   : > { %v3465_v40 = vpop.f32.mrb[16].mxu0 }
 0x860   : > { %v3513_v59 = vadd.f32 %v5875_v39, %v3465_v40  ;;  %v3467_v25 = vpop.f32.mrb[17].mxu0 }
 0x861   : > { %v3514_v28 = vadd.f32 %v5876_v45, %v3467_v25  ;;  %v3469_v26 = vpop.f32.mrb[18].mxu0  ;;  %v3506_v10 = vpop.f32.mrb[16].mxu1 }
 0x862   : > { %3517 = vst [vmem:[%s389_s18] sm:$0xff] %v3513_v59  ;;  %v3515_v54 = vadd.f32 %v5877_v34, %v3506_v10  ;;  %v3470_v32 = vpop.f32.mrb[19].mxu0  ;;  %v3508_v15 = vpop.f32.mrb[17].mxu1 }
 0x863   : > { %3518 = vst [vmem:[%s389_s18 + $0x8] sm:$0xff] %v3514_v28  ;;  %v3516_v11 = vadd.f32 %v5878_v0, %v3508_v15  ;;  %v3510_v33 = vpop.f32.mrb[18].mxu1 }
 0x864   : > { %3519 = vst [vmem:[%s389_s18 + $0x10] sm:$0xff] %v3515_v54  ;;  %v3511_v23 = vpop.f32.mrb[19].mxu1 }
 0x865   : > { %3520 = vst [vmem:[%s389_s18 + $0x18] sm:$0xff] %v3516_v11 }
 0x866 PF: > { %p16_p10 = scmp.ge.s32.totalorder %s4377_s13, 4   ;;  %s5879_s30 = smov %s4292_s10 }
 0x867   : > { %s5880_s10 = smov %s4386_s16  ;;  %s5881_s11 = smov %s4377_s13 }
 0x868   :  { %18 = sbr.rel (!%p16_p10) target bundleno = 2 (0x2), region = 125 }

</bundles_post_ra>
